<compile_context>
chip_gen: v5e
topology: v5e:2x2
jax: 0.10.0
libtpu: 0.0.40
codegen_flags: <defaults>
</compile_context>

<pallas_src>
import math

import jax
import jax.numpy as jnp
from jax import lax
from jax.experimental import pallas as pl
from jax.experimental.pallas import tpu as pltpu

LN_EPS = 1e-5                      # PyTorch nn.LayerNorm default eps
_INV_SQRT2 = 1.0 / math.sqrt(2.0)  # exact (erf) GELU, matching F.gelu default


def _cdiv(a, b):
    return -(-a // b)


def _round_up(x, m):
    return (x + m - 1) // m * m


def _gelu_exact(x):
    # F.gelu default (erf-based); kept exact to match the PyTorch module.
    return 0.5 * x * (1.0 + lax.erf(x * jnp.float32(_INV_SQRT2)))


def _layernorm_fused(x, gamma, beta):
    # Single-pass statistics: var = E[x^2] - E[x]^2 (one fewer full VPU pass
    # than the two-pass centered form; clamp protects against cancellation).
    inv_n = jnp.float32(1.0 / x.shape[-1])
    mu = jnp.sum(x, axis=-1, keepdims=True) * inv_n
    ex2 = jnp.sum(x * x, axis=-1, keepdims=True) * inv_n
    var = jnp.maximum(ex2 - mu * mu, 0.0)
    inv = lax.rsqrt(var + jnp.float32(LN_EPS))
    return (x - mu) * inv * gamma + beta


def _mm(h, w_ref, b_ref):
    # bf16 x bf16 MXU matmul with f32 accumulation, f32 bias add.
    return (
        jnp.dot(h.astype(jnp.bfloat16), w_ref[...], preferred_element_type=jnp.float32)
        + b_ref[...]
    )


def generator_kernel(
    x_ref,
    w1_ref, b1_ref, g1_ref, be1_ref,
    w2_ref, b2_ref, g2_ref, be2_ref,
    w3_ref, b3_ref, g3_ref, be3_ref,
    w4_ref, b4_ref,
    w5_ref, b5_ref,
    o_ref,
    h_ref,
):
    # Layers 1-4 run only on the first fc5-N tile of each batch tile; the
    # bf16 activation is cached in VMEM and reused for the remaining N tiles.
    @pl.when(pl.program_id(1) == 0)
    def _():
        h = x_ref[...]
        h = _gelu_exact(_layernorm_fused(_mm(h, w1_ref, b1_ref), g1_ref[...], be1_ref[...]))
        h = _gelu_exact(_layernorm_fused(_mm(h, w2_ref, b2_ref), g2_ref[...], be2_ref[...]))
        h = _gelu_exact(_layernorm_fused(_mm(h, w3_ref, b3_ref), g3_ref[...], be3_ref[...]))
        h = _mm(h, w4_ref, b4_ref)
        h = jnp.where(h > 0, h, jnp.float32(0.1) * h)   # LeakyReLU(0.1)
        h_ref[...] = h.astype(jnp.bfloat16)

    # fc5 on the current lane-dense N tile (unmasked 128-multiple stores).
    o_ref[...] = (
        jnp.dot(h_ref[...], w5_ref[...], preferred_element_type=jnp.float32)
        + b5_ref[...]
    )


def _choose_tn(n_pad, split_threshold, force_tn):
    """fc5 output-tile width: full width for small n_pad, else a 128-multiple
    divisor of n_pad (W5/b5/out are the only arrays tiled along N)."""
    if force_tn is not None:
        tn = _round_up(int(force_tn), 128)
    elif n_pad <= split_threshold:
        return n_pad
    else:
        tn = 512
    tn = max(128, min(tn, n_pad))
    while n_pad % tn != 0:          # n_pad is a multiple of 128, so this ends
        tn -= 128
    return tn


def _vmem_limit_bytes(params, tm, d_in, tn, n_tiles, hidden):
    # Single-buffered resident params (weights bf16, biases / LN params f32).
    resident = sum(int(p.size) * p.dtype.itemsize for p in params[:14])
    w5_bufs = 1 if n_tiles == 1 else 2          # W5/b5 double-buffer when tiled
    resident += w5_bufs * (hidden * tn * 2 + tn * 4)
    io = 2 * tm * d_in * 4 + 2 * tm * tn * 4    # double-buffered x / out tiles
    scratch = tm * hidden * 2                   # bf16 activation cache
    act = 8 * tm * hidden * 4                   # generous f32 temporaries
    total = resident + io + scratch + act
    # 2x margin, floored at 24 MiB, capped at 48 MiB (safe on v7x's 64 MiB
    # physical VMEM; v5e/v6e have 128 MiB so the cap is conservative there).
    return int(min(max(2 * total, 24 << 20), 48 << 20))


def generator_forward(x, params, num_points, *, tm_max=256, n_split_threshold=4096,
                      force_tn=None):
    """x: (B, latent_size + guided_latent_size) f32 -> (B, num_points, 3) f32."""
    B, d_in = x.shape
    n_out = num_points * 3
    n_pad = params[-2].shape[1]       # padded fc5 output width (multiple of 128)
    hidden = params[-2].shape[0]      # 1024

    # Batch tiling: minimize padding, sublane-aligned (8), capped at tm_max
    # (256 matches the v6e/v7x 256x256 MXU).
    n_batch_tiles = max(1, _cdiv(B, tm_max))
    tm = _round_up(_cdiv(B, n_batch_tiles), 8)
    padded_b = _round_up(B, tm)
    if padded_b != B:
        x = jnp.pad(x, ((0, padded_b - B), (0, 0)))
    n_batch_tiles = padded_b // tm

    # fc5 output tiling (layers 1-4 are never tiled/recomputed along N).
    tn = _choose_tn(n_pad, n_split_threshold, force_tn)
    n_tiles = n_pad // tn
    grid = (n_batch_tiles, n_tiles)

    resident = pl.Buffered(1)                      # never-changing blocks
    w5_mode = pl.Buffered(1) if n_tiles == 1 else None

    def _const(i, j):
        return (0, 0)

    weight_specs = [
        pl.BlockSpec(p.shape, _const, pipeline_mode=resident) for p in params[:14]
    ]
    w5_spec = pl.BlockSpec((hidden, tn), lambda i, j: (0, j), pipeline_mode=w5_mode)
    b5_spec = pl.BlockSpec((1, tn), lambda i, j: (0, j), pipeline_mode=w5_mode)

    # With <=2 batch tiles, megacore-splitting the batch axis on v7x just
    # duplicates the weight DMA for negligible compute win -> keep it serial.
    batch_sem = "parallel" if n_batch_tiles > 2 else "arbitrary"

    out = pl.pallas_call(
        generator_kernel,
        out_shape=jax.ShapeDtypeStruct((padded_b, n_pad), jnp.float32),
        grid=grid,
        in_specs=[pl.BlockSpec((tm, d_in), lambda i, j: (i, 0))]
        + weight_specs
        + [w5_spec, b5_spec],
        out_specs=pl.BlockSpec((tm, tn), lambda i, j: (i, j)),
        scratch_shapes=[pltpu.VMEM((tm, hidden), jnp.bfloat16)],
        compiler_params=pltpu.CompilerParams(
            dimension_semantics=(batch_sem, "arbitrary"),
            vmem_limit_bytes=_vmem_limit_bytes(params, tm, d_in, tn, n_tiles, hidden),
        ),
    )(x, *params)

    return out[:B, :n_out].reshape(B, num_points, 3)


def init_params(key, latent_size, num_points, guided_latent_size=0):
    """PyTorch-style Linear init. Weights stored (in, out) in bf16; fc5 padded
    to a lane-dense (multiple of 128) output width with zero columns."""
    d_in = latent_size + guided_latent_size
    n_out = num_points * 3
    n_pad = _round_up(n_out, 128)

    dims_in = [d_in, 256, 512, 1024, 1024]
    dims_out = [256, 512, 1024, 1024, n_out]
    keys = jax.random.split(key, 10)
    ws, bs = [], []
    for i, (din, dout) in enumerate(zip(dims_in, dims_out)):
        bound = 1.0 / math.sqrt(din)
        w = jax.random.uniform(keys[2 * i], (din, dout), jnp.float32, -bound, bound)
        b = jax.random.uniform(keys[2 * i + 1], (1, dout), jnp.float32, -bound, bound)
        ws.append(w)
        bs.append(b)

    # Pad fc5 columns to lane-dense width (zero columns are sliced off later).
    ws[4] = jnp.pad(ws[4], ((0, 0), (0, n_pad - n_out)))
    bs[4] = jnp.pad(bs[4], ((0, 0), (0, n_pad - n_out)))

    # Weights in bf16 (MXU inputs); biases / LN affine params stay f32.
    ws = [w.astype(jnp.bfloat16) for w in ws]

    g1, be1 = jnp.ones((1, 256), jnp.float32), jnp.zeros((1, 256), jnp.float32)
    g2, be2 = jnp.ones((1, 512), jnp.float32), jnp.zeros((1, 512), jnp.float32)
    g3, be3 = jnp.ones((1, 1024), jnp.float32), jnp.zeros((1, 1024), jnp.float32)

    params = (
        ws[0], bs[0], g1, be1,
        ws[1], bs[1], g2, be2,
        ws[2], bs[2], g3, be3,
        ws[3], bs[3],
        ws[4], bs[4],
    )
    return params


def reference_forward(x, params, num_points):
    """Pure-JAX reference with the same mixed-precision recipe (two-pass LN)."""
    (w1, b1, g1, be1, w2, b2, g2, be2, w3, b3, g3, be3, w4, b4, w5, b5) = params

    def mm(h, w, b):
        return jnp.dot(h.astype(jnp.bfloat16), w, preferred_element_type=jnp.float32) + b

    def ln(h, g, b):
        mu = jnp.mean(h, axis=-1, keepdims=True)
        var = jnp.mean((h - mu) ** 2, axis=-1, keepdims=True)
        return (h - mu) / jnp.sqrt(var + LN_EPS) * g + b

    gelu = lambda h: 0.5 * h * (1.0 + lax.erf(h / jnp.sqrt(2.0)))

    h = gelu(ln(mm(x, w1, b1), g1, be1))
    h = gelu(ln(mm(h, w2, b2), g2, be2))
    h = gelu(ln(mm(h, w3, b3), g3, be3))
    h = mm(h, w4, b4)
    h = jnp.where(h > 0, h, 0.1 * h)
    h = mm(h, w5, b5)
    return h[:, : num_points * 3].reshape(-1, num_points, 3)


if __name__ == "__main__":
    # Small shapes consistent with the module's forward.
    batch = 2
    latent_size = 32
    guided_latent_size = 0
    num_points = 64

    key = jax.random.PRNGKey(0)
    k_x, k_p, k_x2 = jax.random.split(key, 3)
    x = jax.random.normal(k_x, (batch, latent_size + guided_latent_size), jnp.float32)
    params = init_params(k_p, latent_size, num_points, guided_latent_size)

    # Default path: single fc5 N tile, single batch tile.
    out = jax.block_until_ready(generator_forward(x, params, num_points))
    ref = reference_forward(x, params, num_points)
    assert out.shape == (batch, num_points, 3)
    assert jnp.allclose(out, ref, rtol=2e-3, atol=2e-3), "mismatch (default path)"

    # Forced fc5 N-split + multiple batch tiles (exercises the cached-h path).
    x2 = jax.random.normal(k_x2, (10, latent_size + guided_latent_size), jnp.float32)
    out2 = jax.block_until_ready(
        generator_forward(x2, params, num_points, tm_max=8, force_tn=128)
    )
    ref2 = reference_forward(x2, params, num_points)
    assert out2.shape == (10, num_points, 3)
    assert jnp.allclose(out2, ref2, rtol=2e-3, atol=2e-3), "mismatch (split path)"

    print("KERNEL_OK")
</pallas_src>

<mosaic_0001>
module attributes {stable_mosaic.version = 11 : i64} {
  func.func @generator_kernel(%arg0: i32, %arg1: i32, %arg2: memref<8x32xf32, #tpu.memory_space<vmem>>, %arg3: memref<32x256xbf16, #tpu.memory_space<vmem>>, %arg4: memref<1x256xf32, #tpu.memory_space<vmem>>, %arg5: memref<1x256xf32, #tpu.memory_space<vmem>>, %arg6: memref<1x256xf32, #tpu.memory_space<vmem>>, %arg7: memref<256x512xbf16, #tpu.memory_space<vmem>>, %arg8: memref<1x512xf32, #tpu.memory_space<vmem>>, %arg9: memref<1x512xf32, #tpu.memory_space<vmem>>, %arg10: memref<1x512xf32, #tpu.memory_space<vmem>>, %arg11: memref<512x1024xbf16, #tpu.memory_space<vmem>>, %arg12: memref<1x1024xf32, #tpu.memory_space<vmem>>, %arg13: memref<1x1024xf32, #tpu.memory_space<vmem>>, %arg14: memref<1x1024xf32, #tpu.memory_space<vmem>>, %arg15: memref<1024x1024xbf16, #tpu.memory_space<vmem>>, %arg16: memref<1x1024xf32, #tpu.memory_space<vmem>>, %arg17: memref<1024x256xbf16, #tpu.memory_space<vmem>>, %arg18: memref<1x256xf32, #tpu.memory_space<vmem>>, %arg19: memref<8x256xf32, #tpu.memory_space<vmem>>, %arg20: memref<8x1024xbf16, #tpu.memory_space<vmem>>) attributes {dimension_semantics = [#tpu.dimension_semantics<arbitrary>, #tpu.dimension_semantics<arbitrary>], iteration_bounds = array<i64: 1, 1>, scalar_prefetch = 0 : i64, scratch_operands = 1 : i64, tpu.core_type = #tpu.core_type<tc>, window_params = [{transform_indices = @transform_0, window_bounds = array<i64: 8, 32>}, {pipeline_mode = #tpu.pipeline_mode<synchronous>, transform_indices = @transform_1, window_bounds = array<i64: 32, 256>}, {pipeline_mode = #tpu.pipeline_mode<synchronous>, transform_indices = @transform_2, window_bounds = array<i64: 1, 256>}, {pipeline_mode = #tpu.pipeline_mode<synchronous>, transform_indices = @transform_3, window_bounds = array<i64: 1, 256>}, {pipeline_mode = #tpu.pipeline_mode<synchronous>, transform_indices = @transform_4, window_bounds = array<i64: 1, 256>}, {pipeline_mode = #tpu.pipeline_mode<synchronous>, transform_indices = @transform_5, window_bounds = array<i64: 256, 512>}, {pipeline_mode = #tpu.pipeline_mode<synchronous>, transform_indices = @transform_6, window_bounds = array<i64: 1, 512>}, {pipeline_mode = #tpu.pipeline_mode<synchronous>, transform_indices = @transform_7, window_bounds = array<i64: 1, 512>}, {pipeline_mode = #tpu.pipeline_mode<synchronous>, transform_indices = @transform_8, window_bounds = array<i64: 1, 512>}, {pipeline_mode = #tpu.pipeline_mode<synchronous>, transform_indices = @transform_9, window_bounds = array<i64: 512, 1024>}, {pipeline_mode = #tpu.pipeline_mode<synchronous>, transform_indices = @transform_10, window_bounds = array<i64: 1, 1024>}, {pipeline_mode = #tpu.pipeline_mode<synchronous>, transform_indices = @transform_11, window_bounds = array<i64: 1, 1024>}, {pipeline_mode = #tpu.pipeline_mode<synchronous>, transform_indices = @transform_12, window_bounds = array<i64: 1, 1024>}, {pipeline_mode = #tpu.pipeline_mode<synchronous>, transform_indices = @transform_13, window_bounds = array<i64: 1024, 1024>}, {pipeline_mode = #tpu.pipeline_mode<synchronous>, transform_indices = @transform_14, window_bounds = array<i64: 1, 1024>}, {pipeline_mode = #tpu.pipeline_mode<synchronous>, transform_indices = @transform_15, window_bounds = array<i64: 1024, 256>}, {pipeline_mode = #tpu.pipeline_mode<synchronous>, transform_indices = @transform_16, window_bounds = array<i64: 1, 256>}, {transform_indices = @transform_17, window_bounds = array<i64: 8, 256>}]} {
    %c0_i32 = arith.constant 0 : i32
    %0 = arith.cmpi eq, %arg1, %c0_i32 : i32
    %1 = arith.extui %0 : i1 to i32
    %c0_i32_0 = arith.constant 0 : i32
    %2 = arith.cmpi ne, %1, %c0_i32_0 : i32
    scf.if %2 {
      %c0_8 = arith.constant 0 : index
      %c0_9 = arith.constant 0 : index
      %10 = vector.load %arg2[%c0_8, %c0_9] : memref<8x32xf32, #tpu.memory_space<vmem>>, vector<8x32xf32>
      %11 = arith.truncf %10 : vector<8x32xf32> to vector<8x32xbf16>
      %c0_10 = arith.constant 0 : index
      %c0_11 = arith.constant 0 : index
      %12 = vector.load %arg3[%c0_10, %c0_11] : memref<32x256xbf16, #tpu.memory_space<vmem>>, vector<32x256xbf16>
      %cst_12 = arith.constant dense<0.000000e+00> : vector<8x256xf32>
      %13 = tpu.matmul %11, %12, %cst_12 {dimension_numbers = #tpu.dot_dimension_numbers<[1], [0], [0], [1], [0, 0, 1, 1], [], []>} : vector<8x32xbf16>, vector<32x256xbf16>, vector<8x256xf32> -> vector<8x256xf32>
      %c0_13 = arith.constant 0 : index
      %c0_14 = arith.constant 0 : index
      %14 = vector.load %arg4[%c0_13, %c0_14] : memref<1x256xf32, #tpu.memory_space<vmem>>, vector<1x256xf32>
      %15 = vector.broadcast %14 : vector<1x256xf32> to vector<8x256xf32>
      %16 = arith.addf %13, %15 : vector<8x256xf32>
      %c0_15 = arith.constant 0 : index
      %c0_16 = arith.constant 0 : index
      %17 = vector.load %arg5[%c0_15, %c0_16] : memref<1x256xf32, #tpu.memory_space<vmem>>, vector<1x256xf32>
      %c0_17 = arith.constant 0 : index
      %c0_18 = arith.constant 0 : index
      %18 = vector.load %arg6[%c0_17, %c0_18] : memref<1x256xf32, #tpu.memory_space<vmem>>, vector<1x256xf32>
      %cst_19 = arith.constant dense<0.000000e+00> : vector<8xf32>
      %19 = vector.multi_reduction <add>, %16, %cst_19 [1] : vector<8x256xf32> to vector<8xf32>
      %20 = vector.shape_cast %19 : vector<8xf32> to vector<8x1xf32>
      %cst_20 = arith.constant 3.906250e-03 : f32
      %21 = vector.broadcast %cst_20 : f32 to vector<8x1xf32>
      %22 = arith.mulf %20, %21 : vector<8x1xf32>
      %23 = arith.mulf %16, %16 : vector<8x256xf32>
      %cst_21 = arith.constant dense<0.000000e+00> : vector<8xf32>
      %24 = vector.multi_reduction <add>, %23, %cst_21 [1] : vector<8x256xf32> to vector<8xf32>
      %25 = vector.shape_cast %24 : vector<8xf32> to vector<8x1xf32>
      %cst_22 = arith.constant 3.906250e-03 : f32
      %26 = vector.broadcast %cst_22 : f32 to vector<8x1xf32>
      %27 = arith.mulf %25, %26 : vector<8x1xf32>
      %28 = arith.mulf %22, %22 : vector<8x1xf32>
      %29 = arith.subf %27, %28 : vector<8x1xf32>
      %cst_23 = arith.constant 0.000000e+00 : f32
      %30 = vector.broadcast %cst_23 : f32 to vector<8x1xf32>
      %31 = arith.maximumf %29, %30 : vector<8x1xf32>
      %cst_24 = arith.constant 9.99999974E-6 : f32
      %32 = vector.broadcast %cst_24 : f32 to vector<8x1xf32>
      %33 = arith.addf %31, %32 : vector<8x1xf32>
      %34 = math.rsqrt %33 : vector<8x1xf32>
      %35 = vector.broadcast %22 : vector<8x1xf32> to vector<8x256xf32>
      %36 = arith.subf %16, %35 : vector<8x256xf32>
      %37 = vector.broadcast %34 : vector<8x1xf32> to vector<8x256xf32>
      %38 = arith.mulf %36, %37 : vector<8x256xf32>
      %39 = vector.broadcast %17 : vector<1x256xf32> to vector<8x256xf32>
      %40 = arith.mulf %38, %39 : vector<8x256xf32>
      %41 = vector.broadcast %18 : vector<1x256xf32> to vector<8x256xf32>
      %42 = arith.addf %40, %41 : vector<8x256xf32>
      %cst_25 = arith.constant 5.000000e-01 : f32
      %43 = vector.broadcast %cst_25 : f32 to vector<8x256xf32>
      %44 = arith.mulf %43, %42 : vector<8x256xf32>
      %cst_26 = arith.constant 0.707106769 : f32
      %45 = vector.broadcast %cst_26 : f32 to vector<8x256xf32>
      %46 = arith.mulf %42, %45 : vector<8x256xf32>
      %47 = math.erf %46 : vector<8x256xf32>
      %cst_27 = arith.constant 1.000000e+00 : f32
      %48 = vector.broadcast %cst_27 : f32 to vector<8x256xf32>
      %49 = arith.addf %48, %47 : vector<8x256xf32>
      %50 = arith.mulf %44, %49 : vector<8x256xf32>
      %51 = arith.truncf %50 : vector<8x256xf32> to vector<8x256xbf16>
      %c0_28 = arith.constant 0 : index
      %c0_29 = arith.constant 0 : index
      %52 = vector.load %arg7[%c0_28, %c0_29] : memref<256x512xbf16, #tpu.memory_space<vmem>>, vector<256x512xbf16>
      %cst_30 = arith.constant dense<0.000000e+00> : vector<8x512xf32>
      %53 = tpu.matmul %51, %52, %cst_30 {dimension_numbers = #tpu.dot_dimension_numbers<[1], [0], [0], [1], [0, 0, 1, 1], [], []>} : vector<8x256xbf16>, vector<256x512xbf16>, vector<8x512xf32> -> vector<8x512xf32>
      %c0_31 = arith.constant 0 : index
      %c0_32 = arith.constant 0 : index
      %54 = vector.load %arg8[%c0_31, %c0_32] : memref<1x512xf32, #tpu.memory_space<vmem>>, vector<1x512xf32>
      %55 = vector.broadcast %54 : vector<1x512xf32> to vector<8x512xf32>
      %56 = arith.addf %53, %55 : vector<8x512xf32>
      %c0_33 = arith.constant 0 : index
      %c0_34 = arith.constant 0 : index
      %57 = vector.load %arg9[%c0_33, %c0_34] : memref<1x512xf32, #tpu.memory_space<vmem>>, vector<1x512xf32>
      %c0_35 = arith.constant 0 : index
      %c0_36 = arith.constant 0 : index
      %58 = vector.load %arg10[%c0_35, %c0_36] : memref<1x512xf32, #tpu.memory_space<vmem>>, vector<1x512xf32>
      %cst_37 = arith.constant dense<0.000000e+00> : vector<8xf32>
      %59 = vector.multi_reduction <add>, %56, %cst_37 [1] : vector<8x512xf32> to vector<8xf32>
      %60 = vector.shape_cast %59 : vector<8xf32> to vector<8x1xf32>
      %cst_38 = arith.constant 0.001953125 : f32
      %61 = vector.broadcast %cst_38 : f32 to vector<8x1xf32>
      %62 = arith.mulf %60, %61 : vector<8x1xf32>
      %63 = arith.mulf %56, %56 : vector<8x512xf32>
      %cst_39 = arith.constant dense<0.000000e+00> : vector<8xf32>
      %64 = vector.multi_reduction <add>, %63, %cst_39 [1] : vector<8x512xf32> to vector<8xf32>
      %65 = vector.shape_cast %64 : vector<8xf32> to vector<8x1xf32>
      %cst_40 = arith.constant 0.001953125 : f32
      %66 = vector.broadcast %cst_40 : f32 to vector<8x1xf32>
      %67 = arith.mulf %65, %66 : vector<8x1xf32>
      %68 = arith.mulf %62, %62 : vector<8x1xf32>
      %69 = arith.subf %67, %68 : vector<8x1xf32>
      %cst_41 = arith.constant 0.000000e+00 : f32
      %70 = vector.broadcast %cst_41 : f32 to vector<8x1xf32>
      %71 = arith.maximumf %69, %70 : vector<8x1xf32>
      %cst_42 = arith.constant 9.99999974E-6 : f32
      %72 = vector.broadcast %cst_42 : f32 to vector<8x1xf32>
      %73 = arith.addf %71, %72 : vector<8x1xf32>
      %74 = math.rsqrt %73 : vector<8x1xf32>
      %75 = vector.broadcast %62 : vector<8x1xf32> to vector<8x512xf32>
      %76 = arith.subf %56, %75 : vector<8x512xf32>
      %77 = vector.broadcast %74 : vector<8x1xf32> to vector<8x512xf32>
      %78 = arith.mulf %76, %77 : vector<8x512xf32>
      %79 = vector.broadcast %57 : vector<1x512xf32> to vector<8x512xf32>
      %80 = arith.mulf %78, %79 : vector<8x512xf32>
      %81 = vector.broadcast %58 : vector<1x512xf32> to vector<8x512xf32>
      %82 = arith.addf %80, %81 : vector<8x512xf32>
      %cst_43 = arith.constant 5.000000e-01 : f32
      %83 = vector.broadcast %cst_43 : f32 to vector<8x512xf32>
      %84 = arith.mulf %83, %82 : vector<8x512xf32>
      %cst_44 = arith.constant 0.707106769 : f32
      %85 = vector.broadcast %cst_44 : f32 to vector<8x512xf32>
      %86 = arith.mulf %82, %85 : vector<8x512xf32>
      %87 = math.erf %86 : vector<8x512xf32>
      %cst_45 = arith.constant 1.000000e+00 : f32
      %88 = vector.broadcast %cst_45 : f32 to vector<8x512xf32>
      %89 = arith.addf %88, %87 : vector<8x512xf32>
      %90 = arith.mulf %84, %89 : vector<8x512xf32>
      %91 = arith.truncf %90 : vector<8x512xf32> to vector<8x512xbf16>
      %c0_46 = arith.constant 0 : index
      %c0_47 = arith.constant 0 : index
      %92 = vector.load %arg11[%c0_46, %c0_47] : memref<512x1024xbf16, #tpu.memory_space<vmem>>, vector<512x1024xbf16>
      %cst_48 = arith.constant dense<0.000000e+00> : vector<8x1024xf32>
      %93 = tpu.matmul %91, %92, %cst_48 {dimension_numbers = #tpu.dot_dimension_numbers<[1], [0], [0], [1], [0, 0, 1, 1], [], []>} : vector<8x512xbf16>, vector<512x1024xbf16>, vector<8x1024xf32> -> vector<8x1024xf32>
      %c0_49 = arith.constant 0 : index
      %c0_50 = arith.constant 0 : index
      %94 = vector.load %arg12[%c0_49, %c0_50] : memref<1x1024xf32, #tpu.memory_space<vmem>>, vector<1x1024xf32>
      %95 = vector.broadcast %94 : vector<1x1024xf32> to vector<8x1024xf32>
      %96 = arith.addf %93, %95 : vector<8x1024xf32>
      %c0_51 = arith.constant 0 : index
      %c0_52 = arith.constant 0 : index
      %97 = vector.load %arg13[%c0_51, %c0_52] : memref<1x1024xf32, #tpu.memory_space<vmem>>, vector<1x1024xf32>
      %c0_53 = arith.constant 0 : index
      %c0_54 = arith.constant 0 : index
      %98 = vector.load %arg14[%c0_53, %c0_54] : memref<1x1024xf32, #tpu.memory_space<vmem>>, vector<1x1024xf32>
      %cst_55 = arith.constant dense<0.000000e+00> : vector<8xf32>
      %99 = vector.multi_reduction <add>, %96, %cst_55 [1] : vector<8x1024xf32> to vector<8xf32>
      %100 = vector.shape_cast %99 : vector<8xf32> to vector<8x1xf32>
      %cst_56 = arith.constant 9.765625E-4 : f32
      %101 = vector.broadcast %cst_56 : f32 to vector<8x1xf32>
      %102 = arith.mulf %100, %101 : vector<8x1xf32>
      %103 = arith.mulf %96, %96 : vector<8x1024xf32>
      %cst_57 = arith.constant dense<0.000000e+00> : vector<8xf32>
      %104 = vector.multi_reduction <add>, %103, %cst_57 [1] : vector<8x1024xf32> to vector<8xf32>
      %105 = vector.shape_cast %104 : vector<8xf32> to vector<8x1xf32>
      %cst_58 = arith.constant 9.765625E-4 : f32
      %106 = vector.broadcast %cst_58 : f32 to vector<8x1xf32>
      %107 = arith.mulf %105, %106 : vector<8x1xf32>
      %108 = arith.mulf %102, %102 : vector<8x1xf32>
      %109 = arith.subf %107, %108 : vector<8x1xf32>
      %cst_59 = arith.constant 0.000000e+00 : f32
      %110 = vector.broadcast %cst_59 : f32 to vector<8x1xf32>
      %111 = arith.maximumf %109, %110 : vector<8x1xf32>
      %cst_60 = arith.constant 9.99999974E-6 : f32
      %112 = vector.broadcast %cst_60 : f32 to vector<8x1xf32>
      %113 = arith.addf %111, %112 : vector<8x1xf32>
      %114 = math.rsqrt %113 : vector<8x1xf32>
      %115 = vector.broadcast %102 : vector<8x1xf32> to vector<8x1024xf32>
      %116 = arith.subf %96, %115 : vector<8x1024xf32>
      %117 = vector.broadcast %114 : vector<8x1xf32> to vector<8x1024xf32>
      %118 = arith.mulf %116, %117 : vector<8x1024xf32>
      %119 = vector.broadcast %97 : vector<1x1024xf32> to vector<8x1024xf32>
      %120 = arith.mulf %118, %119 : vector<8x1024xf32>
      %121 = vector.broadcast %98 : vector<1x1024xf32> to vector<8x1024xf32>
      %122 = arith.addf %120, %121 : vector<8x1024xf32>
      %cst_61 = arith.constant 5.000000e-01 : f32
      %123 = vector.broadcast %cst_61 : f32 to vector<8x1024xf32>
      %124 = arith.mulf %123, %122 : vector<8x1024xf32>
      %cst_62 = arith.constant 0.707106769 : f32
      %125 = vector.broadcast %cst_62 : f32 to vector<8x1024xf32>
      %126 = arith.mulf %122, %125 : vector<8x1024xf32>
      %127 = math.erf %126 : vector<8x1024xf32>
      %cst_63 = arith.constant 1.000000e+00 : f32
      %128 = vector.broadcast %cst_63 : f32 to vector<8x1024xf32>
      %129 = arith.addf %128, %127 : vector<8x1024xf32>
      %130 = arith.mulf %124, %129 : vector<8x1024xf32>
      %131 = arith.truncf %130 : vector<8x1024xf32> to vector<8x1024xbf16>
      %c0_64 = arith.constant 0 : index
      %c0_65 = arith.constant 0 : index
      %132 = vector.load %arg15[%c0_64, %c0_65] : memref<1024x1024xbf16, #tpu.memory_space<vmem>>, vector<1024x1024xbf16>
      %cst_66 = arith.constant dense<0.000000e+00> : vector<8x1024xf32>
      %133 = tpu.matmul %131, %132, %cst_66 {dimension_numbers = #tpu.dot_dimension_numbers<[1], [0], [0], [1], [0, 0, 1, 1], [], []>} : vector<8x1024xbf16>, vector<1024x1024xbf16>, vector<8x1024xf32> -> vector<8x1024xf32>
      %c0_67 = arith.constant 0 : index
      %c0_68 = arith.constant 0 : index
      %134 = vector.load %arg16[%c0_67, %c0_68] : memref<1x1024xf32, #tpu.memory_space<vmem>>, vector<1x1024xf32>
      %135 = vector.broadcast %134 : vector<1x1024xf32> to vector<8x1024xf32>
      %136 = arith.addf %133, %135 : vector<8x1024xf32>
      %cst_69 = arith.constant 0.000000e+00 : f32
      %137 = vector.broadcast %cst_69 : f32 to vector<8x1024xf32>
      %138 = arith.cmpf ogt, %136, %137 : vector<8x1024xf32>
      %cst_70 = arith.constant 1.000000e-01 : f32
      %139 = vector.broadcast %cst_70 : f32 to vector<8x1024xf32>
      %140 = arith.mulf %139, %136 : vector<8x1024xf32>
      %141 = arith.select %138, %136, %140 : vector<8x1024xi1>, vector<8x1024xf32>
      %142 = arith.truncf %141 : vector<8x1024xf32> to vector<8x1024xbf16>
      %c0_71 = arith.constant 0 : index
      %c0_72 = arith.constant 0 : index
      %143 = vector.load %arg20[%c0_71, %c0_72] : memref<8x1024xbf16, #tpu.memory_space<vmem>>, vector<8x1024xbf16>
      tpu.vector_store %arg20[%c0_71, %c0_72], %142 {strides = array<i32>} : memref<8x1024xbf16, #tpu.memory_space<vmem>>, vector<8x1024xbf16>,
    } else {
    }
    %c0 = arith.constant 0 : index
    %c0_1 = arith.constant 0 : index
    %3 = vector.load %arg20[%c0, %c0_1] : memref<8x1024xbf16, #tpu.memory_space<vmem>>, vector<8x1024xbf16>
    %c0_2 = arith.constant 0 : index
    %c0_3 = arith.constant 0 : index
    %4 = vector.load %arg17[%c0_2, %c0_3] : memref<1024x256xbf16, #tpu.memory_space<vmem>>, vector<1024x256xbf16>
    %cst = arith.constant dense<0.000000e+00> : vector<8x256xf32>
    %5 = tpu.matmul %3, %4, %cst {dimension_numbers = #tpu.dot_dimension_numbers<[1], [0], [0], [1], [0, 0, 1, 1], [], []>} : vector<8x1024xbf16>, vector<1024x256xbf16>, vector<8x256xf32> -> vector<8x256xf32>
    %c0_4 = arith.constant 0 : index
    %c0_5 = arith.constant 0 : index
    %6 = vector.load %arg18[%c0_4, %c0_5] : memref<1x256xf32, #tpu.memory_space<vmem>>, vector<1x256xf32>
    %7 = vector.broadcast %6 : vector<1x256xf32> to vector<8x256xf32>
    %8 = arith.addf %5, %7 : vector<8x256xf32>
    %c0_6 = arith.constant 0 : index
    %c0_7 = arith.constant 0 : index
    %9 = vector.load %arg19[%c0_6, %c0_7] : memref<8x256xf32, #tpu.memory_space<vmem>>, vector<8x256xf32>
    tpu.vector_store %arg19[%c0_6, %c0_7], %8 {strides = array<i32>} : memref<8x256xf32, #tpu.memory_space<vmem>>, vector<8x256xf32>,
    return
  }
  func.func @transform_0(%arg0: i32, %arg1: i32) -> (i32, i32) {
    %c0_i32 = arith.constant 0 : i32
    %c0_i32_0 = arith.constant 0 : i32
    return %arg0, %c0_i32 : i32, i32
  }
  func.func @transform_1(%arg0: i32, %arg1: i32) -> (i32, i32) {
    %c0_i32 = arith.constant 0 : i32
    %c0_i32_0 = arith.constant 0 : i32
    %c0_i32_1 = arith.constant 0 : i32
    return %c0_i32, %c0_i32_0 : i32, i32
  }
  func.func @transform_2(%arg0: i32, %arg1: i32) -> (i32, i32) {
    %c0_i32 = arith.constant 0 : i32
    %c0_i32_0 = arith.constant 0 : i32
    %c0_i32_1 = arith.constant 0 : i32
    return %c0_i32, %c0_i32_0 : i32, i32
  }
  func.func @transform_3(%arg0: i32, %arg1: i32) -> (i32, i32) {
    %c0_i32 = arith.constant 0 : i32
    %c0_i32_0 = arith.constant 0 : i32
    %c0_i32_1 = arith.constant 0 : i32
    return %c0_i32, %c0_i32_0 : i32, i32
  }
  func.func @transform_4(%arg0: i32, %arg1: i32) -> (i32, i32) {
    %c0_i32 = arith.constant 0 : i32
    %c0_i32_0 = arith.constant 0 : i32
    %c0_i32_1 = arith.constant 0 : i32
    return %c0_i32, %c0_i32_0 : i32, i32
  }
  func.func @transform_5(%arg0: i32, %arg1: i32) -> (i32, i32) {
    %c0_i32 = arith.constant 0 : i32
    %c0_i32_0 = arith.constant 0 : i32
    %c0_i32_1 = arith.constant 0 : i32
    return %c0_i32, %c0_i32_0 : i32, i32
  }
  func.func @transform_6(%arg0: i32, %arg1: i32) -> (i32, i32) {
    %c0_i32 = arith.constant 0 : i32
    %c0_i32_0 = arith.constant 0 : i32
    %c0_i32_1 = arith.constant 0 : i32
    return %c0_i32, %c0_i32_0 : i32, i32
  }
  func.func @transform_7(%arg0: i32, %arg1: i32) -> (i32, i32) {
    %c0_i32 = arith.constant 0 : i32
    %c0_i32_0 = arith.constant 0 : i32
    %c0_i32_1 = arith.constant 0 : i32
    return %c0_i32, %c0_i32_0 : i32, i32
  }
  func.func @transform_8(%arg0: i32, %arg1: i32) -> (i32, i32) {
    %c0_i32 = arith.constant 0 : i32
    %c0_i32_0 = arith.constant 0 : i32
    %c0_i32_1 = arith.constant 0 : i32
    return %c0_i32, %c0_i32_0 : i32, i32
  }
  func.func @transform_9(%arg0: i32, %arg1: i32) -> (i32, i32) {
    %c0_i32 = arith.constant 0 : i32
    %c0_i32_0 = arith.constant 0 : i32
    %c0_i32_1 = arith.constant 0 : i32
    return %c0_i32, %c0_i32_0 : i32, i32
  }
  func.func @transform_10(%arg0: i32, %arg1: i32) -> (i32, i32) {
    %c0_i32 = arith.constant 0 : i32
    %c0_i32_0 = arith.constant 0 : i32
    %c0_i32_1 = arith.constant 0 : i32
    return %c0_i32, %c0_i32_0 : i32, i32
  }
  func.func @transform_11(%arg0: i32, %arg1: i32) -> (i32, i32) {
    %c0_i32 = arith.constant 0 : i32
    %c0_i32_0 = arith.constant 0 : i32
    %c0_i32_1 = arith.constant 0 : i32
    return %c0_i32, %c0_i32_0 : i32, i32
  }
  func.func @transform_12(%arg0: i32, %arg1: i32) -> (i32, i32) {
    %c0_i32 = arith.constant 0 : i32
    %c0_i32_0 = arith.constant 0 : i32
    %c0_i32_1 = arith.constant 0 : i32
    return %c0_i32, %c0_i32_0 : i32, i32
  }
  func.func @transform_13(%arg0: i32, %arg1: i32) -> (i32, i32) {
    %c0_i32 = arith.constant 0 : i32
    %c0_i32_0 = arith.constant 0 : i32
    %c0_i32_1 = arith.constant 0 : i32
    return %c0_i32, %c0_i32_0 : i32, i32
  }
  func.func @transform_14(%arg0: i32, %arg1: i32) -> (i32, i32) {
    %c0_i32 = arith.constant 0 : i32
    %c0_i32_0 = arith.constant 0 : i32
    %c0_i32_1 = arith.constant 0 : i32
    return %c0_i32, %c0_i32_0 : i32, i32
  }
  func.func @transform_15(%arg0: i32, %arg1: i32) -> (i32, i32) {
    %c0_i32 = arith.constant 0 : i32
    %c0_i32_0 = arith.constant 0 : i32
    return %c0_i32, %arg1 : i32, i32
  }
  func.func @transform_16(%arg0: i32, %arg1: i32) -> (i32, i32) {
    %c0_i32 = arith.constant 0 : i32
    %c0_i32_0 = arith.constant 0 : i32
    return %c0_i32, %arg1 : i32, i32
  }
  func.func @transform_17(%arg0: i32, %arg1: i32) -> (i32, i32) {
    %c0_i32 = arith.constant 0 : i32
    return %arg0, %arg1 : i32, i32
  }
}

</mosaic_0001>

<bundles_post_ra>
// kernel: tpu_custom_call.1
= control target key start
LH: loop header
LB: loop body
LE: loop exit
PB: predicated region body
PF: predicated region fallthrough
CT: control target
= control target key end

     0   :  { %s15438_s0 = inlined_call_operand.hbm [shape: f32[8,32], index: 0, kind: input, shape index: {}]   ;;  %s15439_s1 = inlined_call_operand.hbm [shape: bf16[32,256], index: 1, kind: input, shape index: {}]   ;;  %s15440_s2 = inlined_call_operand.hbm [shape: f32[1,256], index: 2, kind: input, shape index: {}]   ;;  %s15441_s3 = inlined_call_operand.hbm [shape: f32[1,256], index: 3, kind: input, shape index: {}]   ;;  %s15442_s4 = inlined_call_operand.hbm [shape: f32[1,256], index: 4, kind: input, shape index: {}]   ;;  %s15443_s5 = inlined_call_operand.hbm [shape: bf16[256,512], index: 5, kind: input, shape index: {}]   ;;  %s15444_s6 = inlined_call_operand.hbm [shape: f32[1,512], index: 6, kind: input, shape index: {}]   ;;  %s15445_s7 = inlined_call_operand.hbm [shape: f32[1,512], index: 7, kind: input, shape index: {}]   ;;  %s15446_s8 = inlined_call_operand.hbm [shape: f32[1,512], index: 8, kind: input, shape index: {}]   ;;  %s15447_s9 = inlined_call_operand.hbm [shape: bf16[512,1024], index: 9, kind: input, shape index: {}]   ;;  %s15448_s10 = inlined_call_operand.hbm [shape: f32[1,1024], index: 10, kind: input, shape index: {}]   ;;  %s15449_s11 = inlined_call_operand.hbm [shape: f32[1,1024], index: 11, kind: input, shape index: {}]   ;;  %s15450_s12 = inlined_call_operand.hbm [shape: f32[1,1024], index: 12, kind: input, shape index: {}]   ;;  %s15451_s13 = inlined_call_operand.hbm [shape: bf16[1024,1024], index: 13, kind: input, shape index: {}]   ;;  %s15452_s14 = inlined_call_operand.hbm [shape: f32[1,1024], index: 14, kind: input, shape index: {}]   ;;  %s15453_s15 = inlined_call_operand.hbm [shape: bf16[1024,256], index: 15, kind: input, shape index: {}]   ;;  %s15454_s16 = inlined_call_operand.hbm [shape: f32[1,256], index: 16, kind: input, shape index: {}]   ;;  %s15455_s17 = inlined_call_operand.hbm [shape: f32[8,256], index: 17, kind: output, shape index: {}]  }
   0x1   :  { %15460 = sst [smem:[#allocation45_spill]] %s15438_s0 }
   0x2   :  { %15461 = sst [smem:[#allocation46_spill]] %s15439_s1 }
   0x3   :  { %15462 = sst [smem:[#allocation47_spill]] %s15455_s17 }
   0x4   :  { %22 = vsyncpa [#allocation4], 0 }
   0x5   :  { %23 = vsyncpa [#allocation7], 0 }
   0x6   :  { %24 = vsyncpa [#allocation10], 0 }
   0x7   :  { %25 = vsyncpa [#allocation13], 0 }
   0x8   :  { %26 = vsyncpa [#allocation16], 0 }
   0x9   :  { %27 = vsyncpa [#allocation19], 0 }
   0xa   :  { %28 = vsyncpa [#allocation22], 0 }
   0xb   :  { %29 = vsyncpa [#allocation25], 0 }
   0xc   :  { %30 = vsyncpa [#allocation28], 0  ;;  %s15463_s26 = sld [smem:[#allocation46_spill]] }
  0x12   :  { %s47_s27 = sshll.u32 %s15463_s26, 4  ;;  %s48_s27 = int_to_ptr.hbm [resolvable:$true] %s47_s27 }
  0x13   :  { %31 = vsyncpa [#allocation5], 0  ;;  %s14025_s28 = smov [#allocation6]   ;;  %s72_s18 = sshll.u32 %s15441_s3, 4  ;;  %s73_s18 = int_to_ptr.hbm [resolvable:$true] %s72_s18 }
  0x14   :  { %s49_s29 = sshll.u32 %s14025_s28, 4  ;;  %s15456_s19 = smov 128   ;;  %s50_s29 = int_to_ptr.vmem [resolvable:$true] %s49_s29 }
  0x15   :  { %s14027_s1 = smov 8   ;;  %s14028_s20 = smov [#allocation9]  }
  0x16   :  { %55 = dma.hbm_to_vmem [thread:$0]  %s48_s27, 512, %s50_s29, [#allocation7], %s15456_s19, %s15456_s19, %s14027_s1  }
  0x17   :  { %s74_s21 = sshll.u32 %s14028_s20, 4  ;;  %s93_s24 = sshll.u32 %s15443_s5, 4  ;;  %s75_s21 = int_to_ptr.vmem [resolvable:$true] %s74_s21  ;;  %s94_s24 = int_to_ptr.hbm [resolvable:$true] %s93_s24 }
  0x18   :  { %77 = dma.hbm_to_vmem [thread:$0]  %s73_s18, 32, %s75_s21, [#allocation10]  }
  0x19   :  { %s14029_s25 = smov [#allocation12]   ;;  %s118_s0 = sshll.u32 %s15445_s7, 4  ;;  %s119_s0 = int_to_ptr.hbm [resolvable:$true] %s118_s0 }
  0x1a   :  { %s95_s26 = sshll.u32 %s14029_s25, 4  ;;  %s14030_s30 = smov 256   ;;  %s96_s26 = int_to_ptr.vmem [resolvable:$true] %s95_s26 }
  0x1b   :  { %s14031_s17 = smov 16   ;;  %s14032_s27 = smov [#allocation15]  }
  0x1c   :  { %101 = dma.hbm_to_vmem [thread:$0]  %s94_s24, 8192, %s96_s26, [#allocation13], %s14030_s30, %s14030_s30, %s14031_s17  }
  0x1d   :  { %s120_s29 = sshll.u32 %s14032_s27, 4  ;;  %s139_s5 = sshll.u32 %s15447_s9, 4  ;;  %s121_s29 = int_to_ptr.vmem [resolvable:$true] %s120_s29  ;;  %s140_s5 = int_to_ptr.hbm [resolvable:$true] %s139_s5 }
  0x1e   :  { %123 = dma.hbm_to_vmem [thread:$0]  %s119_s0, 64, %s121_s29, [#allocation16]  }
  0x1f   :  { %s14033_s18 = smov [#allocation18]   ;;  %s164_s7 = sshll.u32 %s15449_s11, 4  ;;  %s165_s7 = int_to_ptr.hbm [resolvable:$true] %s164_s7 }
  0x20   :  { %s141_s21 = sshll.u32 %s14033_s18, 4  ;;  %s14034_s25 = smov 512   ;;  %s142_s21 = int_to_ptr.vmem [resolvable:$true] %s141_s21 }
  0x21   :  { %s14035_s3 = smov 32   ;;  %s14036_s17 = smov [#allocation21]  }
  0x22   :  { %147 = dma.hbm_to_vmem [thread:$0]  %s140_s5, 32768, %s142_s21, [#allocation19], %s14034_s25, %s14034_s25, %s14035_s3  }
  0x23   :  { %s166_s24 = sshll.u32 %s14036_s17, 4  ;;  %s185_s9 = sshll.u32 %s15451_s13, 4  ;;  %s167_s24 = int_to_ptr.vmem [resolvable:$true] %s166_s24  ;;  %s186_s9 = int_to_ptr.hbm [resolvable:$true] %s185_s9 }
  0x24   :  { %169 = dma.hbm_to_vmem [thread:$0]  %s165_s7, 128, %s167_s24, [#allocation22]  }
  0x25   :  { %s209_s30 = sshll.u32 %s15453_s15, 4  ;;  %s14037_s27 = smov [#allocation24]   ;;  %s210_s30 = int_to_ptr.hbm [resolvable:$true] %s209_s30 }
  0x26   :  { %s187_s29 = sshll.u32 %s14037_s27, 4  ;;  %s14038_s11 = smov [#allocation27]   ;;  %s188_s29 = int_to_ptr.vmem [resolvable:$true] %s187_s29 }
  0x27   :  { %193 = dma.hbm_to_vmem [thread:$0]  %s186_s9, 65536, %s188_s29, [#allocation25], %s14034_s25, %s14034_s25, %s14035_s3  }
  0x28   :  { %s211_s20 = sshll.u32 %s14038_s11, 4  ;;  %s15464_s21 = sld [smem:[#allocation45_spill]]  ;;  %s212_s20 = int_to_ptr.vmem [resolvable:$true] %s211_s20 }
  0x29   :  { %s15465_s13 = smov 128   ;;  %s61_s15 = sshll.u32 %s15440_s2, 4  ;;  %s62_s15 = int_to_ptr.hbm [resolvable:$true] %s61_s15 }
  0x2a   :  { %217 = dma.hbm_to_vmem [thread:$0]  %s210_s30, 16384, %s212_s20, [#allocation28], %s15465_s13, %s15465_s13, %s14027_s1  }
  0x2b   :  { %s14039_s17 = smov [#allocation3]   ;;  %s14040_s25 = smov [#allocation8]  }
  0x2c   :  { %s39_s24 = sshll.u32 %s14039_s17, 4  ;;  %s63_s3 = sshll.u32 %s14040_s25, 4  ;;  %s40_s24 = int_to_ptr.vmem [resolvable:$true] %s39_s24  ;;  %s64_s3 = int_to_ptr.vmem [resolvable:$true] %s63_s3 }
  0x2d   :  { %s83_s9 = sshll.u32 %s15442_s4, 4  ;;  %s107_s0 = sshll.u32 %s15444_s6, 4  ;;  %s84_s9 = int_to_ptr.hbm [resolvable:$true] %s83_s9  ;;  %s108_s0 = int_to_ptr.hbm [resolvable:$true] %s107_s0 }
  0x2e   :  { %s37_s22 = sshll.u32 %s15464_s21, 4  ;;  %s14041_s30 = smov [#allocation11]   ;;  %s38_s22 = int_to_ptr.hbm [resolvable:$true] %s37_s22 }
  0x2f   :  { %42 = dma.hbm_to_vmem [thread:$0]  %s38_s22, 128, %s40_s24, [#allocation4]  }
  0x30   :  { %66 = dma.hbm_to_vmem [thread:$0]  %s62_s15, 32, %s64_s3, [#allocation7]  }
  0x31   :  { %s85_s2 = sshll.u32 %s14041_s30, 4  ;;  %s14042_s27 = smov [#allocation14]   ;;  %s86_s2 = int_to_ptr.vmem [resolvable:$true] %s85_s2 }
  0x32   :  { %88 = dma.hbm_to_vmem [thread:$0]  %s84_s9, 32, %s86_s2, [#allocation10]  }
  0x33   :  { %s109_s29 = sshll.u32 %s14042_s27, 4  ;;  %s129_s5 = sshll.u32 %s15446_s8, 4  ;;  %s110_s29 = int_to_ptr.vmem [resolvable:$true] %s109_s29  ;;  %s130_s5 = int_to_ptr.hbm [resolvable:$true] %s129_s5 }
  0x34   :  { %112 = dma.hbm_to_vmem [thread:$0]  %s108_s0, 64, %s110_s29, [#allocation13]  }
  0x35   :  { %s153_s21 = sshll.u32 %s15448_s10, 4  ;;  %s14043_s22 = smov [#allocation17]   ;;  %s154_s21 = int_to_ptr.hbm [resolvable:$true] %s153_s21 }
  0x36   :  { %s131_s6 = sshll.u32 %s14043_s22, 4  ;;  %s14044_s13 = smov [#allocation20]   ;;  %s132_s6 = int_to_ptr.vmem [resolvable:$true] %s131_s6 }
  0x37   :  { %134 = dma.hbm_to_vmem [thread:$0]  %s130_s5, 64, %s132_s6, [#allocation16]  }
  0x38   :  { %s155_s23 = sshll.u32 %s14044_s13, 4  ;;  %s175_s17 = sshll.u32 %s15450_s12, 4  ;;  %s156_s23 = int_to_ptr.vmem [resolvable:$true] %s155_s23  ;;  %s176_s17 = int_to_ptr.hbm [resolvable:$true] %s175_s17 }
  0x39   :  { %158 = dma.hbm_to_vmem [thread:$0]  %s154_s21, 128, %s156_s23, [#allocation19]  }
  0x3a   :  { %s199_s25 = sshll.u32 %s15452_s14, 4  ;;  %s14045_s3 = smov [#allocation23]   ;;  %s200_s25 = int_to_ptr.hbm [resolvable:$true] %s199_s25 }
  0x3b   :  { %s177_s10 = sshll.u32 %s14045_s3, 4  ;;  %s14046_s26 = smov [#allocation26]   ;;  %s178_s10 = int_to_ptr.vmem [resolvable:$true] %s177_s10 }
  0x3c   :  { %180 = dma.hbm_to_vmem [thread:$0]  %s176_s17, 128, %s178_s10, [#allocation22]  }
  0x3d   :  { %s201_s28 = sshll.u32 %s14046_s26, 4  ;;  %s223_s1 = sshll.u32 %s15454_s16, 4  ;;  %s202_s28 = int_to_ptr.vmem [resolvable:$true] %s201_s28  ;;  %s224_s1 = int_to_ptr.hbm [resolvable:$true] %s223_s1 }
  0x3e   :  { %204 = dma.hbm_to_vmem [thread:$0]  %s200_s25, 128, %s202_s28, [#allocation25]  }
  0x3f   :  { %s14047_s12 = smov [#allocation29]  }
  0x40   :  { %s225_s0 = sshll.u32 %s14047_s12, 4  ;;  %s226_s0 = int_to_ptr.vmem [resolvable:$true] %s225_s0 }
  0x41   :  { %228 = dma.hbm_to_vmem [thread:$0]  %s224_s1, 32, %s226_s0, [#allocation28]  }
  0x42   :  { %14005 = dma.done.wait [#allocation4], 128  }
  0x43   :  { %14006 = vsyncadd [#allocation4], 4294967168 }
  0x44   :  { %14007 = dma.done.wait [#allocation7], 544  }
  0x45   :  { %14008 = vsyncadd [#allocation7], 4294966752 }
  0x46   :  { %14009 = dma.done.wait [#allocation10], 64  }
  0x47   :  { %14010 = vsyncadd [#allocation10], 4294967232 }
  0x48   :  { %14011 = dma.done.wait [#allocation13], 8256  }
  0x49   :  { %14012 = vsyncadd [#allocation13], 4294959040 }
  0x4a   :  { %14013 = dma.done.wait [#allocation16], 128  }
  0x4b   :  { %14014 = vsyncadd [#allocation16], 4294967168 }
  0x4c   :  { %14015 = dma.done.wait [#allocation19], 32896  }
  0x4d   :  { %14016 = vsyncadd [#allocation19], 4294934400 }
  0x4e   :  { %14017 = dma.done.wait [#allocation22], 256  }
  0x4f   :  { %14018 = vsyncadd [#allocation22], 4294967040 }
  0x50   :  { %14019 = dma.done.wait [#allocation25], 65664  }
  0x51   :  { %14020 = vsyncadd [#allocation25], 4294901632 }
  0x52   :  { %14021 = dma.done.wait [#allocation28], 16416  }
  0x53   :  { %14022 = vsyncadd [#allocation28], 4294950880  ;;  %v8687_v0 = vld [vmem:[#allocation6 + $0x10] sm:$0xf]  ;;  %v12552_v1 = vld [vmem:[#allocation6 + $0x14] sm:$0xf0] }
  0x54   :  { %v12551_v2 = vld [vmem:[#allocation6 + $0x14] sm:$0xf]  ;;  %v8688_v3 = vor.u32 %v12552_v1, %v8687_v0  ;;  %v8689_v4 = vld [vmem:[#allocation6 + $0x18] sm:$0xf0]  ;;  %v8679_v5 = vld [vmem:[#allocation6] sm:$0xf] }
  0x55   :  { %v12550_v6 = vld [vmem:[#allocation6 + $0x4] sm:$0xf0]  ;;  %v8692_v7 = vor.u32 %v12551_v2, %v8689_v4  ;;  %v12549_v8 = vld [vmem:[#allocation6 + $0x4] sm:$0xf]  ;;  %v8681_v9 = vld [vmem:[#allocation6 + $0x8] sm:$0xf0] }
  0x56   :  { %344 = vmatpush.bf16.msra.mxu0 %v8688_v3  ;;  %v8680_v10 = vor.u32 %v12550_v6, %v8679_v5  ;;  %v302_v11 = vld [vmem:[#allocation3] sm:$0xff]  ;;  %v8684_v12 = vor.u32 %v12549_v8, %v8681_v9  ;;  %vm334_vm0 = vcmask 261120   ;;  %v308_v14 = vld [vmem:[#allocation8] sm:$0x3]  ;;  %v8811_v29 = vld [vmem:[#allocation12 + $0xe0] sm:$0xf] }
  0x57   :  { %357 = vmatpush.bf16.msra.mxu1 %v8692_v7  ;;  %v303_v13 = vpack.c.bf16 %v302_v11, %v302_v11  ;;  %v310_v15 = vperm.slane %v308_v14, 0  ;;  %v311_v16 = vperm.slane %v308_v14, 1  ;;  %v12583_v30 = vld [vmem:[#allocation12 + $0xec] sm:$0xf0]  ;;  %v8939_v31 = vld [vmem:[#allocation12 + $0x1e0] sm:$0xf] }
  0x58   :  { %v8812_v32 = vor.u32 %v12583_v30, %v8811_v29  ;;  %v12615_v33 = vld [vmem:[#allocation12 + $0x1ec] sm:$0xf0]  ;;  %v12581_v34 = vld [vmem:[#allocation12 + $0xe4] sm:$0xf]  ;;  %v8813_v35 = vld [vmem:[#allocation12 + $0xf0] sm:$0xf0] }
  0x59   :  { %v8940_v36 = vor.u32 %v12615_v33, %v8939_v31  ;;  %v8816_v37 = vor.u32 %v12581_v34, %v8813_v35  ;;  %v12613_v38 = vld [vmem:[#allocation12 + $0x1e4] sm:$0xf]  ;;  %v8941_v39 = vld [vmem:[#allocation12 + $0x1f0] sm:$0xf0]  ;;  %v8795_v40 = vld [vmem:[#allocation12 + $0xc0] sm:$0xf] }
  0x5a   :  { %345 = vmatpush.bf16.msra.mxu0 %v8680_v10  ;;  %892 = vmatpush.bf16.msra.mxu2 %v8812_v32  ;;  %v8944_v42 = vor.u32 %v12613_v38, %v8941_v39  ;;  %v12579_v43 = vld [vmem:[#allocation12 + $0xcc] sm:$0xf0]  ;;  %v8923_v44 = vld [vmem:[#allocation12 + $0x1c0] sm:$0xf]  ;;  %v12577_v50 = vld [vmem:[#allocation12 + $0xc4] sm:$0xf] }
  0x5b   :  { %358 = vmatpush.bf16.msra.mxu1 %v8684_v12  ;;  %v12611_v45 = vld [vmem:[#allocation12 + $0x1cc] sm:$0xf0]  ;;  %905 = vmatpush.bf16.msra.mxu3 %v8940_v36  ;;  %v8796_v48 = vor.u32 %v12579_v43, %v8795_v40  ;;  %v8797_v51 = vld [vmem:[#allocation12 + $0xd0] sm:$0xf0]  ;;  %v12609_v53 = vld [vmem:[#allocation12 + $0x1c4] sm:$0xf] }
  0x5c   :  { %v8924_v49 = vor.u32 %v12611_v45, %v8923_v44  ;;  %v8800_v52 = vor.u32 %v12577_v50, %v8797_v51  ;;  %v8925_v54 = vld [vmem:[#allocation12 + $0x1d0] sm:$0xf0]  ;;  %v8779_v55 = vld [vmem:[#allocation12 + $0xa0] sm:$0xf]  ;;  %v12575_v58 = vld [vmem:[#allocation12 + $0xac] sm:$0xf0] }
  0x5d   :  { %8693 = vmatmul.msk.bf16.vlgmr.msra.gmra.mxu0 %vm334_vm0, %v303_v13  ;;  %v8928_v57 = vor.u32 %v12609_v53, %v8925_v54  ;;  %v8907_v59 = vld [vmem:[#allocation12 + $0x1a0] sm:$0xf]  ;;  %v12607_v60 = vld [vmem:[#allocation12 + $0x1ac] sm:$0xf0]  ;;  %v8780_v61 = vor.u32 %v12575_v58, %v8779_v55  ;;  %v12573_v62 = vld [vmem:[#allocation12 + $0xa4] sm:$0xf] }
  0x5e   :  { %8694 = vmatmul.msk.bf16.vlgmr.msra.gmra.mxu1 %vm334_vm0, %v303_v13  ;;  %918 = vmatpush.bf16.msrb.mxu0 %v8816_v37  ;;  %v8781_v63 = vld [vmem:[#allocation12 + $0xb0] sm:$0xf0]  ;;  %v12605_v0 = vld [vmem:[#allocation12 + $0x1a4] sm:$0xf]  ;;  %v8908_v2 = vor.u32 %v12607_v60, %v8907_v59  ;;  %v8763_v5 = vld [vmem:[#allocation12 + $0x80] sm:$0xf] }
  0x5f   :  { %931 = vmatpush.bf16.msrb.mxu1 %v8944_v42  ;;  %893 = vmatpush.bf16.msra.mxu2 %v8796_v48  ;;  %v8784_v3 = vor.u32 %v12573_v62, %v8781_v63  ;;  %v8909_v4 = vld [vmem:[#allocation12 + $0x1b0] sm:$0xf0]  ;;  %v12571_v7 = vld [vmem:[#allocation12 + $0x8c] sm:$0xf0]  ;;  %v8891_v8 = vld [vmem:[#allocation12 + $0x180] sm:$0xf] }
  0x60   :  { %906 = vmatpush.bf16.msra.mxu3 %v8924_v49  ;;  %v8912_v6 = vor.u32 %v12605_v0, %v8909_v4  ;;  %v12603_v9 = vld [vmem:[#allocation12 + $0x18c] sm:$0xf0]  ;;  %v12569_v11 = vld [vmem:[#allocation12 + $0x84] sm:$0xf]  ;;  %v8765_v12 = vld [vmem:[#allocation12 + $0x90] sm:$0xf0]  ;;  %v8764_v13 = vor.u32 %v12571_v7, %v8763_v5 }
  0x61   :  { %v12601_v14 = vld [vmem:[#allocation12 + $0x184] sm:$0xf]  ;;  %v8877_v29 = vld [vmem:[#allocation12 + $0x170] sm:$0xf0]  ;;  %v8731_v33 = vld [vmem:[#allocation12 + $0x40] sm:$0xf] }
  0x62   :  { %919 = vmatpush.bf16.msrb.mxu0 %v8800_v52  ;;  %v12563_v34 = vld [vmem:[#allocation12 + $0x4c] sm:$0xf0]  ;;  %v8859_v35 = vld [vmem:[#allocation12 + $0x140] sm:$0xf]  ;;  %v12561_v38 = vld [vmem:[#allocation12 + $0x44] sm:$0xf] }
  0x63   :  { %932 = vmatpush.bf16.msrb.mxu1 %v8928_v57  ;;  %894 = vmatpush.bf16.msra.mxu2 %v8780_v61  ;;  %v12595_v37 = vld [vmem:[#allocation12 + $0x14c] sm:$0xf0]  ;;  %v8733_v39 = vld [vmem:[#allocation12 + $0x50] sm:$0xf0]  ;;  %v14215_v43 = vld [vmem:[#allocation9] sm:$0x3]  ;;  %v8732_v45 = vor.u32 %v12563_v34, %v8731_v33 }
  0x64   :  { %907 = vmatpush.bf16.msra.mxu3 %v8908_v2  ;;  %v8861_v42 = vld [vmem:[#allocation12 + $0x150] sm:$0xf0]  ;;  %v8715_v48 = vld [vmem:[#allocation12 + $0x20] sm:$0xf]  ;;  %v12559_v49 = vld [vmem:[#allocation12 + $0x2c] sm:$0xf0] }
  0x65   :  { %v8843_v50 = vld [vmem:[#allocation12 + $0x120] sm:$0xf]  ;;  %v12591_v53 = vld [vmem:[#allocation12 + $0x12c] sm:$0xf0]  ;;  %v12557_v54 = vld [vmem:[#allocation12 + $0x24] sm:$0xf]  ;;  %v8716_v61 = vor.u32 %v12559_v49, %v8715_v48 }
  0x66   :  { %920 = vmatpush.bf16.msrb.mxu0 %v8784_v3  ;;  %v8717_v55 = vld [vmem:[#allocation12 + $0x30] sm:$0xf0]  ;;  %v8699_v58 = vld [vmem:[#allocation12] sm:$0xf]  ;;  %v395_v59 = vperm.slane %v14215_v43, 0  ;;  %s14048_s14 = smov [#allocation30]  }
  0x67   :  { %933 = vmatpush.bf16.msrb.mxu1 %v8912_v6  ;;  %895 = vmatpush.bf16.msra.mxu2 %v8764_v13  ;;  %v8845_v57 = vld [vmem:[#allocation12 + $0x130] sm:$0xf0]  ;;  %v12555_v62 = vld [vmem:[#allocation12 + $0xc] sm:$0xf0]  ;;  %v8827_v63 = vld [vmem:[#allocation12 + $0x100] sm:$0xf]  ;;  %v8720_v2 = vor.u32 %v12557_v54, %v8717_v55 }
  0x68   :  { %v14221_v0 = vld [vmem:[#allocation11] sm:$0x3]  ;;  %v12587_v3 = vld [vmem:[#allocation12 + $0x10c] sm:$0xf0]  ;;  %v12553_v4 = vld [vmem:[#allocation12 + $0x4] sm:$0xf] }
  0x69   :  { %v8701_v5 = vld [vmem:[#allocation12 + $0x10] sm:$0xf0]  ;;  %v396_v6 = vperm.slane %v14215_v43, 1  ;;  %v12584_v13 = vld [vmem:[#allocation12 + $0xf4] sm:$0xf0]  ;;  %s8657_s16 = sshll.u32 %s14048_s14, 4  ;;  %s8658_s16 = int_to_ptr.vmem [resolvable:$true] %s8657_s16 }
  0x6a   :  { %v8803_v34 = vld [vmem:[#allocation12 + $0xc8] sm:$0xf]  ;;  %v12576_v49 = vld [vmem:[#allocation12 + $0xb4] sm:$0xf0]  ;;  %v12574_v54 = vld [vmem:[#allocation12 + $0xac] sm:$0xf] }
  0x6b   :  { %v8787_v48 = vld [vmem:[#allocation12 + $0xa8] sm:$0xf]  ;;  %v8789_v55 = vld [vmem:[#allocation12 + $0xb8] sm:$0xf0]  ;;  %s15503_s27 = sld [smem:[#allocation47_spill]] }
  0x71   :  { %s8659_s29 = sshll.u32 %s15503_s27, 4  ;;  %s8660_s29 = int_to_ptr.hbm [resolvable:$true] %s8659_s29 }
  0xda   :  { %v347_v17 = vpop.f32.mrf.mxu0 }
  0xdb   :  { %v14196_v18 = vadd.f32 %v347_v17, %v310_v15  ;;  %v360_v19 = vpop.f32.mrf.mxu1  ;;  %v8893_v15 = vld [vmem:[#allocation12 + $0x190] sm:$0xf0]  ;;  %v8768_v17 = vor.u32 %v12569_v11, %v8765_v12  ;;  %v8819_v12 = vld [vmem:[#allocation12 + $0xe8] sm:$0xf] }
  0xdc   :  { %v14198_v20 = vadd.f32 %v360_v19, %v311_v16  ;;  %v8892_v16 = vor.u32 %v12603_v9, %v8891_v8  ;;  %v8747_v19 = vld [vmem:[#allocation12 + $0x60] sm:$0xf]  ;;  %v12585_v9 = vld [vmem:[#allocation12 + $0x104] sm:$0xf]  ;;  %v8829_v11 = vld [vmem:[#allocation12 + $0x110] sm:$0xf0] }
  0xdd   :  { %v370_v23 = vmul.f32 %v14196_v18, %v14196_v18  ;;  %921 = vmatpush.bf16.msrb.mxu0 %v8768_v17  ;;  %v8700_v17 = vor.u32 %v12555_v62, %v8699_v58  ;;  %v8917_v58 = vld [vmem:[#allocation12 + $0x1b8] sm:$0xf0] }
  0xde   :  { %v366_v21 = vadd.f32 %v14198_v20, %v14196_v18  ;;  %v371_v24 = vmul.f32 %v14198_v20, %v14198_v20  ;;  %908 = vmatpush.bf16.msra.mxu3 %v8892_v16 }
  0xe0   :  { %367 = vadd.xlane.f32.xlu0 %v366_v21  ;;  %v372_v26 = vadd.f32 %v371_v24, %v370_v23  ;;  %v12567_v21 = vld [vmem:[#allocation12 + $0x6c] sm:$0xf0]  ;;  %v8896_v23 = vor.u32 %v12601_v14, %v8893_v15  ;;  %v8947_v14 = vld [vmem:[#allocation12 + $0x1e8] sm:$0xf] }
  0xe1   :  { %v12599_v24 = vld [vmem:[#allocation12 + $0x16c] sm:$0xf0]  ;;  %v8748_v30 = vor.u32 %v12567_v21, %v8747_v19  ;;  %v12616_v19 = vld [vmem:[#allocation12 + $0x1f4] sm:$0xf0]  ;;  %v12582_v21 = vld [vmem:[#allocation12 + $0xec] sm:$0xf] }
  0xe2   :  { %v349_v22 = vpop.f32.mrf.mxu0  ;;  %934 = vmatpush.bf16.msrb.mxu1 %v8896_v23 }
  0xe3   :  { %v362_v25 = vpop.f32.mrf.mxu1  ;;  %v8875_v22 = vld [vmem:[#allocation12 + $0x160] sm:$0xf]  ;;  %896 = vmatpush.bf16.msra.mxu2 %v8748_v30  ;;  %v8820_v30 = vor.u32 %v12584_v13, %v8819_v12 }
  0xe4   :  { %v12565_v25 = vld [vmem:[#allocation12 + $0x64] sm:$0xf]  ;;  %v8876_v31 = vor.u32 %v12599_v24, %v8875_v22  ;;  %v8821_v22 = vld [vmem:[#allocation12 + $0xf8] sm:$0xf0]  ;;  %v8828_v24 = vor.u32 %v12587_v3, %v8827_v63  ;;  %v8792_v63 = vor.u32 %v12574_v54, %v8789_v55  ;;  %v12566_v55 = vld [vmem:[#allocation12 + $0x6c] sm:$0xf] }
  0xe5   :  { %v8824_v33 = vor.u32 %v12582_v21, %v8821_v22 }
  0xe6   :  { %909 = vmatpush.bf16.msra.mxu3 %v8876_v31  ;;  %v403_v31 = vperm.slane %v14221_v0, 1 }
  0xe7   :  { %897 = vmatpush.bf16.msra.mxu2 %v8732_v45 }
  0xe8   :  { %373 = vadd.xlane.f32.xlu0 %v372_v26  ;;  %v8749_v26 = vld [vmem:[#allocation12 + $0x70] sm:$0xf0] }
  0xe9   :  { %v8752_v32 = vor.u32 %v12565_v25, %v8749_v26  ;;  %v8704_v25 = vor.u32 %v12553_v4, %v8701_v5  ;;  %v8949_v26 = vld [vmem:[#allocation12 + $0x1f8] sm:$0xf0]  ;;  %v12604_v5 = vld [vmem:[#allocation12 + $0x194] sm:$0xf0] }
  0xeb   :  { %922 = vmatpush.bf16.msrb.mxu0 %v8752_v32  ;;  %898 = vmatpush.bf16.msra.mxu2 %v8716_v61 }
  0xef   :  { %899 = vmatpush.bf16.msra.mxu2 %v8700_v17 }
  0xf3   :  { %944 = vmatpush.bf16.msrb.mxu2 %v8820_v30 }
 0x153   :  { %v368_v27 = vpop.xlane.xlu0 %367 }
 0x154   :  { %v14206_v28 = vmul.f32 0.00390625, %v368_v27  ;;  %v12597_v27 = vld [vmem:[#allocation12 + $0x164] sm:$0xf] }
 0x155   :  { %v8880_v36 = vor.u32 %v12597_v27, %v8877_v29  ;;  %v402_v27 = vperm.slane %v14221_v0, 0  ;;  %v8832_v29 = vor.u32 %v12585_v9, %v8829_v11  ;;  %v8771_v0 = vld [vmem:[#allocation12 + $0x88] sm:$0xf]  ;;  %v12602_v9 = vld [vmem:[#allocation12 + $0x18c] sm:$0xf] }
 0x156   :  { %v376_v46 = vmul.f32 %v14206_v28, %v14206_v28  ;;  %v390_v15 = vsub.f32 %v14196_v18, %v14206_v28  ;;  %v391_v23 = vsub.f32 %v14198_v20, %v14206_v28  ;;  %v12614_v18 = vld [vmem:[#allocation12 + $0x1ec] sm:$0xf]  ;;  %v8948_v28 = vor.u32 %v12616_v19, %v8947_v14  ;;  %v8901_v11 = vld [vmem:[#allocation12 + $0x198] sm:$0xf0] }
 0x157   :  { %935 = vmatpush.bf16.msrb.mxu1 %v8880_v36  ;;  %v8931_v36 = vld [vmem:[#allocation12 + $0x1c8] sm:$0xf]  ;;  %v8904_v21 = vor.u32 %v12602_v9, %v8901_v11  ;;  %v8741_v11 = vld [vmem:[#allocation12 + $0x58] sm:$0xf0] }
 0x15b   :  { %v374_v41 = vpop.xlane.xlu0 %373 }
 0x15c   :  { %v375_v47 = vmul.f32 0.00390625, %v374_v41  ;;  %v12593_v41 = vld [vmem:[#allocation12 + $0x144] sm:$0xf] }
 0x15d   :  { %v8864_v52 = vor.u32 %v12593_v41, %v8861_v42  ;;  %v8805_v41 = vld [vmem:[#allocation12 + $0xd8] sm:$0xf0] }
 0x15e   :  { %v377_v56 = vsub.f32 %v375_v47, %v376_v46  ;;  %v8860_v46 = vor.u32 %v12595_v37, %v8859_v35  ;;  %v8736_v47 = vor.u32 %v12561_v38, %v8733_v39  ;;  %v12580_v35 = vld [vmem:[#allocation12 + $0xd4] sm:$0xf0]  ;;  %v8952_v37 = vor.u32 %v12614_v18, %v8949_v26  ;;  %v12578_v39 = vld [vmem:[#allocation12 + $0xcc] sm:$0xf] }
 0x15f   :  { %936 = vmatpush.bf16.msrb.mxu1 %v8864_v52  ;;  %v12612_v38 = vld [vmem:[#allocation12 + $0x1d4] sm:$0xf0]  ;;  %v8804_v45 = vor.u32 %v12580_v35, %v8803_v34 }
 0x160   :  { %v378_v1 = vmax.f32 %v377_v56, 0.0  ;;  %v12589_v56 = vld [vmem:[#allocation12 + $0x124] sm:$0xf]  ;;  %910 = vmatpush.bf16.msra.mxu3 %v8860_v46  ;;  %923 = vmatpush.bf16.msrb.mxu0 %v8736_v47  ;;  %v8932_v46 = vor.u32 %v12612_v38, %v8931_v36  ;;  %v8808_v47 = vor.u32 %v12578_v39, %v8805_v41 }
 0x161   :  { %v8848_v8 = vor.u32 %v12589_v56, %v8845_v57  ;;  %v12606_v57 = vld [vmem:[#allocation12 + $0x1ac] sm:$0xf]  ;;  %945 = vmatpush.bf16.msrb.mxu2 %v8804_v45  ;;  %v8755_v45 = vld [vmem:[#allocation12 + $0x68] sm:$0xf] }
 0x162   :  { %v14210_v10 = vadd.f32 1e-05, %v378_v1  ;;  %v8844_v1 = vor.u32 %v12591_v53, %v8843_v50  ;;  %v8915_v50 = vld [vmem:[#allocation12 + $0x1a8] sm:$0xf]  ;;  %v12608_v53 = vld [vmem:[#allocation12 + $0x1b4] sm:$0xf0]  ;;  %v8920_v4 = vor.u32 %v12606_v57, %v8917_v58 }
 0x163   :  { %937 = vmatpush.bf16.msrb.mxu1 %v8848_v8  ;;  %v8916_v62 = vor.u32 %v12608_v53, %v8915_v50  ;;  %v12600_v50 = vld [vmem:[#allocation12 + $0x174] sm:$0xf0]  ;;  %v8757_v57 = vld [vmem:[#allocation12 + $0x78] sm:$0xf0]  ;;  %v12598_v58 = vld [vmem:[#allocation12 + $0x16c] sm:$0xf] }
 0x164   :  { %13537 = vrsqrt.f32 %v14210_v10  ;;  %vm386_vm2 = vweird.f32 %v14210_v10  ;;  %911 = vmatpush.bf16.msra.mxu3 %v8844_v1  ;;  %924 = vmatpush.bf16.msrb.mxu0 %v8720_v2  ;;  %v12572_v1 = vld [vmem:[#allocation12 + $0x94] sm:$0xf0]  ;;  %v8899_v2 = vld [vmem:[#allocation12 + $0x188] sm:$0xf] }
 0x165   :  { %v8772_v13 = vor.u32 %v12572_v1, %v8771_v0 }
 0x167   :  { %938 = vmatpush.bf16.msrb.mxu1 %v8832_v29 }
 0x168   :  { %912 = vmatpush.bf16.msra.mxu3 %v8828_v24  ;;  %925 = vmatpush.bf16.msrb.mxu0 %v8704_v25 }
 0x16a   :  { %v14213_v40 = vpop.eup %13537 }
 0x16b   :  { %v381_v44 = vmul.f32 %v14213_v40, %v14210_v10  ;;  %vm387_vm1 = vweird.f32 %v14213_v40  ;;  %983 = vmatpush.bf16.msra.mxu1 %v8952_v37 }
 0x16c   :  { %vm388_vm3 = vmor %vm386_vm2, %vm387_vm1  ;;  %957 = vmatpush.bf16.msrb.mxu3 %v8948_v28  ;;  %970 = vmatpush.bf16.msra.mxu0 %v8824_v33 }
 0x16d   :  { %v382_v51 = vmul.f32 %v14213_v40, %v381_v44  ;;  %v8933_v44 = vld [vmem:[#allocation12 + $0x1d8] sm:$0xf0] }
 0x16f   :  { %v383_v60 = vmul.f32 0.5, %v382_v51 }
 0x170   :  { %958 = vmatpush.bf16.msrb.mxu3 %v8932_v46  ;;  %971 = vmatpush.bf16.msra.mxu0 %v8808_v47 }
 0x171   :  { %v384_v7 = vsub.f32 1.5, %v383_v60  ;;  %v8788_v60 = vor.u32 %v12576_v49, %v8787_v48  ;;  %v12568_v48 = vld [vmem:[#allocation12 + $0x74] sm:$0xf0]  ;;  %v8883_v49 = vld [vmem:[#allocation12 + $0x168] sm:$0xf] }
 0x172   :  { %v8756_v53 = vor.u32 %v12568_v48, %v8755_v45  ;;  %v8884_v54 = vor.u32 %v12600_v50, %v8883_v49  ;;  %v8709_v45 = vld [vmem:[#allocation12 + $0x18] sm:$0xf0] }
 0x173   :  { %v385_v16 = vmul.f32 %v14213_v40, %v384_v7  ;;  %v8773_v7 = vld [vmem:[#allocation12 + $0x98] sm:$0xf0]  ;;  %946 = vmatpush.bf16.msrb.mxu2 %v8788_v60 }
 0x174   :  { %959 = vmatpush.bf16.msrb.mxu3 %v8916_v62  ;;  %972 = vmatpush.bf16.msra.mxu0 %v8792_v63  ;;  %v8760_v62 = vor.u32 %v12566_v55, %v8757_v57  ;;  %v8885_v63 = vld [vmem:[#allocation12 + $0x178] sm:$0xf0] }
 0x175   :  { %v389_v10 = vsel %vm388_vm3, %v14213_v40, %v385_v16  ;;  %v12610_v40 = vld [vmem:[#allocation12 + $0x1cc] sm:$0xf]  ;;  %v8888_v1 = vor.u32 %v12598_v58, %v8885_v63 }
 0x176   :  { %v392_v32 = vmul.f32 %v390_v15, %v389_v10  ;;  %v393_v20 = vmul.f32 %v391_v23, %v389_v10  ;;  %v8936_v52 = vor.u32 %v12610_v40, %v8933_v44  ;;  %v8900_v15 = vor.u32 %v12604_v5, %v8899_v2  ;;  %v8739_v2 = vld [vmem:[#allocation12 + $0x48] sm:$0xf]  ;;  %v12564_v5 = vld [vmem:[#allocation12 + $0x54] sm:$0xf0] }
 0x177   :  { %947 = vmatpush.bf16.msrb.mxu2 %v8772_v13  ;;  %v8740_v9 = vor.u32 %v12564_v5, %v8739_v2 }
 0x178   :  { %v399_v42 = vmul.f32 %v395_v59, %v392_v32  ;;  %v400_v43 = vmul.f32 %v396_v6, %v393_v20  ;;  %984 = vmatpush.bf16.msra.mxu1 %v8936_v52  ;;  %v12570_v6 = vld [vmem:[#allocation12 + $0x8c] sm:$0xf]  ;;  %960 = vmatpush.bf16.msrb.mxu3 %v8900_v15 }
 0x179   :  { %v8776_v16 = vor.u32 %v12570_v6, %v8773_v7  ;;  %v8867_v6 = vld [vmem:[#allocation12 + $0x148] sm:$0xf]  ;;  %v12596_v7 = vld [vmem:[#allocation12 + $0x154] sm:$0xf0] }
 0x17a   :  { %v14236_v51 = vadd.f32 %v402_v27, %v399_v42  ;;  %v14238_v56 = vadd.f32 %v403_v31, %v400_v43  ;;  %v8868_v13 = vor.u32 %v12596_v7, %v8867_v6 }
 0x17b   :  { %973 = vmatpush.bf16.msra.mxu0 %v8776_v16  ;;  %948 = vmatpush.bf16.msrb.mxu2 %v8756_v53  ;;  %v12594_v16 = vld [vmem:[#allocation12 + $0x14c] sm:$0xf] }
 0x17c   :  { %v14241_v59 = vmul.f32 0.70710677, %v14236_v51  ;;  %v14244_v61 = vmul.f32 0.70710677, %v14238_v56  ;;  %985 = vmatpush.bf16.msra.mxu1 %v8920_v4  ;;  %961 = vmatpush.bf16.msrb.mxu3 %v8884_v54 }
 0x17e   :  { %v412_v3 = vmul.f32 %v14241_v59, %v14241_v59  ;;  %v452_v8 = vmul.f32 %v14244_v61, %v14244_v61 }
 0x17f   :  { %974 = vmatpush.bf16.msra.mxu0 %v8760_v62  ;;  %949 = vmatpush.bf16.msrb.mxu2 %v8740_v9 }
 0x180   :  { %v14250_v12 = vmin.f32 %v412_v3, 16.0  ;;  %v14252_v14 = vmin.f32 %v452_v8, 16.0  ;;  %986 = vmatpush.bf16.msra.mxu1 %v8904_v21  ;;  %v12562_v8 = vld [vmem:[#allocation12 + $0x4c] sm:$0xf]  ;;  %962 = vmatpush.bf16.msrb.mxu3 %v8868_v13 }
 0x181   :  { %v8744_v15 = vor.u32 %v12562_v8, %v8741_v11 }
 0x182   :  { %v414_v17 = vmul.f32 2.1237322e-06, %v14250_v12  ;;  %v425_v19 = vmul.f32 3.8918573e-05, %v14250_v12  ;;  %v454_v22 = vmul.f32 2.1237322e-06, %v14252_v14 }
 0x183   :  { %v465_v23 = vmul.f32 3.8918573e-05, %v14252_v14  ;;  %975 = vmatpush.bf16.msra.mxu0 %v8744_v15 }
 0x184   :  { %v415_v24 = vadd.f32 0.00028619796, %v414_v17  ;;  %v426_v25 = vadd.f32 0.001143296, %v425_v19  ;;  %v455_v18 = vadd.f32 0.00028619796, %v454_v22  ;;  %987 = vmatpush.bf16.msra.mxu1 %v8888_v1 }
 0x185   :  { %v466_v26 = vadd.f32 0.001143296, %v465_v23  ;;  %v8869_v17 = vld [vmem:[#allocation12 + $0x158] sm:$0xf0]  ;;  %v8723_v23 = vld [vmem:[#allocation12 + $0x28] sm:$0xf] }
 0x186   :  { %v416_v27 = vmul.f32 %v415_v24, %v14250_v12  ;;  %v427_v10 = vmul.f32 %v426_v25, %v14250_v12  ;;  %v456_v29 = vmul.f32 %v455_v18, %v14252_v14  ;;  %v8872_v22 = vor.u32 %v12594_v16, %v8869_v17  ;;  %v12560_v24 = vld [vmem:[#allocation12 + $0x34] sm:$0xf0]  ;;  %v8851_v18 = vld [vmem:[#allocation12 + $0x128] sm:$0xf] }
 0x187   :  { %v467_v30 = vmul.f32 %v466_v26, %v14252_v14  ;;  %v8724_v25 = vor.u32 %v12560_v24, %v8723_v23  ;;  %v12592_v26 = vld [vmem:[#allocation12 + $0x134] sm:$0xf0] }
 0x188   :  { %v417_v31 = vadd.f32 0.0036580483, %v416_v27  ;;  %v428_v32 = vadd.f32 0.014752088, %v427_v10  ;;  %v457_v20 = vadd.f32 0.0036580483, %v456_v29  ;;  %988 = vmatpush.bf16.msra.mxu1 %v8872_v22  ;;  %v8852_v29 = vor.u32 %v12592_v26, %v8851_v18 }
 0x189   :  { %v468_v28 = vadd.f32 0.014752088, %v467_v30  ;;  %v12558_v27 = vld [vmem:[#allocation12 + $0x2c] sm:$0xf]  ;;  %v8725_v30 = vld [vmem:[#allocation12 + $0x38] sm:$0xf0]  ;;  %950 = vmatpush.bf16.msrb.mxu2 %v8724_v25 }
 0x18a   :  { %v418_v33 = vmul.f32 %v417_v31, %v14250_v12  ;;  %v429_v34 = vmul.f32 %v428_v32, %v14250_v12  ;;  %v458_v37 = vmul.f32 %v457_v20, %v14252_v14  ;;  %v12590_v31 = vld [vmem:[#allocation12 + $0x12c] sm:$0xf]  ;;  %v8853_v32 = vld [vmem:[#allocation12 + $0x138] sm:$0xf0]  ;;  %963 = vmatpush.bf16.msrb.mxu3 %v8852_v29 }
 0x18b   :  { %v469_v35 = vmul.f32 %v468_v28, %v14252_v14  ;;  %v8728_v28 = vor.u32 %v12558_v27, %v8725_v30 }
 0x18c   :  { %v430_v36 = vadd.f32 0.112945676, %v429_v34  ;;  %v419_v39 = vadd.f32 0.05243302, %v418_v33  ;;  %v459_v40 = vadd.f32 0.05243302, %v458_v37  ;;  %v8856_v33 = vor.u32 %v12590_v31, %v8853_v32 }
 0x18d   :  { %v470_v38 = vadd.f32 0.112945676, %v469_v35  ;;  %v8707_v34 = vld [vmem:[#allocation12 + $0x8] sm:$0xf]  ;;  %v12556_v35 = vld [vmem:[#allocation12 + $0x14] sm:$0xf0]  ;;  %976 = vmatpush.bf16.msra.mxu0 %v8728_v28 }
 0x18e   :  { %v431_v41 = vmul.f32 %v430_v36, %v14250_v12  ;;  %v420_v46 = vmul.f32 %v419_v39, %v14250_v12  ;;  %v460_v4 = vmul.f32 %v459_v40, %v14252_v14  ;;  %v8835_v36 = vld [vmem:[#allocation12 + $0x108] sm:$0xf]  ;;  %989 = vmatpush.bf16.msra.mxu1 %v8856_v33 }
 0x18f   :  { %v471_v42 = vmul.f32 %v470_v38, %v14252_v14 }
 0x190   :  { %v432_v43 = vadd.f32 0.4994258, %v431_v41  ;;  %v421_v3 = vadd.f32 0.18741608, %v420_v46  ;;  %v461_v21 = vadd.f32 0.18741608, %v460_v4  ;;  %v8708_v41 = vor.u32 %v12556_v35, %v8707_v34 }
 0x191   :  { %v472_v44 = vadd.f32 0.4994258, %v471_v42  ;;  %v12588_v42 = vld [vmem:[#allocation12 + $0x114] sm:$0xf0]  ;;  %v12586_v46 = vld [vmem:[#allocation12 + $0x10c] sm:$0xf] }
 0x192   :  { %v433_v47 = vmul.f32 %v432_v43, %v14250_v12  ;;  %v422_v19 = vmul.f32 %v421_v3, %v14250_v12  ;;  %v462_v38 = vmul.f32 %v461_v21, %v14252_v14  ;;  %v12554_v43 = vld [vmem:[#allocation12 + $0xc] sm:$0xf]  ;;  %951 = vmatpush.bf16.msrb.mxu2 %v8708_v41 }
 0x193   :  { %v473_v52 = vmul.f32 %v472_v44, %v14252_v14  ;;  %v8836_v44 = vor.u32 %v12588_v42, %v8835_v36  ;;  %v8712_v50 = vor.u32 %v12554_v43, %v8709_v45  ;;  %v8837_v14 = vld [vmem:[#allocation12 + $0x118] sm:$0xf0] }
 0x194   :  { %v14271_v60 = vadd.f32 1.0, %v433_v47  ;;  %v423_v37 = vadd.f32 1.1283791, %v422_v19  ;;  %v8840_v54 = vor.u32 %v12586_v46, %v8837_v14  ;;  %v463_v55 = vadd.f32 1.1283791, %v462_v38 }
 0x195   :  { %v14273_v0 = vadd.f32 1.0, %v473_v52  ;;  %964 = vmatpush.bf16.msrb.mxu3 %v8836_v44  ;;  %977 = vmatpush.bf16.msra.mxu0 %v8712_v50 }
 0x196   :  { %13539 = vrcp.f32 %v14271_v60  ;;  %v444_v47 = vand.u32 2147483647, %v14271_v60  ;;  %v446_v48 = vand.u32 2147483648, %v14271_v60  ;;  %vm440_vm6 = vweird.f32 %v14271_v60  ;;  %990 = vmatpush.bf16.msra.mxu1 %v8840_v54 }
 0x197   :  { %13541 = vrcp.f32 %v14273_v0  ;;  %v486_v53 = vand.u32 2147483648, %v14273_v0  ;;  %v484_v58 = vand.u32 2147483647, %v14273_v0  ;;  %vm480_vm8 = vweird.f32 %v14273_v0 }
 0x198   :  { %v447_v63 = vor.u32 1.1754944e-38, %v446_v48  ;;  %v424_v2 = vmul.f32 %v423_v37, %v14241_v59  ;;  %vm445_vm9 = vcmp.eq.f32.partialorder %v444_v47, 8.507059e+37  ;;  %v464_v6 = vmul.f32 %v463_v55, %v14244_v61 }
 0x199   :  { %v487_v4 = vor.u32 1.1754944e-38, %v486_v53  ;;  %vm485_vm11 = vcmp.eq.f32.partialorder %v484_v58, 8.507059e+37  ;;  %v409_v59 = vmul.f32 0.5, %v14238_v56  ;;  %v562_v56 = vld [vmem:[#allocation14] sm:$0xf] }
 0x19a   :  { %v564_v26 = vperm.slane %v562_v56, 0  ;;  %v566_v28 = vperm.slane %v562_v56, 2 }
 0x19c   :  { %v13540_v10 = vpop.eup %13539 }
 0x19d   :  { %v13542_v20 = vpop.eup %13541  ;;  %v436_v12 = vmul.f32 %v13540_v10, %v14271_v60  ;;  %vm441_vm4 = vweird.f32 %v13540_v10 }
 0x19e   :  { %v476_v39 = vmul.f32 %v13542_v20, %v14273_v0  ;;  %vm481_vm5 = vweird.f32 %v13542_v20  ;;  %vm442_vm7 = vmor %vm440_vm6, %vm441_vm4  ;;  %v408_v0 = vmul.f32 0.5, %v14236_v51 }
 0x19f   :  { %v437_v40 = vsub.f32 1.0, %v436_v12  ;;  %vm482_vm10 = vmor %vm480_vm8, %vm481_vm5  ;;  %v567_v12 = vperm.slane %v562_v56, 3 }
 0x1a0   :  { %v477_v49 = vsub.f32 1.0, %v476_v39 }
 0x1a1   :  { %v438_v52 = vmul.f32 %v13540_v10, %v437_v40 }
 0x1a2   :  { %v478_v57 = vmul.f32 %v13542_v20, %v477_v49 }
 0x1a3   :  { %v439_v62 = vadd.f32 %v13540_v10, %v438_v52 }
 0x1a4   :  { %v479_v1 = vadd.f32 %v13542_v20, %v478_v57 }
 0x1a5   :  { %v443_v3 = vsel %vm442_vm7, %v13540_v10, %v439_v62  ;;  %v565_v10 = vperm.slane %v562_v56, 1  ;;  %v14320_v56 = vld [vmem:[#allocation15] sm:$0xf] }
 0x1a6   :  { %v448_v5 = vsel %vm445_vm9, %v447_v63, %v443_v3  ;;  %v483_v7 = vsel %vm482_vm10, %v13542_v20, %v479_v1  ;;  %v9183_v3 = vld [vmem:[#allocation18 + $0x1c0] sm:$0xf] }
 0x1a7   :  { %v449_v60 = vmul.f32 %v448_v5, %v424_v2  ;;  %v488_v8 = vsel %vm485_vm11, %v487_v4, %v483_v7  ;;  %v12677_v4 = vld [vmem:[#allocation18 + $0x1dc] sm:$0xf0] }
 0x1a8   :  { %v489_v9 = vmul.f32 %v488_v8, %v464_v6  ;;  %v9439_v5 = vld [vmem:[#allocation18 + $0x3c0] sm:$0xf]  ;;  %v9184_v7 = vor.u32 %v12677_v4, %v9183_v3 }
 0x1a9   :  { %v8695_v11 = vclamps-f32 %v449_v60, 1.0  ;;  %v12741_v60 = vld [vmem:[#allocation18 + $0x3dc] sm:$0xf0] }
 0x1aa   :  { %v8696_v13 = vclamps-f32 %v489_v9, 1.0  ;;  %v9695_v8 = vld [vmem:[#allocation18 + $0x5c0] sm:$0xf]  ;;  %v9440_v9 = vor.u32 %v12741_v60, %v9439_v5 }
 0x1ab   :  { %v492_v15 = vadd.f32 1.0, %v8695_v11  ;;  %v12805_v11 = vld [vmem:[#allocation18 + $0x5dc] sm:$0xf0] }
 0x1ac   :  { %v493_v16 = vadd.f32 1.0, %v8696_v13  ;;  %v9951_v13 = vld [vmem:[#allocation18 + $0x7c0] sm:$0xf] }
 0x1ad   :  { %v494_v17 = vmul.f32 %v492_v15, %v408_v0  ;;  %v12869_v0 = vld [vmem:[#allocation18 + $0x7dc] sm:$0xf0]  ;;  %v9696_v15 = vor.u32 %v12805_v11, %v9695_v8 }
 0x1ae   :  { %v495_v19 = vmul.f32 %v493_v16, %v409_v59  ;;  %v9952_v59 = vor.u32 %v12869_v0, %v9951_v13  ;;  %v9151_v16 = vld [vmem:[#allocation18 + $0x180] sm:$0xf] }
 0x1af   :  { %v496_v21 = vpack.c.bf16 %v494_v17, %v494_v17  ;;  %v12669_v17 = vld [vmem:[#allocation18 + $0x19c] sm:$0xf0] }
 0x1b0   :  { %v497_v22 = vpack.c.bf16 %v495_v19, %v495_v19  ;;  %v9407_v19 = vld [vmem:[#allocation18 + $0x380] sm:$0xf] }
 0x1b1   :  { %900 = vmatmul.bf16.vlgmr.msra.gmra.mxu2 %v496_v21  ;;  %926 = vmatmul.bf16.vlgmr.msrb.gmra.mxu0 %v496_v21  ;;  %v9055_v8 = vld [vmem:[#allocation18 + $0xc0] sm:$0xf] }
 0x1b2   :  { %913 = vmatmul.bf16.vlgmr.msra.gmra.mxu3 %v497_v22  ;;  %939 = vmatmul.bf16.vlgmr.msrb.gmra.mxu1 %v497_v22  ;;  %v9311_v0 = vld [vmem:[#allocation18 + $0x2c0] sm:$0xf] }
 0x1b3   :  { %2796 = vmatpush.bf16.msra.mxu2 %v9184_v7  ;;  %2809 = vmatpush.bf16.msra.mxu3 %v9440_v9  ;;  %v12645_v9 = vld [vmem:[#allocation18 + $0xdc] sm:$0xf0] }
 0x1b4   :  { %2822 = vmatpush.bf16.msrb.mxu0 %v9696_v15  ;;  %2835 = vmatpush.bf16.msrb.mxu1 %v9952_v59  ;;  %v9056_v13 = vor.u32 %v12645_v9, %v9055_v8  ;;  %v12709_v15 = vld [vmem:[#allocation18 + $0x2dc] sm:$0xf0] }
 0x1b5   :  { %v9567_v59 = vld [vmem:[#allocation18 + $0x4c0] sm:$0xf] }
 0x1b6   :  { %v9215_v8 = vld [vmem:[#allocation18 + $0x200] sm:$0xf] }
 0x1b7   :  { %v12685_v9 = vld [vmem:[#allocation18 + $0x21c] sm:$0xf0] }
 0x1c1   :  { %952 = vmatmul.bf16.vlgmr.msrb.gmra.mxu2 %v496_v21  ;;  %978 = vmatmul.bf16.vlgmr.msra.gmra.mxu0 %v496_v21  ;;  %v9152_v21 = vor.u32 %v12669_v17, %v9151_v16 }
 0x1c2   :  { %965 = vmatmul.bf16.vlgmr.msrb.gmra.mxu3 %v497_v22  ;;  %991 = vmatmul.bf16.vlgmr.msra.gmra.mxu1 %v497_v22  ;;  %v12733_v22 = vld [vmem:[#allocation18 + $0x39c] sm:$0xf0] }
 0x1c3   :  { %2797 = vmatpush.bf16.msra.mxu2 %v9152_v21  ;;  %v12773_v21 = vld [vmem:[#allocation18 + $0x4dc] sm:$0xf0] }
 0x22e   :  { %v927_v61 = vpop.f32.mrf.mxu0 }
 0x22f   :  { %v940_v23 = vpop.f32.mrf.mxu1  ;;  %v928_v20 = vadd.f32 %v927_v61, %v565_v10  ;;  %v9663_v61 = vld [vmem:[#allocation18 + $0x580] sm:$0xf] }
 0x230   :  { %v12661_v10 = vld [vmem:[#allocation18 + $0x15c] sm:$0xf0] }
 0x231   :  { %v14295_v35 = vadd.f32 %v940_v23, %v928_v20  ;;  %v12797_v23 = vld [vmem:[#allocation18 + $0x59c] sm:$0xf0] }
 0x232   :  { %v9631_v20 = vld [vmem:[#allocation18 + $0x540] sm:$0xf] }
 0x233   :  { %v1005_v46 = vmul.f32 %v14295_v35, %v14295_v35 }
 0x234   :  { %v901_v24 = vpop.f32.mrf.mxu2 }
 0x235   :  { %v914_v51 = vpop.f32.mrf.mxu3  ;;  %v902_v31 = vadd.f32 %v901_v24, %v564_v26  ;;  %v9408_v24 = vor.u32 %v12733_v22, %v9407_v19  ;;  %v9312_v19 = vor.u32 %v12709_v15, %v9311_v0  ;;  %v9823_v22 = vld [vmem:[#allocation18 + $0x6c0] sm:$0xf]  ;;  %v9216_v0 = vor.u32 %v12685_v9, %v9215_v8 }
 0x236   :  { %v929_v25 = vpop.f32.mrf.mxu0  ;;  %v12749_v15 = vld [vmem:[#allocation18 + $0x41c] sm:$0xf0] }
 0x237   :  { %v942_v18 = vpop.f32.mrf.mxu1  ;;  %v14293_v33 = vadd.f32 %v914_v51, %v902_v31  ;;  %v9664_v51 = vor.u32 %v12797_v23, %v9663_v61  ;;  %v9919_v25 = vld [vmem:[#allocation18 + $0x780] sm:$0xf]  ;;  %2810 = vmatpush.bf16.msra.mxu3 %v9408_v24  ;;  %v9568_v24 = vor.u32 %v12773_v21, %v9567_v59 }
 0x238   :  { %v12861_v18 = vld [vmem:[#allocation18 + $0x79c] sm:$0xf0] }
 0x239   :  { %v998_v43 = vadd.f32 %v14295_v35, %v14293_v33  ;;  %v1004_v40 = vmul.f32 %v14293_v33, %v14293_v33  ;;  %v9920_v26 = vor.u32 %v12861_v18, %v9919_v25  ;;  %2823 = vmatpush.bf16.msrb.mxu0 %v9664_v51  ;;  %v12837_v61 = vld [vmem:[#allocation18 + $0x6dc] sm:$0xf0] }
 0x23a   :  { %v12637_v25 = vld [vmem:[#allocation18 + $0x9c] sm:$0xf0] }
 0x23b   :  { %v1008_v14 = vadd.f32 %v1005_v46, %v1004_v40  ;;  %2836 = vmatpush.bf16.msrb.mxu1 %v9920_v26  ;;  %v1039_v40 = vperm.slane %v14320_v56, 2  ;;  %v9279_v18 = vld [vmem:[#allocation18 + $0x280] sm:$0xf] }
 0x23c   :  { %v903_v27 = vpop.f32.mrf.mxu2  ;;  %v9727_v59 = vld [vmem:[#allocation18 + $0x600] sm:$0xf] }
 0x23d   :  { %v916_v29 = vpop.f32.mrf.mxu3  ;;  %v9119_v27 = vld [vmem:[#allocation18 + $0x140] sm:$0xf] }
 0x23e   :  { %v979_v30 = vpop.f32.mrf.mxu0  ;;  %v9375_v29 = vld [vmem:[#allocation18 + $0x340] sm:$0xf]  ;;  %v9120_v31 = vor.u32 %v12661_v10, %v9119_v27 }
 0x23f   :  { %v992_v32 = vpop.f32.mrf.mxu1  ;;  %v980_v36 = vadd.f32 %v979_v30, %v567_v12  ;;  %v12789_v12 = vld [vmem:[#allocation18 + $0x55c] sm:$0xf0] }
 0x240   :  { %2798 = vmatpush.bf16.msra.mxu2 %v9120_v31  ;;  %v9535_v31 = vld [vmem:[#allocation18 + $0x480] sm:$0xf] }
 0x241   :  { %v14303_v44 = vadd.f32 %v992_v32, %v980_v36  ;;  %v12725_v32 = vld [vmem:[#allocation18 + $0x35c] sm:$0xf0]  ;;  %v9632_v36 = vor.u32 %v12789_v12, %v9631_v20 }
 0x242   :  { %v9791_v12 = vld [vmem:[#allocation18 + $0x680] sm:$0xf] }
 0x243   :  { %v1007_v53 = vmul.f32 %v14303_v44, %v14303_v44  ;;  %2824 = vmatpush.bf16.msrb.mxu0 %v9632_v36 }
 0x244   :  { %v953_v34 = vpop.f32.mrf.mxu2 }
 0x245   :  { %v954_v37 = vadd.f32 %v953_v34, %v566_v28  ;;  %v966_v38 = vpop.f32.mrf.mxu3  ;;  %v9376_v34 = vor.u32 %v12725_v32, %v9375_v29 }
 0x246   :  { %v981_v39 = vpop.f32.mrf.mxu0 }
 0x247   :  { %v14297_v41 = vadd.f32 %v966_v38, %v954_v37  ;;  %v994_v42 = vpop.f32.mrf.mxu1  ;;  %v9887_v37 = vld [vmem:[#allocation18 + $0x740] sm:$0xf]  ;;  %v14326_v39 = vld [vmem:[#allocation17] sm:$0xf]  ;;  %2811 = vmatpush.bf16.msra.mxu3 %v9376_v34 }
 0x248   :  { %v12853_v38 = vld [vmem:[#allocation18 + $0x75c] sm:$0xf0]  ;;  %v1037_v42 = vperm.slane %v14320_v56, 0  ;;  %v1051_v3 = vperm.slane %v14326_v39, 1  ;;  %v1052_v4 = vperm.slane %v14326_v39, 2  ;;  %v1053_v7 = vperm.slane %v14326_v39, 3 }
 0x249   :  { %v999_v45 = vadd.f32 %v998_v43, %v14297_v41  ;;  %v1006_v47 = vmul.f32 %v14297_v41, %v14297_v41  ;;  %v1038_v43 = vperm.slane %v14320_v56, 1 }
 0x24b   :  { %v1000_v48 = vadd.f32 %v999_v45, %v14303_v44  ;;  %v1009_v52 = vadd.f32 %v1008_v14, %v1006_v47  ;;  %v9888_v45 = vor.u32 %v12853_v38, %v9887_v37  ;;  %v9087_v47 = vld [vmem:[#allocation18 + $0x100] sm:$0xf] }
 0x24c   :  { %v955_v49 = vpop.f32.mrf.mxu2  ;;  %v12717_v14 = vld [vmem:[#allocation18 + $0x31c] sm:$0xf0] }
 0x24d   :  { %v968_v50 = vpop.f32.mrf.mxu3  ;;  %1001 = vadd.xlane.f32.xlu1 %v1000_v48  ;;  %v1010_v54 = vadd.f32 %v1009_v52, %v1007_v53  ;;  %v12653_v48 = vld [vmem:[#allocation18 + $0x11c] sm:$0xf0]  ;;  %2837 = vmatpush.bf16.msrb.mxu1 %v9888_v45 }
 0x24e   :  { %v9343_v49 = vld [vmem:[#allocation18 + $0x300] sm:$0xf]  ;;  %v9088_v50 = vor.u32 %v12653_v48, %v9087_v47 }
 0x24f   :  { %v9599_v52 = vld [vmem:[#allocation18 + $0x500] sm:$0xf] }
 0x250   :  { %v12781_v53 = vld [vmem:[#allocation18 + $0x51c] sm:$0xf0]  ;;  %2799 = vmatpush.bf16.msra.mxu2 %v9088_v50 }
 0x251   :  { %v12629_v45 = vld [vmem:[#allocation18 + $0x5c] sm:$0xf0] }
 0x252   :  { %v9503_v50 = vld [vmem:[#allocation18 + $0x440] sm:$0xf] }
 0x254   :  { %2800 = vmatpush.bf16.msra.mxu2 %v9056_v13 }
 0x255   :  { %1011 = vadd.xlane.f32.xlu1 %v1010_v54  ;;  %v1040_v54 = vperm.slane %v14320_v56, 3  ;;  %v12757_v56 = vld [vmem:[#allocation18 + $0x45c] sm:$0xf0] }
 0x2c0   :  { %v1002_v55 = vpop.xlane.xlu1 %1001 }
 0x2c1   :  { %v14313_v57 = vmul.f32 0.001953125, %v1002_v55 }
 0x2c3   :  { %v1014_v62 = vmul.f32 %v14313_v57, %v14313_v57  ;;  %v1028_v11 = vsub.f32 %v14293_v33, %v14313_v57  ;;  %v1029_v16 = vsub.f32 %v14295_v35, %v14313_v57  ;;  %v1030_v33 = vsub.f32 %v14297_v41, %v14313_v57  ;;  %v12701_v41 = vld [vmem:[#allocation18 + $0x29c] sm:$0xf0] }
 0x2c4   :  { %v1031_v23 = vsub.f32 %v14303_v44, %v14313_v57  ;;  %v9824_v35 = vor.u32 %v12837_v61, %v9823_v22  ;;  %v12765_v44 = vld [vmem:[#allocation18 + $0x49c] sm:$0xf0]  ;;  %v9280_v32 = vor.u32 %v12701_v41, %v9279_v18  ;;  %v12673_v61 = vld [vmem:[#allocation18 + $0x1c4] sm:$0xf] }
 0x2c5   :  { %v9536_v20 = vor.u32 %v12765_v44, %v9535_v31 }
 0x2c8   :  { %v1012_v58 = vpop.xlane.xlu1 %1011 }
 0x2c9   :  { %v1013_v63 = vmul.f32 0.001953125, %v1012_v58  ;;  %v9344_v58 = vor.u32 %v12717_v14, %v9343_v49 }
 0x2cb   :  { %v1015_v1 = vsub.f32 %v1013_v63, %v1014_v62  ;;  %v9600_v62 = vor.u32 %v12781_v53, %v9599_v52  ;;  %v9855_v63 = vld [vmem:[#allocation18 + $0x700] sm:$0xf]  ;;  %2812 = vmatpush.bf16.msra.mxu3 %v9344_v58  ;;  %v9504_v52 = vor.u32 %v12757_v56, %v9503_v50 }
 0x2cc   :  { %v9759_v53 = vld [vmem:[#allocation18 + $0x640] sm:$0xf] }
 0x2cd   :  { %v1016_v2 = vmax.f32 %v1015_v1, 0.0  ;;  %v12845_v1 = vld [vmem:[#allocation18 + $0x71c] sm:$0xf0]  ;;  %2825 = vmatpush.bf16.msrb.mxu0 %v9600_v62 }
 0x2ce   :  { %v9856_v5 = vor.u32 %v12845_v1, %v9855_v63 }
 0x2cf   :  { %v14317_v6 = vadd.f32 1e-05, %v1016_v2  ;;  %v1050_v2 = vperm.slane %v14326_v39, 0  ;;  %2813 = vmatpush.bf16.msra.mxu3 %v9312_v19  ;;  %v8991_v39 = vld [vmem:[#allocation18 + $0x40] sm:$0xf] }
 0x2d0   :  { %2838 = vmatpush.bf16.msrb.mxu1 %v9856_v5 }
 0x2d1   :  { %13543 = vrsqrt.f32 %v14317_v6  ;;  %vm1024_vm13 = vweird.f32 %v14317_v6  ;;  %2826 = vmatpush.bf16.msrb.mxu0 %v9568_v24  ;;  %v9185_v24 = vld [vmem:[#allocation18 + $0x1e0] sm:$0xf0] }
 0x2d3   :  { %2814 = vmatpush.bf16.msra.mxu3 %v9280_v32 }
 0x2d4   :  { %2839 = vmatpush.bf16.msrb.mxu1 %v9824_v35 }
 0x2d5   :  { %2827 = vmatpush.bf16.msrb.mxu0 %v9536_v20 }
 0x2d7   :  { %v14322_v30 = vpop.eup %13543 }
 0x2d8   :  { %v1019_v28 = vmul.f32 %v14322_v30, %v14317_v6  ;;  %vm1025_vm12 = vweird.f32 %v14322_v30  ;;  %v9023_v6 = vld [vmem:[#allocation18 + $0x80] sm:$0xf] }
 0x2d9   :  { %vm1026_vm14 = vmor %vm1024_vm13, %vm1025_vm12  ;;  %v9024_v57 = vor.u32 %v12637_v25, %v9023_v6  ;;  %2828 = vmatpush.bf16.msrb.mxu0 %v9504_v52  ;;  %v9188_v25 = vor.u32 %v12673_v61, %v9185_v24 }
 0x2da   :  { %v1020_v46 = vmul.f32 %v14322_v30, %v1019_v28  ;;  %v12829_v28 = vld [vmem:[#allocation18 + $0x69c] sm:$0xf0] }
 0x2db   :  { %2801 = vmatpush.bf16.msra.mxu2 %v9024_v57  ;;  %v9792_v38 = vor.u32 %v12829_v28, %v9791_v12 }
 0x2dc   :  { %v1021_v55 = vmul.f32 0.5, %v1020_v46  ;;  %v9247_v46 = vld [vmem:[#allocation18 + $0x240] sm:$0xf] }
 0x2dd   :  { %2840 = vmatpush.bf16.msrb.mxu1 %v9792_v38 }
 0x2de   :  { %v1022_v60 = vsub.f32 1.5, %v1021_v55 }
 0x2e0   :  { %v1023_v17 = vmul.f32 %v14322_v30, %v1022_v60 }
 0x2e2   :  { %v1027_v51 = vsel %vm1026_vm14, %v14322_v30, %v1023_v17 }
 0x2e3   :  { %v1032_v26 = vmul.f32 %v1028_v11, %v1027_v51  ;;  %v1033_v27 = vmul.f32 %v1029_v16, %v1027_v51  ;;  %v1034_v10 = vmul.f32 %v1030_v33, %v1027_v51  ;;  %v1035_v29 = vmul.f32 %v1031_v23, %v1027_v51  ;;  %v9471_v11 = vld [vmem:[#allocation18 + $0x400] sm:$0xf] }
 0x2e4   :  { %v12813_v16 = vld [vmem:[#allocation18 + $0x61c] sm:$0xf0]  ;;  %v9472_v22 = vor.u32 %v12749_v15, %v9471_v11 }
 0x2e5   :  { %v1045_v30 = vmul.f32 %v1037_v42, %v1032_v26  ;;  %v1046_v34 = vmul.f32 %v1038_v43, %v1033_v27  ;;  %v1047_v36 = vmul.f32 %v1039_v40, %v1034_v10  ;;  %v1048_v37 = vmul.f32 %v1040_v54, %v1035_v29  ;;  %v12693_v43 = vld [vmem:[#allocation18 + $0x25c] sm:$0xf0]  ;;  %v12737_v10 = vld [vmem:[#allocation18 + $0x3c4] sm:$0xf] }
 0x2e6   :  { %v8992_v40 = vor.u32 %v12629_v45, %v8991_v39  ;;  %v9248_v14 = vor.u32 %v12693_v43, %v9247_v46  ;;  %v12821_v54 = vld [vmem:[#allocation18 + $0x65c] sm:$0xf0]  ;;  %v9728_v23 = vor.u32 %v12813_v16, %v9727_v59  ;;  %2829 = vmatpush.bf16.msrb.mxu0 %v9472_v22  ;;  %v9697_v46 = vld [vmem:[#allocation18 + $0x5e0] sm:$0xf0] }
 0x2e7   :  { %v14357_v47 = vadd.f32 %v1050_v2, %v1045_v30  ;;  %v14359_v48 = vadd.f32 %v1051_v3, %v1046_v34  ;;  %v14361_v49 = vadd.f32 %v1052_v4, %v1047_v36  ;;  %v14363_v42 = vadd.f32 %v1053_v7, %v1048_v37  ;;  %v8959_v2 = vld [vmem:[#allocation18] sm:$0xf]  ;;  %v9441_v34 = vld [vmem:[#allocation18 + $0x3e0] sm:$0xf0] }
 0x2e8   :  { %2802 = vmatpush.bf16.msra.mxu2 %v8992_v40  ;;  %2815 = vmatpush.bf16.msra.mxu3 %v9248_v14  ;;  %v9760_v63 = vor.u32 %v12821_v54, %v9759_v53  ;;  %v12621_v3 = vld [vmem:[#allocation18 + $0x1c] sm:$0xf0]  ;;  %v12801_v36 = vld [vmem:[#allocation18 + $0x5c4] sm:$0xf]  ;;  %v9444_v40 = vor.u32 %v12737_v10, %v9441_v34 }
 0x2e9   :  { %v14366_v55 = vmul.f32 0.70710677, %v14357_v47  ;;  %v14369_v58 = vmul.f32 0.70710677, %v14359_v48  ;;  %v14372_v62 = vmul.f32 0.70710677, %v14361_v49  ;;  %v8960_v60 = vor.u32 %v12621_v3, %v8959_v2 }
 0x2ea   :  { %v14375_v1 = vmul.f32 0.70710677, %v14363_v42  ;;  %2841 = vmatpush.bf16.msrb.mxu1 %v9760_v63  ;;  %v9700_v54 = vor.u32 %v12801_v36, %v9697_v46  ;;  %v14429_v36 = vmul.f32 0.5, %v14357_v47  ;;  %v12665_v47 = vld [vmem:[#allocation18 + $0x184] sm:$0xf] }
 0x2eb   :  { %v1070_v4 = vmul.f32 %v14366_v55, %v14366_v55  ;;  %v1110_v5 = vmul.f32 %v14369_v58, %v14369_v58  ;;  %v1150_v7 = vmul.f32 %v14372_v62, %v14372_v62 }
 0x2ec   :  { %v1190_v13 = vmul.f32 %v14375_v1, %v14375_v1  ;;  %2803 = vmatpush.bf16.msra.mxu2 %v8960_v60  ;;  %2816 = vmatpush.bf16.msra.mxu3 %v9216_v0 }
 0x2ed   :  { %v14385_v17 = vmin.f32 %v1070_v4, 16.0  ;;  %v14387_v19 = vmin.f32 %v1110_v5, 16.0  ;;  %v14389_v21 = vmin.f32 %v1150_v7, 16.0  ;;  %2874 = vmatpush.bf16.msra.mxu0 %v9700_v54  ;;  %v12793_v54 = vld [vmem:[#allocation18 + $0x584] sm:$0xf] }
 0x2ee   :  { %v14391_v33 = vmin.f32 %v1190_v13, 16.0  ;;  %2842 = vmatpush.bf16.msrb.mxu1 %v9728_v23 }
 0x2ef   :  { %v1072_v35 = vmul.f32 2.1237322e-06, %v14385_v17  ;;  %v1083_v51 = vmul.f32 3.8918573e-05, %v14385_v17  ;;  %v1112_v6 = vmul.f32 2.1237322e-06, %v14387_v19 }
 0x2f0   :  { %v1123_v18 = vmul.f32 3.8918573e-05, %v14387_v19  ;;  %v1152_v26 = vmul.f32 2.1237322e-06, %v14389_v21  ;;  %v1163_v27 = vmul.f32 3.8918573e-05, %v14389_v21  ;;  %2848 = vmatpush.bf16.msrb.mxu2 %v9188_v25  ;;  %2861 = vmatpush.bf16.msrb.mxu3 %v9444_v40 }
 0x2f1   :  { %v1073_v29 = vadd.f32 0.00028619796, %v1072_v35  ;;  %v1084_v41 = vadd.f32 0.001143296, %v1083_v51  ;;  %v1113_v31 = vadd.f32 0.00028619796, %v1112_v6 }
 0x2f2   :  { %v1124_v44 = vadd.f32 0.001143296, %v1123_v18  ;;  %v1153_v57 = vadd.f32 0.00028619796, %v1152_v26  ;;  %v1164_v32 = vadd.f32 0.001143296, %v1163_v27 }
 0x2f3   :  { %v1074_v20 = vmul.f32 %v1073_v29, %v14385_v17  ;;  %v1085_v12 = vmul.f32 %v1084_v41, %v14385_v17  ;;  %v1114_v28 = vmul.f32 %v1113_v31, %v14387_v19  ;;  %v1192_v30 = vmul.f32 2.1237322e-06, %v14391_v33  ;;  %v9153_v40 = vld [vmem:[#allocation18 + $0x1a0] sm:$0xf0] }
 0x2f4   :  { %v1125_v37 = vmul.f32 %v1124_v44, %v14387_v19  ;;  %v1154_v38 = vmul.f32 %v1153_v57, %v14389_v21  ;;  %v1165_v39 = vmul.f32 %v1164_v32, %v14389_v21  ;;  %v1203_v45 = vmul.f32 3.8918573e-05, %v14391_v33 }
 0x2f5   :  { %v1075_v43 = vadd.f32 0.0036580483, %v1074_v20  ;;  %v1086_v50 = vadd.f32 0.014752088, %v1085_v12  ;;  %v1115_v56 = vadd.f32 0.0036580483, %v1114_v28 }
 0x2f6   :  { %v1126_v14 = vadd.f32 0.014752088, %v1125_v37  ;;  %v1155_v52 = vadd.f32 0.0036580483, %v1154_v38  ;;  %v1166_v53 = vadd.f32 0.014752088, %v1165_v39 }
 0x2f7   :  { %v1076_v63 = vmul.f32 %v1075_v43, %v14385_v17  ;;  %v1087_v2 = vmul.f32 %v1086_v50, %v14385_v17  ;;  %v1116_v3 = vmul.f32 %v1115_v56, %v14387_v19  ;;  %v1193_v4 = vadd.f32 0.00028619796, %v1192_v30  ;;  %v12865_v50 = vld [vmem:[#allocation18 + $0x7c4] sm:$0xf] }
 0x2f8   :  { %v1127_v5 = vmul.f32 %v1126_v14, %v14387_v19  ;;  %v1156_v7 = vmul.f32 %v1155_v52, %v14389_v21  ;;  %v1167_v60 = vmul.f32 %v1166_v53, %v14389_v21  ;;  %v1204_v8 = vadd.f32 0.001143296, %v1203_v45  ;;  %v9953_v56 = vld [vmem:[#allocation18 + $0x7e0] sm:$0xf0] }
 0x2f9   :  { %v1077_v9 = vadd.f32 0.05243302, %v1076_v63  ;;  %v1088_v11 = vadd.f32 0.112945676, %v1087_v2  ;;  %v1117_v13 = vadd.f32 0.05243302, %v1116_v3  ;;  %v1194_v0 = vmul.f32 %v1193_v4, %v14391_v33 }
 0x2fa   :  { %v1128_v15 = vadd.f32 0.112945676, %v1127_v5  ;;  %v1157_v59 = vadd.f32 0.05243302, %v1156_v7  ;;  %v1168_v16 = vadd.f32 0.112945676, %v1167_v60  ;;  %v1205_v22 = vmul.f32 %v1204_v8, %v14391_v33 }
 0x2fb   :  { %v1078_v61 = vmul.f32 %v1077_v9, %v14385_v17  ;;  %v1089_v23 = vmul.f32 %v1088_v11, %v14385_v17  ;;  %v1118_v24 = vmul.f32 %v1117_v13, %v14387_v19  ;;  %v1195_v35 = vadd.f32 0.0036580483, %v1194_v0  ;;  %v12729_v52 = vld [vmem:[#allocation18 + $0x384] sm:$0xf] }
 0x2fc   :  { %v1129_v51 = vmul.f32 %v1128_v15, %v14387_v19  ;;  %v1158_v6 = vmul.f32 %v1157_v59, %v14389_v21  ;;  %v1169_v25 = vmul.f32 %v1168_v16, %v14389_v21  ;;  %v1206_v18 = vadd.f32 0.014752088, %v1205_v22  ;;  %v9409_v53 = vld [vmem:[#allocation18 + $0x3a0] sm:$0xf0] }
 0x2fd   :  { %v1079_v26 = vadd.f32 0.18741608, %v1078_v61  ;;  %v1090_v27 = vadd.f32 0.4994258, %v1089_v23  ;;  %v1119_v10 = vadd.f32 0.18741608, %v1118_v24  ;;  %v1196_v29 = vmul.f32 %v1195_v35, %v14391_v33 }
 0x2fe   :  { %v1130_v41 = vadd.f32 0.4994258, %v1129_v51  ;;  %v1159_v31 = vadd.f32 0.18741608, %v1158_v6  ;;  %v1170_v44 = vadd.f32 0.4994258, %v1169_v25  ;;  %v1207_v57 = vmul.f32 %v1206_v18, %v14391_v33 }
 0x2ff   :  { %v1080_v32 = vmul.f32 %v1079_v26, %v14385_v17  ;;  %v1091_v20 = vmul.f32 %v1090_v27, %v14385_v17  ;;  %v1120_v12 = vmul.f32 %v1119_v10, %v14387_v19  ;;  %v14432_v37 = vmul.f32 0.5, %v14359_v48  ;;  %v9665_v63 = vld [vmem:[#allocation18 + $0x5a0] sm:$0xf0] }
 0x300   :  { %v1131_v28 = vmul.f32 %v1130_v41, %v14387_v19  ;;  %v1171_v30 = vmul.f32 %v1170_v44, %v14389_v21  ;;  %v1208_v34 = vadd.f32 0.112945676, %v1207_v57  ;;  %v1160_v45 = vmul.f32 %v1159_v31, %v14389_v21  ;;  %v12857_v2 = vld [vmem:[#allocation18 + $0x784] sm:$0xf]  ;;  %v9159_v44 = vld [vmem:[#allocation18 + $0x188] sm:$0xf] }
 0x301   :  { %v14434_v38 = vadd.f32 1.0, %v1091_v20  ;;  %v1197_v46 = vadd.f32 0.05243302, %v1196_v29  ;;  %v1081_v43 = vadd.f32 1.1283791, %v1080_v32  ;;  %v14443_v48 = vmul.f32 0.5, %v14361_v49 }
 0x302   :  { %v14436_v39 = vadd.f32 1.0, %v1131_v28  ;;  %v14439_v17 = vadd.f32 1.0, %v1171_v30  ;;  %v1121_v19 = vadd.f32 1.1283791, %v1120_v12  ;;  %v1209_v21 = vmul.f32 %v1208_v34, %v14391_v33  ;;  %v9921_v3 = vld [vmem:[#allocation18 + $0x7a0] sm:$0xf0] }
 0x303   :  { %13545 = vrcp.f32 %v14434_v38  ;;  %v1104_v14 = vand.u32 2147483648, %v14434_v38  ;;  %v1102_v4 = vand.u32 2147483647, %v14434_v38  ;;  %v14449_v5 = vadd.f32 1.1283791, %v1160_v45 }
 0x304   :  { %13547 = vrcp.f32 %v14436_v39  ;;  %v1198_v49 = vmul.f32 %v1197_v46, %v14391_v33  ;;  %v12657_v7 = vld [vmem:[#allocation18 + $0x144] sm:$0xf]  ;;  %v14454_v8 = vmul.f32 %v1081_v43, %v14366_v55  ;;  %v14457_v9 = vmul.f32 %v1121_v19, %v14369_v58 }
 0x305   :  { %13549 = vrcp.f32 %v14439_v17  ;;  %v9121_v60 = vld [vmem:[#allocation18 + $0x160] sm:$0xf0]  ;;  %v1142_v11 = vand.u32 2147483647, %v14436_v39  ;;  %v1144_v13 = vand.u32 2147483648, %v14436_v39  ;;  %vm1098_vm15 = vweird.f32 %v14434_v38 }
 0x306   :  { %v12721_v0 = vld [vmem:[#allocation18 + $0x344] sm:$0xf]  ;;  %v14462_v59 = vor.u32 1.1754944e-38, %v1104_v14  ;;  %v1210_v16 = vadd.f32 0.4994258, %v1209_v21  ;;  %v9956_v22 = vor.u32 %v12865_v50, %v9953_v56  ;;  %v9156_v61 = vor.u32 %v12665_v47, %v9153_v40 }
 0x307   :  { %v9377_v15 = vld [vmem:[#allocation18 + $0x360] sm:$0xf0]  ;;  %vm1138_vm0 = vweird.f32 %v14436_v39  ;;  %v1182_v55 = vand.u32 2147483647, %v14439_v17  ;;  %v1184_v58 = vand.u32 2147483648, %v14439_v17  ;;  %v9412_v35 = vor.u32 %v12729_v52, %v9409_v53 }
 0x308   :  { %v12785_v23 = vld [vmem:[#allocation18 + $0x544] sm:$0xf]  ;;  %v9668_v51 = vor.u32 %v12793_v54, %v9665_v63  ;;  %vm14473_vm1 = vcmp.eq.f32.partialorder %v1102_v4, 8.507059e+37  ;;  %v1199_v27 = vadd.f32 0.18741608, %v1198_v49  ;;  %v1211_v10 = vmul.f32 %v1210_v16, %v14391_v33  ;;  %2887 = vmatpush.bf16.msra.mxu1 %v9956_v22  ;;  %2849 = vmatpush.bf16.msrb.mxu2 %v9156_v61 }
 0x309   :  { %v14464_v24 = vpop.eup %13545  ;;  %v9633_v6 = vld [vmem:[#allocation18 + $0x560] sm:$0xf0]  ;;  %v9924_v29 = vor.u32 %v12857_v2, %v9921_v3  ;;  %vm14480_vm2 = vcmp.eq.f32.partialorder %v1142_v11, 8.507059e+37  ;;  %v14484_v57 = vor.u32 1.1754944e-38, %v1144_v13  ;;  %2862 = vmatpush.bf16.msrb.mxu3 %v9412_v35  ;;  %v9124_v32 = vor.u32 %v12657_v7, %v9121_v60 }
 0x30a   :  { %v14469_v25 = vpop.eup %13547  ;;  %v1094_v18 = vmul.f32 %v14464_v24, %v14434_v38  ;;  %v12849_v41 = vld [vmem:[#allocation18 + $0x744] sm:$0xf]  ;;  %2875 = vmatpush.bf16.msra.mxu0 %v9668_v51  ;;  %v14488_v34 = vadd.f32 1.0, %v1211_v10  ;;  %v9380_v45 = vor.u32 %v12721_v0, %v9377_v15  ;;  %v9636_v46 = vor.u32 %v12785_v23, %v9633_v6 }
 0x30b   :  { %v1134_v31 = vmul.f32 %v14469_v25, %v14436_v39  ;;  %v9889_v20 = vld [vmem:[#allocation18 + $0x760] sm:$0xf0]  ;;  %v14486_v28 = vpop.eup %13549  ;;  %vm1178_vm3 = vweird.f32 %v14439_v17  ;;  %vm14493_vm4 = vcmp.eq.f32.partialorder %v1182_v55, 8.507059e+37  ;;  %v14497_v40 = vor.u32 1.1754944e-38, %v1184_v58 }
 0x30c   :  { %v12649_v12 = vld [vmem:[#allocation18 + $0x104] sm:$0xf]  ;;  %v1095_v30 = vsub.f32 1.0, %v1094_v18  ;;  %v1174_v56 = vmul.f32 %v14486_v28, %v14439_v17  ;;  %vm1099_vm5 = vweird.f32 %v14464_v24  ;;  %v1200_v53 = vmul.f32 %v1199_v27, %v14391_v33  ;;  %2888 = vmatpush.bf16.msra.mxu1 %v9924_v29  ;;  %2850 = vmatpush.bf16.msrb.mxu2 %v9124_v32 }
 0x30d   :  { %v9089_v43 = vld [vmem:[#allocation18 + $0x120] sm:$0xf0]  ;;  %v1135_v50 = vsub.f32 1.0, %v1134_v31  ;;  %13551 = vrcp.f32 %v14488_v34  ;;  %vm1139_vm6 = vweird.f32 %v14469_v25  ;;  %2863 = vmatpush.bf16.msrb.mxu3 %v9380_v45  ;;  %v9892_v49 = vor.u32 %v12849_v41, %v9889_v20  ;;  %vm14511_vm8 = vmor %vm1098_vm15, %vm1099_vm5  ;;  %v9191_v31 = vld [vmem:[#allocation18 + $0x1c8] sm:$0xf] }
 0x30e   :  { %v12713_v19 = vld [vmem:[#allocation18 + $0x304] sm:$0xf]  ;;  %v1096_v52 = vmul.f32 %v14464_v24, %v1095_v30  ;;  %v1175_v4 = vsub.f32 1.0, %v1174_v56  ;;  %2876 = vmatpush.bf16.msra.mxu0 %v9636_v46  ;;  %vm1179_vm7 = vweird.f32 %v14486_v28  ;;  %v9092_v33 = vor.u32 %v12649_v12, %v9089_v43  ;;  %vm14525_vm9 = vmor %vm1138_vm0, %vm1139_vm6 }
 0x30f   :  { %v9345_v14 = vld [vmem:[#allocation18 + $0x320] sm:$0xf0]  ;;  %v1136_v3 = vmul.f32 %v14469_v25, %v1135_v50  ;;  %v1222_v23 = vand.u32 2147483647, %v14488_v34  ;;  %v14529_v6 = vadd.f32 1.1283791, %v1200_v53  ;;  %vm14542_vm10 = vmor %vm1178_vm3, %vm1179_vm7  ;;  %v1162_v50 = vmul.f32 %v14449_v5, %v14372_v62 }
 0x310   :  { %v12777_v21 = vld [vmem:[#allocation18 + $0x504] sm:$0xf]  ;;  %v1097_v11 = vadd.f32 %v14464_v24, %v1096_v52  ;;  %v9348_v13 = vor.u32 %v12713_v19, %v9345_v14  ;;  %v1176_v61 = vmul.f32 %v14486_v28, %v1175_v4  ;;  %2889 = vmatpush.bf16.msra.mxu1 %v9892_v49  ;;  %2851 = vmatpush.bf16.msrb.mxu2 %v9092_v33  ;;  %v1224_v32 = vand.u32 2147483648, %v14488_v34 }
 0x311   :  { %v9601_v54 = vld [vmem:[#allocation18 + $0x520] sm:$0xf0]  ;;  %v1137_v22 = vadd.f32 %v14469_v25, %v1136_v3  ;;  %vm14561_vm11 = vcmp.eq.f32.partialorder %v1222_v23, 8.507059e+37  ;;  %vm1218_vm13 = vweird.f32 %v14488_v34 }
 0x312   :  { %v12841_v63 = vld [vmem:[#allocation18 + $0x704] sm:$0xf]  ;;  %v9604_v55 = vor.u32 %v12777_v21, %v9601_v54  ;;  %v1101_v51 = vsel %vm14511_vm8, %v14464_v24, %v1097_v11  ;;  %v1177_v41 = vadd.f32 %v14486_v28, %v1176_v61  ;;  %2864 = vmatpush.bf16.msrb.mxu3 %v9348_v13 }
 0x313   :  { %v9857_v2 = vld [vmem:[#allocation18 + $0x720] sm:$0xf0]  ;;  %v1106_v24 = vsel %vm14473_vm1, %v14462_v59, %v1101_v51  ;;  %v1141_v39 = vsel %vm14525_vm9, %v14469_v25, %v1137_v22  ;;  %v14547_v20 = vpop.eup %13551 }
 0x314   :  { %v12641_v7 = vld [vmem:[#allocation18 + $0xc4] sm:$0xf]  ;;  %v9860_v18 = vor.u32 %v12841_v63, %v9857_v2  ;;  %2877 = vmatpush.bf16.msra.mxu0 %v9604_v55  ;;  %v1107_v25 = vmul.f32 %v1106_v24, %v14454_v8  ;;  %v1146_v12 = vsel %vm14480_vm2, %v14484_v57, %v1141_v39  ;;  %v1181_v56 = vsel %vm14542_vm10, %v14486_v28, %v1177_v41 }
 0x315   :  { %v9057_v60 = vld [vmem:[#allocation18 + $0xe0] sm:$0xf0]  ;;  %v1147_v19 = vmul.f32 %v1146_v12, %v14457_v9  ;;  %v1214_v8 = vmul.f32 %v14547_v20, %v14488_v34  ;;  %v1186_v9 = vsel %vm14493_vm4, %v14497_v40, %v1181_v56  ;;  %vm1219_vm12 = vweird.f32 %v14547_v20  ;;  %v9447_v12 = vld [vmem:[#allocation18 + $0x3c8] sm:$0xf] }
 0x316   :  { %v12705_v0 = vld [vmem:[#allocation18 + $0x2c4] sm:$0xf]  ;;  %v9060_v27 = vor.u32 %v12641_v7, %v9057_v60  ;;  %v8953_v52 = vclamps-f32 %v1107_v25, 1.0  ;;  %2890 = vmatpush.bf16.msra.mxu1 %v9860_v18  ;;  %v1187_v63 = vmul.f32 %v1186_v9, %v1162_v50  ;;  %v1225_v7 = vor.u32 1.1754944e-38, %v1224_v32  ;;  %vm14575_vm14 = vmor %vm1218_vm13, %vm1219_vm12  ;;  %v12678_v25 = vld [vmem:[#allocation18 + $0x1e4] sm:$0xf0] }
 0x317   :  { %v9313_v15 = vld [vmem:[#allocation18 + $0x2e0] sm:$0xf0]  ;;  %v8954_v54 = vclamps-f32 %v1147_v19, 1.0  ;;  %v1215_v2 = vsub.f32 1.0, %v1214_v8  ;;  %v9192_v56 = vor.u32 %v12678_v25, %v9191_v31  ;;  %v12734_v9 = vld [vmem:[#allocation18 + $0x3a4] sm:$0xf0] }
 0x318   :  { %v12769_v58 = vld [vmem:[#allocation18 + $0x4c4] sm:$0xf]  ;;  %v9316_v30 = vor.u32 %v12705_v0, %v9313_v15  ;;  %2852 = vmatpush.bf16.msrb.mxu2 %v9060_v27  ;;  %v1230_v60 = vadd.f32 1.0, %v8953_v52  ;;  %v8955_v33 = vclamps-f32 %v1187_v63, 1.0  ;;  %v9415_v52 = vld [vmem:[#allocation18 + $0x388] sm:$0xf] }
 0x319   :  { %v9569_v35 = vld [vmem:[#allocation18 + $0x4e0] sm:$0xf0]  ;;  %v1216_v13 = vmul.f32 %v14547_v20, %v1215_v2  ;;  %v1231_v0 = vadd.f32 1.0, %v8954_v54  ;;  %v9959_v63 = vld [vmem:[#allocation18 + $0x7c8] sm:$0xf] }
 0x31a   :  { %v12833_v10 = vld [vmem:[#allocation18 + $0x6c4] sm:$0xf]  ;;  %v9572_v17 = vor.u32 %v12769_v58, %v9569_v35  ;;  %2865 = vmatpush.bf16.msrb.mxu3 %v9316_v30  ;;  %v1234_v22 = vmul.f32 %v1230_v60, %v14429_v36  ;;  %v1232_v18 = vadd.f32 1.0, %v8955_v33  ;;  %v12742_v30 = vld [vmem:[#allocation18 + $0x3e4] sm:$0xf0] }
 0x31b   :  { %v9825_v29 = vld [vmem:[#allocation18 + $0x6e0] sm:$0xf0]  ;;  %v1217_v51 = vadd.f32 %v14547_v20, %v1216_v13  ;;  %v1235_v34 = vmul.f32 %v1231_v0, %v14432_v37  ;;  %v9448_v8 = vor.u32 %v12742_v30, %v9447_v12  ;;  %v12870_v2 = vld [vmem:[#allocation18 + $0x7e4] sm:$0xf0] }
 0x31c   :  { %v12633_v26 = vld [vmem:[#allocation18 + $0x84] sm:$0xf]  ;;  %v9828_v62 = vor.u32 %v12833_v10, %v9825_v29  ;;  %2878 = vmatpush.bf16.msra.mxu0 %v9572_v17  ;;  %v1202_v29 = vmul.f32 %v14529_v6, %v14375_v1  ;;  %v14582_v24 = vpack.c.bf16 %v1234_v22, %v1234_v22  ;;  %v9960_v33 = vor.u32 %v12870_v2, %v9959_v63  ;;  %v9639_v13 = vld [vmem:[#allocation18 + $0x548] sm:$0xf] }
 0x31d   :  { %v9025_v59 = vld [vmem:[#allocation18 + $0xa0] sm:$0xf0]  ;;  %v1221_v32 = vsel %vm14575_vm14, %v14547_v20, %v1217_v51  ;;  %v14588_v37 = vpack.c.bf16 %v1235_v34, %v1235_v34  ;;  %v12718_v51 = vld [vmem:[#allocation18 + $0x324] sm:$0xf0] }
 0x31e   :  { %v12697_v45 = vld [vmem:[#allocation18 + $0x284] sm:$0xf]  ;;  %v9028_v5 = vor.u32 %v12633_v26, %v9025_v59  ;;  %2891 = vmatpush.bf16.msra.mxu1 %v9828_v62  ;;  %v1236_v26 = vmul.f32 %v1232_v18, %v14443_v48  ;;  %v1226_v1 = vsel %vm14561_vm11, %v1225_v7, %v1221_v32  ;;  %2804 = vmatmul.bf16.vlgmr.msra.gmra.mxu2 %v14582_v24  ;;  %v9607_v18 = vld [vmem:[#allocation18 + $0x508] sm:$0xf] }
 0x31f   :  { %v9281_v46 = vld [vmem:[#allocation18 + $0x2a0] sm:$0xf0]  ;;  %2817 = vmatmul.bf16.vlgmr.msra.gmra.mxu3 %v14588_v37  ;;  %v12782_v34 = vld [vmem:[#allocation18 + $0x524] sm:$0xf0] }
 0x320   :  { %v12761_v43 = vld [vmem:[#allocation18 + $0x484] sm:$0xf]  ;;  %v9284_v3 = vor.u32 %v12697_v45, %v9281_v46  ;;  %2853 = vmatpush.bf16.msrb.mxu2 %v9028_v5  ;;  %v9703_v45 = vld [vmem:[#allocation18 + $0x5c8] sm:$0xf]  ;;  %v14592_v19 = vpack.c.bf16 %v1236_v26, %v1236_v26 }
 0x321   :  { %v9537_v57 = vld [vmem:[#allocation18 + $0x4a0] sm:$0xf0]  ;;  %v12806_v46 = vld [vmem:[#allocation18 + $0x5e4] sm:$0xf0] }
 0x322   :  { %v12825_v14 = vld [vmem:[#allocation18 + $0x684] sm:$0xf]  ;;  %v9540_v47 = vor.u32 %v12761_v43, %v9537_v57  ;;  %2866 = vmatpush.bf16.msrb.mxu3 %v9284_v3  ;;  %v1227_v43 = vmul.f32 %v1226_v1, %v1202_v29  ;;  %v12670_v57 = vld [vmem:[#allocation18 + $0x1a4] sm:$0xf0]  ;;  %2830 = vmatmul.bf16.vlgmr.msrb.gmra.mxu0 %v14592_v19 }
 0x323   :  { %v9793_v21 = vld [vmem:[#allocation18 + $0x6a0] sm:$0xf0]  ;;  %v9671_v5 = vld [vmem:[#allocation18 + $0x588] sm:$0xf]  ;;  %v9160_v3 = vor.u32 %v12670_v57, %v9159_v44 }
 0x324   :  { %v12625_v28 = vld [vmem:[#allocation18 + $0x44] sm:$0xf]  ;;  %v9796_v15 = vor.u32 %v12825_v14, %v9793_v21  ;;  %2879 = vmatpush.bf16.msra.mxu0 %v9540_v47  ;;  %v8956_v14 = vclamps-f32 %v1227_v43, 1.0  ;;  %v9704_v21 = vor.u32 %v12806_v46, %v9703_v45  ;;  %v12662_v47 = vld [vmem:[#allocation18 + $0x164] sm:$0xf0] }
 0x325   :  { %v8993_v53 = vld [vmem:[#allocation18 + $0x60] sm:$0xf0]  ;;  %v12646_v31 = vld [vmem:[#allocation18 + $0xe4] sm:$0xf0] }
 0x326   :  { %v12689_v4 = vld [vmem:[#allocation18 + $0x244] sm:$0xf]  ;;  %v8996_v61 = vor.u32 %v12625_v28, %v8993_v53  ;;  %2892 = vmatpush.bf16.msra.mxu1 %v9796_v15  ;;  %v12798_v28 = vld [vmem:[#allocation18 + $0x5a4] sm:$0xf0]  ;;  %v1065_v53 = vmul.f32 0.5, %v14363_v42  ;;  %v1233_v54 = vadd.f32 1.0, %v8956_v14 }
 0x327   :  { %v9249_v49 = vld [vmem:[#allocation18 + $0x260] sm:$0xf0]  ;;  %v9672_v60 = vor.u32 %v12798_v28, %v9671_v5  ;;  %v12790_v42 = vld [vmem:[#allocation18 + $0x564] sm:$0xf0] }
 0x328   :  { %v12753_v40 = vld [vmem:[#allocation18 + $0x444] sm:$0xf]  ;;  %v9252_v23 = vor.u32 %v12689_v4, %v9249_v49  ;;  %2854 = vmatpush.bf16.msrb.mxu2 %v8996_v61  ;;  %v9416_v4 = vor.u32 %v12734_v9, %v9415_v52  ;;  %v9127_v49 = vld [vmem:[#allocation18 + $0x148] sm:$0xf]  ;;  %v1237_v7 = vmul.f32 %v1233_v54, %v1065_v53 }
 0x329   :  { %v9505_v11 = vld [vmem:[#allocation18 + $0x460] sm:$0xf0]  ;;  %v9927_v15 = vld [vmem:[#allocation18 + $0x788] sm:$0xf]  ;;  %v9128_v22 = vor.u32 %v12662_v47, %v9127_v49 }
 0x32a   :  { %v12817_v16 = vld [vmem:[#allocation18 + $0x644] sm:$0xf]  ;;  %v9508_v36 = vor.u32 %v12753_v40, %v9505_v11  ;;  %2867 = vmatpush.bf16.msrb.mxu3 %v9252_v23  ;;  %v9383_v40 = vld [vmem:[#allocation18 + $0x348] sm:$0xf]  ;;  %v14598_v0 = vpack.c.bf16 %v1237_v7, %v1237_v7 }
 0x32b   :  { %v9761_v55 = vld [vmem:[#allocation18 + $0x660] sm:$0xf0]  ;;  %v12726_v11 = vld [vmem:[#allocation18 + $0x364] sm:$0xf0] }
 0x32c   :  { %v12617_v58 = vld [vmem:[#allocation18 + $0x4] sm:$0xf]  ;;  %v9764_v59 = vor.u32 %v12817_v16, %v9761_v55  ;;  %2880 = vmatpush.bf16.msra.mxu0 %v9508_v36  ;;  %v12862_v16 = vld [vmem:[#allocation18 + $0x7a4] sm:$0xf0]  ;;  %v9384_v61 = vor.u32 %v12726_v11, %v9383_v40  ;;  %2843 = vmatmul.bf16.vlgmr.msrb.gmra.mxu1 %v14598_v0  ;;  %v9640_v55 = vor.u32 %v12790_v42, %v9639_v13 }
 0x32d   :  { %v8961_v35 = vld [vmem:[#allocation18 + $0x20] sm:$0xf0]  ;;  %v9095_v23 = vld [vmem:[#allocation18 + $0x108] sm:$0xf]  ;;  %v9928_v38 = vor.u32 %v12862_v16, %v9927_v15  ;;  %v12674_v16 = vld [vmem:[#allocation18 + $0x1cc] sm:$0xf] }
 0x32e   :  { %v12681_v27 = vld [vmem:[#allocation18 + $0x204] sm:$0xf]  ;;  %v8964_v6 = vor.u32 %v12617_v58, %v8961_v35  ;;  %2893 = vmatpush.bf16.msra.mxu1 %v9764_v59  ;;  %v12654_v58 = vld [vmem:[#allocation18 + $0x124] sm:$0xf0] }
 0x32f   :  { %v9217_v10 = vld [vmem:[#allocation18 + $0x220] sm:$0xf0]  ;;  %v9351_v35 = vld [vmem:[#allocation18 + $0x308] sm:$0xf] }
 0x330   :  { %v12745_v39 = vld [vmem:[#allocation18 + $0x404] sm:$0xf]  ;;  %v9220_v17 = vor.u32 %v12681_v27, %v9217_v10  ;;  %2855 = vmatpush.bf16.msrb.mxu2 %v8964_v6  ;;  %v9895_v36 = vld [vmem:[#allocation18 + $0x748] sm:$0xf]  ;;  %v9096_v10 = vor.u32 %v12654_v58, %v9095_v23  ;;  %v9352_v29 = vor.u32 %v12718_v51, %v9351_v35  ;;  %v12738_v23 = vld [vmem:[#allocation18 + $0x3cc] sm:$0xf] }
 0x331   :  { %v9473_v41 = vld [vmem:[#allocation18 + $0x420] sm:$0xf0]  ;;  %v12854_v27 = vld [vmem:[#allocation18 + $0x764] sm:$0xf0]  ;;  %v12802_v51 = vld [vmem:[#allocation18 + $0x5cc] sm:$0xf] }
 0x332   :  { %v9476_v48 = vor.u32 %v12745_v39, %v9473_v41  ;;  %v12809_v20 = vld [vmem:[#allocation18 + $0x604] sm:$0xf]  ;;  %2868 = vmatpush.bf16.msrb.mxu3 %v9220_v17  ;;  %v9063_v39 = vld [vmem:[#allocation18 + $0xc8] sm:$0xf]  ;;  %v9608_v41 = vor.u32 %v12782_v34, %v9607_v18  ;;  %v9896_v59 = vor.u32 %v12854_v27, %v9895_v36 }
 0x333   :  { %v9729_v50 = vld [vmem:[#allocation18 + $0x620] sm:$0xf0]  ;;  %v9319_v32 = vld [vmem:[#allocation18 + $0x2c8] sm:$0xf]  ;;  %v9064_v6 = vor.u32 %v12646_v31, %v9063_v39  ;;  %2856 = vmatmul.bf16.vlgmr.msrb.gmra.mxu2 %v14582_v24  ;;  %v12666_v39 = vld [vmem:[#allocation18 + $0x18c] sm:$0xf] }
 0x334   :  { %v9732_v62 = vor.u32 %v12809_v20, %v9729_v50  ;;  %2881 = vmatpush.bf16.msra.mxu0 %v9476_v48  ;;  %2900 = vmatpush.bf16.msra.mxu2 %v9192_v56  ;;  %v12710_v26 = vld [vmem:[#allocation18 + $0x2e4] sm:$0xf0] }
 0x335   :  { %v9575_v25 = vld [vmem:[#allocation18 + $0x4c8] sm:$0xf]  ;;  %v9320_v17 = vor.u32 %v12710_v26, %v9319_v32  ;;  %2869 = vmatmul.bf16.vlgmr.msrb.gmra.mxu3 %v14588_v37  ;;  %v12866_v32 = vld [vmem:[#allocation18 + $0x7cc] sm:$0xf] }
 0x336   :  { %2913 = vmatpush.bf16.msra.mxu3 %v9448_v8  ;;  %2894 = vmatpush.bf16.msra.mxu1 %v9732_v62  ;;  %v12774_v12 = vld [vmem:[#allocation18 + $0x4e4] sm:$0xf0]  ;;  %v12730_v26 = vld [vmem:[#allocation18 + $0x38c] sm:$0xf] }
 0x337   :  { %v9863_v30 = vld [vmem:[#allocation18 + $0x708] sm:$0xf]  ;;  %v9576_v46 = vor.u32 %v12774_v12, %v9575_v25  ;;  %2882 = vmatmul.bf16.vlgmr.msra.gmra.mxu0 %v14592_v19  ;;  %v9961_v25 = vld [vmem:[#allocation18 + $0x7e8] sm:$0xf0] }
 0x338   :  { %2926 = vmatpush.bf16.msrb.mxu0 %v9704_v21  ;;  %2901 = vmatpush.bf16.msra.mxu2 %v9160_v3  ;;  %v12846_v1 = vld [vmem:[#allocation18 + $0x724] sm:$0xf0]  ;;  %v12794_v12 = vld [vmem:[#allocation18 + $0x58c] sm:$0xf] }
 0x339   :  { %v9031_v45 = vld [vmem:[#allocation18 + $0x88] sm:$0xf]  ;;  %v9864_v50 = vor.u32 %v12846_v1, %v9863_v30  ;;  %v9673_v30 = vld [vmem:[#allocation18 + $0x5a8] sm:$0xf0] }
 0x33a   :  { %2914 = vmatpush.bf16.msra.mxu3 %v9416_v4  ;;  %2939 = vmatpush.bf16.msrb.mxu1 %v9960_v33  ;;  %v12638_v43 = vld [vmem:[#allocation18 + $0xa4] sm:$0xf0] }
 0x33b   :  { %v9287_v48 = vld [vmem:[#allocation18 + $0x288] sm:$0xf]  ;;  %v9032_v14 = vor.u32 %v12638_v43, %v9031_v45  ;;  %v12658_v45 = vld [vmem:[#allocation18 + $0x14c] sm:$0xf]  ;;  %v9964_v43 = vor.u32 %v12866_v32, %v9961_v25 }
 0x33c   :  { %2927 = vmatpush.bf16.msrb.mxu0 %v9672_v60  ;;  %2902 = vmatpush.bf16.msra.mxu2 %v9128_v22  ;;  %v12702_v20 = vld [vmem:[#allocation18 + $0x2a4] sm:$0xf0]  ;;  %v9193_v22 = vld [vmem:[#allocation18 + $0x1e8] sm:$0xf0] }
 0x33d   :  { %v9543_v56 = vld [vmem:[#allocation18 + $0x488] sm:$0xf]  ;;  %v9288_v21 = vor.u32 %v12702_v20, %v9287_v48  ;;  %2895 = vmatmul.bf16.vlgmr.msra.gmra.mxu1 %v14598_v0  ;;  %v9196_v36 = vor.u32 %v12674_v16, %v9193_v22  ;;  %v9676_v48 = vor.u32 %v12794_v12, %v9673_v30  ;;  %v12858_v20 = vld [vmem:[#allocation18 + $0x78c] sm:$0xf] }
 0x33e   :  { %2915 = vmatpush.bf16.msra.mxu3 %v9384_v61  ;;  %2940 = vmatpush.bf16.msrb.mxu1 %v9928_v38  ;;  %v12766_v8 = vld [vmem:[#allocation18 + $0x4a4] sm:$0xf0]  ;;  %v9705_v38 = vld [vmem:[#allocation18 + $0x5e8] sm:$0xf0] }
 0x33f   :  { %v9831_v44 = vld [vmem:[#allocation18 + $0x6c8] sm:$0xf]  ;;  %v9544_v9 = vor.u32 %v12766_v8, %v9543_v56  ;;  %v9708_v31 = vor.u32 %v12802_v51, %v9705_v38  ;;  %v9385_v56 = vld [vmem:[#allocation18 + $0x368] sm:$0xf0] }
 0x340   :  { %2928 = vmatpush.bf16.msrb.mxu0 %v9640_v55  ;;  %2903 = vmatpush.bf16.msra.mxu2 %v9096_v10  ;;  %v12838_v57 = vld [vmem:[#allocation18 + $0x6e4] sm:$0xf0]  ;;  %v9449_v55 = vld [vmem:[#allocation18 + $0x3e8] sm:$0xf0] }
 0x341   :  { %v8999_v52 = vld [vmem:[#allocation18 + $0x48] sm:$0xf]  ;;  %v9832_v53 = vor.u32 %v12838_v57, %v9831_v44  ;;  %v9929_v8 = vld [vmem:[#allocation18 + $0x7a8] sm:$0xf0] }
 0x342   :  { %2916 = vmatpush.bf16.msra.mxu3 %v9352_v29  ;;  %2941 = vmatpush.bf16.msrb.mxu1 %v9896_v59  ;;  %v12630_v62 = vld [vmem:[#allocation18 + $0x64] sm:$0xf0]  ;;  %v9452_v29 = vor.u32 %v12738_v23, %v9449_v55  ;;  %v9417_v59 = vld [vmem:[#allocation18 + $0x3a8] sm:$0xf0] }
 0x343   :  { %v9255_v5 = vld [vmem:[#allocation18 + $0x248] sm:$0xf]  ;;  %v9000_v4 = vor.u32 %v12630_v62, %v8999_v52  ;;  %v12786_v44 = vld [vmem:[#allocation18 + $0x54c] sm:$0xf]  ;;  %v9932_v62 = vor.u32 %v12858_v20, %v9929_v8 }
 0x344   :  { %2929 = vmatpush.bf16.msrb.mxu0 %v9608_v41  ;;  %2904 = vmatpush.bf16.msra.mxu2 %v9064_v6  ;;  %v12694_v28 = vld [vmem:[#allocation18 + $0x264] sm:$0xf0]  ;;  %v9161_v41 = vld [vmem:[#allocation18 + $0x1a8] sm:$0xf0] }
 0x345   :  { %v9511_v54 = vld [vmem:[#allocation18 + $0x448] sm:$0xf]  ;;  %v9256_v49 = vor.u32 %v12694_v28, %v9255_v5  ;;  %v9164_v1 = vor.u32 %v12666_v39, %v9161_v41  ;;  %v9641_v57 = vld [vmem:[#allocation18 + $0x568] sm:$0xf0] }
 0x346   :  { %2917 = vmatpush.bf16.msra.mxu3 %v9320_v17  ;;  %2942 = vmatpush.bf16.msrb.mxu1 %v9864_v50  ;;  %v12758_v63 = vld [vmem:[#allocation18 + $0x464] sm:$0xf0]  ;;  %v9420_v17 = vor.u32 %v12730_v26, %v9417_v59  ;;  %v12722_v50 = vld [vmem:[#allocation18 + $0x34c] sm:$0xf]  ;;  %v9644_v5 = vor.u32 %v12786_v44, %v9641_v57  ;;  %v9199_v44 = vld [vmem:[#allocation18 + $0x1d0] sm:$0xf] }
 0x347   :  { %v9799_v2 = vld [vmem:[#allocation18 + $0x688] sm:$0xf]  ;;  %v9512_v47 = vor.u32 %v12758_v63, %v9511_v54  ;;  %v12650_v52 = vld [vmem:[#allocation18 + $0x10c] sm:$0xf]  ;;  %v12679_v57 = vld [vmem:[#allocation18 + $0x1ec] sm:$0xf0] }
 0x348   :  { %2930 = vmatpush.bf16.msrb.mxu0 %v9576_v46  ;;  %v12830_v3 = vld [vmem:[#allocation18 + $0x6a4] sm:$0xf0]  ;;  %2905 = vmatpush.bf16.msra.mxu2 %v9032_v14  ;;  %v9129_v46 = vld [vmem:[#allocation18 + $0x168] sm:$0xf0] }
 0x349   :  { %v8967_v7 = vld [vmem:[#allocation18 + $0x8] sm:$0xf]  ;;  %v9800_v42 = vor.u32 %v12830_v3, %v9799_v2  ;;  %v9132_v14 = vor.u32 %v12658_v45, %v9129_v46  ;;  %v12850_v28 = vld [vmem:[#allocation18 + $0x74c] sm:$0xf] }
 0x34a   :  { %2918 = vmatpush.bf16.msra.mxu3 %v9288_v21  ;;  %v12622_v60 = vld [vmem:[#allocation18 + $0x24] sm:$0xf0]  ;;  %2943 = vmatpush.bf16.msrb.mxu1 %v9832_v53  ;;  %v9388_v21 = vor.u32 %v12722_v50, %v9385_v56  ;;  %v12714_v53 = vld [vmem:[#allocation18 + $0x30c] sm:$0xf] }
 0x34b   :  { %v9767_v40 = vld [vmem:[#allocation18 + $0x648] sm:$0xf]  ;;  %v8968_v58 = vor.u32 %v12622_v60, %v8967_v7  ;;  %v9353_v54 = vld [vmem:[#allocation18 + $0x328] sm:$0xf0] }
 0x34c   :  { %2931 = vmatpush.bf16.msrb.mxu0 %v9544_v9  ;;  %v9223_v11 = vld [vmem:[#allocation18 + $0x208] sm:$0xf]  ;;  %2906 = vmatpush.bf16.msra.mxu2 %v9000_v4  ;;  %v9097_v9 = vld [vmem:[#allocation18 + $0x128] sm:$0xf0] }
 0x34d   :  { %v12686_v33 = vld [vmem:[#allocation18 + $0x224] sm:$0xf0]  ;;  %v9897_v63 = vld [vmem:[#allocation18 + $0x768] sm:$0xf0]  ;;  %v9100_v4 = vor.u32 %v12650_v52, %v9097_v9  ;;  %v9455_v52 = vld [vmem:[#allocation18 + $0x3d0] sm:$0xf] }
 0x34e   :  { %v9479_v13 = vld [vmem:[#allocation18 + $0x408] sm:$0xf]  ;;  %2919 = vmatpush.bf16.msra.mxu3 %v9256_v49  ;;  %v9224_v35 = vor.u32 %v12686_v33, %v9223_v11  ;;  %2944 = vmatpush.bf16.msrb.mxu1 %v9800_v42  ;;  %v12778_v2 = vld [vmem:[#allocation18 + $0x50c] sm:$0xf]  ;;  %v9356_v49 = vor.u32 %v12714_v53, %v9353_v54  ;;  %v9200_v54 = vor.u32 %v12679_v57, %v9199_v44  ;;  %v9583_v57 = vld [vmem:[#allocation18 + $0x4d0] sm:$0xf] }
 0x34f   :  { %v12750_v15 = vld [vmem:[#allocation18 + $0x424] sm:$0xf0]  ;;  %v9609_v3 = vld [vmem:[#allocation18 + $0x528] sm:$0xf0] }
 0x350   :  { %v12822_v61 = vld [vmem:[#allocation18 + $0x664] sm:$0xf0]  ;;  %2932 = vmatpush.bf16.msrb.mxu0 %v9512_v47  ;;  %v9480_v18 = vor.u32 %v12750_v15, %v9479_v13  ;;  %2907 = vmatpush.bf16.msra.mxu2 %v8968_v58  ;;  %v12642_v7 = vld [vmem:[#allocation18 + $0xcc] sm:$0xf]  ;;  %v9900_v47 = vor.u32 %v12850_v28, %v9897_v63  ;;  %v12807_v28 = vld [vmem:[#allocation18 + $0x5ec] sm:$0xf0] }
 0x351   :  { %v9735_v34 = vld [vmem:[#allocation18 + $0x608] sm:$0xf]  ;;  %v9768_v27 = vor.u32 %v12822_v61, %v9767_v40  ;;  %v9065_v60 = vld [vmem:[#allocation18 + $0xe8] sm:$0xf0]  ;;  %v9612_v40 = vor.u32 %v12778_v2, %v9609_v3  ;;  %v9167_v3 = vld [vmem:[#allocation18 + $0x190] sm:$0xf] }
 0x352   :  { %v12814_v10 = vld [vmem:[#allocation18 + $0x624] sm:$0xf0]  ;;  %2920 = vmatpush.bf16.msra.mxu3 %v9224_v35  ;;  %v12842_v11 = vld [vmem:[#allocation18 + $0x70c] sm:$0xf]  ;;  %v9068_v22 = vor.u32 %v12642_v7, %v9065_v60 }
 0x353   :  { %2945 = vmatpush.bf16.msrb.mxu1 %v9768_v27  ;;  %v9736_v6 = vor.u32 %v12814_v10, %v9735_v34  ;;  %2908 = vmatmul.bf16.vlgmr.msra.gmra.mxu2 %v14582_v24  ;;  %v12706_v33 = vld [vmem:[#allocation18 + $0x2cc] sm:$0xf] }
 0x354   :  { %2933 = vmatpush.bf16.msrb.mxu0 %v9480_v18  ;;  %2952 = vmatpush.bf16.msrb.mxu2 %v9196_v36  ;;  %v9321_v13 = vld [vmem:[#allocation18 + $0x2e8] sm:$0xf0] }
 0x355   :  { %2921 = vmatmul.bf16.vlgmr.msra.gmra.mxu3 %v14588_v37  ;;  %v9865_v42 = vld [vmem:[#allocation18 + $0x728] sm:$0xf0]  ;;  %v9324_v61 = vor.u32 %v12706_v33, %v9321_v13  ;;  %v9423_v33 = vld [vmem:[#allocation18 + $0x390] sm:$0xf] }
 0x356   :  { %2965 = vmatpush.bf16.msrb.mxu3 %v9452_v29  ;;  %v12770_v15 = vld [vmem:[#allocation18 + $0x4cc] sm:$0xf]  ;;  %v9868_v58 = vor.u32 %v12842_v11, %v9865_v42  ;;  %v12871_v11 = vld [vmem:[#allocation18 + $0x7ec] sm:$0xf0] }
 0x357   :  { %2934 = vmatmul.bf16.vlgmr.msrb.gmra.mxu0 %v14592_v19  ;;  %2946 = vmatpush.bf16.msrb.mxu1 %v9736_v6  ;;  %v9577_v16 = vld [vmem:[#allocation18 + $0x4e8] sm:$0xf0]  ;;  %v12735_v13 = vld [vmem:[#allocation18 + $0x3ac] sm:$0xf0] }
 0x358   :  { %2978 = vmatpush.bf16.msra.mxu0 %v9708_v31  ;;  %2953 = vmatpush.bf16.msrb.mxu2 %v9164_v1  ;;  %v12634_v23 = vld [vmem:[#allocation18 + $0x8c] sm:$0xf]  ;;  %v9580_v35 = vor.u32 %v12770_v15, %v9577_v16  ;;  %v9679_v15 = vld [vmem:[#allocation18 + $0x590] sm:$0xf] }
 0x359   :  { %v9033_v55 = vld [vmem:[#allocation18 + $0xa8] sm:$0xf0]  ;;  %v12799_v16 = vld [vmem:[#allocation18 + $0x5ac] sm:$0xf0] }
 0x35a   :  { %2966 = vmatpush.bf16.msrb.mxu3 %v9420_v17  ;;  %2947 = vmatmul.bf16.vlgmr.msrb.gmra.mxu1 %v14598_v0  ;;  %v12834_v51 = vld [vmem:[#allocation18 + $0x6cc] sm:$0xf]  ;;  %v9036_v10 = vor.u32 %v12634_v23, %v9033_v55  ;;  %v12663_v23 = vld [vmem:[#allocation18 + $0x16c] sm:$0xf0] }
 0x35b   :  { %2991 = vmatpush.bf16.msra.mxu1 %v9964_v43  ;;  %v12698_v38 = vld [vmem:[#allocation18 + $0x28c] sm:$0xf] }
 0x35c   :  { %2979 = vmatpush.bf16.msra.mxu0 %v9676_v48  ;;  %2954 = vmatpush.bf16.msrb.mxu2 %v9132_v14  ;;  %v9289_v18 = vld [vmem:[#allocation18 + $0x2a8] sm:$0xf0] }
 0x35d   :  { %v9833_v34 = vld [vmem:[#allocation18 + $0x6e8] sm:$0xf0]  ;;  %v9292_v29 = vor.u32 %v12698_v38, %v9289_v18  ;;  %v12863_v38 = vld [vmem:[#allocation18 + $0x7ac] sm:$0xf0] }
 0x35e   :  { %2967 = vmatpush.bf16.msrb.mxu3 %v9388_v21  ;;  %v12762_v36 = vld [vmem:[#allocation18 + $0x48c] sm:$0xf]  ;;  %v9836_v31 = vor.u32 %v12834_v51, %v9833_v34  ;;  %v9680_v51 = vor.u32 %v12799_v16, %v9679_v15  ;;  %v9391_v18 = vld [vmem:[#allocation18 + $0x350] sm:$0xf] }
 0x35f   :  { %2992 = vmatpush.bf16.msra.mxu1 %v9932_v62  ;;  %v9545_v27 = vld [vmem:[#allocation18 + $0x4a8] sm:$0xf0]  ;;  %v12743_v62 = vld [vmem:[#allocation18 + $0x3ec] sm:$0xf0] }
 0x360   :  { %2980 = vmatpush.bf16.msra.mxu0 %v9644_v5  ;;  %2955 = vmatpush.bf16.msrb.mxu2 %v9100_v4  ;;  %v12626_v39 = vld [vmem:[#allocation18 + $0x4c] sm:$0xf]  ;;  %v9548_v32 = vor.u32 %v12762_v36, %v9545_v27  ;;  %v9711_v5 = vld [vmem:[#allocation18 + $0x5d0] sm:$0xf]  ;;  %v9456_v60 = vor.u32 %v12743_v62, %v9455_v52 }
 0x361   :  { %v9001_v41 = vld [vmem:[#allocation18 + $0x68] sm:$0xf0]  ;;  %v12671_v4 = vld [vmem:[#allocation18 + $0x1ac] sm:$0xf0] }
 0x362   :  { %2968 = vmatpush.bf16.msrb.mxu3 %v9356_v49  ;;  %v12826_v26 = vld [vmem:[#allocation18 + $0x68c] sm:$0xf]  ;;  %v9004_v6 = vor.u32 %v12626_v39, %v9001_v41  ;;  %v9168_v42 = vor.u32 %v12671_v4, %v9167_v3  ;;  %v12727_v34 = vld [vmem:[#allocation18 + $0x36c] sm:$0xf0] }
 0x363   :  { %2993 = vmatpush.bf16.msra.mxu1 %v9900_v47  ;;  %v12690_v59 = vld [vmem:[#allocation18 + $0x24c] sm:$0xf]  ;;  %v9712_v47 = vor.u32 %v12807_v28, %v9711_v5  ;;  %v9647_v27 = vld [vmem:[#allocation18 + $0x550] sm:$0xf] }
 0x364   :  { %2981 = vmatpush.bf16.msra.mxu0 %v9612_v40  ;;  %2956 = vmatpush.bf16.msrb.mxu2 %v9068_v22  ;;  %v9257_v25 = vld [vmem:[#allocation18 + $0x268] sm:$0xf0]  ;;  %v9967_v40 = vld [vmem:[#allocation18 + $0x7d0] sm:$0xf] }
 0x365   :  { %v9801_v12 = vld [vmem:[#allocation18 + $0x6a8] sm:$0xf0]  ;;  %v9260_v17 = vor.u32 %v12690_v59, %v9257_v25  ;;  %v9968_v55 = vor.u32 %v12871_v11, %v9967_v40  ;;  %v12655_v39 = vld [vmem:[#allocation18 + $0x12c] sm:$0xf0] }
 0x366   :  { %2969 = vmatpush.bf16.msrb.mxu3 %v9324_v61  ;;  %v12754_v30 = vld [vmem:[#allocation18 + $0x44c] sm:$0xf]  ;;  %v9804_v50 = vor.u32 %v12826_v26, %v9801_v12  ;;  %v9135_v61 = vld [vmem:[#allocation18 + $0x150] sm:$0xf] }
 0x367   :  { %2994 = vmatpush.bf16.msra.mxu1 %v9868_v58  ;;  %v9513_v1 = vld [vmem:[#allocation18 + $0x468] sm:$0xf0]  ;;  %v9424_v58 = vor.u32 %v12735_v13, %v9423_v33  ;;  %v9136_v36 = vor.u32 %v12663_v23, %v9135_v61  ;;  %v12855_v59 = vld [vmem:[#allocation18 + $0x76c] sm:$0xf0] }
 0x368   :  { %2982 = vmatpush.bf16.msra.mxu0 %v9580_v35  ;;  %2957 = vmatpush.bf16.msrb.mxu2 %v9036_v10  ;;  %v12818_v45 = vld [vmem:[#allocation18 + $0x64c] sm:$0xf]  ;;  %v9516_v56 = vor.u32 %v12754_v30, %v9513_v1  ;;  %v9935_v35 = vld [vmem:[#allocation18 + $0x790] sm:$0xf] }
 0x369   :  { %v9769_v46 = vld [vmem:[#allocation18 + $0x668] sm:$0xf0]  ;;  %v12791_v10 = vld [vmem:[#allocation18 + $0x56c] sm:$0xf0]  ;;  %v9936_v41 = vor.u32 %v12863_v38, %v9935_v35  ;;  %v12675_v38 = vld [vmem:[#allocation18 + $0x1d4] sm:$0xf] }
 0x36a   :  { %2970 = vmatpush.bf16.msrb.mxu3 %v9292_v29  ;;  %v12618_v43 = vld [vmem:[#allocation18 + $0xc] sm:$0xf]  ;;  %v9772_v63 = vor.u32 %v12818_v45, %v9769_v46  ;;  %v9103_v29 = vld [vmem:[#allocation18 + $0x110] sm:$0xf]  ;;  %v9648_v26 = vor.u32 %v12791_v10, %v9647_v27 }
 0x36b   :  { %v8969_v48 = vld [vmem:[#allocation18 + $0x28] sm:$0xf0]  ;;  %2995 = vmatpush.bf16.msra.mxu1 %v9836_v31  ;;  %v9392_v31 = vor.u32 %v12727_v34, %v9391_v18  ;;  %v9359_v25 = vld [vmem:[#allocation18 + $0x310] sm:$0xf]  ;;  %v9104_v30 = vor.u32 %v12655_v39, %v9103_v29  ;;  %v9201_v18 = vld [vmem:[#allocation18 + $0x1f0] sm:$0xf0] }
 0x36c   :  { %v12682_v20 = vld [vmem:[#allocation18 + $0x20c] sm:$0xf]  ;;  %2983 = vmatpush.bf16.msra.mxu0 %v9548_v32  ;;  %2958 = vmatpush.bf16.msrb.mxu2 %v9004_v6  ;;  %v8972_v9 = vor.u32 %v12618_v43, %v8969_v48  ;;  %v9903_v32 = vld [vmem:[#allocation18 + $0x750] sm:$0xf] }
 0x36d   :  { %v9225_v8 = vld [vmem:[#allocation18 + $0x228] sm:$0xf0]  ;;  %v12719_v12 = vld [vmem:[#allocation18 + $0x32c] sm:$0xf0]  ;;  %v9904_v46 = vor.u32 %v12855_v59, %v9903_v32  ;;  %v9204_v32 = vor.u32 %v12675_v38, %v9201_v18  ;;  %v9713_v59 = vld [vmem:[#allocation18 + $0x5f0] sm:$0xf0] }
 0x36e   :  { %v12746_v14 = vld [vmem:[#allocation18 + $0x40c] sm:$0xf]  ;;  %2971 = vmatpush.bf16.msrb.mxu3 %v9260_v17  ;;  %v9228_v53 = vor.u32 %v12682_v20, %v9225_v8  ;;  %v9615_v1 = vld [vmem:[#allocation18 + $0x510] sm:$0xf]  ;;  %v9360_v43 = vor.u32 %v12719_v12, %v9359_v25  ;;  %v9873_v38 = vld [vmem:[#allocation18 + $0x730] sm:$0xf0] }
 0x36f   :  { %v9481_v21 = vld [vmem:[#allocation18 + $0x428] sm:$0xf0]  ;;  %2996 = vmatpush.bf16.msra.mxu1 %v9804_v50  ;;  %v12783_v6 = vld [vmem:[#allocation18 + $0x52c] sm:$0xf0]  ;;  %v12707_v18 = vld [vmem:[#allocation18 + $0x2d4] sm:$0xf] }
 0x370   :  { %2984 = vmatpush.bf16.msra.mxu0 %v9516_v56  ;;  %v9484_v2 = vor.u32 %v12746_v14, %v9481_v21  ;;  %v12810_v49 = vld [vmem:[#allocation18 + $0x60c] sm:$0xf]  ;;  %2959 = vmatpush.bf16.msrb.mxu2 %v8972_v9  ;;  %v9071_v17 = vld [vmem:[#allocation18 + $0xd0] sm:$0xf]  ;;  %v9616_v20 = vor.u32 %v12783_v6, %v9615_v1  ;;  %v9169_v1 = vld [vmem:[#allocation18 + $0x1b0] sm:$0xf0] }
 0x371   :  { %v9737_v7 = vld [vmem:[#allocation18 + $0x628] sm:$0xf0]  ;;  %v12647_v45 = vld [vmem:[#allocation18 + $0xec] sm:$0xf0] }
 0x372   :  { %2972 = vmatpush.bf16.msrb.mxu3 %v9228_v53  ;;  %v9740_v22 = vor.u32 %v12810_v49, %v9737_v7  ;;  %v9871_v48 = vld [vmem:[#allocation18 + $0x710] sm:$0xf]  ;;  %v9072_v44 = vor.u32 %v12647_v45, %v9071_v17 }
 0x373   :  { %2997 = vmatpush.bf16.msra.mxu1 %v9772_v63  ;;  %2960 = vmatmul.bf16.vlgmr.msrb.gmra.mxu2 %v14582_v24  ;;  %v12847_v50 = vld [vmem:[#allocation18 + $0x72c] sm:$0xf0] }
 0x374   :  { %3004 = vmatpush.bf16.msra.mxu2 %v9200_v54  ;;  %2985 = vmatpush.bf16.msra.mxu0 %v9484_v2  ;;  %v9327_v56 = vld [vmem:[#allocation18 + $0x2d0] sm:$0xf]  ;;  %v9872_v9 = vor.u32 %v12847_v50, %v9871_v48  ;;  %v12731_v50 = vld [vmem:[#allocation18 + $0x394] sm:$0xf] }
 0x375   :  { %2973 = vmatmul.bf16.vlgmr.msrb.gmra.mxu3 %v14588_v37  ;;  %v12711_v8 = vld [vmem:[#allocation18 + $0x2ec] sm:$0xf0] }
 0x376   :  { %3017 = vmatpush.bf16.msra.mxu3 %v9456_v60  ;;  %v12775_v14 = vld [vmem:[#allocation18 + $0x4ec] sm:$0xf0]  ;;  %v9328_v62 = vor.u32 %v12711_v8, %v9327_v56  ;;  %v9425_v56 = vld [vmem:[#allocation18 + $0x3b0] sm:$0xf0] }
 0x377   :  { %2986 = vmatmul.bf16.vlgmr.msra.gmra.mxu0 %v14592_v19  ;;  %2998 = vmatpush.bf16.msra.mxu1 %v9740_v22  ;;  %v9039_v21 = vld [vmem:[#allocation18 + $0x90] sm:$0xf]  ;;  %v9584_v28 = vor.u32 %v12775_v14, %v9583_v57  ;;  %v9681_v57 = vld [vmem:[#allocation18 + $0x5b0] sm:$0xf0] }
 0x378   :  { %3030 = vmatpush.bf16.msrb.mxu0 %v9712_v47  ;;  %3005 = vmatpush.bf16.msra.mxu2 %v9168_v42  ;;  %v12639_v52 = vld [vmem:[#allocation18 + $0xac] sm:$0xf0] }
 0x379   :  { %v9839_v5 = vld [vmem:[#allocation18 + $0x6d0] sm:$0xf]  ;;  %v9040_v2 = vor.u32 %v12639_v52, %v9039_v21  ;;  %v12659_v21 = vld [vmem:[#allocation18 + $0x154] sm:$0xf] }
 0x37a   :  { %3018 = vmatpush.bf16.msra.mxu3 %v9424_v58  ;;  %2999 = vmatmul.bf16.vlgmr.msra.gmra.mxu1 %v14598_v0  ;;  %v12839_v53 = vld [vmem:[#allocation18 + $0x6ec] sm:$0xf0]  ;;  %v9137_v52 = vld [vmem:[#allocation18 + $0x170] sm:$0xf0] }
 0x37b   :  { %3043 = vmatpush.bf16.msrb.mxu1 %v9968_v55  ;;  %v9295_v54 = vld [vmem:[#allocation18 + $0x290] sm:$0xf]  ;;  %v9840_v60 = vor.u32 %v12839_v53, %v9839_v5  ;;  %v12859_v5 = vld [vmem:[#allocation18 + $0x794] sm:$0xf] }
 0x37c   :  { %3031 = vmatpush.bf16.msrb.mxu0 %v9680_v51  ;;  %3006 = vmatpush.bf16.msra.mxu2 %v9136_v36  ;;  %v12703_v63 = vld [vmem:[#allocation18 + $0x2ac] sm:$0xf0]  ;;  %v9937_v53 = vld [vmem:[#allocation18 + $0x7b0] sm:$0xf0] }
 0x37d   :  { %v9551_v3 = vld [vmem:[#allocation18 + $0x490] sm:$0xf]  ;;  %v9296_v47 = vor.u32 %v12703_v63, %v9295_v54  ;;  %v12723_v54 = vld [vmem:[#allocation18 + $0x354] sm:$0xf] }
 0x37e   :  { %3019 = vmatpush.bf16.msra.mxu3 %v9392_v31  ;;  %v12767_v4 = vld [vmem:[#allocation18 + $0x4ac] sm:$0xf0]  ;;  %v9457_v31 = vld [vmem:[#allocation18 + $0x3f0] sm:$0xf0] }
 0x37f   :  { %3044 = vmatpush.bf16.msrb.mxu1 %v9936_v41  ;;  %v9007_v49 = vld [vmem:[#allocation18 + $0x50] sm:$0xf]  ;;  %v9552_v11 = vor.u32 %v12767_v4, %v9551_v3  ;;  %v12739_v41 = vld [vmem:[#allocation18 + $0x3d4] sm:$0xf] }
 0x380   :  { %3032 = vmatpush.bf16.msrb.mxu0 %v9648_v26  ;;  %3007 = vmatpush.bf16.msra.mxu2 %v9104_v30  ;;  %v12631_v7 = vld [vmem:[#allocation18 + $0x6c] sm:$0xf0]  ;;  %v12803_v26 = vld [vmem:[#allocation18 + $0x5d4] sm:$0xf] }
 0x381   :  { %v9807_v40 = vld [vmem:[#allocation18 + $0x690] sm:$0xf]  ;;  %v9008_v15 = vor.u32 %v12631_v7, %v9007_v49  ;;  %v12667_v30 = vld [vmem:[#allocation18 + $0x194] sm:$0xf]  ;;  %v9716_v48 = vor.u32 %v12803_v26, %v9713_v59 }
 0x382   :  { %3020 = vmatpush.bf16.msra.mxu3 %v9360_v43  ;;  %v12831_v33 = vld [vmem:[#allocation18 + $0x6ac] sm:$0xf0]  ;;  %v12867_v43 = vld [vmem:[#allocation18 + $0x7d4] sm:$0xf]  ;;  %v9172_v8 = vor.u32 %v12667_v30, %v9169_v1 }
 0x383   :  { %3045 = vmatpush.bf16.msrb.mxu1 %v9904_v46  ;;  %v9263_v13 = vld [vmem:[#allocation18 + $0x250] sm:$0xf]  ;;  %v9808_v58 = vor.u32 %v12831_v33, %v9807_v40  ;;  %v9460_v46 = vor.u32 %v12739_v41, %v9457_v31  ;;  %v9393_v63 = vld [vmem:[#allocation18 + $0x370] sm:$0xf0] }
 0x384   :  { %3033 = vmatpush.bf16.msrb.mxu0 %v9616_v20  ;;  %3008 = vmatpush.bf16.msra.mxu2 %v9072_v44  ;;  %v12695_v42 = vld [vmem:[#allocation18 + $0x26c] sm:$0xf0]  ;;  %v9969_v20 = vld [vmem:[#allocation18 + $0x7f0] sm:$0xf0] }
 0x385   :  { %v9519_v16 = vld [vmem:[#allocation18 + $0x450] sm:$0xf]  ;;  %v9264_v35 = vor.u32 %v12695_v42, %v9263_v13  ;;  %v12795_v44 = vld [vmem:[#allocation18 + $0x594] sm:$0xf] }
 0x386   :  { %3021 = vmatpush.bf16.msra.mxu3 %v9328_v62  ;;  %v12759_v22 = vld [vmem:[#allocation18 + $0x46c] sm:$0xf0]  ;;  %v9428_v62 = vor.u32 %v12731_v50, %v9425_v56  ;;  %v12787_v3 = vld [vmem:[#allocation18 + $0x554] sm:$0xf] }
 0x387   :  { %3046 = vmatpush.bf16.msrb.mxu1 %v9872_v9  ;;  %v9775_v61 = vld [vmem:[#allocation18 + $0x650] sm:$0xf]  ;;  %v9520_v34 = vor.u32 %v12759_v22, %v9519_v16  ;;  %v9972_v9 = vor.u32 %v12867_v43, %v9969_v20  ;;  %v9649_v4 = vld [vmem:[#allocation18 + $0x570] sm:$0xf0] }
 0x388   :  { %3034 = vmatpush.bf16.msrb.mxu0 %v9584_v28  ;;  %3009 = vmatpush.bf16.msra.mxu2 %v9040_v2  ;;  %v8975_v23 = vld [vmem:[#allocation18 + $0x10] sm:$0xf]  ;;  %v9684_v28 = vor.u32 %v12795_v44, %v9681_v57  ;;  %v9140_v2 = vor.u32 %v12659_v21, %v9137_v52  ;;  %v12651_v49 = vld [vmem:[#allocation18 + $0x114] sm:$0xf] }
 0x389   :  { %v12623_v55 = vld [vmem:[#allocation18 + $0x2c] sm:$0xf0]  ;;  %v9105_v7 = vld [vmem:[#allocation18 + $0x130] sm:$0xf0] }
 0x38a   :  { %3022 = vmatpush.bf16.msra.mxu3 %v9296_v47  ;;  %v12823_v51 = vld [vmem:[#allocation18 + $0x66c] sm:$0xf0]  ;;  %v8976_v29 = vor.u32 %v12623_v55, %v8975_v23  ;;  %v9396_v47 = vor.u32 %v12723_v54, %v9393_v63  ;;  %v12851_v40 = vld [vmem:[#allocation18 + $0x754] sm:$0xf]  ;;  %v12680_v54 = vld [vmem:[#allocation18 + $0x1f4] sm:$0xf0] }
 0x38b   :  { %3047 = vmatpush.bf16.msrb.mxu1 %v9840_v60  ;;  %v9231_v36 = vld [vmem:[#allocation18 + $0x210] sm:$0xf]  ;;  %v9776_v25 = vor.u32 %v12823_v51, %v9775_v61  ;;  %v9940_v60 = vor.u32 %v12859_v5, %v9937_v53  ;;  %v9905_v33 = vld [vmem:[#allocation18 + $0x770] sm:$0xf0]  ;;  %v9207_v53 = vld [vmem:[#allocation18 + $0x1d8] sm:$0xf] }
 0x38c   :  { %3035 = vmatpush.bf16.msrb.mxu0 %v9552_v11  ;;  %v12687_v27 = vld [vmem:[#allocation18 + $0x22c] sm:$0xf0]  ;;  %3010 = vmatpush.bf16.msra.mxu2 %v9008_v15  ;;  %v9652_v11 = vor.u32 %v12787_v3, %v9649_v4  ;;  %v12715_v13 = vld [vmem:[#allocation18 + $0x314] sm:$0xf]  ;;  %v9108_v15 = vor.u32 %v12651_v49, %v9105_v7  ;;  %v9908_v55 = vor.u32 %v12851_v40, %v9905_v33  ;;  %v12808_v33 = vld [vmem:[#allocation18 + $0x5f4] sm:$0xf0] }
 0x38d   :  { %v9487_v10 = vld [vmem:[#allocation18 + $0x410] sm:$0xf]  ;;  %v9232_v12 = vor.u32 %v12687_v27, %v9231_v36  ;;  %v9361_v42 = vld [vmem:[#allocation18 + $0x330] sm:$0xf0]  ;;  %v9208_v40 = vor.u32 %v12680_v54, %v9207_v53  ;;  %v9879_v54 = vld [vmem:[#allocation18 + $0x718] sm:$0xf] }
 0x38e   :  { %v12751_v39 = vld [vmem:[#allocation18 + $0x42c] sm:$0xf0]  ;;  %3023 = vmatpush.bf16.msra.mxu3 %v9264_v35  ;;  %v12779_v16 = vld [vmem:[#allocation18 + $0x514] sm:$0xf] }
 0x38f   :  { %3048 = vmatpush.bf16.msrb.mxu1 %v9808_v58  ;;  %v9488_v6 = vor.u32 %v12751_v39, %v9487_v10  ;;  %v9743_v17 = vld [vmem:[#allocation18 + $0x610] sm:$0xf]  ;;  %v9617_v22 = vld [vmem:[#allocation18 + $0x530] sm:$0xf0]  ;;  %v9364_v58 = vor.u32 %v12715_v13, %v9361_v42 }
 0x390   :  { %3036 = vmatpush.bf16.msrb.mxu0 %v9520_v34  ;;  %v12815_v45 = vld [vmem:[#allocation18 + $0x62c] sm:$0xf0]  ;;  %3011 = vmatpush.bf16.msra.mxu2 %v8976_v29  ;;  %v12643_v61 = vld [vmem:[#allocation18 + $0xd4] sm:$0xf]  ;;  %v9620_v51 = vor.u32 %v12779_v16, %v9617_v22  ;;  %v12672_v16 = vld [vmem:[#allocation18 + $0x1b4] sm:$0xf0] }
 0x391   :  { %v9744_v14 = vor.u32 %v12815_v45, %v9743_v17  ;;  %v9073_v23 = vld [vmem:[#allocation18 + $0xf0] sm:$0xf0] }
 0x392   :  { %3024 = vmatpush.bf16.msra.mxu3 %v9232_v12  ;;  %v12843_v35 = vld [vmem:[#allocation18 + $0x714] sm:$0xf]  ;;  %v9076_v36 = vor.u32 %v12643_v61, %v9073_v23 }
 0x393   :  { %3049 = vmatpush.bf16.msrb.mxu1 %v9776_v25  ;;  %3012 = vmatmul.bf16.vlgmr.msra.gmra.mxu2 %v14582_v24  ;;  %v9329_v34 = vld [vmem:[#allocation18 + $0x2f0] sm:$0xf0]  ;;  %v9876_v41 = vor.u32 %v12843_v35, %v9873_v38  ;;  %v9431_v38 = vld [vmem:[#allocation18 + $0x398] sm:$0xf] }
 0x394   :  { %3056 = vmatpush.bf16.msrb.mxu2 %v9204_v32  ;;  %3037 = vmatpush.bf16.msrb.mxu0 %v9488_v6  ;;  %v12771_v27 = vld [vmem:[#allocation18 + $0x4d4] sm:$0xf]  ;;  %v9332_v31 = vor.u32 %v12707_v18, %v9329_v34  ;;  %v12736_v18 = vld [vmem:[#allocation18 + $0x3b4] sm:$0xf0] }
 0x395   :  { %3025 = vmatmul.bf16.vlgmr.msra.gmra.mxu3 %v14588_v37  ;;  %v9585_v10 = vld [vmem:[#allocation18 + $0x4f0] sm:$0xf0] }
 0x396   :  { %3069 = vmatpush.bf16.msrb.mxu3 %v9460_v46  ;;  %v12635_v29 = vld [vmem:[#allocation18 + $0x94] sm:$0xf]  ;;  %v9588_v26 = vor.u32 %v12771_v27, %v9585_v10  ;;  %v12800_v27 = vld [vmem:[#allocation18 + $0x5b4] sm:$0xf0] }
 0x397   :  { %3050 = vmatpush.bf16.msrb.mxu1 %v9744_v14  ;;  %3038 = vmatmul.bf16.vlgmr.msrb.gmra.mxu0 %v14592_v19  ;;  %v9041_v39 = vld [vmem:[#allocation18 + $0xb0] sm:$0xf0] }
 0x398   :  { %3082 = vmatpush.bf16.msra.mxu0 %v9716_v48  ;;  %3057 = vmatpush.bf16.msrb.mxu2 %v9172_v8  ;;  %v12835_v32 = vld [vmem:[#allocation18 + $0x6d4] sm:$0xf]  ;;  %v9044_v30 = vor.u32 %v12635_v29, %v9041_v39  ;;  %v9143_v29 = vld [vmem:[#allocation18 + $0x158] sm:$0xf] }
 0x399   :  { %v9841_v59 = vld [vmem:[#allocation18 + $0x6f0] sm:$0xf0]  ;;  %v12664_v39 = vld [vmem:[#allocation18 + $0x174] sm:$0xf0] }
 0x39a   :  { %3070 = vmatpush.bf16.msrb.mxu3 %v9428_v62  ;;  %3051 = vmatmul.bf16.vlgmr.msrb.gmra.mxu1 %v14598_v0  ;;  %v12699_v25 = vld [vmem:[#allocation18 + $0x294] sm:$0xf]  ;;  %v9844_v46 = vor.u32 %v12835_v32, %v9841_v59  ;;  %v9943_v32 = vld [vmem:[#allocation18 + $0x798] sm:$0xf] }
 0x39b   :  { %3095 = vmatpush.bf16.msra.mxu1 %v9972_v9  ;;  %v9297_v12 = vld [vmem:[#allocation18 + $0x2b0] sm:$0xf0]  ;;  %v12864_v59 = vld [vmem:[#allocation18 + $0x7b4] sm:$0xf0] }
 0x39c   :  { %3083 = vmatpush.bf16.msra.mxu0 %v9684_v28  ;;  %3058 = vmatpush.bf16.msrb.mxu2 %v9140_v2  ;;  %v12763_v1 = vld [vmem:[#allocation18 + $0x494] sm:$0xf]  ;;  %v9300_v43 = vor.u32 %v12699_v25, %v9297_v12  ;;  %v9399_v25 = vld [vmem:[#allocation18 + $0x358] sm:$0xf] }
 0x39d   :  { %v9553_v6 = vld [vmem:[#allocation18 + $0x4b0] sm:$0xf0]  ;;  %v12728_v12 = vld [vmem:[#allocation18 + $0x374] sm:$0xf0] }
 0x39e   :  { %3071 = vmatpush.bf16.msrb.mxu3 %v9396_v47  ;;  %v12627_v17 = vld [vmem:[#allocation18 + $0x54] sm:$0xf]  ;;  %v9556_v20 = vor.u32 %v12763_v1, %v9553_v6  ;;  %v12744_v47 = vld [vmem:[#allocation18 + $0x3f4] sm:$0xf0] }
 0x39f   :  { %3096 = vmatpush.bf16.msra.mxu1 %v9940_v60  ;;  %v9009_v45 = vld [vmem:[#allocation18 + $0x70] sm:$0xf0]  ;;  %v9463_v60 = vld [vmem:[#allocation18 + $0x3d8] sm:$0xf] }
 0x3a0   :  { %3084 = vmatpush.bf16.msra.mxu0 %v9652_v11  ;;  %3059 = vmatpush.bf16.msrb.mxu2 %v9108_v15  ;;  %v12827_v48 = vld [vmem:[#allocation18 + $0x694] sm:$0xf]  ;;  %v9012_v44 = vor.u32 %v12627_v17, %v9009_v45  ;;  %v9719_v11 = vld [vmem:[#allocation18 + $0x5d8] sm:$0xf] }
 0x3a1   :  { %v9809_v50 = vld [vmem:[#allocation18 + $0x6b0] sm:$0xf0]  ;;  %v9175_v15 = vld [vmem:[#allocation18 + $0x198] sm:$0xf]  ;;  %v9720_v35 = vor.u32 %v12808_v33, %v9719_v11 }
 0x3a2   :  { %3072 = vmatpush.bf16.msrb.mxu3 %v9364_v58  ;;  %v12691_v56 = vld [vmem:[#allocation18 + $0x254] sm:$0xf]  ;;  %v9812_v62 = vor.u32 %v12827_v48, %v9809_v50  ;;  %v9975_v58 = vld [vmem:[#allocation18 + $0x7d8] sm:$0xf]  ;;  %v9176_v34 = vor.u32 %v12672_v16, %v9175_v15  ;;  %v9400_v48 = vor.u32 %v12728_v12, %v9399_v25  ;;  %v2831_v50 = vpop.f32.mrf.mxu0 }
 0x3a3   :  { %3097 = vmatpush.bf16.msra.mxu1 %v9908_v55  ;;  %v9265_v8 = vld [vmem:[#allocation18 + $0x270] sm:$0xf0]  ;;  %v9464_v55 = vor.u32 %v12744_v47, %v9463_v60  ;;  %v9655_v1 = vld [vmem:[#allocation18 + $0x558] sm:$0xf] }
 0x3a4   :  { %3085 = vmatpush.bf16.msra.mxu0 %v9620_v51  ;;  %3060 = vmatpush.bf16.msrb.mxu2 %v9076_v36  ;;  %v12755_v57 = vld [vmem:[#allocation18 + $0x454] sm:$0xf]  ;;  %v9268_v5 = vor.u32 %v12691_v56, %v9265_v8  ;;  %v12872_v51 = vld [vmem:[#allocation18 + $0x7f4] sm:$0xf0] }
 0x3a5   :  { %v9521_v14 = vld [vmem:[#allocation18 + $0x470] sm:$0xf0]  ;;  %v9687_v36 = vld [vmem:[#allocation18 + $0x598] sm:$0xf] }
 0x3a6   :  { %3073 = vmatpush.bf16.msrb.mxu3 %v9332_v31  ;;  %v12819_v21 = vld [vmem:[#allocation18 + $0x654] sm:$0xf]  ;;  %v9524_v63 = vor.u32 %v12755_v57, %v9521_v14  ;;  %v9432_v31 = vor.u32 %v12736_v18, %v9431_v38  ;;  %v12792_v6 = vld [vmem:[#allocation18 + $0x574] sm:$0xf0] }
 0x3a7   :  { %3098 = vmatpush.bf16.msra.mxu1 %v9876_v41  ;;  %v12619_v52 = vld [vmem:[#allocation18 + $0x14] sm:$0xf]  ;;  %v9976_v41 = vor.u32 %v12872_v51, %v9975_v58  ;;  %v9111_v17 = vld [vmem:[#allocation18 + $0x118] sm:$0xf]  ;;  %v9656_v56 = vor.u32 %v12792_v6, %v9655_v1 }
 0x3a8   :  { %3086 = vmatpush.bf16.msra.mxu0 %v9588_v26  ;;  %3061 = vmatpush.bf16.msrb.mxu2 %v9044_v30  ;;  %v8977_v9 = vld [vmem:[#allocation18 + $0x30] sm:$0xf0]  ;;  %v9688_v26 = vor.u32 %v12800_v27, %v9687_v36  ;;  %v9144_v30 = vor.u32 %v12664_v39, %v9143_v29  ;;  %v12656_v45 = vld [vmem:[#allocation18 + $0x134] sm:$0xf0] }
 0x3a9   :  { %v9777_v28 = vld [vmem:[#allocation18 + $0x670] sm:$0xf0]  ;;  %v8980_v49 = vor.u32 %v12619_v52, %v8977_v9  ;;  %v12856_v8 = vld [vmem:[#allocation18 + $0x774] sm:$0xf0]  ;;  %v9112_v14 = vor.u32 %v12656_v45, %v9111_v17 }
 0x3aa   :  { %3074 = vmatpush.bf16.msrb.mxu3 %v9300_v43  ;;  %v12683_v2 = vld [vmem:[#allocation18 + $0x214] sm:$0xf]  ;;  %v9780_v13 = vor.u32 %v12819_v21, %v9777_v28  ;;  %v9944_v43 = vor.u32 %v12864_v59, %v9943_v32  ;;  %v12720_v57 = vld [vmem:[#allocation18 + $0x334] sm:$0xf0] }
 0x3ab   :  { %3099 = vmatpush.bf16.msra.mxu1 %v9844_v46  ;;  %v9233_v3 = vld [vmem:[#allocation18 + $0x230] sm:$0xf0]  ;;  %v14620_v46 = vld [vmem:[#allocation20] sm:$0xff]  ;;  %v9623_v21 = vld [vmem:[#allocation18 + $0x518] sm:$0xf] }
 0x3ac   :  { %3087 = vmatpush.bf16.msra.mxu0 %v9556_v20  ;;  %v12747_v4 = vld [vmem:[#allocation18 + $0x414] sm:$0xf]  ;;  %3062 = vmatpush.bf16.msrb.mxu2 %v9012_v44  ;;  %v9236_v42 = vor.u32 %v12683_v2, %v9233_v3  ;;  %v9911_v20 = vld [vmem:[#allocation18 + $0x758] sm:$0xf]  ;;  %v1500_v9 = vperm.slane %v14620_v46, 0  ;;  %v2805_v3 = vpop.f32.mrf.mxu2 }
 0x3ad   :  { %v9489_v7 = vld [vmem:[#allocation18 + $0x430] sm:$0xf0]  ;;  %v9367_v44 = vld [vmem:[#allocation18 + $0x318] sm:$0xf]  ;;  %v9912_v28 = vor.u32 %v12856_v8, %v9911_v20 }
 0x3ae   :  { %3075 = vmatpush.bf16.msrb.mxu3 %v9268_v5  ;;  %v9492_v22 = vor.u32 %v12747_v4, %v9489_v7  ;;  %v12811_v61 = vld [vmem:[#allocation18 + $0x614] sm:$0xf]  ;;  %v12784_v52 = vld [vmem:[#allocation18 + $0x534] sm:$0xf0]  ;;  %v9368_v53 = vor.u32 %v12720_v57, %v9367_v44  ;;  %v2818_v4 = vpop.f32.mrf.mxu3  ;;  %v2806_v60 = vadd.f32 %v2805_v3, %v1500_v9  ;;  %v12676_v44 = vld [vmem:[#allocation18 + $0x1dc] sm:$0xf] }
 0x3af   :  { %3100 = vmatpush.bf16.msra.mxu1 %v9812_v62  ;;  %v9745_v23 = vld [vmem:[#allocation18 + $0x630] sm:$0xf0]  ;;  %v9079_v62 = vld [vmem:[#allocation18 + $0xd8] sm:$0xf]  ;;  %v9209_v57 = vld [vmem:[#allocation18 + $0x1f8] sm:$0xf0] }
 0x3b0   :  { %3088 = vmatpush.bf16.msra.mxu0 %v9524_v63  ;;  %3063 = vmatpush.bf16.msrb.mxu2 %v8980_v49  ;;  %v9748_v10 = vor.u32 %v12811_v61, %v9745_v23  ;;  %v12648_v5 = vld [vmem:[#allocation18 + $0xf4] sm:$0xf0]  ;;  %v9624_v63 = vor.u32 %v12784_v52, %v9623_v21  ;;  %v2819_v16 = vadd.f32 %v2818_v4, %v2806_v60  ;;  %v2833_v23 = vpop.f32.mrf.mxu0  ;;  %v9721_v3 = vld [vmem:[#allocation18 + $0x5f8] sm:$0xf0]  ;;  %v1501_v4 = vperm.slane %v14620_v46, 1 }
 0x3b1   :  { %v12848_v2 = vld [vmem:[#allocation18 + $0x734] sm:$0xf0]  ;;  %v9080_v47 = vor.u32 %v12648_v5, %v9079_v62  ;;  %v12668_v60 = vld [vmem:[#allocation18 + $0x19c] sm:$0xf] }
 0x3b2   :  { %3076 = vmatpush.bf16.msrb.mxu3 %v9236_v42  ;;  %v9335_v49 = vld [vmem:[#allocation18 + $0x2d8] sm:$0xf]  ;;  %v2844_v42 = vpop.f32.mrf.mxu1  ;;  %v9880_v15 = vor.u32 %v12848_v2, %v9879_v54  ;;  %v2832_v38 = vadd.f32 %v2831_v50, %v2819_v16  ;;  %v9465_v54 = vld [vmem:[#allocation18 + $0x3f8] sm:$0xf0] }
 0x3b3   :  { %3101 = vmatpush.bf16.msra.mxu1 %v9780_v13  ;;  %3064 = vmatmul.bf16.vlgmr.msrb.gmra.mxu2 %v14582_v24  ;;  %v12712_v7 = vld [vmem:[#allocation18 + $0x2f4] sm:$0xf0]  ;;  %v12804_v2 = vld [vmem:[#allocation18 + $0x5dc] sm:$0xf] }
 0x3b4   :  { %3108 = vmatpush.bf16.msra.mxu2 %v9208_v40  ;;  %3089 = vmatpush.bf16.msra.mxu0 %v9492_v22  ;;  %v9591_v40 = vld [vmem:[#allocation18 + $0x4d8] sm:$0xf]  ;;  %v9336_v22 = vor.u32 %v12712_v7, %v9335_v49  ;;  %v14624_v29 = vadd.f32 %v2844_v42, %v2832_v38  ;;  %v2807_v59 = vpop.f32.mrf.mxu2  ;;  %v12868_v42 = vld [vmem:[#allocation18 + $0x7dc] sm:$0xf] }
 0x3b5   :  { %3077 = vmatmul.bf16.vlgmr.msrb.gmra.mxu3 %v14588_v37  ;;  %v12776_v11 = vld [vmem:[#allocation18 + $0x4f4] sm:$0xf0]  ;;  %v9977_v16 = vld [vmem:[#allocation18 + $0x7f8] sm:$0xf0] }
 0x3b6   :  { %3121 = vmatpush.bf16.msra.mxu3 %v9464_v55  ;;  %v9047_v33 = vld [vmem:[#allocation18 + $0x98] sm:$0xf]  ;;  %v9592_v55 = vor.u32 %v12776_v11, %v9591_v40  ;;  %v2820_v25 = vpop.f32.mrf.mxu3  ;;  %v9433_v23 = vld [vmem:[#allocation18 + $0x3b8] sm:$0xf0] }
 0x3b7   :  { %3102 = vmatpush.bf16.msra.mxu1 %v9748_v10  ;;  %3090 = vmatmul.bf16.vlgmr.msra.gmra.mxu0 %v14592_v19  ;;  %v12640_v13 = vld [vmem:[#allocation18 + $0xb4] sm:$0xf0]  ;;  %v9689_v38 = vld [vmem:[#allocation18 + $0x5b8] sm:$0xf0] }
 0x3b8   :  { %3134 = vmatpush.bf16.msrb.mxu0 %v9720_v35  ;;  %3109 = vmatpush.bf16.msra.mxu2 %v9176_v34  ;;  %v9847_v61 = vld [vmem:[#allocation18 + $0x6d8] sm:$0xf]  ;;  %v9048_v18 = vor.u32 %v12640_v13, %v9047_v33  ;;  %v2883_v62 = vpop.f32.mrf.mxu0  ;;  %v9945_v59 = vld [vmem:[#allocation18 + $0x7b8] sm:$0xf0] }
 0x3b9   :  { %v12840_v58 = vld [vmem:[#allocation18 + $0x6f4] sm:$0xf0]  ;;  %v12724_v25 = vld [vmem:[#allocation18 + $0x35c] sm:$0xf] }
 0x3ba   :  { %3122 = vmatpush.bf16.msra.mxu3 %v9432_v31  ;;  %3103 = vmatmul.bf16.vlgmr.msra.gmra.mxu1 %v14598_v0  ;;  %v9303_v35 = vld [vmem:[#allocation18 + $0x298] sm:$0xf]  ;;  %v9848_v39 = vor.u32 %v12840_v58, %v9847_v61  ;;  %v2846_v20 = vpop.f32.mrf.mxu1  ;;  %v12732_v61 = vld [vmem:[#allocation18 + $0x39c] sm:$0xf] }
 0x3bb   :  { %3147 = vmatpush.bf16.msrb.mxu1 %v9976_v41  ;;  %v12704_v51 = vld [vmem:[#allocation18 + $0x2b4] sm:$0xf0] }
 0x3bc   :  { %3135 = vmatpush.bf16.msrb.mxu0 %v9688_v26  ;;  %3110 = vmatpush.bf16.msra.mxu2 %v9144_v30  ;;  %v9559_v34 = vld [vmem:[#allocation18 + $0x498] sm:$0xf]  ;;  %v9304_v41 = vor.u32 %v12704_v51, %v9303_v35  ;;  %v12796_v51 = vld [vmem:[#allocation18 + $0x59c] sm:$0xf] }
 0x3bd   :  { %v12768_v36 = vld [vmem:[#allocation18 + $0x4b4] sm:$0xf0] }
 0x3be   :  { %3123 = vmatpush.bf16.msra.mxu3 %v9400_v48  ;;  %v9015_v27 = vld [vmem:[#allocation18 + $0x58] sm:$0xf]  ;;  %v9560_v32 = vor.u32 %v12768_v36, %v9559_v34  ;;  %v2870_v58 = vpop.f32.mrf.mxu3  ;;  %v12660_v36 = vld [vmem:[#allocation18 + $0x15c] sm:$0xf] }
 0x3bf   :  { %3148 = vmatpush.bf16.msrb.mxu1 %v9944_v43  ;;  %v12632_v10 = vld [vmem:[#allocation18 + $0x74] sm:$0xf0] }
 0x3c0   :  { %3136 = vmatpush.bf16.msrb.mxu0 %v9656_v56  ;;  %3111 = vmatpush.bf16.msra.mxu2 %v9112_v14  ;;  %v9815_v31 = vld [vmem:[#allocation18 + $0x698] sm:$0xf]  ;;  %v9016_v1 = vor.u32 %v12632_v10, %v9015_v27  ;;  %v9145_v27 = vld [vmem:[#allocation18 + $0x178] sm:$0xf0]  ;;  %v9980_v10 = vor.u32 %v12868_v42, %v9977_v16 }
 0x3c1   :  { %v12832_v26 = vld [vmem:[#allocation18 + $0x6b4] sm:$0xf0]  ;;  %v9049_v42 = vld [vmem:[#allocation18 + $0xb8] sm:$0xf0] }
 0x3c2   :  { %3124 = vmatpush.bf16.msra.mxu3 %v9368_v53  ;;  %v9271_v12 = vld [vmem:[#allocation18 + $0x258] sm:$0xf]  ;;  %v9816_v50 = vor.u32 %v12832_v26, %v9815_v31  ;;  %v12740_v53 = vld [vmem:[#allocation18 + $0x3dc] sm:$0xf]  ;;  %v9692_v26 = vor.u32 %v12796_v51, %v9689_v38 }
 0x3c3   :  { %3149 = vmatpush.bf16.msrb.mxu1 %v9912_v28  ;;  %v12696_v30 = vld [vmem:[#allocation18 + $0x274] sm:$0xf0]  ;;  %v9468_v13 = vor.u32 %v12740_v53, %v9465_v54  ;;  %v12860_v31 = vld [vmem:[#allocation18 + $0x79c] sm:$0xf] }
 0x3c4   :  { %3137 = vmatpush.bf16.msrb.mxu0 %v9624_v63  ;;  %3112 = vmatpush.bf16.msra.mxu2 %v9080_v47  ;;  %v9527_v6 = vld [vmem:[#allocation18 + $0x458] sm:$0xf]  ;;  %v9272_v56 = vor.u32 %v12696_v30, %v9271_v12  ;;  %v9212_v63 = vor.u32 %v12676_v44, %v9209_v57  ;;  %v9177_v47 = vld [vmem:[#allocation18 + $0x1b8] sm:$0xf0]  ;;  %v9948_v20 = vor.u32 %v12860_v31, %v9945_v59 }
 0x3c5   :  { %v12760_v17 = vld [vmem:[#allocation18 + $0x474] sm:$0xf0]  ;;  %v9180_v35 = vor.u32 %v12668_v60, %v9177_v47  ;;  %v9401_v12 = vld [vmem:[#allocation18 + $0x378] sm:$0xf0] }
 0x3c6   :  { %3125 = vmatpush.bf16.msra.mxu3 %v9336_v22  ;;  %v9783_v45 = vld [vmem:[#allocation18 + $0x658] sm:$0xf]  ;;  %v9528_v14 = vor.u32 %v12760_v17, %v9527_v6  ;;  %v2857_v22 = vpop.f32.mrf.mxu2  ;;  %v12788_v6 = vld [vmem:[#allocation18 + $0x55c] sm:$0xf] }
 0x3c7   :  { %3150 = vmatpush.bf16.msrb.mxu1 %v9880_v15  ;;  %v8983_v43 = vld [vmem:[#allocation18 + $0x18] sm:$0xf]  ;;  %v9724_v15 = vor.u32 %v12804_v2, %v9721_v3  ;;  %v9657_v17 = vld [vmem:[#allocation18 + $0x578] sm:$0xf0] }
 0x3c8   :  { %3138 = vmatpush.bf16.msrb.mxu0 %v9592_v55  ;;  %3113 = vmatpush.bf16.msra.mxu2 %v9048_v18  ;;  %v12624_v48 = vld [vmem:[#allocation18 + $0x34] sm:$0xf0]  ;;  %v2858_v55 = vadd.f32 %v2857_v22, %v1501_v4  ;;  %v2896_v18 = vpop.f32.mrf.mxu1  ;;  %v9913_v44 = vld [vmem:[#allocation18 + $0x778] sm:$0xf0] }
 0x3c9   :  { %v12824_v8 = vld [vmem:[#allocation18 + $0x674] sm:$0xf0]  ;;  %v8984_v5 = vor.u32 %v12624_v48, %v8983_v43  ;;  %v9113_v43 = vld [vmem:[#allocation18 + $0x138] sm:$0xf0] }
 0x3ca   :  { %3126 = vmatpush.bf16.msra.mxu3 %v9304_v41  ;;  %v9239_v21 = vld [vmem:[#allocation18 + $0x218] sm:$0xf]  ;;  %v9784_v49 = vor.u32 %v12824_v8, %v9783_v45  ;;  %v9436_v41 = vor.u32 %v12732_v61, %v9433_v23  ;;  %v12652_v45 = vld [vmem:[#allocation18 + $0x11c] sm:$0xf]  ;;  %v9660_v8 = vor.u32 %v12788_v6, %v9657_v17  ;;  %v1502_v61 = vperm.slane %v14620_v46, 2 }
 0x3cb   :  { %3151 = vmatpush.bf16.msrb.mxu1 %v9848_v39  ;;  %v12688_v52 = vld [vmem:[#allocation18 + $0x234] sm:$0xf0]  ;;  %v2871_v39 = vadd.f32 %v2870_v58, %v2858_v55  ;;  %v12644_v53 = vld [vmem:[#allocation18 + $0xdc] sm:$0xf] }
 0x3cc   :  { %3139 = vmatpush.bf16.msrb.mxu0 %v9560_v32  ;;  %v9495_v9 = vld [vmem:[#allocation18 + $0x418] sm:$0xf]  ;;  %3114 = vmatpush.bf16.msra.mxu2 %v9016_v1  ;;  %v9240_v7 = vor.u32 %v12688_v52, %v9239_v21  ;;  %v2885_v32 = vpop.f32.mrf.mxu0  ;;  %v9148_v1 = vor.u32 %v12660_v36, %v9145_v27  ;;  %v9369_v21 = vld [vmem:[#allocation18 + $0x338] sm:$0xf0]  ;;  %v2872_v52 = vpop.f32.mrf.mxu3 }
 0x3cd   :  { %v12752_v28 = vld [vmem:[#allocation18 + $0x434] sm:$0xf0]  ;;  %v2884_v30 = vadd.f32 %v2883_v62, %v2871_v39  ;;  %v12780_v62 = vld [vmem:[#allocation18 + $0x51c] sm:$0xf] }
 0x3ce   :  { %3127 = vmatpush.bf16.msra.mxu3 %v9272_v56  ;;  %v9496_v40 = vor.u32 %v12752_v28, %v9495_v9  ;;  %v9751_v11 = vld [vmem:[#allocation18 + $0x618] sm:$0xf]  ;;  %v12852_v56 = vld [vmem:[#allocation18 + $0x75c] sm:$0xf]  ;;  %v2859_v57 = vpop.f32.mrf.mxu2  ;;  %v9116_v9 = vor.u32 %v12652_v45, %v9113_v43 }
 0x3cf   :  { %3152 = vmatpush.bf16.msrb.mxu1 %v9816_v50  ;;  %v12816_v33 = vld [vmem:[#allocation18 + $0x634] sm:$0xf0]  ;;  %v14630_v48 = vadd.f32 %v2896_v18, %v2884_v30  ;;  %v9404_v50 = vor.u32 %v12724_v25, %v9401_v12  ;;  %v9081_v54 = vld [vmem:[#allocation18 + $0xf8] sm:$0xf0] }
 0x3d0   :  { %3140 = vmatpush.bf16.msrb.mxu0 %v9528_v14  ;;  %3115 = vmatpush.bf16.msra.mxu2 %v8984_v5  ;;  %v9752_v34 = vor.u32 %v12816_v33, %v9751_v11  ;;  %v12716_v14 = vld [vmem:[#allocation18 + $0x31c] sm:$0xf]  ;;  %v2898_v28 = vpop.f32.mrf.mxu1 }
 0x3d1   :  { %v9625_v5 = vld [vmem:[#allocation18 + $0x538] sm:$0xf0]  ;;  %v9372_v2 = vor.u32 %v12716_v14, %v9369_v21 }
 0x3d2   :  { %3128 = vmatpush.bf16.msra.mxu3 %v9240_v7  ;;  %v12844_v3 = vld [vmem:[#allocation18 + $0x71c] sm:$0xf]  ;;  %v9628_v4 = vor.u32 %v12780_v62, %v9625_v5 }
 0x3d3   :  { %3153 = vmatpush.bf16.msrb.mxu1 %v9784_v49  ;;  %3116 = vmatmul.bf16.vlgmr.msra.gmra.mxu2 %v14582_v24  ;;  %v9881_v49 = vld [vmem:[#allocation18 + $0x738] sm:$0xf0] }
 0x3d4   :  { %3160 = vmatpush.bf16.msrb.mxu2 %v9212_v63  ;;  %3141 = vmatpush.bf16.msrb.mxu0 %v9496_v40  ;;  %v9916_v63 = vor.u32 %v12852_v56, %v9913_v44  ;;  %v12708_v7 = vld [vmem:[#allocation18 + $0x2dc] sm:$0xf]  ;;  %v2935_v47 = vpop.f32.mrf.mxu0  ;;  %v9084_v40 = vor.u32 %v12644_v53, %v9081_v54 }
 0x3d5   :  { %3129 = vmatmul.bf16.vlgmr.msra.gmra.mxu3 %v14588_v37  ;;  %v9337_v60 = vld [vmem:[#allocation18 + $0x2f8] sm:$0xf0] }
 0x3d6   :  { %3173 = vmatpush.bf16.msrb.mxu3 %v9468_v13  ;;  %v12772_v11 = vld [vmem:[#allocation18 + $0x4dc] sm:$0xf]  ;;  %v9340_v16 = vor.u32 %v12708_v7, %v9337_v60  ;;  %v2909_v36 = vpop.f32.mrf.mxu2 }
 0x3d7   :  { %3154 = vmatpush.bf16.msrb.mxu1 %v9752_v34  ;;  %3142 = vmatmul.bf16.vlgmr.msrb.gmra.mxu0 %v14592_v19  ;;  %v9593_v33 = vld [vmem:[#allocation18 + $0x4f8] sm:$0xf0] }
 0x3d8   :  { %3186 = vmatpush.bf16.msra.mxu0 %v9724_v15  ;;  %3161 = vmatpush.bf16.msrb.mxu2 %v9180_v35  ;;  %v12636_v13 = vld [vmem:[#allocation18 + $0x9c] sm:$0xf]  ;;  %v9884_v15 = vor.u32 %v12844_v3, %v9881_v49  ;;  %v9596_v23 = vor.u32 %v12772_v11, %v9593_v33  ;;  %v2948_v34 = vpop.f32.mrf.mxu1  ;;  %v2922_v31 = vpop.f32.mrf.mxu3  ;;  %v1503_v11 = vperm.slane %v14620_v46, 3 }
 0x3d9   :  { %v12836_v22 = vld [vmem:[#allocation18 + $0x6dc] sm:$0xf]  ;;  %v9052_v51 = vor.u32 %v12636_v13, %v9049_v42 }
 0x3da   :  { %3174 = vmatpush.bf16.msrb.mxu3 %v9436_v41  ;;  %3155 = vmatmul.bf16.vlgmr.msrb.gmra.mxu1 %v14598_v0  ;;  %v9849_v55 = vld [vmem:[#allocation18 + $0x6f8] sm:$0xf0]  ;;  %v2910_v41 = vadd.f32 %v2909_v36, %v1502_v61 }
 0x3db   :  { %3199 = vmatpush.bf16.msra.mxu1 %v9980_v10  ;;  %v12700_v58 = vld [vmem:[#allocation18 + $0x29c] sm:$0xf]  ;;  %v9852_v39 = vor.u32 %v12836_v22, %v9849_v55 }
 0x3dc   :  { %3187 = vmatpush.bf16.msra.mxu0 %v9692_v26  ;;  %3162 = vmatpush.bf16.msrb.mxu2 %v9148_v1  ;;  %v9305_v35 = vld [vmem:[#allocation18 + $0x2b8] sm:$0xf0]  ;;  %v2923_v1 = vadd.f32 %v2922_v31, %v2910_v41  ;;  %v2937_v6 = vpop.f32.mrf.mxu0 }
 0x3dd   :  { %v12764_v38 = vld [vmem:[#allocation18 + $0x49c] sm:$0xf]  ;;  %v9308_v32 = vor.u32 %v12700_v58, %v9305_v35 }
 0x3de   :  { %3175 = vmatpush.bf16.msrb.mxu3 %v9404_v50  ;;  %v9561_v18 = vld [vmem:[#allocation18 + $0x4b8] sm:$0xf0]  ;;  %v2936_v56 = vadd.f32 %v2935_v47, %v2923_v1 }
 0x3df   :  { %3200 = vmatpush.bf16.msra.mxu1 %v9948_v20  ;;  %v12628_v27 = vld [vmem:[#allocation18 + $0x5c] sm:$0xf]  ;;  %v9564_v59 = vor.u32 %v12764_v38, %v9561_v18 }
 0x3e0   :  { %3188 = vmatpush.bf16.msra.mxu0 %v9660_v8  ;;  %3163 = vmatpush.bf16.msrb.mxu2 %v9116_v9  ;;  %v9017_v10 = vld [vmem:[#allocation18 + $0x78] sm:$0xf0]  ;;  %v14634_v62 = vadd.f32 %v2948_v34, %v2936_v56  ;;  %v2950_v54 = vpop.f32.mrf.mxu1  ;;  %v2924_v3 = vpop.f32.mrf.mxu3 }
 0x3e1   :  { %v12828_v26 = vld [vmem:[#allocation18 + $0x69c] sm:$0xf]  ;;  %v9020_v17 = vor.u32 %v12628_v27, %v9017_v10  ;;  %v1507_v54 = vperm.slane %v14620_v46, 7 }
 0x3e2   :  { %3176 = vmatpush.bf16.msrb.mxu3 %v9372_v2  ;;  %v9817_v25 = vld [vmem:[#allocation18 + $0x6b8] sm:$0xf0] }
 0x3e3   :  { %3201 = vmatpush.bf16.msra.mxu1 %v9916_v63  ;;  %v12692_v12 = vld [vmem:[#allocation18 + $0x25c] sm:$0xf]  ;;  %v9820_v8 = vor.u32 %v12828_v26, %v9817_v25  ;;  %v2911_v63 = vpop.f32.mrf.mxu2 }
 0x3e4   :  { %3189 = vmatpush.bf16.msra.mxu0 %v9628_v4  ;;  %3164 = vmatpush.bf16.msrb.mxu2 %v9084_v40  ;;  %v9273_v30 = vld [vmem:[#allocation18 + $0x278] sm:$0xf0] }
 0x3e5   :  { %v12756_v45 = vld [vmem:[#allocation18 + $0x45c] sm:$0xf]  ;;  %v9276_v44 = vor.u32 %v12692_v12, %v9273_v30 }
 0x3e6   :  { %3177 = vmatpush.bf16.msrb.mxu3 %v9340_v16  ;;  %v9529_v43 = vld [vmem:[#allocation18 + $0x478] sm:$0xf0] }
 0x3e7   :  { %3202 = vmatpush.bf16.msra.mxu1 %v9884_v15  ;;  %v12620_v20 = vld [vmem:[#allocation18 + $0x1c] sm:$0xf]  ;;  %v9532_v14 = vor.u32 %v12756_v45, %v9529_v43 }
 0x3e8   :  { %3190 = vmatpush.bf16.msra.mxu0 %v9596_v23  ;;  %3165 = vmatpush.bf16.msrb.mxu2 %v9052_v51  ;;  %v8985_v50 = vld [vmem:[#allocation18 + $0x38] sm:$0xf0] }
 0x3e9   :  { %v12820_v57 = vld [vmem:[#allocation18 + $0x65c] sm:$0xf]  ;;  %v8988_v5 = vor.u32 %v12620_v20, %v8985_v50 }
 0x3ea   :  { %3178 = vmatpush.bf16.msrb.mxu3 %v9308_v32  ;;  %v9785_v21 = vld [vmem:[#allocation18 + $0x678] sm:$0xf0] }
 0x3eb   :  { %3203 = vmatpush.bf16.msra.mxu1 %v9852_v39  ;;  %v12684_v52 = vld [vmem:[#allocation18 + $0x21c] sm:$0xf]  ;;  %v9788_v2 = vor.u32 %v12820_v57, %v9785_v21  ;;  %v1506_v57 = vperm.slane %v14620_v46, 6 }
 0x3ec   :  { %3191 = vmatpush.bf16.msra.mxu0 %v9564_v59  ;;  %v9241_v9 = vld [vmem:[#allocation18 + $0x238] sm:$0xf0]  ;;  %3166 = vmatpush.bf16.msrb.mxu2 %v9020_v17 }
 0x3ed   :  { %v12748_v28 = vld [vmem:[#allocation18 + $0x41c] sm:$0xf]  ;;  %v9244_v4 = vor.u32 %v12684_v52, %v9241_v9 }
 0x3ee   :  { %v9497_v53 = vld [vmem:[#allocation18 + $0x438] sm:$0xf0]  ;;  %3179 = vmatpush.bf16.msrb.mxu3 %v9276_v44  ;;  %v1505_v44 = vperm.slane %v14620_v46, 5 }
 0x3ef   :  { %3204 = vmatpush.bf16.msra.mxu1 %v9820_v8  ;;  %v9500_v49 = vor.u32 %v12748_v28, %v9497_v53  ;;  %v12812_v7 = vld [vmem:[#allocation18 + $0x61c] sm:$0xf] }
 0x3f0   :  { %3192 = vmatpush.bf16.msra.mxu0 %v9532_v14  ;;  %v9753_v60 = vld [vmem:[#allocation18 + $0x638] sm:$0xf0]  ;;  %3167 = vmatpush.bf16.msrb.mxu2 %v8988_v5  ;;  %v3214_v5 = vadd.f32 %v14630_v48, %v14624_v29 }
 0x3f1   :  { %v9756_v47 = vor.u32 %v12812_v7, %v9753_v60 }
 0x3f2   :  { %3180 = vmatpush.bf16.msrb.mxu3 %v9244_v4  ;;  %v3215_v63 = vadd.f32 %v3214_v5, %v14634_v62 }
 0x3f3   :  { %3205 = vmatpush.bf16.msra.mxu1 %v9788_v2  ;;  %3168 = vmatmul.bf16.vlgmr.msrb.gmra.mxu2 %v14582_v24 }
 0x3f4   :  { %3193 = vmatpush.bf16.msra.mxu0 %v9500_v49  ;;  %v2987_v40 = vpop.f32.mrf.mxu0  ;;  %v3225_v49 = vmul.f32 %v14630_v48, %v14630_v48 }
 0x3f5   :  { %3181 = vmatmul.bf16.vlgmr.msrb.gmra.mxu3 %v14588_v37 }
 0x3f6   :  { %v2961_v13 = vpop.f32.mrf.mxu2 }
 0x3f7   :  { %3206 = vmatpush.bf16.msra.mxu1 %v9756_v47  ;;  %3194 = vmatmul.bf16.vlgmr.msra.gmra.mxu0 %v14592_v19  ;;  %v3000_v33 = vpop.f32.mrf.mxu1  ;;  %v2962_v15 = vadd.f32 %v2961_v13, %v1503_v11  ;;  %v1504_v19 = vperm.slane %v14620_v46, 4  ;;  %v3226_v46 = vmul.f32 %v14634_v62, %v14634_v62 }
 0x3f8   :  { %v2974_v42 = vpop.f32.mrf.mxu3 }
 0x3f9   :  { %v2975_v16 = vadd.f32 %v2974_v42, %v2962_v15 }
 0x3fa   :  { %3207 = vmatmul.bf16.vlgmr.msra.gmra.mxu1 %v14598_v0 }
 0x3fb   :  { %v2988_v61 = vadd.f32 %v2987_v40, %v2975_v16  ;;  %v3224_v40 = vmul.f32 %v14624_v29, %v14624_v29 }
 0x3fc   :  { %v2989_v22 = vpop.f32.mrf.mxu0 }
 0x3fd   :  { %v14641_v23 = vadd.f32 %v3000_v33, %v2988_v61  ;;  %v3232_v15 = vadd.f32 %v3225_v49, %v3224_v40  ;;  %v13117_v40 = vld [vmem:[#allocation24 + $0x79c] sm:$0xf0] }
 0x3fe   :  { %v2963_v55 = vpop.f32.mrf.mxu2 }
 0x3ff   :  { %v3002_v24 = vpop.f32.mrf.mxu1  ;;  %v3216_v47 = vadd.f32 %v3215_v63, %v14641_v23  ;;  %v3227_v16 = vmul.f32 %v14641_v23, %v14641_v23  ;;  %v3233_v55 = vadd.f32 %v3232_v15, %v3226_v46  ;;  %v12917_v15 = vld [vmem:[#allocation24 + $0x15c] sm:$0xf0] }
 0x400   :  { %v2976_v37 = vpop.f32.mrf.mxu3 }
 0x414   :  { %v3039_v58 = vpop.f32.mrf.mxu0 }
 0x416   :  { %v3013_v0 = vpop.f32.mrf.mxu2 }
 0x417   :  { %v3052_v35 = vpop.f32.mrf.mxu1  ;;  %v3014_v51 = vadd.f32 %v3013_v0, %v1504_v19 }
 0x418   :  { %v3026_v38 = vpop.f32.mrf.mxu3 }
 0x419   :  { %v3027_v18 = vadd.f32 %v3026_v38, %v3014_v51 }
 0x41b   :  { %v3040_v36 = vadd.f32 %v3039_v58, %v3027_v18  ;;  %v3234_v18 = vadd.f32 %v3233_v55, %v3227_v16  ;;  %v10407_v16 = vld [vmem:[#allocation24 + $0x340] sm:$0xf] }
 0x41c   :  { %v3041_v34 = vpop.f32.mrf.mxu0  ;;  %v13045_v55 = vld [vmem:[#allocation24 + $0x55c] sm:$0xf0] }
 0x41d   :  { %v14644_v27 = vadd.f32 %v3052_v35, %v3040_v36 }
 0x41e   :  { %v3015_v39 = vpop.f32.mrf.mxu2 }
 0x41f   :  { %v3054_v10 = vpop.f32.mrf.mxu1  ;;  %v3217_v42 = vadd.f32 %v3216_v47, %v14644_v27  ;;  %v3228_v37 = vmul.f32 %v14644_v27, %v14644_v27  ;;  %v10951_v47 = vld [vmem:[#allocation24 + $0x780] sm:$0xf] }
 0x420   :  { %v3028_v41 = vpop.f32.mrf.mxu3 }
 0x421   :  { %v3235_v10 = vadd.f32 %v3234_v18, %v3228_v37  ;;  %v14692_v18 = vld [vmem:[#allocation23] sm:$0xff] }
 0x434   :  { %v3091_v31 = vpop.f32.mrf.mxu0 }
 0x436   :  { %v3065_v26 = vpop.f32.mrf.mxu2 }
 0x437   :  { %v3104_v32 = vpop.f32.mrf.mxu1  ;;  %v3066_v14 = vadd.f32 %v3065_v26, %v1505_v44 }
 0x438   :  { %v3078_v59 = vpop.f32.mrf.mxu3 }
 0x439   :  { %v3079_v52 = vadd.f32 %v3078_v59, %v3066_v14  ;;  %v10983_v14 = vld [vmem:[#allocation24 + $0x7c0] sm:$0xf] }
 0x43b   :  { %v3092_v28 = vadd.f32 %v3091_v31, %v3079_v52 }
 0x43c   :  { %v3093_v25 = vpop.f32.mrf.mxu0 }
 0x43d   :  { %v14654_v7 = vadd.f32 %v3104_v32, %v3092_v28  ;;  %v10183_v28 = vld [vmem:[#allocation24 + $0x180] sm:$0xf] }
 0x43e   :  { %v3067_v30 = vpop.f32.mrf.mxu2 }
 0x43f   :  { %v3106_v12 = vpop.f32.mrf.mxu1  ;;  %v3218_v24 = vadd.f32 %v3217_v42, %v14654_v7  ;;  %v3229_v38 = vmul.f32 %v14654_v7, %v14654_v7  ;;  %v10151_v42 = vld [vmem:[#allocation24 + $0x140] sm:$0xf] }
 0x440   :  { %v3080_v1 = vpop.f32.mrf.mxu3  ;;  %v14681_v12 = vld [vmem:[#allocation21] sm:$0xff] }
 0x441   :  { %v3236_v41 = vadd.f32 %v3235_v10, %v3229_v38  ;;  %v3273_v52 = vperm.slane %v14681_v12, 0  ;;  %v3275_v37 = vperm.slane %v14681_v12, 2  ;;  %v13109_v38 = vld [vmem:[#allocation24 + $0x75c] sm:$0xf0]  ;;  %v3279_v10 = vperm.slane %v14681_v12, 6 }
 0x454   :  { %v3143_v6 = vpop.f32.mrf.mxu0 }
 0x456   :  { %v3117_v45 = vpop.f32.mrf.mxu2 }
 0x457   :  { %v3156_v17 = vpop.f32.mrf.mxu1  ;;  %v3118_v21 = vadd.f32 %v3117_v45, %v1506_v57  ;;  %v10471_v45 = vld [vmem:[#allocation24 + $0x3c0] sm:$0xf] }
 0x458   :  { %v3130_v43 = vpop.f32.mrf.mxu3 }
 0x459   :  { %v3131_v9 = vadd.f32 %v3130_v43, %v3118_v21  ;;  %v13125_v21 = vld [vmem:[#allocation24 + $0x7dc] sm:$0xf0] }
 0x45a   :  { %v10984_v5 = vor.u32 %v13125_v21, %v10983_v14 }
 0x45b   :  { %v3144_v2 = vadd.f32 %v3143_v6, %v3131_v9  ;;  %v10215_v6 = vld [vmem:[#allocation24 + $0x1c0] sm:$0xf] }
 0x45c   :  { %v3145_v20 = vpop.f32.mrf.mxu0  ;;  %6811 = vmatpush.bf16.msrb.mxu1 %v10984_v5  ;;  %v12901_v5 = vld [vmem:[#allocation24 + $0xdc] sm:$0xf0] }
 0x45d   :  { %v14661_v33 = vadd.f32 %v3156_v17, %v3144_v2  ;;  %v12933_v17 = vld [vmem:[#allocation24 + $0x1dc] sm:$0xf0] }
 0x45e   :  { %v3119_v56 = vpop.f32.mrf.mxu2  ;;  %v10216_v20 = vor.u32 %v12933_v17, %v10215_v6  ;;  %v13037_v6 = vld [vmem:[#allocation24 + $0x51c] sm:$0xf0]  ;;  %v3280_v17 = vperm.slane %v14681_v12, 7 }
 0x45f   :  { %v3158_v50 = vpop.f32.mrf.mxu1  ;;  %v3219_v19 = vadd.f32 %v3218_v24, %v14661_v33  ;;  %v3230_v36 = vmul.f32 %v14661_v33, %v14661_v33  ;;  %v10727_v56 = vld [vmem:[#allocation24 + $0x5c0] sm:$0xf] }
 0x460   :  { %v3132_v8 = vpop.f32.mrf.mxu3  ;;  %v12997_v50 = vld [vmem:[#allocation24 + $0x3dc] sm:$0xf0]  ;;  %6772 = vmatpush.bf16.msra.mxu2 %v10216_v20 }
 0x461   :  { %v3237_v31 = vadd.f32 %v3236_v41, %v3230_v36  ;;  %v13061_v8 = vld [vmem:[#allocation24 + $0x5dc] sm:$0xf0]  ;;  %v10472_v44 = vor.u32 %v12997_v50, %v10471_v45  ;;  %v3278_v36 = vperm.slane %v14681_v12, 5 }
 0x462   :  { %v10728_v57 = vor.u32 %v13061_v8, %v10727_v56  ;;  %v10663_v24 = vld [vmem:[#allocation24 + $0x540] sm:$0xf]  ;;  %v3298_v8 = vperm.slane %v14692_v18, 0 }
 0x463   :  { %6785 = vmatpush.bf16.msra.mxu3 %v10472_v44  ;;  %v10119_v41 = vld [vmem:[#allocation24 + $0x100] sm:$0xf]  ;;  %v3299_v44 = vperm.slane %v14692_v18, 1 }
 0x464   :  { %6798 = vmatpush.bf16.msrb.mxu0 %v10728_v57  ;;  %v10887_v50 = vld [vmem:[#allocation24 + $0x700] sm:$0xf]  ;;  %v3300_v57 = vperm.slane %v14692_v18, 2 }
 0x465   :  { %v13101_v56 = vld [vmem:[#allocation24 + $0x71c] sm:$0xf0] }
 0x466   :  { %v10888_v14 = vor.u32 %v13101_v56, %v10887_v50 }
 0x474   :  { %v3195_v53 = vpop.f32.mrf.mxu0 }
 0x476   :  { %v3169_v4 = vpop.f32.mrf.mxu2 }
 0x477   :  { %v3208_v3 = vpop.f32.mrf.mxu1  ;;  %v3170_v60 = vadd.f32 %v3169_v4, %v1507_v54  ;;  %v10439_v54 = vld [vmem:[#allocation24 + $0x380] sm:$0xf] }
 0x478   :  { %v3182_v11 = vpop.f32.mrf.mxu3  ;;  %v10695_v4 = vld [vmem:[#allocation24 + $0x580] sm:$0xf] }
 0x479   :  { %v3183_v13 = vadd.f32 %v3182_v11, %v3170_v60  ;;  %v13053_v60 = vld [vmem:[#allocation24 + $0x59c] sm:$0xf0]  ;;  %v3274_v11 = vperm.slane %v14681_v12, 1 }
 0x47a   :  { %v10696_v46 = vor.u32 %v13053_v60, %v10695_v4  ;;  %v3301_v4 = vperm.slane %v14692_v18, 3 }
 0x47b   :  { %v3196_v22 = vadd.f32 %v3195_v53, %v3183_v13  ;;  %v12925_v53 = vld [vmem:[#allocation24 + $0x19c] sm:$0xf0]  ;;  %v10952_v13 = vor.u32 %v13117_v40, %v10951_v47 }
 0x47c   :  { %v3197_v61 = vpop.f32.mrf.mxu0  ;;  %v10184_v2 = vor.u32 %v12925_v53, %v10183_v28  ;;  %6799 = vmatpush.bf16.msrb.mxu0 %v10696_v46  ;;  %v10343_v28 = vld [vmem:[#allocation24 + $0x2c0] sm:$0xf] }
 0x47d   :  { %v14669_v58 = vadd.f32 %v3208_v3, %v3196_v22  ;;  %v12989_v3 = vld [vmem:[#allocation24 + $0x39c] sm:$0xf0]  ;;  %6812 = vmatpush.bf16.msrb.mxu1 %v10952_v13  ;;  %v10152_v22 = vor.u32 %v12917_v15, %v10151_v42  ;;  %v3302_v13 = vperm.slane %v14692_v18, 4  ;;  %v3303_v42 = vperm.slane %v14692_v18, 5 }
 0x47e   :  { %v3171_v0 = vpop.f32.mrf.mxu2  ;;  %v10440_v49 = vor.u32 %v12989_v3, %v10439_v54  ;;  %6773 = vmatpush.bf16.msra.mxu2 %v10184_v2  ;;  %v12981_v61 = vld [vmem:[#allocation24 + $0x35c] sm:$0xf0]  ;;  %v3304_v15 = vperm.slane %v14692_v18, 6 }
 0x47f   :  { %v3210_v35 = vpop.f32.mrf.mxu1  ;;  %v3220_v51 = vadd.f32 %v3219_v19, %v14669_v58  ;;  %v3231_v39 = vmul.f32 %v14669_v58, %v14669_v58  ;;  %v3276_v19 = vperm.slane %v14681_v12, 3  ;;  %v10664_v0 = vor.u32 %v13045_v55, %v10663_v24  ;;  %v12965_v54 = vld [vmem:[#allocation24 + $0x2dc] sm:$0xf0] }
 0x480   :  { %v3184_v34 = vpop.f32.mrf.mxu3  ;;  %6786 = vmatpush.bf16.msra.mxu3 %v10440_v49  ;;  %v10408_v35 = vor.u32 %v12981_v61, %v10407_v16  ;;  %v10599_v2 = vld [vmem:[#allocation24 + $0x4c0] sm:$0xf]  ;;  %v10344_v60 = vor.u32 %v12965_v54, %v10343_v28 }
 0x481   :  { %3221 = vadd.xlane.f32.xlu2 %v3220_v51  ;;  %v3238_v32 = vadd.f32 %v3237_v31, %v3231_v39  ;;  %v10919_v51 = vld [vmem:[#allocation24 + $0x740] sm:$0xf]  ;;  %v3277_v34 = vperm.slane %v14681_v12, 4  ;;  %6800 = vmatpush.bf16.msrb.mxu0 %v10664_v0 }
 0x482   :  { %6774 = vmatpush.bf16.msra.mxu2 %v10152_v22  ;;  %v10920_v39 = vor.u32 %v13109_v38, %v10919_v51  ;;  %v12909_v31 = vld [vmem:[#allocation24 + $0x11c] sm:$0xf0]  ;;  %v3305_v22 = vperm.slane %v14692_v18, 7 }
 0x483   :  { %v13029_v3 = vld [vmem:[#allocation24 + $0x4dc] sm:$0xf0] }
 0x484   :  { %6787 = vmatpush.bf16.msra.mxu3 %v10408_v35  ;;  %6813 = vmatpush.bf16.msrb.mxu1 %v10920_v39  ;;  %v10600_v47 = vor.u32 %v13029_v3, %v10599_v2  ;;  %v10855_v40 = vld [vmem:[#allocation24 + $0x6c0] sm:$0xf] }
 0x485   :  { %v13093_v46 = vld [vmem:[#allocation24 + $0x6dc] sm:$0xf0] }
 0x486   :  { %v10856_v16 = vor.u32 %v13093_v46, %v10855_v40  ;;  %v10055_v24 = vld [vmem:[#allocation24 + $0x80] sm:$0xf] }
 0x487   :  { %v12893_v55 = vld [vmem:[#allocation24 + $0x9c] sm:$0xf0] }
 0x488   :  { %6814 = vmatpush.bf16.msrb.mxu1 %v10888_v14  ;;  %v10056_v51 = vor.u32 %v12893_v55, %v10055_v24  ;;  %v10311_v38 = vld [vmem:[#allocation24 + $0x280] sm:$0xf] }
 0x489   :  { %3239 = vadd.xlane.f32.xlu2 %v3238_v32  ;;  %v10375_v32 = vld [vmem:[#allocation24 + $0x300] sm:$0xf] }
 0x48a   :  { %v12957_v39 = vld [vmem:[#allocation24 + $0x29c] sm:$0xf0] }
 0x48b   :  { %v12949_v3 = vld [vmem:[#allocation24 + $0x25c] sm:$0xf0] }
 0x48c   :  { %6815 = vmatpush.bf16.msrb.mxu1 %v10856_v16 }
 0x4f4   :  { %v3222_v26 = vpop.xlane.xlu2 %3221 }
 0x4f5   :  { %v14679_v59 = vmul.f32 0.0009765625, %v3222_v26 }
 0x4f7   :  { %v3242_v30 = vmul.f32 %v14679_v59, %v14679_v59  ;;  %v3256_v35 = vsub.f32 %v14624_v29, %v14679_v59  ;;  %v3257_v0 = vsub.f32 %v14630_v48, %v14679_v59  ;;  %v13085_v29 = vld [vmem:[#allocation24 + $0x69c] sm:$0xf0]  ;;  %v3259_v48 = vsub.f32 %v14641_v23, %v14679_v59 }
 0x4fc   :  { %v3240_v25 = vpop.xlane.xlu2 %3239 }
 0x4fd   :  { %v3241_v1 = vmul.f32 0.0009765625, %v3240_v25  ;;  %v10120_v25 = vor.u32 %v12909_v31, %v10119_v41  ;;  %v10567_v41 = vld [vmem:[#allocation24 + $0x480] sm:$0xf]  ;;  %v3258_v31 = vsub.f32 %v14634_v62, %v14679_v59 }
 0x4ff   :  { %v3243_v43 = vsub.f32 %v3241_v1, %v3242_v30  ;;  %v12973_v30 = vld [vmem:[#allocation24 + $0x31c] sm:$0xf0]  ;;  %6775 = vmatpush.bf16.msra.mxu2 %v10120_v25  ;;  %v10312_v25 = vor.u32 %v12957_v39, %v10311_v38 }
 0x500   :  { %v10631_v1 = vld [vmem:[#allocation24 + $0x500] sm:$0xf] }
 0x501   :  { %v3244_v9 = vmax.f32 %v3243_v43, 0.0  ;;  %v10376_v43 = vor.u32 %v12973_v30, %v10375_v32  ;;  %v10632_v20 = vor.u32 %v13037_v6, %v10631_v1  ;;  %v13021_v30 = vld [vmem:[#allocation24 + $0x49c] sm:$0xf0]  ;;  %v3260_v6 = vsub.f32 %v14644_v27, %v14679_v59 }
 0x502   :  { %v10823_v1 = vld [vmem:[#allocation24 + $0x680] sm:$0xf] }
 0x503   :  { %v14686_v63 = vadd.f32 1e-05, %v3244_v9  ;;  %6788 = vmatpush.bf16.msra.mxu3 %v10376_v43  ;;  %v10087_v9 = vld [vmem:[#allocation24 + $0xc0] sm:$0xf]  ;;  %6801 = vmatpush.bf16.msrb.mxu0 %v10632_v20  ;;  %v10824_v62 = vor.u32 %v13085_v29, %v10823_v1  ;;  %v3261_v43 = vsub.f32 %v14654_v7, %v14679_v59  ;;  %v3263_v20 = vsub.f32 %v14669_v58, %v14679_v59 }
 0x504   :  { %v10088_v53 = vor.u32 %v12901_v5, %v10087_v9 }
 0x505   :  { %13553 = vrsqrt.f32 %v14686_v63  ;;  %vm3252_vm0 = vweird.f32 %v14686_v63  ;;  %6816 = vmatpush.bf16.msrb.mxu1 %v10824_v62 }
 0x506   :  { %6776 = vmatpush.bf16.msra.mxu2 %v10088_v53 }
 0x507   :  { %6789 = vmatpush.bf16.msra.mxu3 %v10344_v60  ;;  %6802 = vmatpush.bf16.msrb.mxu0 %v10600_v47 }
 0x50a   :  { %6777 = vmatpush.bf16.msra.mxu2 %v10056_v51  ;;  %v10791_v51 = vld [vmem:[#allocation24 + $0x640] sm:$0xf] }
 0x50b   :  { %v14697_v26 = vpop.eup %13553  ;;  %6790 = vmatpush.bf16.msra.mxu3 %v10312_v25  ;;  %v9991_v25 = vld [vmem:[#allocation24] sm:$0xf] }
 0x50c   :  { %v3247_v45 = vmul.f32 %v14697_v26, %v14686_v63  ;;  %vm3253_vm15 = vweird.f32 %v14697_v26  ;;  %v3262_v63 = vsub.f32 %v14661_v33, %v14679_v59 }
 0x50d   :  { %vm3254_vm1 = vmor %vm3252_vm0, %vm3253_vm15 }
 0x50e   :  { %v3248_v21 = vmul.f32 %v14697_v26, %v3247_v45  ;;  %v10568_v45 = vor.u32 %v13021_v30, %v10567_v41 }
 0x510   :  { %v3249_v49 = vmul.f32 0.5, %v3248_v21  ;;  %6803 = vmatpush.bf16.msrb.mxu0 %v10568_v45 }
 0x512   :  { %v3250_v61 = vsub.f32 1.5, %v3249_v49 }
 0x514   :  { %v3251_v32 = vmul.f32 %v14697_v26, %v3250_v61 }
 0x516   :  { %v3255_v23 = vsel %vm3254_vm1, %v14697_v26, %v3251_v32  ;;  %v13077_v32 = vld [vmem:[#allocation24 + $0x65c] sm:$0xf0] }
 0x517   :  { %v3264_v50 = vmul.f32 %v3256_v35, %v3255_v23  ;;  %v3265_v27 = vmul.f32 %v3257_v0, %v3255_v23  ;;  %v3266_v56 = vmul.f32 %v3258_v31, %v3255_v23  ;;  %v3267_v14 = vmul.f32 %v3259_v48, %v3255_v23  ;;  %v10535_v35 = vld [vmem:[#allocation24 + $0x440] sm:$0xf] }
 0x518   :  { %v3268_v21 = vmul.f32 %v3260_v6, %v3255_v23  ;;  %v3269_v9 = vmul.f32 %v3261_v43, %v3255_v23  ;;  %v3270_v5 = vmul.f32 %v3262_v63, %v3255_v23  ;;  %v3271_v28 = vmul.f32 %v3263_v20, %v3255_v23  ;;  %v13013_v0 = vld [vmem:[#allocation24 + $0x45c] sm:$0xf0] }
 0x519   :  { %v3289_v7 = vmul.f32 %v3273_v52, %v3264_v50  ;;  %v3290_v33 = vmul.f32 %v3274_v11, %v3265_v27  ;;  %v3291_v58 = vmul.f32 %v3275_v37, %v3266_v56  ;;  %v3292_v59 = vmul.f32 %v3276_v19, %v3267_v14  ;;  %v12877_v6 = vld [vmem:[#allocation24 + $0x1c] sm:$0xf0] }
 0x51a   :  { %v3293_v26 = vmul.f32 %v3277_v34, %v3268_v21  ;;  %v3294_v53 = vmul.f32 %v3278_v36, %v3269_v9  ;;  %v3295_v54 = vmul.f32 %v3279_v10, %v3270_v5  ;;  %v3296_v52 = vmul.f32 %v3280_v17, %v3271_v28  ;;  %v10023_v10 = vld [vmem:[#allocation24 + $0x40] sm:$0xf] }
 0x51b   :  { %v14751_v11 = vadd.f32 %v3298_v8, %v3289_v7  ;;  %v14755_v37 = vadd.f32 %v3299_v44, %v3290_v33  ;;  %v14759_v19 = vadd.f32 %v3300_v57, %v3291_v58  ;;  %v14763_v34 = vadd.f32 %v3301_v4, %v3292_v59  ;;  %v12885_v17 = vld [vmem:[#allocation24 + $0x5c] sm:$0xf0] }
 0x51c   :  { %v14765_v36 = vadd.f32 %v3302_v13, %v3293_v26  ;;  %v14767_v12 = vadd.f32 %v3303_v42, %v3294_v53  ;;  %v14769_v8 = vadd.f32 %v3304_v15, %v3295_v54  ;;  %v14771_v2 = vadd.f32 %v3305_v22, %v3296_v52  ;;  %v10279_v44 = vld [vmem:[#allocation24 + $0x240] sm:$0xf] }
 0x51d   :  { %v14774_v49 = vmul.f32 0.70710677, %v14751_v11  ;;  %v14777_v57 = vmul.f32 0.70710677, %v14755_v37  ;;  %v14780_v18 = vmul.f32 0.70710677, %v14759_v19  ;;  %v10024_v4 = vor.u32 %v12885_v17, %v10023_v10 }
 0x51e   :  { %15482 = vst [vmem:[#allocation41_spill] sm:$0xff] %v14771_v2  ;;  %v14783_v60 = vmul.f32 0.70710677, %v14763_v34  ;;  %v14786_v47 = vmul.f32 0.70710677, %v14765_v36  ;;  %v10280_v46 = vor.u32 %v12949_v3, %v10279_v44  ;;  %v10536_v27 = vor.u32 %v13013_v0, %v10535_v35 }
 0x51f   :  { %v14789_v40 = vmul.f32 0.70710677, %v14767_v12  ;;  %v14792_v13 = vmul.f32 0.70710677, %v14769_v8  ;;  %v14795_v42 = vmul.f32 0.70710677, %v14771_v2  ;;  %v3338_v15 = vmul.f32 %v14774_v49, %v14774_v49  ;;  %6778 = vmatpush.bf16.msra.mxu2 %v10024_v4 }
 0x520   :  { %v3378_v16 = vmul.f32 %v14777_v57, %v14777_v57  ;;  %v3418_v22 = vmul.f32 %v14780_v18, %v14780_v18  ;;  %v3458_v61 = vmul.f32 %v14783_v60, %v14783_v60  ;;  %v3498_v24 = vmul.f32 %v14786_v47, %v14786_v47  ;;  %6791 = vmatpush.bf16.msra.mxu3 %v10280_v46  ;;  %v10247_v5 = vld [vmem:[#allocation24 + $0x200] sm:$0xf] }
 0x521   :  { %15483 = vst [vmem:[#allocation42_spill] sm:$0xff] %v14792_v13  ;;  %v3538_v55 = vmul.f32 %v14789_v40, %v14789_v40  ;;  %v14809_v38 = vmin.f32 %v3338_v15, 16.0  ;;  %v3578_v41 = vmul.f32 %v14792_v13, %v14792_v13  ;;  %v3618_v31 = vmul.f32 %v14795_v42, %v14795_v42  ;;  %6804 = vmatpush.bf16.msrb.mxu0 %v10536_v27  ;;  %v12941_v52 = vld [vmem:[#allocation24 + $0x21c] sm:$0xf0] }
 0x522   :  { %15484 = vst [vmem:[#allocation43_spill] sm:$0xff] %v14795_v42  ;;  %v14811_v39 = vmin.f32 %v3378_v16, 16.0  ;;  %v14817_v30 = vmin.f32 %v3418_v22, 16.0  ;;  %v14819_v1 = vmin.f32 %v3458_v61, 16.0  ;;  %v14821_v29 = vmin.f32 %v3498_v24, 16.0 }
 0x523   :  { %v14823_v48 = vmin.f32 %v3538_v55, 16.0  ;;  %v3340_v45 = vmul.f32 2.1237322e-06, %v14809_v38  ;;  %v14827_v43 = vmin.f32 %v3578_v41, 16.0  ;;  %v14829_v63 = vmin.f32 %v3618_v31, 16.0 }
 0x524   :  { %v3380_v62 = vmul.f32 2.1237322e-06, %v14811_v39  ;;  %v3420_v20 = vmul.f32 2.1237322e-06, %v14817_v30  ;;  %v3460_v23 = vmul.f32 2.1237322e-06, %v14819_v1  ;;  %v10792_v9 = vor.u32 %v13077_v32, %v10791_v51 }
 0x525   :  { %v3500_v50 = vmul.f32 2.1237322e-06, %v14821_v29  ;;  %v3341_v56 = vadd.f32 0.00028619796, %v3340_v45  ;;  %v3540_v21 = vmul.f32 2.1237322e-06, %v14823_v48  ;;  %v9992_v58 = vor.u32 %v12877_v6, %v9991_v25 }
 0x526   :  { %v3381_v14 = vadd.f32 0.00028619796, %v3380_v62  ;;  %v3421_v28 = vadd.f32 0.00028619796, %v3420_v20  ;;  %v3461_v7 = vadd.f32 0.00028619796, %v3460_v23  ;;  %6817 = vmatpush.bf16.msrb.mxu1 %v10792_v9  ;;  %v10248_v24 = vor.u32 %v12941_v52, %v10247_v5 }
 0x527   :  { %v3501_v33 = vadd.f32 0.00028619796, %v3500_v50  ;;  %v3342_v59 = vmul.f32 %v3341_v56, %v14809_v38  ;;  %v3541_v53 = vadd.f32 0.00028619796, %v3540_v21  ;;  %v3580_v54 = vmul.f32 2.1237322e-06, %v14827_v43  ;;  %6779 = vmatpush.bf16.msra.mxu2 %v9992_v58 }
 0x528   :  { %v3382_v26 = vmul.f32 %v3381_v14, %v14811_v39  ;;  %v3422_v10 = vmul.f32 %v3421_v28, %v14817_v30  ;;  %v3462_v17 = vmul.f32 %v3461_v7, %v14819_v1  ;;  %v3620_v3 = vmul.f32 2.1237322e-06, %v14829_v63  ;;  %6792 = vmatpush.bf16.msra.mxu3 %v10248_v24  ;;  %v13069_v52 = vld [vmem:[#allocation24 + $0x61c] sm:$0xf0] }
 0x529   :  { %v3502_v44 = vmul.f32 %v3501_v33, %v14821_v29  ;;  %v3343_v4 = vadd.f32 0.0036580483, %v3342_v59  ;;  %v3542_v15 = vmul.f32 %v3541_v53, %v14823_v48  ;;  %v3581_v16 = vadd.f32 0.00028619796, %v3580_v54  ;;  %v10503_v53 = vld [vmem:[#allocation24 + $0x400] sm:$0xf] }
 0x52a   :  { %v3383_v46 = vadd.f32 0.0036580483, %v3382_v26  ;;  %v3423_v22 = vadd.f32 0.0036580483, %v3422_v10  ;;  %v3463_v61 = vadd.f32 0.0036580483, %v3462_v17 }
 0x52b   :  { %v3344_v55 = vmul.f32 %v3343_v4, %v14809_v38  ;;  %v3503_v0 = vadd.f32 0.0036580483, %v3502_v44  ;;  %v3543_v51 = vadd.f32 0.0036580483, %v3542_v15  ;;  %v3582_v41 = vmul.f32 %v3581_v16, %v14827_v43  ;;  %v13005_v54 = vld [vmem:[#allocation24 + $0x41c] sm:$0xf0] }
 0x52c   :  { %v3384_v35 = vmul.f32 %v3383_v46, %v14811_v39  ;;  %v3621_v31 = vadd.f32 0.00028619796, %v3620_v3  ;;  %v3424_v6 = vmul.f32 %v3423_v22, %v14817_v30  ;;  %v3464_v45 = vmul.f32 %v3463_v61, %v14819_v1  ;;  %v11239_v17 = vld [vmem:[#allocation24 + $0x9c0] sm:$0xf] }
 0x52d   :  { %v3345_v32 = vadd.f32 0.05243302, %v3344_v55  ;;  %v3504_v62 = vmul.f32 %v3503_v0, %v14821_v29  ;;  %v3544_v20 = vmul.f32 %v3543_v51, %v14823_v48  ;;  %v3583_v23 = vadd.f32 0.0036580483, %v3582_v41  ;;  %v13189_v44 = vld [vmem:[#allocation24 + $0x9dc] sm:$0xf0] }
 0x52e   :  { %v3385_v25 = vadd.f32 0.05243302, %v3384_v35  ;;  %v3622_v50 = vmul.f32 %v3621_v31, %v14829_v63  ;;  %v14852_v27 = vmul.f32 0.5, %v14751_v11  ;;  %v14857_v21 = vmul.f32 0.5, %v14755_v37  ;;  %v11495_v3 = vld [vmem:[#allocation24 + $0xbc0] sm:$0xf] }
 0x52f   :  { %v3346_v56 = vmul.f32 %v3345_v32, %v14809_v38  ;;  %v14860_v9 = vmul.f32 0.5, %v14759_v19  ;;  %v14863_v5 = vmul.f32 0.5, %v14763_v34  ;;  %v3425_v28 = vadd.f32 0.05243302, %v3424_v6  ;;  %v10759_v19 = vld [vmem:[#allocation24 + $0x600] sm:$0xf] }
 0x530   :  { %v3386_v14 = vmul.f32 %v3385_v25, %v14811_v39  ;;  %v3465_v7 = vadd.f32 0.05243302, %v3464_v45  ;;  %v3505_v33 = vadd.f32 0.05243302, %v3504_v62  ;;  %v3545_v58 = vadd.f32 0.05243302, %v3544_v20 }
 0x531   :  { %v14866_v11 = vmul.f32 0.5, %v14765_v36  ;;  %v14869_v59 = vmul.f32 0.5, %v14767_v12  ;;  %v3584_v26 = vmul.f32 %v3583_v23, %v14827_v43  ;;  %v3623_v37 = vadd.f32 0.0036580483, %v3622_v50  ;;  %v13253_v46 = vld [vmem:[#allocation24 + $0xbdc] sm:$0xf0] }
 0x532   :  { %v3347_v10 = vadd.f32 0.18741608, %v3346_v56  ;;  %v3387_v34 = vadd.f32 0.18741608, %v3386_v14  ;;  %v3426_v4 = vmul.f32 %v3425_v28, %v14817_v30  ;;  %v11751_v36 = vld [vmem:[#allocation24 + $0xdc0] sm:$0xf]  ;;  %v3466_v12 = vmul.f32 %v3465_v7, %v14819_v1 }
 0x533   :  { %15485 = vst [vmem:[#allocation44_spill] sm:$0xff] %v14869_v59  ;;  %v13317_v15 = vld [vmem:[#allocation24 + $0xddc] sm:$0xf0]  ;;  %v3506_v16 = vmul.f32 %v3505_v33, %v14821_v29  ;;  %v3546_v22 = vmul.f32 %v3545_v58, %v14823_v48  ;;  %v14876_v35 = vadd.f32 0.05243302, %v3584_v26  ;;  %v3624_v0 = vmul.f32 %v3623_v37, %v14829_v63 }
 0x534   :  { %v12007_v61 = vld [vmem:[#allocation24 + $0xfc0] sm:$0xf]  ;;  %v3348_v31 = vmul.f32 %v3347_v10, %v14809_v38  ;;  %v3388_v32 = vmul.f32 %v3387_v34, %v14811_v39  ;;  %v10504_v25 = vor.u32 %v13005_v54, %v10503_v53  ;;  %v10760_v6 = vor.u32 %v13069_v52, %v10759_v19 }
 0x535   :  { %v13381_v24 = vld [vmem:[#allocation24 + $0xfdc] sm:$0xf0]  ;;  %v3427_v23 = vadd.f32 0.18741608, %v3426_v4  ;;  %v11240_v50 = vor.u32 %v13189_v44, %v11239_v17  ;;  %v11496_v56 = vor.u32 %v13253_v46, %v11495_v3  ;;  %v11752_v14 = vor.u32 %v13317_v15, %v11751_v36 }
 0x536   :  { %v11207_v55 = vld [vmem:[#allocation24 + $0x980] sm:$0xf]  ;;  %v3467_v33 = vadd.f32 0.18741608, %v3466_v12  ;;  %v3507_v58 = vadd.f32 0.18741608, %v3506_v16  ;;  %6805 = vmatpush.bf16.msrb.mxu0 %v10504_v25  ;;  %6818 = vmatpush.bf16.msrb.mxu1 %v10760_v6  ;;  %v12008_v37 = vor.u32 %v13381_v24, %v12007_v61 }
 0x537   :  { %v13181_v51 = vld [vmem:[#allocation24 + $0x99c] sm:$0xf0]  ;;  %v3547_v26 = vadd.f32 0.18741608, %v3546_v22  ;;  %v14881_v54 = vadd.f32 0.05243302, %v3624_v0  ;;  %6824 = vmatpush.bf16.msrb.mxu2 %v11240_v50  ;;  %6837 = vmatpush.bf16.msrb.mxu3 %v11496_v56 }
 0x538   :  { %v11463_v41 = vld [vmem:[#allocation24 + $0xb80] sm:$0xf]  ;;  %v11208_v19 = vor.u32 %v13181_v51, %v11207_v55  ;;  %v14883_v4 = vadd.f32 1.1283791, %v3348_v31  ;;  %v14885_v46 = vadd.f32 1.1283791, %v3388_v32 }
 0x539   :  { %v13245_v45 = vld [vmem:[#allocation24 + $0xb9c] sm:$0xf0] }
 0x53a   :  { %v11719_v62 = vld [vmem:[#allocation24 + $0xd80] sm:$0xf]  ;;  %v11464_v52 = vor.u32 %v13245_v45, %v11463_v41  ;;  %6850 = vmatpush.bf16.msra.mxu0 %v11752_v14  ;;  %6863 = vmatpush.bf16.msra.mxu1 %v12008_v37  ;;  %v14904_v14 = vmul.f32 %v3427_v23, %v14817_v30 }
 0x53b   :  { %v13309_v20 = vld [vmem:[#allocation24 + $0xd9c] sm:$0xf0]  ;;  %6825 = vmatpush.bf16.msrb.mxu2 %v11208_v19 }
 0x53c   :  { %v11975_v28 = vld [vmem:[#allocation24 + $0xf80] sm:$0xf]  ;;  %v11720_v36 = vor.u32 %v13309_v20, %v11719_v62  ;;  %6838 = vmatpush.bf16.msrb.mxu3 %v11464_v52 }
 0x53d   :  { %v13373_v7 = vld [vmem:[#allocation24 + $0xf9c] sm:$0xf0] }
 0x53e   :  { %v11175_v10 = vld [vmem:[#allocation24 + $0x940] sm:$0xf]  ;;  %v11976_v15 = vor.u32 %v13373_v7, %v11975_v28  ;;  %6851 = vmatpush.bf16.msra.mxu0 %v11720_v36  ;;  %v14910_v28 = vmul.f32 %v3507_v58, %v14821_v29  ;;  %v14914_v7 = vmul.f32 %v14876_v35, %v14827_v43 }
 0x53f   :  { %v13173_v2 = vld [vmem:[#allocation24 + $0x95c] sm:$0xf0] }
 0x540   :  { %v11431_v34 = vld [vmem:[#allocation24 + $0xb40] sm:$0xf]  ;;  %v11176_v41 = vor.u32 %v13173_v2, %v11175_v10  ;;  %6864 = vmatpush.bf16.msra.mxu1 %v11976_v15  ;;  %v14907_v2 = vmul.f32 %v3467_v33, %v14819_v1 }
 0x541   :  { %v13237_v53 = vld [vmem:[#allocation24 + $0xb5c] sm:$0xf0] }
 0x542   :  { %v11687_v17 = vld [vmem:[#allocation24 + $0xd40] sm:$0xf]  ;;  %v11432_v31 = vor.u32 %v13237_v53, %v11431_v34  ;;  %v14923_v53 = vmul.f32 %v3547_v26, %v14823_v48  ;;  %6826 = vmatpush.bf16.msrb.mxu2 %v11176_v41 }
 0x543   :  { %v13301_v44 = vld [vmem:[#allocation24 + $0xd5c] sm:$0xf0] }
 0x544   :  { %v11943_v3 = vld [vmem:[#allocation24 + $0xf40] sm:$0xf]  ;;  %v11688_v45 = vor.u32 %v13301_v44, %v11687_v17  ;;  %6839 = vmatpush.bf16.msrb.mxu3 %v11432_v31  ;;  %v3431_v31 = vmul.f32 3.8918573e-05, %v14817_v30 }
 0x545   :  { %v13365_v12 = vld [vmem:[#allocation24 + $0xf5c] sm:$0xf0] }
 0x546   :  { %v11143_v16 = vld [vmem:[#allocation24 + $0x900] sm:$0xf]  ;;  %v11944_v62 = vor.u32 %v13365_v12, %v11943_v3  ;;  %6852 = vmatpush.bf16.msra.mxu0 %v11688_v45 }
 0x547   :  { %v13165_v22 = vld [vmem:[#allocation24 + $0x91c] sm:$0xf0] }
 0x548   :  { %v11399_v61 = vld [vmem:[#allocation24 + $0xb00] sm:$0xf]  ;;  %v11144_v23 = vor.u32 %v13165_v22, %v11143_v16  ;;  %6865 = vmatpush.bf16.msra.mxu1 %v11944_v62 }
 0x549   :  { %v13229_v24 = vld [vmem:[#allocation24 + $0xb1c] sm:$0xf0] }
 0x54a   :  { %v14887_v0 = vld [vmem:[#allocation24 + $0xd00] sm:$0xf]  ;;  %v11400_v19 = vor.u32 %v13229_v24, %v11399_v61  ;;  %v3351_v24 = vmul.f32 3.8918573e-05, %v14809_v38  ;;  %6827 = vmatpush.bf16.msrb.mxu2 %v11144_v23 }
 0x54b   :  { %v14889_v55 = vld [vmem:[#allocation24 + $0xd1c] sm:$0xf0] }
 0x54c   :  { %v14891_v51 = vld [vmem:[#allocation24 + $0xf00] sm:$0xf]  ;;  %v11656_v33 = vor.u32 %v14889_v55, %v14887_v0  ;;  %v3391_v0 = vmul.f32 3.8918573e-05, %v14811_v39  ;;  %v3352_v62 = vadd.f32 0.001143296, %v3351_v24  ;;  %6840 = vmatpush.bf16.msrb.mxu3 %v11400_v19 }
 0x54d   :  { %v13357_v32 = vld [vmem:[#allocation24 + $0xf1c] sm:$0xf0]  ;;  %v3591_v24 = vmul.f32 3.8918573e-05, %v14827_v43 }
 0x54e   :  { %v14893_v25 = vld [vmem:[#allocation24 + $0x8c0] sm:$0xf]  ;;  %v11912_v17 = vor.u32 %v13357_v32, %v14891_v51  ;;  %v3471_v32 = vmul.f32 3.8918573e-05, %v14819_v1  ;;  %6853 = vmatpush.bf16.msra.mxu0 %v11656_v33 }
 0x54f   :  { %v14895_v6 = vld [vmem:[#allocation24 + $0x8dc] sm:$0xf0] }
 0x550   :  { %v14897_v20 = vld [vmem:[#allocation24 + $0xac0] sm:$0xf]  ;;  %v11112_v44 = vor.u32 %v14895_v6, %v14893_v25  ;;  %v3511_v25 = vmul.f32 3.8918573e-05, %v14821_v29  ;;  %6866 = vmatpush.bf16.msra.mxu1 %v11912_v17 }
 0x551   :  { %v14899_v50 = vld [vmem:[#allocation24 + $0xadc] sm:$0xf0] }
 0x552   :  { %v14901_v56 = vld [vmem:[#allocation24 + $0xcc0] sm:$0xf]  ;;  %v11368_v26 = vor.u32 %v14899_v50, %v14897_v20  ;;  %v3392_v20 = vadd.f32 0.001143296, %v3391_v0  ;;  %v3551_v50 = vmul.f32 3.8918573e-05, %v14823_v48  ;;  %6828 = vmatpush.bf16.msrb.mxu2 %v11112_v44 }
 0x553   :  { %v14916_v37 = vld [vmem:[#allocation24 + $0xcdc] sm:$0xf0]  ;;  %v3631_v44 = vmul.f32 3.8918573e-05, %v14829_v63 }
 0x554   :  { %v14918_v10 = vld [vmem:[#allocation24 + $0xec0] sm:$0xf]  ;;  %v11624_v12 = vor.u32 %v14916_v37, %v14901_v56  ;;  %v3432_v37 = vadd.f32 0.001143296, %v3431_v31  ;;  %6841 = vmatpush.bf16.msrb.mxu3 %v11368_v26 }
 0x555   :  { %v14920_v34 = vld [vmem:[#allocation24 + $0xedc] sm:$0xf0]  ;;  %v3632_v13 = vadd.f32 0.001143296, %v3631_v44 }
 0x556   :  { %v14927_v58 = vld [vmem:[#allocation24 + $0x880] sm:$0xf]  ;;  %v11880_v16 = vor.u32 %v14920_v34, %v14918_v10  ;;  %v3472_v10 = vadd.f32 0.001143296, %v3471_v32  ;;  %v3512_v34 = vadd.f32 0.001143296, %v3511_v25  ;;  %v3433_v17 = vmul.f32 %v3432_v37, %v14817_v30  ;;  %6854 = vmatpush.bf16.msra.mxu0 %v11624_v12 }
 0x557   :  { %v14929_v52 = vld [vmem:[#allocation24 + $0x89c] sm:$0xf0] }
 0x558   :  { %v14931_v35 = vld [vmem:[#allocation24 + $0xa80] sm:$0xf]  ;;  %v11080_v55 = vor.u32 %v14929_v52, %v14927_v58  ;;  %v3353_v52 = vmul.f32 %v3352_v62, %v14809_v38  ;;  %v3473_v0 = vmul.f32 %v3472_v10, %v14819_v1  ;;  %v3513_v31 = vmul.f32 %v3512_v34, %v14821_v29  ;;  %6867 = vmatpush.bf16.msra.mxu1 %v11880_v16 }
 0x559   :  { %v14938_v3 = vld [vmem:[#allocation24 + $0xa9c] sm:$0xf0] }
 0x55a   :  { %v14940_v36 = vld [vmem:[#allocation24 + $0xc80] sm:$0xf]  ;;  %v11336_v6 = vor.u32 %v14938_v3, %v14931_v35  ;;  %v3393_v35 = vmul.f32 %v3392_v20, %v14811_v39  ;;  %v3552_v3 = vadd.f32 0.001143296, %v3551_v50  ;;  %v3354_v25 = vadd.f32 0.014752088, %v3353_v52  ;;  %6829 = vmatpush.bf16.msrb.mxu2 %v11080_v55 }
 0x55b   :  { %v14942_v15 = vld [vmem:[#allocation24 + $0xc9c] sm:$0xf0]  ;;  %v3434_v20 = vadd.f32 0.014752088, %v3433_v17  ;;  %v3474_v50 = vadd.f32 0.014752088, %v3473_v0 }
 0x55c   :  { %v14948_v22 = vld [vmem:[#allocation24 + $0xe80] sm:$0xf]  ;;  %v11592_v56 = vor.u32 %v14942_v15, %v14940_v36  ;;  %v3394_v62 = vadd.f32 0.014752088, %v3393_v35  ;;  %v3514_v42 = vadd.f32 0.014752088, %v3513_v31  ;;  %v3355_v34 = vmul.f32 %v3354_v25, %v14809_v38  ;;  %6842 = vmatpush.bf16.msrb.mxu3 %v11336_v6 }
 0x55d   :  { %v14950_v61 = vld [vmem:[#allocation24 + $0xe9c] sm:$0xf0]  ;;  %v3475_v12 = vmul.f32 %v3474_v50, %v14819_v1 }
 0x55e   :  { %v14956_v51 = vld [vmem:[#allocation24 + $0x840] sm:$0xf]  ;;  %v11848_v23 = vor.u32 %v14950_v61, %v14948_v22  ;;  %v3592_v22 = vadd.f32 0.001143296, %v3591_v24  ;;  %v3515_v16 = vmul.f32 %v3514_v42, %v14821_v29  ;;  %v3356_v31 = vadd.f32 0.112945676, %v3355_v34  ;;  %6855 = vmatpush.bf16.msra.mxu0 %v11592_v56 }
 0x55f   :  { %v14958_v41 = vld [vmem:[#allocation24 + $0x85c] sm:$0xf0]  ;;  %v3476_v59 = vadd.f32 0.112945676, %v3475_v12 }
 0x560   :  { %v14965_v45 = vld [vmem:[#allocation24 + $0xa40] sm:$0xf]  ;;  %v11048_v32 = vor.u32 %v14958_v41, %v14956_v51  ;;  %v3395_v51 = vmul.f32 %v3394_v62, %v14811_v39  ;;  %v3553_v41 = vmul.f32 %v3552_v3, %v14823_v48  ;;  %v3593_v24 = vmul.f32 %v3592_v22, %v14827_v43  ;;  %6868 = vmatpush.bf16.msra.mxu1 %v11848_v23 }
 0x561   :  { %v14970_v58 = vld [vmem:[#allocation24 + $0xa5c] sm:$0xf0]  ;;  %v3516_v50 = vadd.f32 0.112945676, %v3515_v16  ;;  %v3357_v22 = vmul.f32 %v3356_v31, %v14809_v38 }
 0x562   :  { %v14977_v19 = vld [vmem:[#allocation24 + $0xc40] sm:$0xf]  ;;  %v11304_v61 = vor.u32 %v14970_v58, %v14965_v45  ;;  %v3435_v58 = vmul.f32 %v3434_v20, %v14817_v30  ;;  %v3396_v25 = vadd.f32 0.112945676, %v3395_v51  ;;  %v3594_v6 = vadd.f32 0.014752088, %v3593_v24  ;;  %6830 = vmatpush.bf16.msrb.mxu2 %v11048_v32 }
 0x563   :  { %v14979_v36 = vld [vmem:[#allocation24 + $0xc5c] sm:$0xf0]  ;;  %v3517_v55 = vmul.f32 %v3516_v50, %v14821_v29  ;;  %v3358_v34 = vadd.f32 0.4994258, %v3357_v22  ;;  %v3509_v24 = vadd.f32 1.1283791, %v14910_v28 }
 0x564   :  { %v14981_v15 = vld [vmem:[#allocation24 + $0xe40] sm:$0xf]  ;;  %v11560_v17 = vor.u32 %v14979_v36, %v14977_v19  ;;  %v3436_v20 = vadd.f32 0.112945676, %v3435_v58  ;;  %v3397_v19 = vmul.f32 %v3396_v25, %v14811_v39  ;;  %v3554_v36 = vadd.f32 0.014752088, %v3553_v41  ;;  %6843 = vmatpush.bf16.msrb.mxu3 %v11304_v61 }
 0x565   :  { %v14983_v33 = vld [vmem:[#allocation24 + $0xe5c] sm:$0xf0]  ;;  %v3518_v12 = vadd.f32 0.4994258, %v3517_v55  ;;  %v15013_v41 = vadd.f32 0.18741608, %v14914_v7  ;;  %v3595_v61 = vmul.f32 %v3594_v6, %v14827_v43 }
 0x566   :  { %v14992_v37 = vld [vmem:[#allocation24 + $0x800] sm:$0xf]  ;;  %v11816_v3 = vor.u32 %v14983_v33, %v14981_v15  ;;  %v3437_v15 = vmul.f32 %v3436_v20, %v14817_v30  ;;  %v3477_v33 = vmul.f32 %v3476_v59, %v14819_v1  ;;  %v3398_v51 = vadd.f32 0.4994258, %v3397_v19  ;;  %6856 = vmatpush.bf16.msra.mxu0 %v11560_v17 }
 0x567   :  { %v13133_v10 = vld [vmem:[#allocation24 + $0x81c] sm:$0xf0]  ;;  %v3359_v59 = vmul.f32 %v3358_v34, %v14809_v38  ;;  %v3519_v38 = vmul.f32 %v3518_v12, %v14821_v29 }
 0x568   :  { %v11271_v26 = vld [vmem:[#allocation24 + $0xa00] sm:$0xf]  ;;  %v11016_v62 = vor.u32 %v13133_v10, %v14992_v37  ;;  %v3438_v23 = vadd.f32 0.4994258, %v3437_v15  ;;  %v3478_v58 = vadd.f32 0.4994258, %v3477_v33  ;;  %6869 = vmatpush.bf16.msra.mxu1 %v11816_v3  ;;  %v3399_v44 = vmul.f32 %v3398_v51, %v14811_v39 }
 0x569   :  { %v13197_v52 = vld [vmem:[#allocation24 + $0xa1c] sm:$0xf0]  ;;  %v15023_v7 = vadd.f32 1.0, %v3359_v59  ;;  %v3469_v39 = vadd.f32 1.1283791, %v14907_v2  ;;  %v15043_v2 = vmul.f32 %v14885_v46, %v14777_v57  ;;  %v15059_v57 = vmul.f32 %v3509_v24, %v14786_v47 }
 0x56a   :  { %v11527_v35 = vld [vmem:[#allocation24 + $0xc00] sm:$0xf]  ;;  %v11272_v37 = vor.u32 %v13197_v52, %v11271_v26  ;;  %v3555_v26 = vmul.f32 %v3554_v36, %v14823_v48  ;;  %v3439_v52 = vmul.f32 %v3438_v23, %v14817_v30  ;;  %v3479_v32 = vmul.f32 %v3478_v58, %v14819_v1  ;;  %6831 = vmatpush.bf16.msrb.mxu2 %v11016_v62 }
 0x56b   :  { %v13261_v45 = vld [vmem:[#allocation24 + $0xc1c] sm:$0xf0]  ;;  %v15025_v16 = vadd.f32 1.0, %v3399_v44  ;;  %v3626_v30 = vmul.f32 %v14881_v54, %v14829_v63  ;;  %13555 = vrcp.f32 %v15023_v7  ;;  %v3596_v54 = vadd.f32 0.112945676, %v3595_v61 }
 0x56c   :  { %v11783_v0 = vld [vmem:[#allocation24 + $0xe00] sm:$0xf]  ;;  %v11528_v10 = vor.u32 %v13261_v45, %v11527_v35  ;;  %v3633_v35 = vmul.f32 %v3632_v13, %v14829_v63  ;;  %v3429_v45 = vadd.f32 1.1283791, %v14904_v14  ;;  %6844 = vmatpush.bf16.msrb.mxu3 %v11272_v37  ;;  %v15032_v1 = vadd.f32 1.0, %v3439_v52 }
 0x56d   :  { %v13325_v42 = vld [vmem:[#allocation24 + $0xe1c] sm:$0xf0]  ;;  %v15036_v13 = vmul.f32 %v14883_v4, %v14774_v49  ;;  %v15039_v29 = vadd.f32 1.0, %v3479_v32  ;;  %v3556_v14 = vadd.f32 0.112945676, %v3555_v26  ;;  %13557 = vrcp.f32 %v15025_v16 }
 0x56e   :  { %v11784_v56 = vor.u32 %v13325_v42, %v11783_v0  ;;  %6857 = vmatpush.bf16.msra.mxu0 %v11528_v10  ;;  %v3634_v28 = vadd.f32 0.014752088, %v3633_v35  ;;  %v15047_v17 = vmul.f32 %v3429_v45, %v14780_v18  ;;  %v15050_v49 = vadd.f32 1.1283791, %v14923_v53 }
 0x56f   :  { %13559 = vrcp.f32 %v15032_v1  ;;  %v15053_v4 = vadd.f32 1.0, %v3519_v38  ;;  %v15056_v3 = vmul.f32 %v3469_v39, %v14783_v60  ;;  %v15061_v46 = vadd.f32 0.18741608, %v3626_v30 }
 0x570   :  { %6870 = vmatpush.bf16.msra.mxu1 %v11784_v56  ;;  %v3370_v0 = vand.u32 2147483647, %v15023_v7  ;;  %v3372_v18 = vand.u32 2147483648, %v15023_v7  ;;  %v3410_v31 = vand.u32 2147483647, %v15025_v16  ;;  %13561 = vrcp.f32 %v15039_v29 }
 0x571   :  { %v15068_v53 = vmul.f32 %v3556_v14, %v14823_v48  ;;  %vm3366_vm2 = vweird.f32 %v15023_v7  ;;  %v3412_v60 = vand.u32 2147483648, %v15025_v16  ;;  %v15073_v47 = vmul.f32 %v3596_v54, %v14827_v43  ;;  %v13556_v62 = vpop.eup %13555 }
 0x572   :  { %v15076_v25 = vmul.f32 %v3634_v28, %v14829_v63  ;;  %v3450_v20 = vand.u32 2147483647, %v15032_v1  ;;  %v3452_v50 = vand.u32 2147483648, %v15032_v1  ;;  %v3492_v42 = vand.u32 2147483648, %v15039_v29 }
 0x573   :  { %13563 = vrcp.f32 %v15053_v4  ;;  %v13558_v22 = vpop.eup %13557  ;;  %v3362_v19 = vmul.f32 %v13556_v62, %v15023_v7  ;;  %vm15083_vm3 = vcmp.eq.f32.partialorder %v3370_v0, 8.507059e+37  ;;  %vm3406_vm4 = vweird.f32 %v15025_v16 }
 0x574   :  { %v3490_v15 = vand.u32 2147483647, %v15039_v29  ;;  %v3373_v55 = vor.u32 1.1754944e-38, %v3372_v18  ;;  %v3402_v6 = vmul.f32 %v13558_v22, %v15025_v16  ;;  %vm15090_vm5 = vcmp.eq.f32.partialorder %v3410_v31, 8.507059e+37  ;;  %v12985_v31 = vld [vmem:[#allocation24 + $0x384] sm:$0xf] }
 0x575   :  { %v13560_v33 = vpop.eup %13559  ;;  %vm3446_vm6 = vweird.f32 %v15032_v1  ;;  %v3363_v10 = vsub.f32 1.0, %v3362_v19  ;;  %v3413_v34 = vor.u32 1.1754944e-38, %v3412_v60  ;;  %vm3486_vm7 = vweird.f32 %v15039_v29 }
 0x576   :  { %v3442_v51 = vmul.f32 %v13560_v33, %v15032_v1  ;;  %v13562_v56 = vpop.eup %13561  ;;  %v3403_v23 = vsub.f32 1.0, %v3402_v6  ;;  %vm15097_vm8 = vcmp.eq.f32.partialorder %v3450_v20, 8.507059e+37  ;;  %v3453_v12 = vor.u32 1.1754944e-38, %v3452_v50 }
 0x577   :  { %v3493_v59 = vor.u32 1.1754944e-38, %v3492_v42  ;;  %v3364_v44 = vmul.f32 %v13556_v62, %v3363_v10  ;;  %vm3367_vm9 = vweird.f32 %v13556_v62  ;;  %v3482_v52 = vmul.f32 %v13562_v56, %v15039_v29  ;;  %v12929_v10 = vld [vmem:[#allocation24 + $0x1c4] sm:$0xf] }
 0x578   :  { %v3443_v26 = vsub.f32 1.0, %v3442_v51  ;;  %vm15102_vm10 = vcmp.eq.f32.partialorder %v3490_v15, 8.507059e+37  ;;  %v3404_v35 = vmul.f32 %v13558_v22, %v3403_v23  ;;  %vm3407_vm11 = vweird.f32 %v13558_v22  ;;  %vm3368_vm14 = vmor %vm3366_vm2, %vm3367_vm9 }
 0x579   :  { %v13564_v61 = vpop.eup %13563  ;;  %v3530_v45 = vand.u32 2147483647, %v15053_v4  ;;  %v3532_v38 = vand.u32 2147483648, %v15053_v4  ;;  %v3365_v39 = vadd.f32 %v13556_v62, %v3364_v44  ;;  %vm3447_vm13 = vweird.f32 %v13560_v33  ;;  %vm3408_vm1 = vmor %vm3406_vm4, %vm3407_vm11  ;;  %v10473_v44 = vld [vmem:[#allocation24 + $0x3e0] sm:$0xf0] }
 0x57a   :  { %v3444_v24 = vmul.f32 %v13560_v33, %v3443_v26  ;;  %v3483_v30 = vsub.f32 1.0, %v3482_v52  ;;  %v3405_v14 = vadd.f32 %v13558_v22, %v3404_v35  ;;  %vm3487_vm15 = vweird.f32 %v13562_v56  ;;  %vm3448_vm2 = vmor %vm3446_vm6, %vm3447_vm13  ;;  %v13057_v35 = vld [vmem:[#allocation24 + $0x5c4] sm:$0xf] }
 0x57b   :  { %v3522_v54 = vmul.f32 %v13564_v61, %v15053_v4  ;;  %vm3527_vm0 = vweird.f32 %v13564_v61  ;;  %v3369_v28 = vsel %vm3368_vm14, %v13556_v62, %v3365_v39  ;;  %vm15114_vm12 = vcmp.eq.f32.partialorder %v3530_v45, 8.507059e+37 }
 0x57c   :  { %v3445_v0 = vadd.f32 %v13560_v33, %v3444_v24  ;;  %v3484_v18 = vmul.f32 %v13562_v56, %v3483_v30  ;;  %v3374_v60 = vsel %vm15083_vm3, %v3373_v55, %v3369_v28  ;;  %v3409_v7 = vsel %vm3408_vm1, %v13558_v22, %v3405_v14  ;;  %vm3488_vm3 = vmor %vm3486_vm7, %vm3487_vm15  ;;  %v13121_v24 = vld [vmem:[#allocation24 + $0x7c4] sm:$0xf] }
 0x57d   :  { %v3523_v20 = vsub.f32 1.0, %v3522_v54  ;;  %v3533_v50 = vor.u32 1.1754944e-38, %v3532_v38  ;;  %v3375_v62 = vmul.f32 %v3374_v60, %v15036_v13  ;;  %v3414_v16 = vsel %vm15090_vm5, %v3413_v34, %v3409_v7  ;;  %v10217_v34 = vld [vmem:[#allocation24 + $0x1e0] sm:$0xf0] }
 0x57e   :  { %v3449_v42 = vsel %vm3448_vm2, %v13560_v33, %v3445_v0  ;;  %v3485_v19 = vadd.f32 %v13562_v56, %v3484_v18  ;;  %v3415_v15 = vmul.f32 %v3414_v16, %v15043_v2  ;;  %v3558_v22 = vadd.f32 0.4994258, %v15068_v53  ;;  %v12993_v53 = vld [vmem:[#allocation24 + $0x3c4] sm:$0xf] }
 0x57f   :  { %v3454_v6 = vsel %vm15097_vm8, %v3453_v12, %v3449_v42  ;;  %v3524_v1 = vmul.f32 %v13564_v61, %v3523_v20  ;;  %v9981_v36 = vclamps-f32 %v3375_v62, 1.0  ;;  %v3598_v37 = vadd.f32 0.4994258, %v15073_v47  ;;  %v10985_v30 = vld [vmem:[#allocation24 + $0x7e0] sm:$0xf0] }
 0x580   :  { %v3455_v13 = vmul.f32 %v3454_v6, %v15047_v17  ;;  %v3489_v55 = vsel %vm3488_vm3, %v13562_v56, %v3485_v19  ;;  %v9982_v33 = vclamps-f32 %v3415_v15, 1.0  ;;  %v3559_v23 = vmul.f32 %v3558_v22, %v14823_v48  ;;  %v12921_v14 = vld [vmem:[#allocation24 + $0x184] sm:$0xf] }
 0x581   :  { %v3494_v2 = vsel %vm15102_vm10, %v3493_v59, %v3489_v55  ;;  %v3525_v51 = vadd.f32 %v13564_v61, %v3524_v1  ;;  %v3658_v29 = vadd.f32 1.0, %v9981_v36  ;;  %vm15496_vm4 = vweird.f32 %v15053_v4  ;;  %v10185_v54 = vld [vmem:[#allocation24 + $0x1a0] sm:$0xf0] }
 0x582   :  { %v9983_v58 = vclamps-f32 %v3455_v13, 1.0  ;;  %v3495_v12 = vmul.f32 %v3494_v2, %v15056_v3  ;;  %vm3528_vm5 = vmor %vm15496_vm4, %vm3527_vm0  ;;  %v3599_v17 = vmul.f32 %v3598_v37, %v14827_v43  ;;  %v3659_v47 = vadd.f32 1.0, %v9982_v33  ;;  %v10729_v3 = vld [vmem:[#allocation24 + $0x5e0] sm:$0xf0] }
 0x583   :  { %v3529_v56 = vsel %vm3528_vm5, %v13564_v61, %v3525_v51  ;;  %v15142_v59 = vadd.f32 1.0, %v3559_v23  ;;  %v3636_v26 = vadd.f32 0.112945676, %v15076_v25  ;;  %v3666_v48 = vmul.f32 %v3658_v29, %v14852_v27  ;;  %v10441_v60 = vld [vmem:[#allocation24 + $0x3a0] sm:$0xf0] }
 0x584   :  { %v3660_v52 = vadd.f32 1.0, %v9983_v58  ;;  %v9984_v32 = vclamps-f32 %v3495_v12, 1.0  ;;  %v3534_v45 = vsel %vm15114_vm12, %v3533_v50, %v3529_v56  ;;  %v3667_v4 = vmul.f32 %v3659_v47, %v14857_v21  ;;  %v10697_v62 = vld [vmem:[#allocation24 + $0x5a0] sm:$0xf0] }
 0x585   :  { %v10220_v38 = vor.u32 %v12929_v10, %v10217_v34  ;;  %v10476_v39 = vor.u32 %v12993_v53, %v10473_v44  ;;  %13565 = vrcp.f32 %v15142_v59  ;;  %v15150_v61 = vpack.c.bf16 %v3666_v48, %v3666_v48  ;;  %v10153_v6 = vld [vmem:[#allocation24 + $0x160] sm:$0xf0] }
 0x586   :  { %v3668_v25 = vmul.f32 %v3660_v52, %v14860_v9  ;;  %v3661_v27 = vadd.f32 1.0, %v9984_v32  ;;  %v3535_v28 = vmul.f32 %v3534_v45, %v15059_v57  ;;  %v15155_v0 = vmul.f32 0.5, %v14769_v8  ;;  %v13049_v57 = vld [vmem:[#allocation24 + $0x584] sm:$0xf] }
 0x587   :  { %v15157_v18 = vpack.c.bf16 %v3667_v4, %v3667_v4  ;;  %v10732_v21 = vor.u32 %v13057_v35, %v10729_v3  ;;  %v15159_v7 = vadd.f32 1.0, %v3599_v17  ;;  %v3588_v20 = vmul.f32 %v15013_v41, %v14827_v43  ;;  %6780 = vmatmul.bf16.vlgmr.msra.gmra.mxu2 %v15150_v61  ;;  %v13113_v8 = vld [vmem:[#allocation24 + $0x784] sm:$0xf] }
 0x588   :  { %v15164_v9 = vpack.c.bf16 %v3668_v25, %v3668_v25  ;;  %v3669_v50 = vmul.f32 %v3661_v27, %v14863_v5  ;;  %v3637_v16 = vmul.f32 %v3636_v26, %v14829_v63  ;;  %v3628_v42 = vmul.f32 %v15061_v46, %v14829_v63  ;;  %6876 = vmatpush.bf16.msra.mxu2 %v10220_v38  ;;  %v10953_v43 = vld [vmem:[#allocation24 + $0x7a0] sm:$0xf0] }
 0x589   :  { %6793 = vmatmul.bf16.vlgmr.msra.gmra.mxu3 %v15157_v18  ;;  %v10988_v19 = vor.u32 %v13121_v24, %v10985_v30  ;;  %v10188_v15 = vor.u32 %v12921_v14, %v10185_v54  ;;  %v12913_v41 = vld [vmem:[#allocation24 + $0x144] sm:$0xf]  ;;  %13567 = vrcp.f32 %v15159_v7  ;;  %v10444_v1 = vor.u32 %v12985_v31, %v10441_v60 }
 0x58a   :  { %6806 = vmatmul.bf16.vlgmr.msrb.gmra.mxu0 %v15164_v9  ;;  %v15173_v5 = vpack.c.bf16 %v3669_v50, %v3669_v50  ;;  %6889 = vmatpush.bf16.msra.mxu3 %v10476_v39  ;;  %v12977_v22 = vld [vmem:[#allocation24 + $0x344] sm:$0xf]  ;;  %v9985_v36 = vclamps-f32 %v3535_v28, 1.0  ;;  %v3638_v13 = vadd.f32 0.4994258, %v3637_v16  ;;  %v10700_v55 = vor.u32 %v13049_v57, %v10697_v62 }
 0x58b   :  { %v15175_v46 = vpop.eup %13565  ;;  %6902 = vmatpush.bf16.msrb.mxu0 %v10732_v21  ;;  %v10409_v37 = vld [vmem:[#allocation24 + $0x360] sm:$0xf0]  ;;  %v15179_v10 = vmul.f32 %v15050_v49, %v14789_v40  ;;  %v15181_v34 = vadd.f32 1.1283791, %v3588_v20  ;;  %v15186_v58 = vadd.f32 1.1283791, %v3628_v42  ;;  %v10956_v12 = vor.u32 %v13113_v8, %v10953_v43 }
 0x58c   :  { %v13041_v33 = vld [vmem:[#allocation24 + $0x544] sm:$0xf]  ;;  %6819 = vmatmul.bf16.vlgmr.msrb.gmra.mxu1 %v15173_v5  ;;  %v3562_v29 = vmul.f32 %v15175_v46, %v15142_v59  ;;  %6877 = vmatpush.bf16.msra.mxu2 %v10188_v15  ;;  %v10156_v53 = vor.u32 %v12913_v41, %v10153_v6  ;;  %v3639_v40 = vmul.f32 %v3638_v13, %v14829_v63  ;;  %v3662_v48 = vadd.f32 1.0, %v9985_v36 }
 0x58d   :  { %v10665_v2 = vld [vmem:[#allocation24 + $0x560] sm:$0xf0]  ;;  %6915 = vmatpush.bf16.msrb.mxu1 %v10988_v19  ;;  %v10412_v49 = vor.u32 %v12977_v22, %v10409_v37  ;;  %v3570_v45 = vand.u32 2147483647, %v15142_v59  ;;  %v3572_v4 = vand.u32 2147483648, %v15142_v59  ;;  %vm3567_vm6 = vweird.f32 %v15175_v46 }
 0x58e   :  { %v13105_v51 = vld [vmem:[#allocation24 + $0x744] sm:$0xf]  ;;  %6890 = vmatpush.bf16.msra.mxu3 %v10444_v1  ;;  %v10668_v47 = vor.u32 %v13041_v33, %v10665_v2  ;;  %v3563_v52 = vsub.f32 1.0, %v3562_v29  ;;  %v15193_v38 = vadd.f32 1.0, %v3639_v40  ;;  %v3610_v54 = vand.u32 2147483647, %v15159_v7 }
 0x58f   :  { %v10921_v23 = vld [vmem:[#allocation24 + $0x760] sm:$0xf0]  ;;  %v15189_v32 = vpop.eup %13567  ;;  %6903 = vmatpush.bf16.msrb.mxu0 %v10700_v55  ;;  %v3612_v28 = vand.u32 2147483648, %v15159_v7  ;;  %v3670_v21 = vmul.f32 %v3662_v48, %v14866_v11  ;;  %vm3566_vm7 = vweird.f32 %v15142_v59  ;;  %vm3571_vm9 = vcmp.eq.f32.partialorder %v3570_v45, 8.507059e+37 }
 0x590   :  { %v12905_v44 = vld [vmem:[#allocation24 + $0x104] sm:$0xf]  ;;  %v10924_v35 = vor.u32 %v13105_v51, %v10921_v23  ;;  %v3564_v25 = vmul.f32 %v15175_v46, %v3563_v52  ;;  %v3602_v27 = vmul.f32 %v15189_v32, %v15159_v7  ;;  %6878 = vmatpush.bf16.msra.mxu2 %v10156_v53  ;;  %13569 = vrcp.f32 %v15193_v38  ;;  %vm3568_vm8 = vmor %vm3566_vm7, %vm3567_vm6 }
 0x591   :  { %v10121_v17 = vld [vmem:[#allocation24 + $0x120] sm:$0xf0]  ;;  %6916 = vmatpush.bf16.msrb.mxu1 %v10956_v12  ;;  %v3573_v8 = vor.u32 1.1754944e-38, %v3572_v4  ;;  %vm3606_vm10 = vweird.f32 %v15159_v7  ;;  %vm3607_vm11 = vweird.f32 %v15189_v32  ;;  %vm15211_vm12 = vcmp.eq.f32.partialorder %v3610_v54, 8.507059e+37  ;;  %v15500_v54 = vld [vmem:[#allocation44_spill] sm:$0xff] }
 0x592   :  { %v12969_v56 = vld [vmem:[#allocation24 + $0x304] sm:$0xf]  ;;  %v10124_v39 = vor.u32 %v12905_v44, %v10121_v17  ;;  %6891 = vmatpush.bf16.msra.mxu3 %v10412_v49  ;;  %v3565_v31 = vadd.f32 %v15175_v46, %v3564_v25  ;;  %v3603_v60 = vsub.f32 1.0, %v3602_v27  ;;  %v3613_v6 = vor.u32 1.1754944e-38, %v3612_v28  ;;  %vm3608_vm13 = vmor %vm3606_vm10, %vm3607_vm11 }
 0x593   :  { %v10377_v26 = vld [vmem:[#allocation24 + $0x320] sm:$0xf0]  ;;  %6904 = vmatpush.bf16.msrb.mxu0 %v10668_v47  ;;  %v15215_v36 = vpack.c.bf16 %v3670_v21, %v3670_v21  ;;  %v3650_v12 = vand.u32 2147483647, %v15193_v38  ;;  %vm3646_vm15 = vweird.f32 %v15193_v38 }
 0x594   :  { %v13033_v3 = vld [vmem:[#allocation24 + $0x504] sm:$0xf]  ;;  %v10380_v14 = vor.u32 %v12969_v56, %v10377_v26  ;;  %v3569_v19 = vsel %vm3568_vm8, %v15175_v46, %v3565_v31  ;;  %v3604_v11 = vmul.f32 %v15189_v32, %v3603_v60  ;;  %6879 = vmatpush.bf16.msra.mxu2 %v10124_v39 }
 0x595   :  { %v10633_v63 = vld [vmem:[#allocation24 + $0x520] sm:$0xf0]  ;;  %6917 = vmatpush.bf16.msrb.mxu1 %v10924_v35  ;;  %v3574_v43 = vsel %vm3571_vm9, %v3573_v8, %v3569_v19  ;;  %vm3651_vm1 = vcmp.eq.f32.partialorder %v3650_v12, 8.507059e+37 }
 0x596   :  { %v13097_v24 = vld [vmem:[#allocation24 + $0x704] sm:$0xf]  ;;  %v10636_v57 = vor.u32 %v13033_v3, %v10633_v63  ;;  %6892 = vmatpush.bf16.msra.mxu3 %v10380_v14  ;;  %v3575_v13 = vmul.f32 %v3574_v43, %v15179_v10  ;;  %v3605_v46 = vadd.f32 %v15189_v32, %v3604_v11  ;;  %v15219_v51 = vpop.eup %13569 }
 0x597   :  { %v10889_v30 = vld [vmem:[#allocation24 + $0x720] sm:$0xf0]  ;;  %6832 = vmatmul.bf16.vlgmr.msrb.gmra.mxu2 %v15215_v36  ;;  %v3642_v49 = vmul.f32 %v15219_v51, %v15193_v38  ;;  %vm3647_vm14 = vweird.f32 %v15219_v51 }
 0x598   :  { %v12897_v20 = vld [vmem:[#allocation24 + $0xc4] sm:$0xf]  ;;  %v10892_v62 = vor.u32 %v13097_v24, %v10889_v30  ;;  %6905 = vmatpush.bf16.msrb.mxu0 %v10636_v57  ;;  %v9986_v17 = vclamps-f32 %v3575_v13, 1.0  ;;  %v3609_v40 = vsel %vm3608_vm13, %v15189_v32, %v3605_v46  ;;  %vm3648_vm0 = vmor %vm3646_vm15, %vm3647_vm14  ;;  %v15501_v13 = vld [vmem:[#allocation43_spill] sm:$0xff] }
 0x599   :  { %v10089_v50 = vld [vmem:[#allocation24 + $0xe0] sm:$0xf0]  ;;  %v3614_v7 = vsel %vm15211_vm12, %v3613_v6, %v3609_v40  ;;  %v3643_v32 = vsub.f32 1.0, %v3642_v49  ;;  %v3630_v46 = vmul.f32 %v15186_v58, %v15501_v13 }
 0x59a   :  { %v12961_v16 = vld [vmem:[#allocation24 + $0x2c4] sm:$0xf]  ;;  %v10092_v1 = vor.u32 %v12897_v20, %v10089_v50  ;;  %6918 = vmatpush.bf16.msrb.mxu1 %v10892_v62  ;;  %v3663_v45 = vadd.f32 1.0, %v9986_v17 }
 0x59b   :  { %v10345_v42 = vld [vmem:[#allocation24 + $0x2e0] sm:$0xf0]  ;;  %v3644_v31 = vmul.f32 %v15219_v51, %v3643_v32 }
 0x59c   :  { %v13025_v59 = vld [vmem:[#allocation24 + $0x4c4] sm:$0xf]  ;;  %v10348_v55 = vor.u32 %v12961_v16, %v10345_v42  ;;  %6880 = vmatpush.bf16.msra.mxu2 %v10092_v1  ;;  %v3671_v28 = vmul.f32 %v3663_v45, %v15500_v54 }
 0x59d   :  { %v10601_v15 = vld [vmem:[#allocation24 + $0x4e0] sm:$0xf0]  ;;  %v3645_v11 = vadd.f32 %v15219_v51, %v3644_v31 }
 0x59e   :  { %v13089_v22 = vld [vmem:[#allocation24 + $0x6c4] sm:$0xf]  ;;  %v10604_v10 = vor.u32 %v13025_v59, %v10601_v15  ;;  %6893 = vmatpush.bf16.msra.mxu3 %v10348_v55  ;;  %v15239_v42 = vpack.c.bf16 %v3671_v28, %v3671_v28 }
 0x59f   :  { %v10857_v37 = vld [vmem:[#allocation24 + $0x6e0] sm:$0xf0] }
 0x5a0   :  { %v12889_v33 = vld [vmem:[#allocation24 + $0x84] sm:$0xf]  ;;  %v10860_v26 = vor.u32 %v13089_v22, %v10857_v37  ;;  %6906 = vmatpush.bf16.msrb.mxu0 %v10604_v10  ;;  %6845 = vmatmul.bf16.vlgmr.msrb.gmra.mxu3 %v15239_v42  ;;  %v3649_v37 = vsel %vm3648_vm0, %v15219_v51, %v3645_v11 }
 0x5a1   :  { %v10057_v2 = vld [vmem:[#allocation24 + $0xa0] sm:$0xf0] }
 0x5a2   :  { %v15499_v23 = vld [vmem:[#allocation42_spill] sm:$0xff]  ;;  %v10060_v48 = vor.u32 %v12889_v33, %v10057_v2  ;;  %6919 = vmatpush.bf16.msrb.mxu1 %v10860_v26 }
 0x5a3   :  { %v3590_v29 = vmul.f32 %v15181_v34, %v15499_v23  ;;  %v12953_v53 = vld [vmem:[#allocation24 + $0x284] sm:$0xf]  ;;  %v3652_v34 = vand.u32 2147483648, %v15193_v38 }
 0x5a4   :  { %v10313_v44 = vld [vmem:[#allocation24 + $0x2a0] sm:$0xf0]  ;;  %6881 = vmatpush.bf16.msra.mxu2 %v10060_v48 }
 0x5a5   :  { %v13017_v47 = vld [vmem:[#allocation24 + $0x484] sm:$0xf]  ;;  %v3615_v4 = vmul.f32 %v3614_v7, %v3590_v29  ;;  %v10316_v39 = vor.u32 %v12953_v53, %v10313_v44  ;;  %v3653_v41 = vor.u32 1.1754944e-38, %v3652_v34 }
 0x5a6   :  { %v10569_v56 = vld [vmem:[#allocation24 + $0x4a0] sm:$0xf0] }
 0x5a7   :  { %v13081_v52 = vld [vmem:[#allocation24 + $0x684] sm:$0xf]  ;;  %v10572_v30 = vor.u32 %v13017_v47, %v10569_v56  ;;  %v9987_v21 = vclamps-f32 %v3615_v4, 1.0  ;;  %6894 = vmatpush.bf16.msra.mxu3 %v10316_v39  ;;  %v3654_v38 = vsel %vm3651_vm1, %v3653_v41, %v3649_v37  ;;  %v15502_v4 = vld [vmem:[#allocation41_spill] sm:$0xff] }
 0x5a8   :  { %v10825_v35 = vld [vmem:[#allocation24 + $0x6a0] sm:$0xf0]  ;;  %v3655_v17 = vmul.f32 %v3654_v38, %v3630_v46  ;;  %v3329_v32 = vmul.f32 0.5, %v15502_v4 }
 0x5a9   :  { %v12881_v3 = vld [vmem:[#allocation24 + $0x44] sm:$0xf]  ;;  %v10828_v50 = vor.u32 %v13081_v52, %v10825_v35  ;;  %v3664_v19 = vadd.f32 1.0, %v9987_v21  ;;  %6907 = vmatpush.bf16.msrb.mxu0 %v10572_v30 }
 0x5aa   :  { %v10025_v63 = vld [vmem:[#allocation24 + $0x60] sm:$0xf0]  ;;  %v9988_v7 = vclamps-f32 %v3655_v17, 1.0 }
 0x5ab   :  { %v12945_v24 = vld [vmem:[#allocation24 + $0x244] sm:$0xf]  ;;  %v10028_v57 = vor.u32 %v12881_v3, %v10025_v63  ;;  %v3672_v55 = vmul.f32 %v3664_v19, %v15155_v0  ;;  %6920 = vmatpush.bf16.msrb.mxu1 %v10828_v50 }
 0x5ac   :  { %v10281_v25 = vld [vmem:[#allocation24 + $0x260] sm:$0xf0]  ;;  %v3665_v39 = vadd.f32 1.0, %v9988_v7 }
 0x5ad   :  { %v13009_v27 = vld [vmem:[#allocation24 + $0x444] sm:$0xf]  ;;  %v10284_v59 = vor.u32 %v12945_v24, %v10281_v25  ;;  %6882 = vmatpush.bf16.msra.mxu2 %v10028_v57  ;;  %v15251_v44 = vpack.c.bf16 %v3672_v55, %v3672_v55 }
 0x5ae   :  { %v10537_v14 = vld [vmem:[#allocation24 + $0x460] sm:$0xf0]  ;;  %v3673_v54 = vmul.f32 %v3665_v39, %v3329_v32 }
 0x5af   :  { %v13073_v60 = vld [vmem:[#allocation24 + $0x644] sm:$0xf]  ;;  %v10540_v6 = vor.u32 %v13009_v27, %v10537_v14  ;;  %6895 = vmatpush.bf16.msra.mxu3 %v10284_v59  ;;  %6858 = vmatmul.bf16.vlgmr.msra.gmra.mxu0 %v15251_v44 }
 0x5b0   :  { %v10793_v20 = vld [vmem:[#allocation24 + $0x660] sm:$0xf0]  ;;  %v15256_v57 = vpack.c.bf16 %v3673_v54, %v3673_v54 }
 0x5b1   :  { %v12873_v62 = vld [vmem:[#allocation24 + $0x4] sm:$0xf]  ;;  %v10796_v29 = vor.u32 %v13073_v60, %v10793_v20  ;;  %6908 = vmatpush.bf16.msrb.mxu0 %v10540_v6 }
 0x5b2   :  { %v9993_v8 = vld [vmem:[#allocation24 + $0x20] sm:$0xf0]  ;;  %6871 = vmatmul.bf16.vlgmr.msra.gmra.mxu1 %v15256_v57 }
 0x5b3   :  { %v12937_v16 = vld [vmem:[#allocation24 + $0x204] sm:$0xf]  ;;  %v9996_v12 = vor.u32 %v12873_v62, %v9993_v8  ;;  %6921 = vmatpush.bf16.msrb.mxu1 %v10796_v29 }
 0x5b4   :  { %v10249_v15 = vld [vmem:[#allocation24 + $0x220] sm:$0xf0] }
 0x5b5   :  { %v13001_v43 = vld [vmem:[#allocation24 + $0x404] sm:$0xf]  ;;  %v10252_v58 = vor.u32 %v12937_v16, %v10249_v15  ;;  %6883 = vmatpush.bf16.msra.mxu2 %v9996_v12 }
 0x5b6   :  { %v13185_v1 = vld [vmem:[#allocation24 + $0x9c4] sm:$0xf] }
 0x5b7   :  { %v11241_v22 = vld [vmem:[#allocation24 + $0x9e0] sm:$0xf0]  ;;  %6896 = vmatpush.bf16.msra.mxu3 %v10252_v58 }
 0x5b8   :  { %v10505_v33 = vld [vmem:[#allocation24 + $0x420] sm:$0xf0]  ;;  %v11244_v0 = vor.u32 %v13185_v1, %v11241_v22  ;;  %6884 = vmatmul.bf16.vlgmr.msra.gmra.mxu2 %v15150_v61 }
 0x5b9   :  { %v13249_v2 = vld [vmem:[#allocation24 + $0xbc4] sm:$0xf]  ;;  %v10508_v51 = vor.u32 %v13001_v43, %v10505_v33 }
 0x5ba   :  { %v11497_v23 = vld [vmem:[#allocation24 + $0xbe0] sm:$0xf0]  ;;  %6928 = vmatpush.bf16.msrb.mxu2 %v11244_v0  ;;  %6897 = vmatmul.bf16.vlgmr.msra.gmra.mxu3 %v15157_v18 }
 0x5bb   :  { %v13313_v10 = vld [vmem:[#allocation24 + $0xdc4] sm:$0xf]  ;;  %v11500_v34 = vor.u32 %v13249_v2, %v11497_v23  ;;  %6909 = vmatpush.bf16.msrb.mxu0 %v10508_v51 }
 0x5bc   :  { %v11753_v53 = vld [vmem:[#allocation24 + $0xde0] sm:$0xf0] }
 0x5bd   :  { %v13065_v40 = vld [vmem:[#allocation24 + $0x604] sm:$0xf]  ;;  %v11756_v26 = vor.u32 %v13313_v10, %v11753_v53  ;;  %6941 = vmatpush.bf16.msrb.mxu3 %v11500_v34 }
 0x5be   :  { %v10761_v49 = vld [vmem:[#allocation24 + $0x620] sm:$0xf0] }
 0x5bf   :  { %v13177_v47 = vld [vmem:[#allocation24 + $0x984] sm:$0xf]  ;;  %v10764_v35 = vor.u32 %v13065_v40, %v10761_v49  ;;  %6954 = vmatpush.bf16.msra.mxu0 %v11756_v26 }
 0x5c0   :  { %v11209_v56 = vld [vmem:[#allocation24 + $0x9a0] sm:$0xf0]  ;;  %6910 = vmatmul.bf16.vlgmr.msrb.gmra.mxu0 %v15164_v9 }
 0x5c1   :  { %v13241_v48 = vld [vmem:[#allocation24 + $0xb84] sm:$0xf]  ;;  %v11212_v30 = vor.u32 %v13177_v47, %v11209_v56  ;;  %6922 = vmatpush.bf16.msrb.mxu1 %v10764_v35 }
 0x5c2   :  { %v11465_v52 = vld [vmem:[#allocation24 + $0xba0] sm:$0xf0] }
 0x5c3   :  { %v13305_v3 = vld [vmem:[#allocation24 + $0xd84] sm:$0xf]  ;;  %v11468_v25 = vor.u32 %v13241_v48, %v11465_v52  ;;  %6929 = vmatpush.bf16.msrb.mxu2 %v11212_v30 }
 0x5c4   :  { %v11721_v45 = vld [vmem:[#allocation24 + $0xda0] sm:$0xf0]  ;;  %6923 = vmatmul.bf16.vlgmr.msrb.gmra.mxu1 %v15173_v5 }
 0x5c5   :  { %v13377_v63 = vld [vmem:[#allocation24 + $0xfc4] sm:$0xf]  ;;  %v11724_v28 = vor.u32 %v13305_v3, %v11721_v45  ;;  %6942 = vmatpush.bf16.msrb.mxu3 %v11468_v25 }
 0x5c6   :  { %v12009_v24 = vld [vmem:[#allocation24 + $0xfe0] sm:$0xf0] }
 0x5c7   :  { %v13169_v27 = vld [vmem:[#allocation24 + $0x944] sm:$0xf]  ;;  %v12012_v60 = vor.u32 %v13377_v63, %v12009_v24  ;;  %6955 = vmatpush.bf16.msra.mxu0 %v11724_v28 }
 0x5c8   :  { %v11177_v14 = vld [vmem:[#allocation24 + $0x960] sm:$0xf0] }
 0x5c9   :  { %v13233_v21 = vld [vmem:[#allocation24 + $0xb44] sm:$0xf]  ;;  %v11180_v16 = vor.u32 %v13169_v27, %v11177_v14  ;;  %6967 = vmatpush.bf16.msra.mxu1 %v12012_v60 }
 0x5ca   :  { %v11433_v31 = vld [vmem:[#allocation24 + $0xb60] sm:$0xf0] }
 0x5cb   :  { %v13297_v20 = vld [vmem:[#allocation24 + $0xd44] sm:$0xf]  ;;  %v11436_v19 = vor.u32 %v13233_v21, %v11433_v31  ;;  %6930 = vmatpush.bf16.msrb.mxu2 %v11180_v16 }
 0x5cc   :  { %v11689_v50 = vld [vmem:[#allocation24 + $0xd60] sm:$0xf0] }
 0x5cd   :  { %v13369_v62 = vld [vmem:[#allocation24 + $0xf84] sm:$0xf]  ;;  %v11692_v15 = vor.u32 %v13297_v20, %v11689_v50  ;;  %6943 = vmatpush.bf16.msrb.mxu3 %v11436_v19 }
 0x5ce   :  { %v11977_v8 = vld [vmem:[#allocation24 + $0xfa0] sm:$0xf0] }
 0x5cf   :  { %v13161_v11 = vld [vmem:[#allocation24 + $0x904] sm:$0xf]  ;;  %v11980_v6 = vor.u32 %v13369_v62, %v11977_v8  ;;  %6956 = vmatpush.bf16.msra.mxu0 %v11692_v15  ;;  %v10223_v62 = vld [vmem:[#allocation24 + $0x1c8] sm:$0xf] }
 0x5d0   :  { %v11145_v59 = vld [vmem:[#allocation24 + $0x920] sm:$0xf0]  ;;  %v12934_v8 = vld [vmem:[#allocation24 + $0x1e4] sm:$0xf0] }
 0x5d1   :  { %v13225_v43 = vld [vmem:[#allocation24 + $0xb04] sm:$0xf]  ;;  %v11148_v13 = vor.u32 %v13161_v11, %v11145_v59  ;;  %6968 = vmatpush.bf16.msra.mxu1 %v11980_v6  ;;  %v10479_v59 = vld [vmem:[#allocation24 + $0x3c8] sm:$0xf] }
 0x5d2   :  { %v11401_v41 = vld [vmem:[#allocation24 + $0xb20] sm:$0xf0]  ;;  %v12998_v15 = vld [vmem:[#allocation24 + $0x3e4] sm:$0xf0] }
 0x5d3   :  { %v13361_v1 = vld [vmem:[#allocation24 + $0xf44] sm:$0xf]  ;;  %v11404_v37 = vor.u32 %v13225_v43, %v11401_v41  ;;  %6931 = vmatpush.bf16.msrb.mxu2 %v11148_v13  ;;  %v10224_v13 = vor.u32 %v12934_v8, %v10223_v62  ;;  %v10095_v62 = vld [vmem:[#allocation24 + $0xc8] sm:$0xf] }
 0x5d4   :  { %v11945_v22 = vld [vmem:[#allocation24 + $0xf60] sm:$0xf0]  ;;  %v12902_v8 = vld [vmem:[#allocation24 + $0xe4] sm:$0xf0] }
 0x5d5   :  { %v13289_v46 = vld [vmem:[#allocation24 + $0xd04] sm:$0xf]  ;;  %v11948_v29 = vor.u32 %v13361_v1, %v11945_v22  ;;  %6944 = vmatpush.bf16.msrb.mxu3 %v11404_v37  ;;  %v10480_v37 = vor.u32 %v12998_v15, %v10479_v59  ;;  %v10895_v15 = vld [vmem:[#allocation24 + $0x708] sm:$0xf] }
 0x5d6   :  { %v11657_v55 = vld [vmem:[#allocation24 + $0xd20] sm:$0xf0] }
 0x5d7   :  { %v13153_v33 = vld [vmem:[#allocation24 + $0x8c4] sm:$0xf]  ;;  %v11660_v12 = vor.u32 %v13289_v46, %v11657_v55  ;;  %6969 = vmatpush.bf16.msra.mxu1 %v11948_v29  ;;  %v10735_v46 = vld [vmem:[#allocation24 + $0x5c8] sm:$0xf] }
 0x5d8   :  { %v11113_v2 = vld [vmem:[#allocation24 + $0x8e0] sm:$0xf0]  ;;  %v13062_v55 = vld [vmem:[#allocation24 + $0x5e4] sm:$0xf0] }
 0x5d9   :  { %v13217_v23 = vld [vmem:[#allocation24 + $0xac4] sm:$0xf]  ;;  %v11116_v17 = vor.u32 %v13153_v33, %v11113_v2  ;;  %6957 = vmatpush.bf16.msra.mxu0 %v11660_v12  ;;  %v10191_v33 = vld [vmem:[#allocation24 + $0x188] sm:$0xf] }
 0x5da   :  { %v11369_v38 = vld [vmem:[#allocation24 + $0xae0] sm:$0xf0]  ;;  %v12926_v2 = vld [vmem:[#allocation24 + $0x1a4] sm:$0xf0] }
 0x5db   :  { %v13353_v10 = vld [vmem:[#allocation24 + $0xf04] sm:$0xf]  ;;  %v11372_v49 = vor.u32 %v13217_v23, %v11369_v38  ;;  %6932 = vmatpush.bf16.msrb.mxu2 %v11116_v17  ;;  %v10447_v29 = vld [vmem:[#allocation24 + $0x388] sm:$0xf]  ;;  %v10736_v17 = vor.u32 %v13062_v55, %v10735_v46 }
 0x5dc   :  { %v11913_v53 = vld [vmem:[#allocation24 + $0xf20] sm:$0xf0]  ;;  %v12990_v12 = vld [vmem:[#allocation24 + $0x3a4] sm:$0xf0] }
 0x5dd   :  { %v13281_v58 = vld [vmem:[#allocation24 + $0xcc4] sm:$0xf]  ;;  %v11916_v56 = vor.u32 %v13353_v10, %v11913_v53  ;;  %6945 = vmatpush.bf16.msrb.mxu3 %v11372_v49  ;;  %v10192_v49 = vor.u32 %v12926_v2, %v10191_v33  ;;  %v12894_v46 = vld [vmem:[#allocation24 + $0xa4] sm:$0xf0] }
 0x5de   :  { %v11625_v40 = vld [vmem:[#allocation24 + $0xce0] sm:$0xf0]  ;;  %v10319_v55 = vld [vmem:[#allocation24 + $0x288] sm:$0xf] }
 0x5df   :  { %v13145_v0 = vld [vmem:[#allocation24 + $0x884] sm:$0xf]  ;;  %v11628_v7 = vor.u32 %v13281_v58, %v11625_v40  ;;  %6970 = vmatpush.bf16.msra.mxu1 %v11916_v56  ;;  %v10991_v58 = vld [vmem:[#allocation24 + $0x7c8] sm:$0xf] }
 0x5e0   :  { %v11081_v51 = vld [vmem:[#allocation24 + $0x8a0] sm:$0xf0]  ;;  %v13126_v40 = vld [vmem:[#allocation24 + $0x7e4] sm:$0xf0] }
 0x5e1   :  { %v13209_v34 = vld [vmem:[#allocation24 + $0xa84] sm:$0xf]  ;;  %v11084_v52 = vor.u32 %v13145_v0, %v11081_v51  ;;  %6958 = vmatpush.bf16.msra.mxu0 %v11628_v7  ;;  %v10703_v0 = vld [vmem:[#allocation24 + $0x588] sm:$0xf] }
 0x5e2   :  { %v11337_v47 = vld [vmem:[#allocation24 + $0xaa0] sm:$0xf0]  ;;  %v13054_v51 = vld [vmem:[#allocation24 + $0x5a4] sm:$0xf0] }
 0x5e3   :  { %v13345_v26 = vld [vmem:[#allocation24 + $0xec4] sm:$0xf]  ;;  %v11340_v45 = vor.u32 %v13209_v34, %v11337_v47  ;;  %6933 = vmatpush.bf16.msrb.mxu2 %v11084_v52  ;;  %v10448_v34 = vor.u32 %v12990_v12, %v10447_v29  ;;  %v10159_v47 = vld [vmem:[#allocation24 + $0x148] sm:$0xf]  ;;  %v10992_v52 = vor.u32 %v13126_v40, %v10991_v58 }
 0x5e4   :  { %v11881_v48 = vld [vmem:[#allocation24 + $0xee0] sm:$0xf0]  ;;  %v12918_v56 = vld [vmem:[#allocation24 + $0x164] sm:$0xf0] }
 0x5e5   :  { %v13273_v35 = vld [vmem:[#allocation24 + $0xc84] sm:$0xf]  ;;  %v11884_v24 = vor.u32 %v13345_v26, %v11881_v48  ;;  %6946 = vmatpush.bf16.msrb.mxu3 %v11340_v45  ;;  %v10415_v26 = vld [vmem:[#allocation24 + $0x348] sm:$0xf] }
 0x5e6   :  { %v11593_v3 = vld [vmem:[#allocation24 + $0xca0] sm:$0xf0]  ;;  %v12982_v48 = vld [vmem:[#allocation24 + $0x364] sm:$0xf0] }
 0x5e7   :  { %v13137_v4 = vld [vmem:[#allocation24 + $0x844] sm:$0xf]  ;;  %v11596_v30 = vor.u32 %v13273_v35, %v11593_v3  ;;  %6971 = vmatpush.bf16.msra.mxu1 %v11884_v24  ;;  %v10704_v35 = vor.u32 %v13054_v51, %v10703_v0  ;;  %v10959_v3 = vld [vmem:[#allocation24 + $0x788] sm:$0xf] }
 0x5e8   :  { %v11049_v32 = vld [vmem:[#allocation24 + $0x860] sm:$0xf0]  ;;  %v13118_v45 = vld [vmem:[#allocation24 + $0x7a4] sm:$0xf0] }
 0x5e9   :  { %v13201_v39 = vld [vmem:[#allocation24 + $0xa44] sm:$0xf]  ;;  %v11052_v14 = vor.u32 %v13137_v4, %v11049_v32  ;;  %6959 = vmatpush.bf16.msra.mxu0 %v11596_v30  ;;  %v10160_v4 = vor.u32 %v12918_v56, %v10159_v47  ;;  %v10671_v32 = vld [vmem:[#allocation24 + $0x548] sm:$0xf] }
 0x5ea   :  { %v11305_v63 = vld [vmem:[#allocation24 + $0xa60] sm:$0xf0]  ;;  %v10127_v24 = vld [vmem:[#allocation24 + $0x108] sm:$0xf] }
 0x5eb   :  { %v13337_v25 = vld [vmem:[#allocation24 + $0xe84] sm:$0xf]  ;;  %v11308_v21 = vor.u32 %v13201_v39, %v11305_v63  ;;  %6934 = vmatpush.bf16.msrb.mxu2 %v11052_v14  ;;  %v13046_v39 = vld [vmem:[#allocation24 + $0x564] sm:$0xf0]  ;;  %v10416_v63 = vor.u32 %v12982_v48, %v10415_v26  ;;  %v10960_v14 = vor.u32 %v13118_v45, %v10959_v3 }
 0x5ec   :  { %v11849_v27 = vld [vmem:[#allocation24 + $0xea0] sm:$0xf0]  ;;  %v12910_v30 = vld [vmem:[#allocation24 + $0x124] sm:$0xf0] }
 0x5ed   :  { %v13265_v54 = vld [vmem:[#allocation24 + $0xc44] sm:$0xf]  ;;  %v11852_v16 = vor.u32 %v13337_v25, %v11849_v27  ;;  %6947 = vmatpush.bf16.msrb.mxu3 %v11308_v21  ;;  %v10383_v25 = vld [vmem:[#allocation24 + $0x308] sm:$0xf] }
 0x5ee   :  { %v11561_v28 = vld [vmem:[#allocation24 + $0xc60] sm:$0xf0]  ;;  %v12974_v27 = vld [vmem:[#allocation24 + $0x324] sm:$0xf0] }
 0x5ef   :  { %v13129_v31 = vld [vmem:[#allocation24 + $0x804] sm:$0xf]  ;;  %v11564_v19 = vor.u32 %v13265_v54, %v11561_v28  ;;  %6972 = vmatpush.bf16.msra.mxu1 %v11852_v16  ;;  %v10672_v54 = vor.u32 %v13046_v39, %v10671_v32  ;;  %v10927_v28 = vld [vmem:[#allocation24 + $0x748] sm:$0xf] }
 0x5f0   :  { %v11017_v60 = vld [vmem:[#allocation24 + $0x820] sm:$0xf0]  ;;  %v13110_v21 = vld [vmem:[#allocation24 + $0x764] sm:$0xf0] }
 0x5f1   :  { %v13193_v20 = vld [vmem:[#allocation24 + $0xa04] sm:$0xf]  ;;  %v11020_v41 = vor.u32 %v13129_v31, %v11017_v60  ;;  %6960 = vmatpush.bf16.msra.mxu0 %v11564_v19  ;;  %v10128_v31 = vor.u32 %v12910_v30, %v10127_v24  ;;  %v10639_v60 = vld [vmem:[#allocation24 + $0x508] sm:$0xf] }
 0x5f2   :  { %v11273_v50 = vld [vmem:[#allocation24 + $0xa20] sm:$0xf0]  ;;  %v10351_v16 = vld [vmem:[#allocation24 + $0x2c8] sm:$0xf] }
 0x5f3   :  { %v13329_v11 = vld [vmem:[#allocation24 + $0xe44] sm:$0xf]  ;;  %v11276_v22 = vor.u32 %v13193_v20, %v11273_v50  ;;  %6935 = vmatpush.bf16.msrb.mxu2 %v11020_v41  ;;  %v13038_v20 = vld [vmem:[#allocation24 + $0x524] sm:$0xf0]  ;;  %v10384_v50 = vor.u32 %v12974_v27, %v10383_v25  ;;  %v10096_v41 = vor.u32 %v12902_v8, %v10095_v62 }
 0x5f4   :  { %v11817_v43 = vld [vmem:[#allocation24 + $0xe60] sm:$0xf0]  ;;  %v12966_v19 = vld [vmem:[#allocation24 + $0x2e4] sm:$0xf0]  ;;  %v10640_v59 = vor.u32 %v13038_v20, %v10639_v60 }
 0x5f5   :  { %v13257_v6 = vld [vmem:[#allocation24 + $0xc04] sm:$0xf]  ;;  %v11820_v23 = vor.u32 %v13329_v11, %v11817_v43  ;;  %6948 = vmatpush.bf16.msrb.mxu3 %v11276_v22  ;;  %v10928_v11 = vor.u32 %v13110_v21, %v10927_v28  ;;  %v13102_v43 = vld [vmem:[#allocation24 + $0x724] sm:$0xf0]  ;;  %v10352_v22 = vor.u32 %v12966_v19, %v10351_v16 }
 0x5f6   :  { %v11529_v1 = vld [vmem:[#allocation24 + $0xc20] sm:$0xf0]  ;;  %6936 = vmatmul.bf16.vlgmr.msrb.gmra.mxu2 %v15215_v36  ;;  %v10896_v33 = vor.u32 %v13102_v43, %v10895_v15  ;;  %v10575_v12 = vld [vmem:[#allocation24 + $0x488] sm:$0xf] }
 0x5f7   :  { %v11532_v38 = vor.u32 %v13257_v6, %v11529_v1  ;;  %v13321_v10 = vld [vmem:[#allocation24 + $0xe04] sm:$0xf]  ;;  %6980 = vmatpush.bf16.msra.mxu2 %v10224_v13  ;;  %6973 = vmatpush.bf16.msra.mxu1 %v11820_v23  ;;  %v10607_v6 = vld [vmem:[#allocation24 + $0x4c8] sm:$0xf] }
 0x5f8   :  { %v11785_v53 = vld [vmem:[#allocation24 + $0xe20] sm:$0xf0]  ;;  %6949 = vmatmul.bf16.vlgmr.msrb.gmra.mxu3 %v15239_v42  ;;  %v13030_v1 = vld [vmem:[#allocation24 + $0x4e4] sm:$0xf0] }
 0x5f9   :  { %6993 = vmatpush.bf16.msra.mxu3 %v10480_v37  ;;  %6961 = vmatpush.bf16.msra.mxu0 %v11532_v38  ;;  %v11788_v7 = vor.u32 %v13321_v10, %v11785_v53  ;;  %v10063_v13 = vld [vmem:[#allocation24 + $0x88] sm:$0xf]  ;;  %v10608_v2 = vor.u32 %v13030_v1, %v10607_v6 }
 0x5fa   :  { %v12958_v37 = vld [vmem:[#allocation24 + $0x2a4] sm:$0xf0]  ;;  %v10064_v29 = vor.u32 %v12894_v46, %v10063_v13 }
 0x5fb   :  { %6981 = vmatpush.bf16.msra.mxu2 %v10192_v49  ;;  %6974 = vmatpush.bf16.msra.mxu1 %v11788_v7  ;;  %v10863_v23 = vld [vmem:[#allocation24 + $0x6c8] sm:$0xf]  ;;  %v10320_v53 = vor.u32 %v12958_v37, %v10319_v55 }
 0x5fc   :  { %6962 = vmatmul.bf16.vlgmr.msra.gmra.mxu0 %v15251_v44  ;;  %v13094_v38 = vld [vmem:[#allocation24 + $0x6e4] sm:$0xf0] }
 0x5fd   :  { %7006 = vmatpush.bf16.msrb.mxu0 %v10736_v17  ;;  %6994 = vmatpush.bf16.msra.mxu3 %v10448_v34  ;;  %v13022_v10 = vld [vmem:[#allocation24 + $0x4a4] sm:$0xf0]  ;;  %v10864_v0 = vor.u32 %v13094_v38, %v10863_v23 }
 0x5fe   :  { %6975 = vmatmul.bf16.vlgmr.msra.gmra.mxu1 %v15256_v57  ;;  %v10031_v17 = vld [vmem:[#allocation24 + $0x48] sm:$0xf]  ;;  %v10576_v51 = vor.u32 %v13022_v10, %v10575_v12 }
 0x5ff   :  { %7019 = vmatpush.bf16.msrb.mxu1 %v10992_v52  ;;  %6982 = vmatpush.bf16.msra.mxu2 %v10160_v4  ;;  %v12886_v58 = vld [vmem:[#allocation24 + $0x64] sm:$0xf0] }
 0x600   :  { %v10287_v40 = vld [vmem:[#allocation24 + $0x248] sm:$0xf]  ;;  %v10032_v56 = vor.u32 %v12886_v58, %v10031_v17 }
 0x601   :  { %7007 = vmatpush.bf16.msrb.mxu0 %v10704_v35  ;;  %6995 = vmatpush.bf16.msra.mxu3 %v10416_v63  ;;  %v12950_v49 = vld [vmem:[#allocation24 + $0x264] sm:$0xf0] }
 0x602   :  { %v10831_v34 = vld [vmem:[#allocation24 + $0x688] sm:$0xf]  ;;  %v10288_v48 = vor.u32 %v12950_v49, %v10287_v40 }
 0x603   :  { %7020 = vmatpush.bf16.msrb.mxu1 %v10960_v14  ;;  %6983 = vmatpush.bf16.msra.mxu2 %v10128_v31  ;;  %v13086_v47 = vld [vmem:[#allocation24 + $0x6a4] sm:$0xf0] }
 0x604   :  { %v10543_v7 = vld [vmem:[#allocation24 + $0x448] sm:$0xf]  ;;  %v10832_v39 = vor.u32 %v13086_v47, %v10831_v34 }
 0x605   :  { %7008 = vmatpush.bf16.msrb.mxu0 %v10672_v54  ;;  %6996 = vmatpush.bf16.msra.mxu3 %v10384_v50  ;;  %v13014_v26 = vld [vmem:[#allocation24 + $0x464] sm:$0xf0] }
 0x606   :  { %v9999_v52 = vld [vmem:[#allocation24 + $0x8] sm:$0xf]  ;;  %v10544_v63 = vor.u32 %v13014_v26, %v10543_v7 }
 0x607   :  { %7021 = vmatpush.bf16.msrb.mxu1 %v10928_v11  ;;  %6984 = vmatpush.bf16.msra.mxu2 %v10096_v41  ;;  %v12878_v35 = vld [vmem:[#allocation24 + $0x24] sm:$0xf0] }
 0x608   :  { %v10255_v3 = vld [vmem:[#allocation24 + $0x208] sm:$0xf]  ;;  %v10000_v14 = vor.u32 %v12878_v35, %v9999_v52 }
 0x609   :  { %7009 = vmatpush.bf16.msrb.mxu0 %v10640_v59  ;;  %6997 = vmatpush.bf16.msra.mxu3 %v10352_v22  ;;  %v12942_v45 = vld [vmem:[#allocation24 + $0x224] sm:$0xf0] }
 0x60a   :  { %v11247_v4 = vld [vmem:[#allocation24 + $0x9c8] sm:$0xf]  ;;  %v10256_v21 = vor.u32 %v12942_v45, %v10255_v3 }
 0x60b   :  { %7022 = vmatpush.bf16.msrb.mxu1 %v10896_v33  ;;  %6985 = vmatpush.bf16.msra.mxu2 %v10064_v29  ;;  %v13190_v32 = vld [vmem:[#allocation24 + $0x9e4] sm:$0xf0] }
 0x60c   :  { %v10799_v24 = vld [vmem:[#allocation24 + $0x648] sm:$0xf]  ;;  %v11248_v31 = vor.u32 %v13190_v32, %v11247_v4 }
 0x60d   :  { %7010 = vmatpush.bf16.msrb.mxu0 %v10608_v2  ;;  %6998 = vmatpush.bf16.msra.mxu3 %v10320_v53  ;;  %v11503_v30 = vld [vmem:[#allocation24 + $0xbc8] sm:$0xf] }
 0x60e   :  { %v13254_v25 = vld [vmem:[#allocation24 + $0xbe4] sm:$0xf0] }
 0x60f   :  { %7023 = vmatpush.bf16.msrb.mxu1 %v10864_v0  ;;  %6986 = vmatpush.bf16.msra.mxu2 %v10032_v56  ;;  %v13078_v27 = vld [vmem:[#allocation24 + $0x664] sm:$0xf0]  ;;  %v11504_v50 = vor.u32 %v13254_v25, %v11503_v30 }
 0x610   :  { %v10511_v54 = vld [vmem:[#allocation24 + $0x408] sm:$0xf]  ;;  %v10800_v16 = vor.u32 %v13078_v27, %v10799_v24 }
 0x611   :  { %7011 = vmatpush.bf16.msrb.mxu0 %v10576_v51  ;;  %v13006_v28 = vld [vmem:[#allocation24 + $0x424] sm:$0xf0]  ;;  %6999 = vmatpush.bf16.msra.mxu3 %v10288_v48 }
 0x612   :  { %v11759_v60 = vld [vmem:[#allocation24 + $0xdc8] sm:$0xf]  ;;  %v10512_v19 = vor.u32 %v13006_v28, %v10511_v54 }
 0x613   :  { %v13318_v20 = vld [vmem:[#allocation24 + $0xde4] sm:$0xf0]  ;;  %7024 = vmatpush.bf16.msrb.mxu1 %v10832_v39  ;;  %6987 = vmatpush.bf16.msra.mxu2 %v10000_v14 }
 0x614   :  { %v11215_v62 = vld [vmem:[#allocation24 + $0x988] sm:$0xf]  ;;  %v11760_v41 = vor.u32 %v13318_v20, %v11759_v60 }
 0x615   :  { %v13182_v8 = vld [vmem:[#allocation24 + $0x9a4] sm:$0xf0]  ;;  %7012 = vmatpush.bf16.msrb.mxu0 %v10544_v63  ;;  %7000 = vmatpush.bf16.msra.mxu3 %v10256_v21 }
 0x616   :  { %v11471_v11 = vld [vmem:[#allocation24 + $0xb88] sm:$0xf]  ;;  %v11216_v22 = vor.u32 %v13182_v8, %v11215_v62  ;;  %6988 = vmatmul.bf16.vlgmr.msra.gmra.mxu2 %v15150_v61 }
 0x617   :  { %v13246_v59 = vld [vmem:[#allocation24 + $0xba4] sm:$0xf0]  ;;  %7032 = vmatpush.bf16.msrb.mxu2 %v11248_v31  ;;  %7025 = vmatpush.bf16.msrb.mxu1 %v10800_v16 }
 0x618   :  { %v10767_v15 = vld [vmem:[#allocation24 + $0x608] sm:$0xf]  ;;  %v11472_v55 = vor.u32 %v13246_v59, %v11471_v11  ;;  %7001 = vmatmul.bf16.vlgmr.msra.gmra.mxu3 %v15157_v18 }
 0x619   :  { %v13070_v43 = vld [vmem:[#allocation24 + $0x624] sm:$0xf0]  ;;  %7045 = vmatpush.bf16.msrb.mxu3 %v11504_v50  ;;  %7013 = vmatpush.bf16.msrb.mxu0 %v10512_v19 }
 0x61a   :  { %v12015_v6 = vld [vmem:[#allocation24 + $0xfc8] sm:$0xf]  ;;  %v10768_v2 = vor.u32 %v13070_v43, %v10767_v15 }
 0x61b   :  { %v13382_v1 = vld [vmem:[#allocation24 + $0xfe4] sm:$0xf0]  ;;  %7033 = vmatpush.bf16.msrb.mxu2 %v11216_v22 }
 0x61c   :  { %v11727_v13 = vld [vmem:[#allocation24 + $0xd88] sm:$0xf]  ;;  %v12016_v29 = vor.u32 %v13382_v1, %v12015_v6  ;;  %7014 = vmatmul.bf16.vlgmr.msrb.gmra.mxu0 %v15164_v9  ;;  %7026 = vmatpush.bf16.msrb.mxu1 %v10768_v2 }
 0x61d   :  { %v13310_v46 = vld [vmem:[#allocation24 + $0xda4] sm:$0xf0]  ;;  %7058 = vmatpush.bf16.msra.mxu0 %v11760_v41  ;;  %7046 = vmatpush.bf16.msrb.mxu3 %v11472_v55 }
 0x61e   :  { %v11183_v37 = vld [vmem:[#allocation24 + $0x948] sm:$0xf]  ;;  %v11728_v12 = vor.u32 %v13310_v46, %v11727_v13 }
 0x61f   :  { %v13174_v33 = vld [vmem:[#allocation24 + $0x964] sm:$0xf0]  ;;  %7027 = vmatmul.bf16.vlgmr.msrb.gmra.mxu1 %v15173_v5 }
 0x620   :  { %v11439_v23 = vld [vmem:[#allocation24 + $0xb48] sm:$0xf]  ;;  %v11184_v17 = vor.u32 %v13174_v33, %v11183_v37  ;;  %7071 = vmatpush.bf16.msra.mxu1 %v12016_v29 }
 0x621   :  { %v13238_v38 = vld [vmem:[#allocation24 + $0xb64] sm:$0xf0]  ;;  %7059 = vmatpush.bf16.msra.mxu0 %v11728_v12 }
 0x622   :  { %v11983_v10 = vld [vmem:[#allocation24 + $0xf88] sm:$0xf]  ;;  %v11440_v49 = vor.u32 %v13238_v38, %v11439_v23  ;;  %7034 = vmatpush.bf16.msrb.mxu2 %v11184_v17  ;;  %v12930_v17 = vld [vmem:[#allocation24 + $0x1cc] sm:$0xf] }
 0x623   :  { %v13374_v53 = vld [vmem:[#allocation24 + $0xfa4] sm:$0xf0] }
 0x624   :  { %v11695_v58 = vld [vmem:[#allocation24 + $0xd48] sm:$0xf]  ;;  %v11984_v56 = vor.u32 %v13374_v53, %v11983_v10  ;;  %7047 = vmatpush.bf16.msrb.mxu3 %v11440_v49 }
 0x625   :  { %v13302_v40 = vld [vmem:[#allocation24 + $0xd64] sm:$0xf0] }
 0x626   :  { %v11151_v0 = vld [vmem:[#allocation24 + $0x908] sm:$0xf]  ;;  %v11696_v7 = vor.u32 %v13302_v40, %v11695_v58  ;;  %7072 = vmatpush.bf16.msra.mxu1 %v11984_v56  ;;  %v10225_v58 = vld [vmem:[#allocation24 + $0x1e8] sm:$0xf0] }
 0x627   :  { %v13166_v51 = vld [vmem:[#allocation24 + $0x924] sm:$0xf0] }
 0x628   :  { %v11407_v34 = vld [vmem:[#allocation24 + $0xb08] sm:$0xf]  ;;  %v11152_v52 = vor.u32 %v13166_v51, %v11151_v0  ;;  %7060 = vmatpush.bf16.msra.mxu0 %v11696_v7  ;;  %v12994_v51 = vld [vmem:[#allocation24 + $0x3cc] sm:$0xf] }
 0x629   :  { %v13230_v47 = vld [vmem:[#allocation24 + $0xb24] sm:$0xf0] }
 0x62a   :  { %v11951_v26 = vld [vmem:[#allocation24 + $0xf48] sm:$0xf]  ;;  %v11408_v45 = vor.u32 %v13230_v47, %v11407_v34  ;;  %7035 = vmatpush.bf16.msrb.mxu2 %v11152_v52  ;;  %v10481_v34 = vld [vmem:[#allocation24 + $0x3e8] sm:$0xf0]  ;;  %v10228_v52 = vor.u32 %v12930_v17, %v10225_v58 }
 0x62b   :  { %v13366_v48 = vld [vmem:[#allocation24 + $0xf64] sm:$0xf0]  ;;  %v12898_v58 = vld [vmem:[#allocation24 + $0xcc] sm:$0xf] }
 0x62c   :  { %v11663_v35 = vld [vmem:[#allocation24 + $0xd08] sm:$0xf]  ;;  %v11952_v24 = vor.u32 %v13366_v48, %v11951_v26  ;;  %7048 = vmatpush.bf16.msrb.mxu3 %v11408_v45  ;;  %v10484_v45 = vor.u32 %v12994_v51, %v10481_v34  ;;  %v10353_v51 = vld [vmem:[#allocation24 + $0x2e8] sm:$0xf0] }
 0x62d   :  { %v13294_v3 = vld [vmem:[#allocation24 + $0xd24] sm:$0xf0] }
 0x62e   :  { %v11119_v4 = vld [vmem:[#allocation24 + $0x8c8] sm:$0xf]  ;;  %v11664_v30 = vor.u32 %v13294_v3, %v11663_v35  ;;  %7073 = vmatpush.bf16.msra.mxu1 %v11952_v24  ;;  %v13058_v35 = vld [vmem:[#allocation24 + $0x5cc] sm:$0xf] }
 0x62f   :  { %v13158_v32 = vld [vmem:[#allocation24 + $0x8e4] sm:$0xf0]  ;;  %v10737_v3 = vld [vmem:[#allocation24 + $0x5e8] sm:$0xf0] }
 0x630   :  { %v11375_v39 = vld [vmem:[#allocation24 + $0xac8] sm:$0xf]  ;;  %v11120_v14 = vor.u32 %v13158_v32, %v11119_v4  ;;  %7061 = vmatpush.bf16.msra.mxu0 %v11664_v30  ;;  %v12922_v4 = vld [vmem:[#allocation24 + $0x18c] sm:$0xf] }
 0x631   :  { %v13222_v63 = vld [vmem:[#allocation24 + $0xae4] sm:$0xf0]  ;;  %v10193_v32 = vld [vmem:[#allocation24 + $0x1a8] sm:$0xf0] }
 0x632   :  { %v11919_v25 = vld [vmem:[#allocation24 + $0xf08] sm:$0xf]  ;;  %v11376_v21 = vor.u32 %v13222_v63, %v11375_v39  ;;  %7036 = vmatpush.bf16.msrb.mxu2 %v11120_v14  ;;  %v12986_v24 = vld [vmem:[#allocation24 + $0x38c] sm:$0xf]  ;;  %v10740_v14 = vor.u32 %v13058_v35, %v10737_v3 }
 0x633   :  { %v13358_v27 = vld [vmem:[#allocation24 + $0xf24] sm:$0xf0]  ;;  %v10449_v30 = vld [vmem:[#allocation24 + $0x3a8] sm:$0xf0] }
 0x634   :  { %v11631_v54 = vld [vmem:[#allocation24 + $0xcc8] sm:$0xf]  ;;  %v11920_v62 = vor.u32 %v13358_v27, %v11919_v25  ;;  %7049 = vmatpush.bf16.msrb.mxu3 %v11376_v21  ;;  %v10196_v21 = vor.u32 %v12922_v4, %v10193_v32  ;;  %v13026_v35 = vld [vmem:[#allocation24 + $0x4cc] sm:$0xf] }
 0x635   :  { %v13286_v28 = vld [vmem:[#allocation24 + $0xce4] sm:$0xf0]  ;;  %v10609_v3 = vld [vmem:[#allocation24 + $0x4e8] sm:$0xf0] }
 0x636   :  { %v11087_v31 = vld [vmem:[#allocation24 + $0x888] sm:$0xf]  ;;  %v11632_v8 = vor.u32 %v13286_v28, %v11631_v54  ;;  %7074 = vmatpush.bf16.msra.mxu1 %v11920_v62  ;;  %v13122_v54 = vld [vmem:[#allocation24 + $0x7cc] sm:$0xf] }
 0x637   :  { %v13150_v60 = vld [vmem:[#allocation24 + $0x8a4] sm:$0xf0]  ;;  %v10993_v28 = vld [vmem:[#allocation24 + $0x7e8] sm:$0xf0] }
 0x638   :  { %v11343_v20 = vld [vmem:[#allocation24 + $0xa88] sm:$0xf]  ;;  %v11088_v11 = vor.u32 %v13150_v60, %v11087_v31  ;;  %7062 = vmatpush.bf16.msra.mxu0 %v11632_v8  ;;  %v13050_v31 = vld [vmem:[#allocation24 + $0x58c] sm:$0xf] }
 0x639   :  { %v13214_v50 = vld [vmem:[#allocation24 + $0xaa4] sm:$0xf0]  ;;  %v10705_v60 = vld [vmem:[#allocation24 + $0x5a8] sm:$0xf0] }
 0x63a   :  { %v11887_v16 = vld [vmem:[#allocation24 + $0xec8] sm:$0xf]  ;;  %v11344_v43 = vor.u32 %v13214_v50, %v11343_v20  ;;  %7037 = vmatpush.bf16.msrb.mxu2 %v11088_v11  ;;  %v10452_v20 = vor.u32 %v12986_v24, %v10449_v30  ;;  %v12914_v50 = vld [vmem:[#allocation24 + $0x14c] sm:$0xf]  ;;  %v10996_v11 = vor.u32 %v13122_v54, %v10993_v28 }
 0x63b   :  { %v13350_v19 = vld [vmem:[#allocation24 + $0xee4] sm:$0xf0]  ;;  %v10161_v62 = vld [vmem:[#allocation24 + $0x168] sm:$0xf0] }
 0x63c   :  { %v11599_v59 = vld [vmem:[#allocation24 + $0xc88] sm:$0xf]  ;;  %v11888_v13 = vor.u32 %v13350_v19, %v11887_v16  ;;  %7050 = vmatpush.bf16.msrb.mxu3 %v11344_v43  ;;  %v12978_v16 = vld [vmem:[#allocation24 + $0x34c] sm:$0xf] }
 0x63d   :  { %v13278_v15 = vld [vmem:[#allocation24 + $0xca4] sm:$0xf0]  ;;  %v10417_v19 = vld [vmem:[#allocation24 + $0x368] sm:$0xf0] }
 0x63e   :  { %v11055_v41 = vld [vmem:[#allocation24 + $0x848] sm:$0xf]  ;;  %v11600_v46 = vor.u32 %v13278_v15, %v11599_v59  ;;  %7075 = vmatpush.bf16.msra.mxu1 %v11888_v13  ;;  %v10708_v59 = vor.u32 %v13050_v31, %v10705_v60  ;;  %v13114_v15 = vld [vmem:[#allocation24 + $0x78c] sm:$0xf] }
 0x63f   :  { %v13142_v6 = vld [vmem:[#allocation24 + $0x864] sm:$0xf0]  ;;  %v10961_v43 = vld [vmem:[#allocation24 + $0x7a8] sm:$0xf0] }
 0x640   :  { %v11311_v1 = vld [vmem:[#allocation24 + $0xa48] sm:$0xf]  ;;  %v11056_v33 = vor.u32 %v13142_v6, %v11055_v41  ;;  %7063 = vmatpush.bf16.msra.mxu0 %v11600_v46  ;;  %v10164_v41 = vor.u32 %v12914_v50, %v10161_v62  ;;  %v13042_v6 = vld [vmem:[#allocation24 + $0x54c] sm:$0xf] }
 0x641   :  { %v13206_v22 = vld [vmem:[#allocation24 + $0xa64] sm:$0xf0]  ;;  %v12906_v13 = vld [vmem:[#allocation24 + $0x10c] sm:$0xf] }
 0x642   :  { %v11855_v55 = vld [vmem:[#allocation24 + $0xe88] sm:$0xf]  ;;  %v11312_v38 = vor.u32 %v13206_v22, %v11311_v1  ;;  %7038 = vmatpush.bf16.msrb.mxu2 %v11056_v33  ;;  %v10673_v1 = vld [vmem:[#allocation24 + $0x568] sm:$0xf0]  ;;  %v10420_v22 = vor.u32 %v12978_v16, %v10417_v19  ;;  %v10964_v33 = vor.u32 %v13114_v15, %v10961_v43 }
 0x643   :  { %v13342_v37 = vld [vmem:[#allocation24 + $0xea4] sm:$0xf0]  ;;  %v10129_v46 = vld [vmem:[#allocation24 + $0x128] sm:$0xf0] }
 0x644   :  { %v11567_v2 = vld [vmem:[#allocation24 + $0xc48] sm:$0xf]  ;;  %v11856_v40 = vor.u32 %v13342_v37, %v11855_v55  ;;  %7051 = vmatpush.bf16.msrb.mxu3 %v11312_v38  ;;  %v12970_v55 = vld [vmem:[#allocation24 + $0x30c] sm:$0xf] }
 0x645   :  { %v13270_v23 = vld [vmem:[#allocation24 + $0xc64] sm:$0xf0]  ;;  %v10385_v37 = vld [vmem:[#allocation24 + $0x328] sm:$0xf0] }
 0x646   :  { %v11023_v29 = vld [vmem:[#allocation24 + $0x808] sm:$0xf]  ;;  %v11568_v49 = vor.u32 %v13270_v23, %v11567_v2  ;;  %7076 = vmatpush.bf16.msra.mxu1 %v11856_v40  ;;  %v10676_v2 = vor.u32 %v13042_v6, %v10673_v1  ;;  %v13106_v23 = vld [vmem:[#allocation24 + $0x74c] sm:$0xf]  ;;  %v10388_v17 = vor.u32 %v12970_v55, %v10385_v37 }
 0x647   :  { %v13134_v12 = vld [vmem:[#allocation24 + $0x824] sm:$0xf0]  ;;  %v10929_v38 = vld [vmem:[#allocation24 + $0x768] sm:$0xf0] }
 0x648   :  { %v11279_v10 = vld [vmem:[#allocation24 + $0xa08] sm:$0xf]  ;;  %v11024_v56 = vor.u32 %v13134_v12, %v11023_v29  ;;  %7064 = vmatpush.bf16.msra.mxu0 %v11568_v49  ;;  %v10132_v29 = vor.u32 %v12906_v13, %v10129_v46  ;;  %v13034_v12 = vld [vmem:[#allocation24 + $0x50c] sm:$0xf]  ;;  %v6807_v49 = vpop.f32.mrf.mxu0  ;;  %v10932_v34 = vor.u32 %v13106_v23, %v10929_v38 }
 0x649   :  { %v13198_v53 = vld [vmem:[#allocation24 + $0xa24] sm:$0xf0]  ;;  %v10097_v40 = vld [vmem:[#allocation24 + $0xe8] sm:$0xf0] }
 0x64a   :  { %v11823_v0 = vld [vmem:[#allocation24 + $0xe48] sm:$0xf]  ;;  %v11280_v48 = vor.u32 %v13198_v53, %v11279_v10  ;;  %7039 = vmatpush.bf16.msrb.mxu2 %v11024_v56  ;;  %v10641_v10 = vld [vmem:[#allocation24 + $0x528] sm:$0xf0]  ;;  %v15273_v53 = vld [vmem:[#allocation26] sm:$0xff] }
 0x64b   :  { %v13334_v47 = vld [vmem:[#allocation24 + $0xe64] sm:$0xf0]  ;;  %v13098_v56 = vld [vmem:[#allocation24 + $0x70c] sm:$0xf] }
 0x64c   :  { %v11535_v7 = vld [vmem:[#allocation24 + $0xc08] sm:$0xf]  ;;  %v11824_v39 = vor.u32 %v13334_v47, %v11823_v0  ;;  %7052 = vmatpush.bf16.msrb.mxu3 %v11280_v48  ;;  %v12962_v0 = vld [vmem:[#allocation24 + $0x2cc] sm:$0xf]  ;;  %v10644_v47 = vor.u32 %v13034_v12, %v10641_v10 }
 0x64d   :  { %v13262_v26 = vld [vmem:[#allocation24 + $0xc24] sm:$0xf0]  ;;  %7040 = vmatmul.bf16.vlgmr.msrb.gmra.mxu2 %v15215_v36  ;;  %v10897_v48 = vld [vmem:[#allocation24 + $0x728] sm:$0xf0] }
 0x64e   :  { %v11536_v63 = vor.u32 %v13262_v26, %v11535_v7  ;;  %v11791_v25 = vld [vmem:[#allocation24 + $0xe08] sm:$0xf]  ;;  %7084 = vmatpush.bf16.msra.mxu2 %v10228_v52  ;;  %7077 = vmatpush.bf16.msra.mxu1 %v11824_v39  ;;  %v4196_v7 = vperm.slane %v15273_v53, 0  ;;  %v6820_v26 = vpop.f32.mrf.mxu1  ;;  %v10100_v52 = vor.u32 %v12898_v58, %v10097_v40  ;;  %v12890_v4 = vld [vmem:[#allocation24 + $0x8c] sm:$0xf]  ;;  %v6781_v39 = vpop.f32.mrf.mxu2  ;;  %v10900_v30 = vor.u32 %v13098_v56, %v10897_v48 }
 0x64f   :  { %v13326_v27 = vld [vmem:[#allocation24 + $0xe24] sm:$0xf0]  ;;  %7053 = vmatmul.bf16.vlgmr.msrb.gmra.mxu3 %v15239_v42  ;;  %v10065_v32 = vld [vmem:[#allocation24 + $0xa8] sm:$0xf0] }
 0x650   :  { %7097 = vmatpush.bf16.msra.mxu3 %v10484_v45  ;;  %7065 = vmatpush.bf16.msra.mxu0 %v11536_v63  ;;  %v11792_v8 = vor.u32 %v13326_v27, %v11791_v25  ;;  %v10356_v45 = vor.u32 %v12962_v0, %v10353_v51  ;;  %v12954_v63 = vld [vmem:[#allocation24 + $0x28c] sm:$0xf]  ;;  %v6782_v25 = vadd.f32 %v6781_v39, %v4196_v7  ;;  %v6794_v27 = vpop.f32.mrf.mxu3  ;;  %v6809_v16 = vpop.f32.mrf.mxu0 }
 0x651   :  { %v10321_v24 = vld [vmem:[#allocation24 + $0x2a8] sm:$0xf0] }
 0x652   :  { %7085 = vmatpush.bf16.msra.mxu2 %v10196_v21  ;;  %7078 = vmatpush.bf16.msra.mxu1 %v11792_v8  ;;  %v13090_v54 = vld [vmem:[#allocation24 + $0x6cc] sm:$0xf]  ;;  %v10068_v21 = vor.u32 %v12890_v4, %v10065_v32  ;;  %v10324_v50 = vor.u32 %v12954_v63, %v10321_v24 }
 0x653   :  { %7066 = vmatmul.bf16.vlgmr.msra.gmra.mxu0 %v15251_v44  ;;  %v10865_v28 = vld [vmem:[#allocation24 + $0x6e8] sm:$0xf0] }
 0x654   :  { %7110 = vmatpush.bf16.msrb.mxu0 %v10740_v14  ;;  %7098 = vmatpush.bf16.msra.mxu3 %v10452_v20  ;;  %v10612_v14 = vor.u32 %v13026_v35, %v10609_v3  ;;  %v13018_v31 = vld [vmem:[#allocation24 + $0x48c] sm:$0xf]  ;;  %v6795_v20 = vadd.f32 %v6794_v27, %v6782_v25  ;;  %v10868_v15 = vor.u32 %v13090_v54, %v10865_v28 }
 0x655   :  { %7079 = vmatmul.bf16.vlgmr.msra.gmra.mxu1 %v15256_v57  ;;  %v10577_v60 = vld [vmem:[#allocation24 + $0x4a8] sm:$0xf0] }
 0x656   :  { %7123 = vmatpush.bf16.msrb.mxu1 %v10996_v11  ;;  %7086 = vmatpush.bf16.msra.mxu2 %v10164_v41  ;;  %v12882_v62 = vld [vmem:[#allocation24 + $0x4c] sm:$0xf]  ;;  %v10580_v43 = vor.u32 %v13018_v31, %v10577_v60  ;;  %v6822_v6 = vpop.f32.mrf.mxu1  ;;  %v6783_v38 = vpop.f32.mrf.mxu2 }
 0x657   :  { %v10033_v8 = vld [vmem:[#allocation24 + $0x68] sm:$0xf0] }
 0x658   :  { %7111 = vmatpush.bf16.msrb.mxu0 %v10708_v59  ;;  %7099 = vmatpush.bf16.msra.mxu3 %v10420_v22  ;;  %v12946_v19 = vld [vmem:[#allocation24 + $0x24c] sm:$0xf]  ;;  %v6808_v59 = vadd.f32 %v6807_v49, %v6795_v20  ;;  %v10036_v22 = vor.u32 %v12882_v62, %v10033_v8  ;;  %v6796_v58 = vpop.f32.mrf.mxu3 }
 0x659   :  { %v10289_v11 = vld [vmem:[#allocation24 + $0x268] sm:$0xf0] }
 0x65a   :  { %7124 = vmatpush.bf16.msrb.mxu1 %v10964_v33  ;;  %7087 = vmatpush.bf16.msra.mxu2 %v10132_v29  ;;  %v13082_v41 = vld [vmem:[#allocation24 + $0x68c] sm:$0xf]  ;;  %v10292_v55 = vor.u32 %v12946_v19, %v10289_v11  ;;  %v6821_v23 = vadd.f32 %v6820_v26, %v6808_v59 }
 0x65b   :  { %v10833_v1 = vld [vmem:[#allocation24 + $0x6a8] sm:$0xf0] }
 0x65c   :  { %7112 = vmatpush.bf16.msrb.mxu0 %v10676_v2  ;;  %7100 = vmatpush.bf16.msra.mxu3 %v10388_v17  ;;  %v13010_v13 = vld [vmem:[#allocation24 + $0x44c] sm:$0xf]  ;;  %v10836_v17 = vor.u32 %v13082_v41, %v10833_v1 }
 0x65d   :  { %v10545_v46 = vld [vmem:[#allocation24 + $0x468] sm:$0xf0] }
 0x65e   :  { %7125 = vmatpush.bf16.msrb.mxu1 %v10932_v34  ;;  %7088 = vmatpush.bf16.msra.mxu2 %v10100_v52  ;;  %v12874_v37 = vld [vmem:[#allocation24 + $0xc] sm:$0xf]  ;;  %v10548_v40 = vor.u32 %v13010_v13, %v10545_v46  ;;  %v6833_v60 = vpop.f32.mrf.mxu2 }
 0x65f   :  { %v10001_v33 = vld [vmem:[#allocation24 + $0x28] sm:$0xf0]  ;;  %v6834_v16 = vadd.f32 %v6833_v60, %v6821_v23 }
 0x660   :  { %7113 = vmatpush.bf16.msrb.mxu0 %v10644_v47  ;;  %7101 = vmatpush.bf16.msra.mxu3 %v10356_v45  ;;  %v12938_v2 = vld [vmem:[#allocation24 + $0x20c] sm:$0xf]  ;;  %v10004_v47 = vor.u32 %v12874_v37, %v10001_v33 }
 0x661   :  { %v10257_v29 = vld [vmem:[#allocation24 + $0x228] sm:$0xf0] }
 0x662   :  { %7126 = vmatpush.bf16.msrb.mxu1 %v10900_v30  ;;  %7089 = vmatpush.bf16.msra.mxu2 %v10068_v21  ;;  %v13186_v12 = vld [vmem:[#allocation24 + $0x9cc] sm:$0xf]  ;;  %v10260_v48 = vor.u32 %v12938_v2, %v10257_v29  ;;  %v6859_v2 = vpop.f32.mrf.mxu0 }
 0x663   :  { %v11249_v10 = vld [vmem:[#allocation24 + $0x9e8] sm:$0xf0] }
 0x664   :  { %7114 = vmatpush.bf16.msrb.mxu0 %v10612_v14  ;;  %7102 = vmatpush.bf16.msra.mxu3 %v10324_v50  ;;  %v13074_v49 = vld [vmem:[#allocation24 + $0x64c] sm:$0xf]  ;;  %v11252_v26 = vor.u32 %v13186_v12, %v11249_v10 }
 0x665   :  { %v13250_v0 = vld [vmem:[#allocation24 + $0xbcc] sm:$0xf] }
 0x666   :  { %7127 = vmatpush.bf16.msrb.mxu1 %v10868_v15  ;;  %v11505_v51 = vld [vmem:[#allocation24 + $0xbe8] sm:$0xf0]  ;;  %7090 = vmatpush.bf16.msra.mxu2 %v10036_v22 }
 0x667   :  { %v10801_v34 = vld [vmem:[#allocation24 + $0x668] sm:$0xf0]  ;;  %v11508_v3 = vor.u32 %v13250_v0, %v11505_v51 }
 0x668   :  { %7115 = vmatpush.bf16.msrb.mxu0 %v10580_v43  ;;  %v13002_v56 = vld [vmem:[#allocation24 + $0x40c] sm:$0xf]  ;;  %7103 = vmatpush.bf16.msra.mxu3 %v10292_v55  ;;  %v10804_v32 = vor.u32 %v13074_v49, %v10801_v34  ;;  %v6835_v49 = vpop.f32.mrf.mxu2 }
 0x669   :  { %v10513_v7 = vld [vmem:[#allocation24 + $0x428] sm:$0xf0] }
 0x66a   :  { %v13314_v52 = vld [vmem:[#allocation24 + $0xdcc] sm:$0xf]  ;;  %7128 = vmatpush.bf16.msrb.mxu1 %v10836_v17  ;;  %v10516_v39 = vor.u32 %v13002_v56, %v10513_v7  ;;  %7091 = vmatpush.bf16.msra.mxu2 %v10004_v47 }
 0x66b   :  { %v11761_v35 = vld [vmem:[#allocation24 + $0xde8] sm:$0xf0] }
 0x66c   :  { %v13178_v45 = vld [vmem:[#allocation24 + $0x98c] sm:$0xf]  ;;  %7116 = vmatpush.bf16.msrb.mxu0 %v10548_v40  ;;  %v11764_v27 = vor.u32 %v13314_v52, %v11761_v35  ;;  %7104 = vmatpush.bf16.msra.mxu3 %v10260_v48  ;;  %v6846_v40 = vpop.f32.mrf.mxu3 }
 0x66d   :  { %v11217_v4 = vld [vmem:[#allocation24 + $0x9a8] sm:$0xf0]  ;;  %7092 = vmatmul.bf16.vlgmr.msra.gmra.mxu2 %v15150_v61  ;;  %v6847_v47 = vadd.f32 %v6846_v40, %v6834_v16 }
 0x66e   :  { %v13242_v63 = vld [vmem:[#allocation24 + $0xb8c] sm:$0xf]  ;;  %7136 = vmatpush.bf16.msrb.mxu2 %v11252_v26  ;;  %v11220_v28 = vor.u32 %v13178_v45, %v11217_v4  ;;  %7129 = vmatpush.bf16.msrb.mxu1 %v10804_v32 }
 0x66f   :  { %v11473_v24 = vld [vmem:[#allocation24 + $0xba8] sm:$0xf0]  ;;  %7105 = vmatmul.bf16.vlgmr.msra.gmra.mxu3 %v15157_v18  ;;  %v6860_v35 = vadd.f32 %v6859_v2, %v6847_v47  ;;  %v12999_v47 = vld [vmem:[#allocation24 + $0x3ec] sm:$0xf0] }
 0x670   :  { %v13066_v30 = vld [vmem:[#allocation24 + $0x60c] sm:$0xf]  ;;  %7149 = vmatpush.bf16.msrb.mxu3 %v11508_v3  ;;  %v11476_v20 = vor.u32 %v13242_v63, %v11473_v24  ;;  %7117 = vmatpush.bf16.msrb.mxu0 %v10516_v39  ;;  %v6885_v16 = vpop.f32.mrf.mxu2 }
 0x671   :  { %v10769_v25 = vld [vmem:[#allocation24 + $0x628] sm:$0xf0] }
 0x672   :  { %v13378_v14 = vld [vmem:[#allocation24 + $0xfcc] sm:$0xf]  ;;  %v10772_v8 = vor.u32 %v13066_v30, %v10769_v25  ;;  %7137 = vmatpush.bf16.msrb.mxu2 %v11220_v28 }
 0x673   :  { %v12017_v54 = vld [vmem:[#allocation24 + $0xfe8] sm:$0xf0]  ;;  %7118 = vmatmul.bf16.vlgmr.msrb.gmra.mxu0 %v15164_v9 }
 0x674   :  { %v13306_v21 = vld [vmem:[#allocation24 + $0xd8c] sm:$0xf]  ;;  %7162 = vmatpush.bf16.msra.mxu0 %v11764_v27  ;;  %v12020_v59 = vor.u32 %v13378_v14, %v12017_v54  ;;  %7150 = vmatpush.bf16.msrb.mxu3 %v11476_v20  ;;  %v6872_v27 = vpop.f32.mrf.mxu1  ;;  %v6861_v14 = vpop.f32.mrf.mxu0 }
 0x675   :  { %v11729_v31 = vld [vmem:[#allocation24 + $0xda8] sm:$0xf0]  ;;  %7130 = vmatpush.bf16.msrb.mxu1 %v10772_v8  ;;  %v6848_v8 = vpop.f32.mrf.mxu3  ;;  %v10455_v14 = vld [vmem:[#allocation24 + $0x390] sm:$0xf] }
 0x676   :  { %v13170_v50 = vld [vmem:[#allocation24 + $0x94c] sm:$0xf]  ;;  %v11732_v15 = vor.u32 %v13306_v21, %v11729_v31  ;;  %v15281_v31 = vadd.f32 %v6872_v27, %v6860_v35 }
 0x677   :  { %v11185_v62 = vld [vmem:[#allocation24 + $0x968] sm:$0xf0] }
 0x678   :  { %v13234_v19 = vld [vmem:[#allocation24 + $0xb4c] sm:$0xf]  ;;  %v11188_v6 = vor.u32 %v13170_v50, %v11185_v62  ;;  %7163 = vmatpush.bf16.msra.mxu0 %v11732_v15  ;;  %7131 = vmatmul.bf16.vlgmr.msrb.gmra.mxu1 %v15173_v5  ;;  %v4197_v15 = vperm.slane %v15273_v53, 1  ;;  %v6887_v35 = vpop.f32.mrf.mxu2  ;;  %vm7604_vm2 = vcmp.gt.f32.partialorder %v15281_v31, 0.0 }
 0x679   :  { %v11441_v11 = vld [vmem:[#allocation24 + $0xb68] sm:$0xf0]  ;;  %7175 = vmatpush.bf16.msra.mxu1 %v12020_v59 }
 0x67a   :  { %v13370_v43 = vld [vmem:[#allocation24 + $0xf8c] sm:$0xf]  ;;  %v11444_v13 = vor.u32 %v13234_v19, %v11441_v11  ;;  %7138 = vmatpush.bf16.msrb.mxu2 %v11188_v6 }
 0x67b   :  { %v11985_v41 = vld [vmem:[#allocation24 + $0xfa8] sm:$0xf0] }
 0x67c   :  { %v13298_v1 = vld [vmem:[#allocation24 + $0xd4c] sm:$0xf]  ;;  %v11988_v23 = vor.u32 %v13370_v43, %v11985_v41  ;;  %7151 = vmatpush.bf16.msrb.mxu3 %v11444_v13  ;;  %v6911_v40 = vpop.f32.mrf.mxu0 }
 0x67d   :  { %v11697_v22 = vld [vmem:[#allocation24 + $0xd68] sm:$0xf0] }
 0x67e   :  { %v13162_v46 = vld [vmem:[#allocation24 + $0x90c] sm:$0xf]  ;;  %v11700_v38 = vor.u32 %v13298_v1, %v11697_v22  ;;  %7176 = vmatpush.bf16.msra.mxu1 %v11988_v23 }
 0x67f   :  { %v11153_v55 = vld [vmem:[#allocation24 + $0x928] sm:$0xf0] }
 0x680   :  { %v13226_v37 = vld [vmem:[#allocation24 + $0xb0c] sm:$0xf]  ;;  %v11156_v10 = vor.u32 %v13162_v46, %v11153_v55  ;;  %7164 = vmatpush.bf16.msra.mxu0 %v11700_v38 }
 0x681   :  { %v11409_v33 = vld [vmem:[#allocation24 + $0xb28] sm:$0xf0] }
 0x682   :  { %v13362_v29 = vld [vmem:[#allocation24 + $0xf4c] sm:$0xf]  ;;  %v11412_v0 = vor.u32 %v13226_v37, %v11409_v33  ;;  %7139 = vmatpush.bf16.msrb.mxu2 %v11156_v10  ;;  %v10231_v10 = vld [vmem:[#allocation24 + $0x1d0] sm:$0xf] }
 0x683   :  { %v11953_v12 = vld [vmem:[#allocation24 + $0xf68] sm:$0xf0] }
 0x684   :  { %v13290_v17 = vld [vmem:[#allocation24 + $0xd0c] sm:$0xf]  ;;  %v11956_v48 = vor.u32 %v13362_v29, %v11953_v12  ;;  %7152 = vmatpush.bf16.msrb.mxu3 %v11412_v0  ;;  %v6886_v29 = vadd.f32 %v6885_v16, %v4197_v15  ;;  %v10711_v16 = vld [vmem:[#allocation24 + $0x590] sm:$0xf] }
 0x685   :  { %v11665_v58 = vld [vmem:[#allocation24 + $0xd28] sm:$0xf0]  ;;  %v12919_v15 = vld [vmem:[#allocation24 + $0x16c] sm:$0xf0] }
 0x686   :  { %v13154_v51 = vld [vmem:[#allocation24 + $0x8cc] sm:$0xf]  ;;  %v11668_v26 = vor.u32 %v13290_v17, %v11665_v58  ;;  %7177 = vmatpush.bf16.msra.mxu1 %v11956_v48  ;;  %v12935_v17 = vld [vmem:[#allocation24 + $0x1ec] sm:$0xf0]  ;;  %v6874_v58 = vpop.f32.mrf.mxu1 }
 0x687   :  { %v11121_v34 = vld [vmem:[#allocation24 + $0x8e8] sm:$0xf0]  ;;  %v10391_v58 = vld [vmem:[#allocation24 + $0x310] sm:$0xf] }
 0x688   :  { %v13218_v56 = vld [vmem:[#allocation24 + $0xacc] sm:$0xf]  ;;  %v11124_v45 = vor.u32 %v13154_v51, %v11121_v34  ;;  %7165 = vmatpush.bf16.msra.mxu0 %v11668_v26  ;;  %v10487_v34 = vld [vmem:[#allocation24 + $0x3d0] sm:$0xf] }
 0x689   :  { %v11377_v7 = vld [vmem:[#allocation24 + $0xae8] sm:$0xf0] }
 0x68a   :  { %v13354_v52 = vld [vmem:[#allocation24 + $0xf0c] sm:$0xf]  ;;  %v11380_v39 = vor.u32 %v13218_v56, %v11377_v7  ;;  %7140 = vmatpush.bf16.msrb.mxu2 %v11124_v45  ;;  %v10232_v45 = vor.u32 %v12935_v17, %v10231_v10  ;;  %v10135_v10 = vld [vmem:[#allocation24 + $0x110] sm:$0xf] }
 0x68b   :  { %v11921_v3 = vld [vmem:[#allocation24 + $0xf28] sm:$0xf0]  ;;  %v12911_v17 = vld [vmem:[#allocation24 + $0x12c] sm:$0xf0] }
 0x68c   :  { %v13282_v4 = vld [vmem:[#allocation24 + $0xccc] sm:$0xf]  ;;  %v11924_v54 = vor.u32 %v13354_v52, %v11921_v3  ;;  %7153 = vmatpush.bf16.msrb.mxu3 %v11380_v39  ;;  %v6898_v52 = vpop.f32.mrf.mxu3 }
 0x68d   :  { %v11633_v32 = vld [vmem:[#allocation24 + $0xce8] sm:$0xf0]  ;;  %v6899_v39 = vadd.f32 %v6898_v52, %v6886_v29  ;;  %v13047_v29 = vld [vmem:[#allocation24 + $0x56c] sm:$0xf0] }
 0x68e   :  { %v13146_v63 = vld [vmem:[#allocation24 + $0x88c] sm:$0xf]  ;;  %v11636_v28 = vor.u32 %v13282_v4, %v11633_v32  ;;  %7178 = vmatpush.bf16.msra.mxu1 %v11924_v54  ;;  %v10743_v4 = vld [vmem:[#allocation24 + $0x5d0] sm:$0xf] }
 0x68f   :  { %v11089_v24 = vld [vmem:[#allocation24 + $0x8a8] sm:$0xf0]  ;;  %v13063_v32 = vld [vmem:[#allocation24 + $0x5ec] sm:$0xf0] }
 0x690   :  { %v13210_v30 = vld [vmem:[#allocation24 + $0xa8c] sm:$0xf]  ;;  %v11092_v20 = vor.u32 %v13146_v63, %v11089_v24  ;;  %7166 = vmatpush.bf16.msra.mxu0 %v11636_v28  ;;  %v10488_v63 = vor.u32 %v12999_v47, %v10487_v34  ;;  %v10199_v24 = vld [vmem:[#allocation24 + $0x190] sm:$0xf]  ;;  %v6912_v28 = vadd.f32 %v6911_v40, %v6899_v39  ;;  %v10136_v47 = vor.u32 %v12911_v17, %v10135_v10 }
 0x691   :  { %v11345_v25 = vld [vmem:[#allocation24 + $0xaa8] sm:$0xf0]  ;;  %v12991_v54 = vld [vmem:[#allocation24 + $0x3ac] sm:$0xf0] }
 0x692   :  { %v13346_v21 = vld [vmem:[#allocation24 + $0xecc] sm:$0xf]  ;;  %v11348_v19 = vor.u32 %v13210_v30, %v11345_v25  ;;  %7141 = vmatpush.bf16.msrb.mxu2 %v11092_v20  ;;  %v12927_v30 = vld [vmem:[#allocation24 + $0x1ac] sm:$0xf0]  ;;  %v10744_v20 = vor.u32 %v13063_v32, %v10743_v4 }
 0x693   :  { %v11889_v60 = vld [vmem:[#allocation24 + $0xee8] sm:$0xf0]  ;;  %v10200_v8 = vor.u32 %v12927_v30, %v10199_v24  ;;  %v12975_v40 = vld [vmem:[#allocation24 + $0x32c] sm:$0xf0] }
 0x694   :  { %v13274_v50 = vld [vmem:[#allocation24 + $0xc8c] sm:$0xf]  ;;  %v11892_v6 = vor.u32 %v13346_v21, %v11889_v60  ;;  %7154 = vmatpush.bf16.msrb.mxu3 %v11348_v19  ;;  %v13055_v19 = vld [vmem:[#allocation24 + $0x5ac] sm:$0xf0] }
 0x695   :  { %v11601_v62 = vld [vmem:[#allocation24 + $0xca8] sm:$0xf0]  ;;  %v13111_v34 = vld [vmem:[#allocation24 + $0x76c] sm:$0xf0] }
 0x696   :  { %v13138_v11 = vld [vmem:[#allocation24 + $0x84c] sm:$0xf]  ;;  %v11604_v1 = vor.u32 %v13274_v50, %v11601_v62  ;;  %7179 = vmatpush.bf16.msra.mxu1 %v11892_v6  ;;  %v10999_v50 = vld [vmem:[#allocation24 + $0x7d0] sm:$0xf] }
 0x697   :  { %v11057_v59 = vld [vmem:[#allocation24 + $0x868] sm:$0xf0]  ;;  %v13127_v62 = vld [vmem:[#allocation24 + $0x7ec] sm:$0xf0] }
 0x698   :  { %v13202_v43 = vld [vmem:[#allocation24 + $0xa4c] sm:$0xf]  ;;  %v11060_v46 = vor.u32 %v13138_v11, %v11057_v59  ;;  %7167 = vmatpush.bf16.msra.mxu0 %v11604_v1  ;;  %v10456_v11 = vor.u32 %v12991_v54, %v10455_v14  ;;  %v10167_v59 = vld [vmem:[#allocation24 + $0x150] sm:$0xf] }
 0x699   :  { %v11313_v41 = vld [vmem:[#allocation24 + $0xa68] sm:$0xf0]  ;;  %v10423_v1 = vld [vmem:[#allocation24 + $0x350] sm:$0xf] }
 0x69a   :  { %v13338_v22 = vld [vmem:[#allocation24 + $0xe8c] sm:$0xf]  ;;  %v11316_v33 = vor.u32 %v13202_v43, %v11313_v41  ;;  %7142 = vmatpush.bf16.msrb.mxu2 %v11060_v46  ;;  %v6924_v43 = vpop.f32.mrf.mxu1  ;;  %v6913_v41 = vpop.f32.mrf.mxu0  ;;  %v10712_v46 = vor.u32 %v13055_v19, %v10711_v16  ;;  %v12903_v52 = vld [vmem:[#allocation24 + $0xec] sm:$0xf0] }
 0x69b   :  { %v11857_v13 = vld [vmem:[#allocation24 + $0xea8] sm:$0xf0]  ;;  %v10903_v39 = vld [vmem:[#allocation24 + $0x710] sm:$0xf] }
 0x69c   :  { %v13266_v55 = vld [vmem:[#allocation24 + $0xc4c] sm:$0xf]  ;;  %v11860_v49 = vor.u32 %v13338_v22, %v11857_v13  ;;  %7155 = vmatpush.bf16.msrb.mxu3 %v11316_v33  ;;  %v12983_v22 = vld [vmem:[#allocation24 + $0x36c] sm:$0xf0]  ;;  %v11000_v13 = vor.u32 %v13127_v62, %v10999_v50  ;;  %v6900_v33 = vpop.f32.mrf.mxu3 }
 0x69d   :  { %v11569_v37 = vld [vmem:[#allocation24 + $0xc68] sm:$0xf0]  ;;  %v10615_v30 = vld [vmem:[#allocation24 + $0x4d0] sm:$0xf] }
 0x69e   :  { %v13130_v2 = vld [vmem:[#allocation24 + $0x80c] sm:$0xf]  ;;  %v11572_v0 = vor.u32 %v13266_v55, %v11569_v37  ;;  %7180 = vmatpush.bf16.msra.mxu1 %v11860_v49  ;;  %v10967_v55 = vld [vmem:[#allocation24 + $0x790] sm:$0xf]  ;;  %v15285_v37 = vadd.f32 %v6924_v43, %v6912_v28 }
 0x69f   :  { %v11025_v23 = vld [vmem:[#allocation24 + $0x828] sm:$0xf0]  ;;  %v10071_v14 = vld [vmem:[#allocation24 + $0x90] sm:$0xf] }
 0x6a0   :  { %v13194_v38 = vld [vmem:[#allocation24 + $0xa0c] sm:$0xf]  ;;  %v11028_v7 = vor.u32 %v13130_v2, %v11025_v23  ;;  %7168 = vmatpush.bf16.msra.mxu0 %v11572_v0  ;;  %v13119_v2 = vld [vmem:[#allocation24 + $0x7ac] sm:$0xf0]  ;;  %v10168_v23 = vor.u32 %v12919_v15, %v10167_v59 }
 0x6a1   :  { %v11281_v12 = vld [vmem:[#allocation24 + $0xa28] sm:$0xf0]  ;;  %v10968_v49 = vor.u32 %v13119_v2, %v10967_v55  ;;  %v12895_v54 = vld [vmem:[#allocation24 + $0xac] sm:$0xf0] }
 0x6a2   :  { %v13330_v51 = vld [vmem:[#allocation24 + $0xe4c] sm:$0xf]  ;;  %v11284_v3 = vor.u32 %v13194_v38, %v11281_v12  ;;  %7143 = vmatpush.bf16.msrb.mxu2 %v11028_v7  ;;  %v10679_v38 = vld [vmem:[#allocation24 + $0x550] sm:$0xf]  ;;  %v10424_v12 = vor.u32 %v12983_v22, %v10423_v1  ;;  %v6926_v35 = vpop.f32.mrf.mxu1  ;;  %v6963_v28 = vpop.f32.mrf.mxu0  ;;  %v10072_v16 = vor.u32 %v12895_v54, %v10071_v14 }
 0x6a3   :  { %v11825_v56 = vld [vmem:[#allocation24 + $0xe68] sm:$0xf0]  ;;  %v10680_v0 = vor.u32 %v13047_v29, %v10679_v38  ;;  %v13039_v7 = vld [vmem:[#allocation24 + $0x52c] sm:$0xf0] }
 0x6a4   :  { %v13258_v48 = vld [vmem:[#allocation24 + $0xc0c] sm:$0xf]  ;;  %v11828_v25 = vor.u32 %v13330_v51, %v11825_v56  ;;  %7156 = vmatpush.bf16.msrb.mxu3 %v11284_v3  ;;  %v10935_v51 = vld [vmem:[#allocation24 + $0x750] sm:$0xf]  ;;  %v6950_v55 = vpop.f32.mrf.mxu3 }
 0x6a5   :  { %v11537_v26 = vld [vmem:[#allocation24 + $0xc28] sm:$0xf0]  ;;  %7144 = vmatmul.bf16.vlgmr.msrb.gmra.mxu2 %v15215_v36  ;;  %v10647_v56 = vld [vmem:[#allocation24 + $0x510] sm:$0xf]  ;;  %v10936_v4 = vor.u32 %v13111_v34, %v10935_v51 }
 0x6a6   :  { %v11540_v27 = vor.u32 %v13258_v48, %v11537_v26  ;;  %v13322_v21 = vld [vmem:[#allocation24 + $0xe0c] sm:$0xf]  ;;  %7188 = vmatpush.bf16.msra.mxu2 %v10232_v45  ;;  %7181 = vmatpush.bf16.msra.mxu1 %v11828_v25  ;;  %v10392_v48 = vor.u32 %v12975_v40, %v10391_v58  ;;  %v10103_v26 = vld [vmem:[#allocation24 + $0xd0] sm:$0xf]  ;;  %v10648_v32 = vor.u32 %v13039_v7, %v10647_v56 }
 0x6a7   :  { %v11793_v60 = vld [vmem:[#allocation24 + $0xe28] sm:$0xf0]  ;;  %7157 = vmatmul.bf16.vlgmr.msrb.gmra.mxu3 %v15239_v42  ;;  %v10359_v3 = vld [vmem:[#allocation24 + $0x2d0] sm:$0xf]  ;;  %v10104_v24 = vor.u32 %v12903_v52, %v10103_v26 }
 0x6a8   :  { %7201 = vmatpush.bf16.msra.mxu3 %v10488_v63  ;;  %7169 = vmatpush.bf16.msra.mxu0 %v11540_v27  ;;  %v11796_v6 = vor.u32 %v13322_v21, %v11793_v60  ;;  %v12967_v45 = vld [vmem:[#allocation24 + $0x2ec] sm:$0xf0] }
 0x6a9   :  { %v13103_v63 = vld [vmem:[#allocation24 + $0x72c] sm:$0xf0]  ;;  %v10360_v27 = vor.u32 %v12967_v45, %v10359_v3 }
 0x6aa   :  { %7189 = vmatpush.bf16.msra.mxu2 %v10200_v8  ;;  %7182 = vmatpush.bf16.msra.mxu1 %v11796_v6  ;;  %v13031_v25 = vld [vmem:[#allocation24 + $0x4ec] sm:$0xf0]  ;;  %v6976_v41 = vpop.f32.mrf.mxu1  ;;  %v6937_v6 = vpop.f32.mrf.mxu2 }
 0x6ab   :  { %7170 = vmatmul.bf16.vlgmr.msra.gmra.mxu0 %v15251_v44  ;;  %v10327_v21 = vld [vmem:[#allocation24 + $0x290] sm:$0xf]  ;;  %v10616_v50 = vor.u32 %v13031_v25, %v10615_v30 }
 0x6ac   :  { %7214 = vmatpush.bf16.msrb.mxu0 %v10744_v20  ;;  %7202 = vmatpush.bf16.msra.mxu3 %v10456_v11  ;;  %v12959_v60 = vld [vmem:[#allocation24 + $0x2ac] sm:$0xf0]  ;;  %v10904_v20 = vor.u32 %v13103_v63, %v10903_v39 }
 0x6ad   :  { %7183 = vmatmul.bf16.vlgmr.msra.gmra.mxu1 %v15256_v57  ;;  %v10871_v62 = vld [vmem:[#allocation24 + $0x6d0] sm:$0xf]  ;;  %v10328_v59 = vor.u32 %v12959_v60, %v10327_v21 }
 0x6ae   :  { %7227 = vmatpush.bf16.msrb.mxu1 %v11000_v13  ;;  %7190 = vmatpush.bf16.msra.mxu2 %v10168_v23  ;;  %v13095_v8 = vld [vmem:[#allocation24 + $0x6ec] sm:$0xf0] }
 0x6af   :  { %v10583_v19 = vld [vmem:[#allocation24 + $0x490] sm:$0xf]  ;;  %v10872_v13 = vor.u32 %v13095_v8, %v10871_v62  ;;  %v6952_v62 = vpop.f32.mrf.mxu3 }
 0x6b0   :  { %7215 = vmatpush.bf16.msrb.mxu0 %v10712_v46  ;;  %7203 = vmatpush.bf16.msra.mxu3 %v10424_v12  ;;  %v13023_v11 = vld [vmem:[#allocation24 + $0x4ac] sm:$0xf0]  ;;  %v6938_v46 = vadd.f32 %v6937_v6, %v15285_v37 }
 0x6b1   :  { %v10039_v15 = vld [vmem:[#allocation24 + $0x50] sm:$0xf]  ;;  %v10584_v33 = vor.u32 %v13023_v11, %v10583_v19 }
 0x6b2   :  { %7228 = vmatpush.bf16.msrb.mxu1 %v10968_v49  ;;  %7191 = vmatpush.bf16.msra.mxu2 %v10136_v47  ;;  %v12887_v43 = vld [vmem:[#allocation24 + $0x6c] sm:$0xf0]  ;;  %v6951_v10 = vadd.f32 %v6950_v55, %v6938_v46  ;;  %v6939_v14 = vpop.f32.mrf.mxu2 }
 0x6b3   :  { %v10295_v1 = vld [vmem:[#allocation24 + $0x250] sm:$0xf]  ;;  %v10040_v38 = vor.u32 %v12887_v43, %v10039_v15 }
 0x6b4   :  { %7216 = vmatpush.bf16.msrb.mxu0 %v10680_v0  ;;  %7204 = vmatpush.bf16.msra.mxu3 %v10392_v48  ;;  %v12951_v22 = vld [vmem:[#allocation24 + $0x26c] sm:$0xf0]  ;;  %v6965_v0 = vpop.f32.mrf.mxu0  ;;  %v6964_v37 = vadd.f32 %v6963_v28, %v6951_v10 }
 0x6b5   :  { %v10839_v2 = vld [vmem:[#allocation24 + $0x690] sm:$0xf]  ;;  %v10296_v17 = vor.u32 %v12951_v22, %v10295_v1 }
 0x6b6   :  { %7229 = vmatpush.bf16.msrb.mxu1 %v10936_v4  ;;  %7192 = vmatpush.bf16.msra.mxu2 %v10104_v24  ;;  %v13087_v23 = vld [vmem:[#allocation24 + $0x6ac] sm:$0xf0]  ;;  %v6977_v39 = vadd.f32 %v6976_v41, %v6964_v37 }
 0x6b7   :  { %v10551_v29 = vld [vmem:[#allocation24 + $0x450] sm:$0xf]  ;;  %v10840_v56 = vor.u32 %v13087_v23, %v10839_v2 }
 0x6b8   :  { %7217 = vmatpush.bf16.msrb.mxu0 %v10648_v32  ;;  %7205 = vmatpush.bf16.msra.mxu3 %v10360_v27  ;;  %v13015_v12 = vld [vmem:[#allocation24 + $0x46c] sm:$0xf0]  ;;  %v7612_v32 = vmul.f32 0.1, %v15281_v31  ;;  %v6978_v27 = vpop.f32.mrf.mxu1  ;;  %vm7605_vm3 = vcmp.gt.f32.partialorder %v6977_v39, 0.0 }
 0x6b9   :  { %v10007_v58 = vld [vmem:[#allocation24 + $0x10] sm:$0xf]  ;;  %v10552_v7 = vor.u32 %v13015_v12, %v10551_v29 }
 0x6ba   :  { %7230 = vmatpush.bf16.msrb.mxu1 %v10904_v20  ;;  %7193 = vmatpush.bf16.msra.mxu2 %v10072_v16  ;;  %v12879_v40 = vld [vmem:[#allocation24 + $0x2c] sm:$0xf0]  ;;  %v7613_v20 = vmul.f32 0.1, %v6977_v39  ;;  %v7620_v43 = vsel %vm7604_vm2, %v15281_v31, %v7612_v32 }
 0x6bb   :  { %v10263_v49 = vld [vmem:[#allocation24 + $0x210] sm:$0xf]  ;;  %v10008_v3 = vor.u32 %v12879_v40, %v10007_v58 }
 0x6bc   :  { %7218 = vmatpush.bf16.msrb.mxu0 %v10616_v50  ;;  %7206 = vmatpush.bf16.msra.mxu3 %v10328_v59  ;;  %v12943_v51 = vld [vmem:[#allocation24 + $0x22c] sm:$0xf0]  ;;  %v7621_v41 = vsel %vm7605_vm3, %v6977_v39, %v7613_v20 }
 0x6bd   :  { %v11255_v34 = vld [vmem:[#allocation24 + $0x9d0] sm:$0xf]  ;;  %v10264_v63 = vor.u32 %v12943_v51, %v10263_v49  ;;  %v15296_v46 = vpack.c.bf16 %v7621_v41, %v7620_v43 }
 0x6be   :  { %v13191_v47 = vld [vmem:[#allocation24 + $0x9ec] sm:$0xf0]  ;;  %7231 = vmatpush.bf16.msrb.mxu1 %v10872_v13  ;;  %7194 = vmatpush.bf16.msra.mxu2 %v10040_v38 }
 0x6bf   :  { %v10807_v48 = vld [vmem:[#allocation24 + $0x650] sm:$0xf]  ;;  %v11256_v24 = vor.u32 %v13191_v47, %v11255_v34 }
 0x6c0   :  { %7219 = vmatpush.bf16.msrb.mxu0 %v10584_v33  ;;  %v11511_v26 = vld [vmem:[#allocation24 + $0xbd0] sm:$0xf]  ;;  %7207 = vmatpush.bf16.msra.mxu3 %v10296_v17 }
 0x6c1   :  { %v13255_v52 = vld [vmem:[#allocation24 + $0xbec] sm:$0xf0] }
 0x6c2   :  { %v13079_v35 = vld [vmem:[#allocation24 + $0x66c] sm:$0xf0]  ;;  %v11512_v54 = vor.u32 %v13255_v52, %v11511_v26  ;;  %7232 = vmatpush.bf16.msrb.mxu1 %v10840_v56  ;;  %7195 = vmatpush.bf16.msra.mxu2 %v10008_v3 }
 0x6c3   :  { %v10519_v45 = vld [vmem:[#allocation24 + $0x410] sm:$0xf]  ;;  %v10808_v50 = vor.u32 %v13079_v35, %v10807_v48 }
 0x6c4   :  { %v13007_v4 = vld [vmem:[#allocation24 + $0x42c] sm:$0xf0]  ;;  %7220 = vmatpush.bf16.msrb.mxu0 %v10552_v7  ;;  %7208 = vmatpush.bf16.msra.mxu3 %v10264_v63 }
 0x6c5   :  { %v11767_v30 = vld [vmem:[#allocation24 + $0xdd0] sm:$0xf]  ;;  %v10520_v8 = vor.u32 %v13007_v4, %v10519_v45  ;;  %7196 = vmatmul.bf16.vlgmr.msra.gmra.mxu2 %v15150_v61 }
 0x6c6   :  { %v13319_v25 = vld [vmem:[#allocation24 + $0xdec] sm:$0xf0]  ;;  %7240 = vmatpush.bf16.msrb.mxu2 %v11256_v24  ;;  %7233 = vmatpush.bf16.msrb.mxu1 %v10808_v50  ;;  %v7015_v50 = vpop.f32.mrf.mxu0 }
 0x6c7   :  { %v11223_v28 = vld [vmem:[#allocation24 + $0x990] sm:$0xf]  ;;  %v11768_v59 = vor.u32 %v13319_v25, %v11767_v30  ;;  %7209 = vmatmul.bf16.vlgmr.msra.gmra.mxu3 %v15157_v18 }
 0x6c8   :  { %v13183_v21 = vld [vmem:[#allocation24 + $0x9ac] sm:$0xf0]  ;;  %7253 = vmatpush.bf16.msrb.mxu3 %v11512_v54  ;;  %7221 = vmatpush.bf16.msrb.mxu0 %v10520_v8 }
 0x6c9   :  { %v11479_v60 = vld [vmem:[#allocation24 + $0xb90] sm:$0xf]  ;;  %v11224_v1 = vor.u32 %v13183_v21, %v11223_v28 }
 0x6ca   :  { %v13247_v16 = vld [vmem:[#allocation24 + $0xbac] sm:$0xf0] }
 0x6cb   :  { %v10775_v19 = vld [vmem:[#allocation24 + $0x610] sm:$0xf]  ;;  %v11480_v55 = vor.u32 %v13247_v16, %v11479_v60  ;;  %7241 = vmatpush.bf16.msrb.mxu2 %v11224_v1  ;;  %7222 = vmatmul.bf16.vlgmr.msrb.gmra.mxu0 %v15164_v9 }
 0x6cc   :  { %v13071_v11 = vld [vmem:[#allocation24 + $0x62c] sm:$0xf0]  ;;  %7266 = vmatpush.bf16.msra.mxu0 %v11768_v59  ;;  %v4198_v59 = vperm.slane %v15273_v53, 2 }
 0x6cd   :  { %v12023_v15 = vld [vmem:[#allocation24 + $0xfd0] sm:$0xf]  ;;  %v10776_v23 = vor.u32 %v13071_v11, %v10775_v19  ;;  %7254 = vmatpush.bf16.msrb.mxu3 %v11480_v55  ;;  %v7028_v55 = vpop.f32.mrf.mxu1 }
 0x6ce   :  { %v13383_v6 = vld [vmem:[#allocation24 + $0xfec] sm:$0xf0] }
 0x6cf   :  { %v11735_v22 = vld [vmem:[#allocation24 + $0xd90] sm:$0xf]  ;;  %v12024_v31 = vor.u32 %v13383_v6, %v12023_v15  ;;  %7234 = vmatpush.bf16.msrb.mxu1 %v10776_v23 }
 0x6d0   :  { %v13311_v13 = vld [vmem:[#allocation24 + $0xdac] sm:$0xf0] }
 0x6d1   :  { %v11191_v33 = vld [vmem:[#allocation24 + $0x950] sm:$0xf]  ;;  %v11736_v12 = vor.u32 %v13311_v13, %v11735_v22 }
 0x6d2   :  { %v13175_v2 = vld [vmem:[#allocation24 + $0x96c] sm:$0xf0]  ;;  %7235 = vmatmul.bf16.vlgmr.msrb.gmra.mxu1 %v15173_v5 }
 0x6d3   :  { %v11447_v38 = vld [vmem:[#allocation24 + $0xb50] sm:$0xf]  ;;  %v11192_v58 = vor.u32 %v13175_v2, %v11191_v33  ;;  %7279 = vmatpush.bf16.msra.mxu1 %v12024_v31  ;;  %7267 = vmatpush.bf16.msra.mxu0 %v11736_v12  ;;  %v6989_v33 = vpop.f32.mrf.mxu2  ;;  %v7002_v31 = vpop.f32.mrf.mxu3 }
 0x6d4   :  { %v13239_v29 = vld [vmem:[#allocation24 + $0xb6c] sm:$0xf0] }
 0x6d5   :  { %v11991_v10 = vld [vmem:[#allocation24 + $0xf90] sm:$0xf]  ;;  %v11448_v0 = vor.u32 %v13239_v29, %v11447_v38  ;;  %7242 = vmatpush.bf16.msrb.mxu2 %v11192_v58  ;;  %v6990_v29 = vadd.f32 %v6989_v33, %v4198_v59  ;;  %v12915_v33 = vld [vmem:[#allocation24 + $0x154] sm:$0xf] }
 0x6d6   :  { %v13375_v17 = vld [vmem:[#allocation24 + $0xfac] sm:$0xf0] }
 0x6d7   :  { %v11703_v40 = vld [vmem:[#allocation24 + $0xd50] sm:$0xf]  ;;  %v11992_v56 = vor.u32 %v13375_v17, %v11991_v10  ;;  %7255 = vmatpush.bf16.msrb.mxu3 %v11448_v0 }
 0x6d8   :  { %v13303_v49 = vld [vmem:[#allocation24 + $0xd6c] sm:$0xf0] }
 0x6d9   :  { %v11159_v51 = vld [vmem:[#allocation24 + $0x910] sm:$0xf]  ;;  %v11704_v7 = vor.u32 %v13303_v49, %v11703_v40  ;;  %7280 = vmatpush.bf16.msra.mxu1 %v11992_v56  ;;  %v7003_v49 = vadd.f32 %v7002_v31, %v6990_v29  ;;  %v10425_v29 = vld [vmem:[#allocation24 + $0x370] sm:$0xf0] }
 0x6da   :  { %v13167_v34 = vld [vmem:[#allocation24 + $0x92c] sm:$0xf0] }
 0x6db   :  { %v11415_v47 = vld [vmem:[#allocation24 + $0xb10] sm:$0xf]  ;;  %v11160_v52 = vor.u32 %v13167_v34, %v11159_v51  ;;  %7268 = vmatpush.bf16.msra.mxu0 %v11704_v7  ;;  %v12931_v7 = vld [vmem:[#allocation24 + $0x1d4] sm:$0xf] }
 0x6dc   :  { %v13231_v37 = vld [vmem:[#allocation24 + $0xb2c] sm:$0xf0] }
 0x6dd   :  { %v11959_v48 = vld [vmem:[#allocation24 + $0xf50] sm:$0xf]  ;;  %v11416_v45 = vor.u32 %v13231_v37, %v11415_v47  ;;  %7243 = vmatpush.bf16.msrb.mxu2 %v11160_v52  ;;  %v7017_v37 = vpop.f32.mrf.mxu0 }
 0x6de   :  { %v13367_v26 = vld [vmem:[#allocation24 + $0xf6c] sm:$0xf0] }
 0x6df   :  { %v11671_v35 = vld [vmem:[#allocation24 + $0xd10] sm:$0xf]  ;;  %v11960_v24 = vor.u32 %v13367_v26, %v11959_v48  ;;  %7256 = vmatpush.bf16.msrb.mxu3 %v11416_v45  ;;  %v10233_v48 = vld [vmem:[#allocation24 + $0x1f0] sm:$0xf0]  ;;  %v7016_v26 = vadd.f32 %v7015_v50, %v7003_v49 }
 0x6e0   :  { %v13295_v3 = vld [vmem:[#allocation24 + $0xd2c] sm:$0xf0]  ;;  %v12995_v45 = vld [vmem:[#allocation24 + $0x3d4] sm:$0xf] }
 0x6e1   :  { %v11127_v4 = vld [vmem:[#allocation24 + $0x8d0] sm:$0xf]  ;;  %v11672_v30 = vor.u32 %v13295_v3, %v11671_v35  ;;  %7281 = vmatpush.bf16.msra.mxu1 %v11960_v24  ;;  %v10201_v50 = vld [vmem:[#allocation24 + $0x1b0] sm:$0xf0] }
 0x6e2   :  { %v13159_v32 = vld [vmem:[#allocation24 + $0x8ec] sm:$0xf0] }
 0x6e3   :  { %v11383_v39 = vld [vmem:[#allocation24 + $0xad0] sm:$0xf]  ;;  %v11128_v14 = vor.u32 %v13159_v32, %v11127_v4  ;;  %7269 = vmatpush.bf16.msra.mxu0 %v11672_v30  ;;  %v10489_v4 = vld [vmem:[#allocation24 + $0x3f0] sm:$0xf0] }
 0x6e4   :  { %v13223_v63 = vld [vmem:[#allocation24 + $0xaec] sm:$0xf0] }
 0x6e5   :  { %v11927_v25 = vld [vmem:[#allocation24 + $0xf10] sm:$0xf]  ;;  %v11384_v21 = vor.u32 %v13223_v63, %v11383_v39  ;;  %7244 = vmatpush.bf16.msrb.mxu2 %v11128_v14  ;;  %v10745_v14 = vld [vmem:[#allocation24 + $0x5f0] sm:$0xf0] }
 0x6e6   :  { %v13359_v27 = vld [vmem:[#allocation24 + $0xf2c] sm:$0xf0] }
 0x6e7   :  { %v11639_v54 = vld [vmem:[#allocation24 + $0xcd0] sm:$0xf]  ;;  %v11928_v16 = vor.u32 %v13359_v27, %v11927_v25  ;;  %7257 = vmatpush.bf16.msrb.mxu3 %v11384_v21  ;;  %v10236_v25 = vor.u32 %v12931_v7, %v10233_v48  ;;  %v13059_v27 = vld [vmem:[#allocation24 + $0x5d4] sm:$0xf]  ;;  %v6991_v21 = vpop.f32.mrf.mxu2 }
 0x6e8   :  { %v13287_v28 = vld [vmem:[#allocation24 + $0xcec] sm:$0xf0]  ;;  %v13107_v7 = vld [vmem:[#allocation24 + $0x754] sm:$0xf] }
 0x6e9   :  { %v11095_v60 = vld [vmem:[#allocation24 + $0x890] sm:$0xf]  ;;  %v11640_v19 = vor.u32 %v13287_v28, %v11639_v54  ;;  %7282 = vmatpush.bf16.msra.mxu1 %v11928_v16  ;;  %v15303_v54 = vadd.f32 %v7028_v55, %v7016_v26  ;;  %v7030_v28 = vpop.f32.mrf.mxu1  ;;  %v10937_v48 = vld [vmem:[#allocation24 + $0x770] sm:$0xf0] }
 0x6ea   :  { %v13151_v20 = vld [vmem:[#allocation24 + $0x8ac] sm:$0xf0]  ;;  %v10617_v28 = vld [vmem:[#allocation24 + $0x4f0] sm:$0xf0] }
 0x6eb   :  { %v11351_v62 = vld [vmem:[#allocation24 + $0xa90] sm:$0xf]  ;;  %v11096_v43 = vor.u32 %v13151_v20, %v11095_v60  ;;  %7270 = vmatpush.bf16.msra.mxu0 %v11640_v19  ;;  %v10492_v60 = vor.u32 %v12995_v45, %v10489_v4  ;;  %v12923_v20 = vld [vmem:[#allocation24 + $0x194] sm:$0xf] }
 0x6ec   :  { %v13215_v8 = vld [vmem:[#allocation24 + $0xaac] sm:$0xf0]  ;;  %v12987_v19 = vld [vmem:[#allocation24 + $0x394] sm:$0xf] }
 0x6ed   :  { %v11895_v11 = vld [vmem:[#allocation24 + $0xed0] sm:$0xf]  ;;  %v11352_v1 = vor.u32 %v13215_v8, %v11351_v62  ;;  %7245 = vmatpush.bf16.msrb.mxu2 %v11096_v43  ;;  %v7004_v8 = vpop.f32.mrf.mxu3  ;;  %v10748_v43 = vor.u32 %v13059_v27, %v10745_v14  ;;  %v12899_v45 = vld [vmem:[#allocation24 + $0xd4] sm:$0xf] }
 0x6ee   :  { %v13351_v15 = vld [vmem:[#allocation24 + $0xeec] sm:$0xf0]  ;;  %v10105_v4 = vld [vmem:[#allocation24 + $0xf0] sm:$0xf0] }
 0x6ef   :  { %v11607_v41 = vld [vmem:[#allocation24 + $0xc90] sm:$0xf]  ;;  %v11896_v38 = vor.u32 %v13351_v15, %v11895_v11  ;;  %7258 = vmatpush.bf16.msrb.mxu3 %v11352_v1  ;;  %v10457_v11 = vld [vmem:[#allocation24 + $0x3b0] sm:$0xf0]  ;;  %v10204_v1 = vor.u32 %v12923_v20, %v10201_v50  ;;  %v10108_v27 = vor.u32 %v12899_v45, %v10105_v4  ;;  %v7067_v50 = vpop.f32.mrf.mxu0 }
 0x6f0   :  { %v13279_v6 = vld [vmem:[#allocation24 + $0xcac] sm:$0xf0]  ;;  %v10460_v55 = vor.u32 %v12987_v19, %v10457_v11  ;;  %v13027_v14 = vld [vmem:[#allocation24 + $0x4d4] sm:$0xf] }
 0x6f1   :  { %v11063_v22 = vld [vmem:[#allocation24 + $0x850] sm:$0xf]  ;;  %v11608_v12 = vor.u32 %v13279_v6, %v11607_v41  ;;  %7283 = vmatpush.bf16.msra.mxu1 %v11896_v38  ;;  %v13123_v41 = vld [vmem:[#allocation24 + $0x7d4] sm:$0xf]  ;;  %v10620_v19 = vor.u32 %v13027_v14, %v10617_v28 }
 0x6f2   :  { %v13143_v13 = vld [vmem:[#allocation24 + $0x86c] sm:$0xf0]  ;;  %v11001_v6 = vld [vmem:[#allocation24 + $0x7f0] sm:$0xf0] }
 0x6f3   :  { %v11319_v2 = vld [vmem:[#allocation24 + $0xa50] sm:$0xf]  ;;  %v11064_v17 = vor.u32 %v13143_v13, %v11063_v22  ;;  %7271 = vmatpush.bf16.msra.mxu0 %v11608_v12  ;;  %v13051_v22 = vld [vmem:[#allocation24 + $0x594] sm:$0xf]  ;;  %v11004_v31 = vor.u32 %v13123_v41, %v11001_v6 }
 0x6f4   :  { %v13207_v23 = vld [vmem:[#allocation24 + $0xa6c] sm:$0xf0]  ;;  %v10713_v13 = vld [vmem:[#allocation24 + $0x5b0] sm:$0xf0] }
 0x6f5   :  { %v11863_v53 = vld [vmem:[#allocation24 + $0xe90] sm:$0xf]  ;;  %v11320_v0 = vor.u32 %v13207_v23, %v11319_v2  ;;  %7246 = vmatpush.bf16.msrb.mxu2 %v11064_v17  ;;  %v10169_v2 = vld [vmem:[#allocation24 + $0x170] sm:$0xf0]  ;;  %v10716_v12 = vor.u32 %v13051_v22, %v10713_v13  ;;  %v7080_v13 = vpop.f32.mrf.mxu1 }
 0x6f6   :  { %v13343_v10 = vld [vmem:[#allocation24 + $0xeac] sm:$0xf0]  ;;  %v12979_v38 = vld [vmem:[#allocation24 + $0x354] sm:$0xf]  ;;  %v10172_v17 = vor.u32 %v12915_v33, %v10169_v2 }
 0x6f7   :  { %v11575_v58 = vld [vmem:[#allocation24 + $0xc50] sm:$0xf]  ;;  %v11864_v52 = vor.u32 %v13343_v10, %v11863_v53  ;;  %7259 = vmatpush.bf16.msrb.mxu3 %v11320_v0  ;;  %v13115_v53 = vld [vmem:[#allocation24 + $0x794] sm:$0xf]  ;;  %v10428_v49 = vor.u32 %v12979_v38, %v10425_v29  ;;  %v7054_v29 = vpop.f32.mrf.mxu3 }
 0x6f8   :  { %v13271_v40 = vld [vmem:[#allocation24 + $0xc6c] sm:$0xf0]  ;;  %v10969_v10 = vld [vmem:[#allocation24 + $0x7b0] sm:$0xf0] }
 0x6f9   :  { %v11031_v51 = vld [vmem:[#allocation24 + $0x810] sm:$0xf]  ;;  %v11576_v35 = vor.u32 %v13271_v40, %v11575_v58  ;;  %7284 = vmatpush.bf16.msra.mxu1 %v11864_v52  ;;  %v13043_v58 = vld [vmem:[#allocation24 + $0x554] sm:$0xf]  ;;  %v10972_v37 = vor.u32 %v13115_v53, %v10969_v10 }
 0x6fa   :  { %v13135_v34 = vld [vmem:[#allocation24 + $0x82c] sm:$0xf0]  ;;  %v10681_v40 = vld [vmem:[#allocation24 + $0x570] sm:$0xf0] }
 0x6fb   :  { %v11287_v47 = vld [vmem:[#allocation24 + $0xa10] sm:$0xf]  ;;  %v11032_v39 = vor.u32 %v13135_v34, %v11031_v51  ;;  %7272 = vmatpush.bf16.msra.mxu0 %v11576_v35  ;;  %v12907_v0 = vld [vmem:[#allocation24 + $0x114] sm:$0xf] }
 0x6fc   :  { %v13199_v56 = vld [vmem:[#allocation24 + $0xa2c] sm:$0xf0]  ;;  %v10137_v51 = vld [vmem:[#allocation24 + $0x130] sm:$0xf0] }
 0x6fd   :  { %v11831_v3 = vld [vmem:[#allocation24 + $0xe50] sm:$0xf]  ;;  %v11288_v30 = vor.u32 %v13199_v56, %v11287_v47  ;;  %7247 = vmatpush.bf16.msrb.mxu2 %v11032_v39  ;;  %v12971_v34 = vld [vmem:[#allocation24 + $0x314] sm:$0xf]  ;;  %v10684_v56 = vor.u32 %v13043_v58, %v10681_v40  ;;  %v10140_v26 = vor.u32 %v12907_v0, %v10137_v51  ;;  %v7082_v14 = vpop.f32.mrf.mxu1 }
 0x6fe   :  { %v13335_v32 = vld [vmem:[#allocation24 + $0xe6c] sm:$0xf0]  ;;  %v10393_v47 = vld [vmem:[#allocation24 + $0x330] sm:$0xf0] }
 0x6ff   :  { %v11543_v63 = vld [vmem:[#allocation24 + $0xc10] sm:$0xf]  ;;  %v11832_v62 = vor.u32 %v13335_v32, %v11831_v3  ;;  %7260 = vmatpush.bf16.msrb.mxu3 %v11288_v30  ;;  %v13035_v52 = vld [vmem:[#allocation24 + $0x514] sm:$0xf]  ;;  %v10396_v3 = vor.u32 %v12971_v34, %v10393_v47  ;;  %v7069_v47 = vpop.f32.mrf.mxu0 }
 0x700   :  { %v13263_v24 = vld [vmem:[#allocation24 + $0xc2c] sm:$0xf0]  ;;  %7248 = vmatmul.bf16.vlgmr.msrb.gmra.mxu2 %v15215_v36  ;;  %v10649_v35 = vld [vmem:[#allocation24 + $0x530] sm:$0xf0] }
 0x701   :  { %v11544_v16 = vor.u32 %v13263_v24, %v11543_v63  ;;  %v11799_v59 = vld [vmem:[#allocation24 + $0xe10] sm:$0xf]  ;;  %7292 = vmatpush.bf16.msra.mxu2 %v10236_v25  ;;  %7285 = vmatpush.bf16.msra.mxu1 %v11832_v62  ;;  %v12963_v32 = vld [vmem:[#allocation24 + $0x2d4] sm:$0xf]  ;;  %v10940_v63 = vor.u32 %v13107_v7, %v10937_v48  ;;  %v10652_v24 = vor.u32 %v13035_v52, %v10649_v35 }
 0x702   :  { %v13327_v15 = vld [vmem:[#allocation24 + $0xe2c] sm:$0xf0]  ;;  %7261 = vmatmul.bf16.vlgmr.msrb.gmra.mxu3 %v15239_v42  ;;  %v10361_v39 = vld [vmem:[#allocation24 + $0x2f0] sm:$0xf0] }
 0x703   :  { %7305 = vmatpush.bf16.msra.mxu3 %v10492_v60  ;;  %7273 = vmatpush.bf16.msra.mxu0 %v11544_v16  ;;  %v11800_v23 = vor.u32 %v13327_v15, %v11799_v59  ;;  %v13099_v30 = vld [vmem:[#allocation24 + $0x714] sm:$0xf]  ;;  %v10364_v21 = vor.u32 %v12963_v32, %v10361_v39 }
 0x704   :  { %v10905_v25 = vld [vmem:[#allocation24 + $0x730] sm:$0xf0] }
 0x705   :  { %7293 = vmatpush.bf16.msra.mxu2 %v10204_v1  ;;  %7286 = vmatpush.bf16.msra.mxu1 %v11800_v23  ;;  %v12891_v60 = vld [vmem:[#allocation24 + $0x94] sm:$0xf]  ;;  %v10908_v16 = vor.u32 %v13099_v30, %v10905_v25 }
 0x706   :  { %7274 = vmatmul.bf16.vlgmr.msra.gmra.mxu0 %v15251_v44  ;;  %v10073_v20 = vld [vmem:[#allocation24 + $0xb0] sm:$0xf0] }
 0x707   :  { %7318 = vmatpush.bf16.msrb.mxu0 %v10748_v43  ;;  %7306 = vmatpush.bf16.msra.mxu3 %v10460_v55  ;;  %v12955_v62 = vld [vmem:[#allocation24 + $0x294] sm:$0xf]  ;;  %v10076_v15 = vor.u32 %v12891_v60, %v10073_v20  ;;  %v7041_v55 = vpop.f32.mrf.mxu2 }
 0x708   :  { %7287 = vmatmul.bf16.vlgmr.msra.gmra.mxu1 %v15256_v57  ;;  %v10329_v8 = vld [vmem:[#allocation24 + $0x2b0] sm:$0xf0]  ;;  %v7042_v38 = vadd.f32 %v7041_v55, %v15303_v54 }
 0x709   :  { %7331 = vmatpush.bf16.msrb.mxu1 %v11004_v31  ;;  %7294 = vmatpush.bf16.msra.mxu2 %v10172_v17  ;;  %v13091_v11 = vld [vmem:[#allocation24 + $0x6d4] sm:$0xf]  ;;  %v10332_v6 = vor.u32 %v12955_v62, %v10329_v8  ;;  %v7056_v62 = vpop.f32.mrf.mxu3 }
 0x70a   :  { %v10873_v59 = vld [vmem:[#allocation24 + $0x6f0] sm:$0xf0]  ;;  %v7055_v40 = vadd.f32 %v7054_v29, %v7042_v38 }
 0x70b   :  { %7319 = vmatpush.bf16.msrb.mxu0 %v10716_v12  ;;  %7307 = vmatpush.bf16.msra.mxu3 %v10428_v49  ;;  %v13019_v43 = vld [vmem:[#allocation24 + $0x494] sm:$0xf]  ;;  %v10876_v23 = vor.u32 %v13091_v11, %v10873_v59 }
 0x70c   :  { %v10585_v41 = vld [vmem:[#allocation24 + $0x4b0] sm:$0xf0]  ;;  %v7068_v54 = vadd.f32 %v7067_v50, %v7055_v40 }
 0x70d   :  { %7332 = vmatpush.bf16.msrb.mxu1 %v10972_v37  ;;  %7295 = vmatpush.bf16.msra.mxu2 %v10140_v26  ;;  %v12883_v1 = vld [vmem:[#allocation24 + $0x54] sm:$0xf]  ;;  %v10588_v31 = vor.u32 %v13019_v43, %v10585_v41 }
 0x70e   :  { %v10041_v22 = vld [vmem:[#allocation24 + $0x70] sm:$0xf0] }
 0x70f   :  { %7320 = vmatpush.bf16.msrb.mxu0 %v10684_v56  ;;  %7308 = vmatpush.bf16.msra.mxu3 %v10396_v3  ;;  %v12947_v33 = vld [vmem:[#allocation24 + $0x254] sm:$0xf]  ;;  %v10044_v10 = vor.u32 %v12883_v1, %v10041_v22  ;;  %v7043_v28 = vpop.f32.mrf.mxu2 }
 0x710   :  { %v10297_v2 = vld [vmem:[#allocation24 + $0x270] sm:$0xf0] }
 0x711   :  { %7333 = vmatpush.bf16.msrb.mxu1 %v10940_v63  ;;  %7296 = vmatpush.bf16.msra.mxu2 %v10108_v27  ;;  %v13083_v12 = vld [vmem:[#allocation24 + $0x694] sm:$0xf]  ;;  %v10300_v49 = vor.u32 %v12947_v33, %v10297_v2  ;;  %v15310_v63 = vadd.f32 %v7080_v13, %v7068_v54 }
 0x712   :  { %v10841_v53 = vld [vmem:[#allocation24 + $0x6b0] sm:$0xf0] }
 0x713   :  { %7321 = vmatpush.bf16.msrb.mxu0 %v10652_v24  ;;  %7309 = vmatpush.bf16.msra.mxu3 %v10364_v21  ;;  %v13011_v17 = vld [vmem:[#allocation24 + $0x454] sm:$0xf]  ;;  %v10844_v48 = vor.u32 %v13083_v12, %v10841_v53  ;;  %vm7606_vm4 = vcmp.gt.f32.partialorder %v15310_v63, 0.0 }
 0x714   :  { %v10553_v58 = vld [vmem:[#allocation24 + $0x470] sm:$0xf0] }
 0x715   :  { %7334 = vmatpush.bf16.msrb.mxu1 %v10908_v16  ;;  %7297 = vmatpush.bf16.msra.mxu2 %v10076_v15  ;;  %v12875_v0 = vld [vmem:[#allocation24 + $0x14] sm:$0xf]  ;;  %v10556_v26 = vor.u32 %v13011_v17, %v10553_v58 }
 0x716   :  { %v10009_v51 = vld [vmem:[#allocation24 + $0x30] sm:$0xf0] }
 0x717   :  { %7322 = vmatpush.bf16.msrb.mxu0 %v10620_v19  ;;  %7310 = vmatpush.bf16.msra.mxu3 %v10332_v6  ;;  %v12939_v34 = vld [vmem:[#allocation24 + $0x214] sm:$0xf]  ;;  %v10012_v4 = vor.u32 %v12875_v0, %v10009_v51 }
 0x718   :  { %v10265_v37 = vld [vmem:[#allocation24 + $0x230] sm:$0xf0] }
 0x719   :  { %v13187_v56 = vld [vmem:[#allocation24 + $0x9d4] sm:$0xf]  ;;  %7335 = vmatpush.bf16.msrb.mxu1 %v10876_v23  ;;  %7298 = vmatpush.bf16.msra.mxu2 %v10044_v10  ;;  %v10268_v24 = vor.u32 %v12939_v34, %v10265_v37 }
 0x71a   :  { %v11257_v7 = vld [vmem:[#allocation24 + $0x9f0] sm:$0xf0] }
 0x71b   :  { %7323 = vmatpush.bf16.msrb.mxu0 %v10588_v31  ;;  %v13075_v52 = vld [vmem:[#allocation24 + $0x654] sm:$0xf]  ;;  %7311 = vmatpush.bf16.msra.mxu3 %v10300_v49  ;;  %v11260_v30 = vor.u32 %v13187_v56, %v11257_v7 }
 0x71c   :  { %v13251_v35 = vld [vmem:[#allocation24 + $0xbd4] sm:$0xf] }
 0x71d   :  { %v11513_v3 = vld [vmem:[#allocation24 + $0xbf0] sm:$0xf0]  ;;  %7336 = vmatpush.bf16.msrb.mxu1 %v10844_v48  ;;  %7299 = vmatpush.bf16.msra.mxu2 %v10012_v4 }
 0x71e   :  { %v10809_v45 = vld [vmem:[#allocation24 + $0x670] sm:$0xf0]  ;;  %v11516_v21 = vor.u32 %v13251_v35, %v11513_v3 }
 0x71f   :  { %v13003_v32 = vld [vmem:[#allocation24 + $0x414] sm:$0xf]  ;;  %7324 = vmatpush.bf16.msrb.mxu0 %v10556_v26  ;;  %v10812_v50 = vor.u32 %v13075_v52, %v10809_v45  ;;  %7312 = vmatpush.bf16.msra.mxu3 %v10268_v24 }
 0x720   :  { %v10521_v39 = vld [vmem:[#allocation24 + $0x430] sm:$0xf0]  ;;  %7300 = vmatmul.bf16.vlgmr.msra.gmra.mxu2 %v15150_v61 }
 0x721   :  { %v13315_v25 = vld [vmem:[#allocation24 + $0xdd4] sm:$0xf]  ;;  %v10524_v8 = vor.u32 %v13003_v32, %v10521_v39  ;;  %7344 = vmatpush.bf16.msrb.mxu2 %v11260_v30  ;;  %7337 = vmatpush.bf16.msrb.mxu1 %v10812_v50 }
 0x722   :  { %v11769_v27 = vld [vmem:[#allocation24 + $0xdf0] sm:$0xf0]  ;;  %7313 = vmatmul.bf16.vlgmr.msra.gmra.mxu3 %v15157_v18 }
 0x723   :  { %v13179_v60 = vld [vmem:[#allocation24 + $0x994] sm:$0xf]  ;;  %v11772_v15 = vor.u32 %v13315_v25, %v11769_v27  ;;  %7357 = vmatpush.bf16.msrb.mxu3 %v11516_v21  ;;  %7325 = vmatpush.bf16.msrb.mxu0 %v10524_v8 }
 0x724   :  { %v11225_v20 = vld [vmem:[#allocation24 + $0x9b0] sm:$0xf0] }
 0x725   :  { %v13243_v16 = vld [vmem:[#allocation24 + $0xb94] sm:$0xf]  ;;  %v11228_v6 = vor.u32 %v13179_v60, %v11225_v20  ;;  %v7119_v20 = vpop.f32.mrf.mxu0 }
 0x726   :  { %v11481_v19 = vld [vmem:[#allocation24 + $0xbb0] sm:$0xf0]  ;;  %7326 = vmatmul.bf16.vlgmr.msrb.gmra.mxu0 %v15164_v9 }
 0x727   :  { %v13067_v11 = vld [vmem:[#allocation24 + $0x614] sm:$0xf]  ;;  %v11484_v13 = vor.u32 %v13243_v16, %v11481_v19  ;;  %7370 = vmatpush.bf16.msra.mxu0 %v11772_v15  ;;  %7345 = vmatpush.bf16.msrb.mxu2 %v11228_v6 }
 0x728   :  { %v10777_v59 = vld [vmem:[#allocation24 + $0x630] sm:$0xf0] }
 0x729   :  { %v13379_v43 = vld [vmem:[#allocation24 + $0xfd4] sm:$0xf]  ;;  %v10780_v2 = vor.u32 %v13067_v11, %v10777_v59  ;;  %7358 = vmatpush.bf16.msrb.mxu3 %v11484_v13  ;;  %v15316_v11 = vld [vmem:[#allocation26] sm:$0xff] }
 0x72a   :  { %v12025_v41 = vld [vmem:[#allocation24 + $0xff0] sm:$0xf0]  ;;  %v4199_v59 = vperm.slane %v15316_v11, 3 }
 0x72b   :  { %v13307_v1 = vld [vmem:[#allocation24 + $0xd94] sm:$0xf]  ;;  %v12028_v29 = vor.u32 %v13379_v43, %v12025_v41  ;;  %7338 = vmatpush.bf16.msrb.mxu1 %v10780_v2 }
 0x72c   :  { %v11737_v22 = vld [vmem:[#allocation24 + $0xdb0] sm:$0xf0] }
 0x72d   :  { %v13171_v55 = vld [vmem:[#allocation24 + $0x954] sm:$0xf]  ;;  %v11740_v31 = vor.u32 %v13307_v1, %v11737_v22 }
 0x72e   :  { %v11193_v33 = vld [vmem:[#allocation24 + $0x970] sm:$0xf0]  ;;  %7339 = vmatmul.bf16.vlgmr.msrb.gmra.mxu1 %v15173_v5 }
 0x72f   :  { %v13235_v23 = vld [vmem:[#allocation24 + $0xb54] sm:$0xf]  ;;  %v11196_v10 = vor.u32 %v13171_v55, %v11193_v33  ;;  %7383 = vmatpush.bf16.msra.mxu1 %v12028_v29  ;;  %7371 = vmatpush.bf16.msra.mxu0 %v11740_v31  ;;  %v7132_v55 = vpop.f32.mrf.mxu1  ;;  %v7093_v33 = vpop.f32.mrf.mxu2 }
 0x730   :  { %v11449_v38 = vld [vmem:[#allocation24 + $0xb70] sm:$0xf0]  ;;  %v7094_v29 = vadd.f32 %v7093_v33, %v4199_v59  ;;  %v7106_v31 = vpop.f32.mrf.mxu3  ;;  %v10463_v59 = vld [vmem:[#allocation24 + $0x398] sm:$0xf] }
 0x731   :  { %v13371_v12 = vld [vmem:[#allocation24 + $0xf94] sm:$0xf]  ;;  %v11452_v40 = vor.u32 %v13235_v23, %v11449_v38  ;;  %7346 = vmatpush.bf16.msrb.mxu2 %v11196_v10  ;;  %v13056_v33 = vld [vmem:[#allocation24 + $0x5b4] sm:$0xf0] }
 0x732   :  { %v11993_v53 = vld [vmem:[#allocation24 + $0xfb0] sm:$0xf0] }
 0x733   :  { %v13299_v17 = vld [vmem:[#allocation24 + $0xd54] sm:$0xf]  ;;  %v11996_v47 = vor.u32 %v13371_v12, %v11993_v53  ;;  %7359 = vmatpush.bf16.msrb.mxu3 %v11452_v40 }
 0x734   :  { %v11705_v58 = vld [vmem:[#allocation24 + $0xd70] sm:$0xf0] }
 0x735   :  { %v13163_v49 = vld [vmem:[#allocation24 + $0x914] sm:$0xf]  ;;  %v11708_v37 = vor.u32 %v13299_v17, %v11705_v58  ;;  %7384 = vmatpush.bf16.msra.mxu1 %v11996_v47 }
 0x736   :  { %v11161_v0 = vld [vmem:[#allocation24 + $0x930] sm:$0xf0] }
 0x737   :  { %v13227_v51 = vld [vmem:[#allocation24 + $0xb14] sm:$0xf]  ;;  %v11164_v54 = vor.u32 %v13163_v49, %v11161_v0  ;;  %7372 = vmatpush.bf16.msra.mxu0 %v11708_v37  ;;  %v7107_v49 = vadd.f32 %v7106_v31, %v7094_v29  ;;  %v7121_v37 = vpop.f32.mrf.mxu0  ;;  %v10431_v31 = vld [vmem:[#allocation24 + $0x358] sm:$0xf] }
 0x738   :  { %v11417_v34 = vld [vmem:[#allocation24 + $0xb30] sm:$0xf0]  ;;  %v10399_v37 = vld [vmem:[#allocation24 + $0x318] sm:$0xf] }
 0x739   :  { %v13363_v56 = vld [vmem:[#allocation24 + $0xf54] sm:$0xf]  ;;  %v11420_v52 = vor.u32 %v13227_v51, %v11417_v34  ;;  %7347 = vmatpush.bf16.msrb.mxu2 %v11164_v54  ;;  %v12936_v54 = vld [vmem:[#allocation24 + $0x1f4] sm:$0xf0] }
 0x73a   :  { %v11961_v7 = vld [vmem:[#allocation24 + $0xf70] sm:$0xf0] }
 0x73b   :  { %v13291_v48 = vld [vmem:[#allocation24 + $0xd14] sm:$0xf]  ;;  %v11964_v32 = vor.u32 %v13363_v56, %v11961_v7  ;;  %7360 = vmatpush.bf16.msrb.mxu3 %v11420_v52  ;;  %v10239_v7 = vld [vmem:[#allocation24 + $0x1d8] sm:$0xf] }
 0x73c   :  { %v11673_v26 = vld [vmem:[#allocation24 + $0xd30] sm:$0xf0] }
 0x73d   :  { %v13155_v35 = vld [vmem:[#allocation24 + $0x8d4] sm:$0xf]  ;;  %v11676_v39 = vor.u32 %v13291_v48, %v11673_v26  ;;  %7385 = vmatpush.bf16.msra.mxu1 %v11964_v32  ;;  %v7120_v48 = vadd.f32 %v7119_v20, %v7107_v49  ;;  %v10687_v49 = vld [vmem:[#allocation24 + $0x558] sm:$0xf] }
 0x73e   :  { %v11129_v3 = vld [vmem:[#allocation24 + $0x8f0] sm:$0xf0] }
 0x73f   :  { %v13219_v45 = vld [vmem:[#allocation24 + $0xad4] sm:$0xf]  ;;  %v11132_v25 = vor.u32 %v13155_v35, %v11129_v3  ;;  %7373 = vmatpush.bf16.msra.mxu0 %v11676_v39  ;;  %v10495_v3 = vld [vmem:[#allocation24 + $0x3d8] sm:$0xf] }
 0x740   :  { %v11385_v4 = vld [vmem:[#allocation24 + $0xaf0] sm:$0xf0] }
 0x741   :  { %v13355_v24 = vld [vmem:[#allocation24 + $0xf14] sm:$0xf]  ;;  %v11388_v28 = vor.u32 %v13219_v45, %v11385_v4  ;;  %7348 = vmatpush.bf16.msrb.mxu2 %v11132_v25  ;;  %v13000_v45 = vld [vmem:[#allocation24 + $0x3f4] sm:$0xf0]  ;;  %v10240_v25 = vor.u32 %v12936_v54, %v10239_v7 }
 0x742   :  { %v11929_v30 = vld [vmem:[#allocation24 + $0xf30] sm:$0xf0]  ;;  %v10496_v20 = vor.u32 %v13000_v45, %v10495_v3  ;;  %v13040_v3 = vld [vmem:[#allocation24 + $0x534] sm:$0xf0] }
 0x743   :  { %v13283_v27 = vld [vmem:[#allocation24 + $0xcd4] sm:$0xf]  ;;  %v11932_v8 = vor.u32 %v13355_v24, %v11929_v30  ;;  %7361 = vmatpush.bf16.msrb.mxu3 %v11388_v28  ;;  %v15319_v28 = vadd.f32 %v7132_v55, %v7120_v48  ;;  %v10719_v55 = vld [vmem:[#allocation24 + $0x598] sm:$0xf] }
 0x744   :  { %v11641_v14 = vld [vmem:[#allocation24 + $0xcf0] sm:$0xf0]  ;;  %v10943_v48 = vld [vmem:[#allocation24 + $0x758] sm:$0xf] }
 0x745   :  { %v13147_v21 = vld [vmem:[#allocation24 + $0x894] sm:$0xf]  ;;  %v11644_v16 = vor.u32 %v13283_v27, %v11641_v14  ;;  %7386 = vmatpush.bf16.msra.mxu1 %v11932_v8  ;;  %v10751_v27 = vld [vmem:[#allocation24 + $0x5d8] sm:$0xf] }
 0x746   :  { %v11097_v60 = vld [vmem:[#allocation24 + $0x8b0] sm:$0xf0]  ;;  %v13064_v14 = vld [vmem:[#allocation24 + $0x5f4] sm:$0xf0] }
 0x747   :  { %v13211_v50 = vld [vmem:[#allocation24 + $0xa94] sm:$0xf]  ;;  %v11100_v43 = vor.u32 %v13147_v21, %v11097_v60  ;;  %7374 = vmatpush.bf16.msra.mxu0 %v11644_v16  ;;  %v7134_v21 = vpop.f32.mrf.mxu1  ;;  %v7095_v60 = vpop.f32.mrf.mxu2 }
 0x748   :  { %v11353_v62 = vld [vmem:[#allocation24 + $0xab0] sm:$0xf0]  ;;  %v7108_v16 = vpop.f32.mrf.mxu3  ;;  %v10623_v60 = vld [vmem:[#allocation24 + $0x4d8] sm:$0xf] }
 0x749   :  { %v13347_v19 = vld [vmem:[#allocation24 + $0xed4] sm:$0xf]  ;;  %v11356_v1 = vor.u32 %v13211_v50, %v11353_v62  ;;  %7349 = vmatpush.bf16.msrb.mxu2 %v11100_v43  ;;  %v10207_v50 = vld [vmem:[#allocation24 + $0x198] sm:$0xf]  ;;  %v7171_v16 = vpop.f32.mrf.mxu0 }
 0x74a   :  { %v11897_v15 = vld [vmem:[#allocation24 + $0xef0] sm:$0xf0]  ;;  %v12928_v62 = vld [vmem:[#allocation24 + $0x1b4] sm:$0xf0] }
 0x74b   :  { %v13275_v41 = vld [vmem:[#allocation24 + $0xc94] sm:$0xf]  ;;  %v11900_v38 = vor.u32 %v13347_v19, %v11897_v15  ;;  %7362 = vmatpush.bf16.msrb.mxu3 %v11356_v1  ;;  %v12992_v15 = vld [vmem:[#allocation24 + $0x3b4] sm:$0xf0] }
 0x74c   :  { %v11609_v6 = vld [vmem:[#allocation24 + $0xcb0] sm:$0xf0]  ;;  %v11007_v1 = vld [vmem:[#allocation24 + $0x7d8] sm:$0xf] }
 0x74d   :  { %v13139_v22 = vld [vmem:[#allocation24 + $0x854] sm:$0xf]  ;;  %v11612_v12 = vor.u32 %v13275_v41, %v11609_v6  ;;  %7387 = vmatpush.bf16.msra.mxu1 %v11900_v38  ;;  %v10752_v6 = vor.u32 %v13064_v14, %v10751_v27  ;;  %v12920_v38 = vld [vmem:[#allocation24 + $0x174] sm:$0xf0] }
 0x74e   :  { %v11065_v13 = vld [vmem:[#allocation24 + $0x870] sm:$0xf0]  ;;  %v10911_v27 = vld [vmem:[#allocation24 + $0x718] sm:$0xf] }
 0x74f   :  { %v13203_v2 = vld [vmem:[#allocation24 + $0xa54] sm:$0xf]  ;;  %v11068_v17 = vor.u32 %v13139_v22, %v11065_v13  ;;  %7375 = vmatpush.bf16.msra.mxu0 %v11612_v12  ;;  %v13128_v22 = vld [vmem:[#allocation24 + $0x7f4] sm:$0xf0]  ;;  %v10208_v13 = vor.u32 %v12928_v62, %v10207_v50 }
 0x750   :  { %v11321_v23 = vld [vmem:[#allocation24 + $0xa70] sm:$0xf0]  ;;  %v12984_v12 = vld [vmem:[#allocation24 + $0x374] sm:$0xf0] }
 0x751   :  { %v13339_v53 = vld [vmem:[#allocation24 + $0xe94] sm:$0xf]  ;;  %v11324_v0 = vor.u32 %v13203_v2, %v11321_v23  ;;  %7350 = vmatpush.bf16.msrb.mxu2 %v11068_v17  ;;  %v10464_v2 = vor.u32 %v12992_v15, %v10463_v59  ;;  %v10175_v23 = vld [vmem:[#allocation24 + $0x158] sm:$0xf] }
 0x752   :  { %v11865_v10 = vld [vmem:[#allocation24 + $0xeb0] sm:$0xf0]  ;;  %v10975_v17 = vld [vmem:[#allocation24 + $0x798] sm:$0xf] }
 0x753   :  { %v13267_v58 = vld [vmem:[#allocation24 + $0xc54] sm:$0xf]  ;;  %v11868_v26 = vor.u32 %v13339_v53, %v11865_v10  ;;  %7363 = vmatpush.bf16.msrb.mxu3 %v11324_v0  ;;  %v11008_v53 = vor.u32 %v13128_v22, %v11007_v1  ;;  %v10720_v10 = vor.u32 %v13056_v33, %v10719_v55  ;;  %v13048_v0 = vld [vmem:[#allocation24 + $0x574] sm:$0xf0] }
 0x754   :  { %v11577_v40 = vld [vmem:[#allocation24 + $0xc70] sm:$0xf0]  ;;  %v10688_v54 = vor.u32 %v13048_v0, %v10687_v49  ;;  %v13104_v14 = vld [vmem:[#allocation24 + $0x734] sm:$0xf0] }
 0x755   :  { %v13131_v51 = vld [vmem:[#allocation24 + $0x814] sm:$0xf]  ;;  %v11580_v52 = vor.u32 %v13267_v58, %v11577_v40  ;;  %7388 = vmatpush.bf16.msra.mxu1 %v11868_v26  ;;  %v13120_v58 = vld [vmem:[#allocation24 + $0x7b4] sm:$0xf0]  ;;  %v10176_v40 = vor.u32 %v12920_v38, %v10175_v23  ;;  %v10912_v15 = vor.u32 %v13104_v14, %v10911_v27  ;;  %v7184_v23 = vpop.f32.mrf.mxu1  ;;  %v7145_v38 = vpop.f32.mrf.mxu2  ;;  %v7614_v27 = vmul.f32 0.1, %v15310_v63 }
 0x756   :  { %v11033_v34 = vld [vmem:[#allocation24 + $0x830] sm:$0xf0]  ;;  %v10976_v7 = vor.u32 %v13120_v58, %v10975_v17  ;;  %v13112_v26 = vld [vmem:[#allocation24 + $0x774] sm:$0xf0] }
 0x757   :  { %v13195_v47 = vld [vmem:[#allocation24 + $0xa14] sm:$0xf]  ;;  %v11036_v32 = vor.u32 %v13131_v51, %v11033_v34  ;;  %7376 = vmatpush.bf16.msra.mxu0 %v11580_v52  ;;  %v10432_v51 = vor.u32 %v12984_v12, %v10431_v31  ;;  %v10143_v34 = vld [vmem:[#allocation24 + $0x118] sm:$0xf] }
 0x758   :  { %v11289_v56 = vld [vmem:[#allocation24 + $0xa30] sm:$0xf0]  ;;  %v10079_v62 = vld [vmem:[#allocation24 + $0x98] sm:$0xf] }
 0x759   :  { %v13331_v35 = vld [vmem:[#allocation24 + $0xe54] sm:$0xf]  ;;  %v11292_v30 = vor.u32 %v13195_v47, %v11289_v56  ;;  %7351 = vmatpush.bf16.msrb.mxu2 %v11036_v32  ;;  %v12912_v47 = vld [vmem:[#allocation24 + $0x134] sm:$0xf0] }
 0x75a   :  { %v11833_v4 = vld [vmem:[#allocation24 + $0xe70] sm:$0xf0]  ;;  %v12976_v56 = vld [vmem:[#allocation24 + $0x334] sm:$0xf0]  ;;  %v10144_v52 = vor.u32 %v12912_v47, %v10143_v34 }
 0x75b   :  { %v13259_v39 = vld [vmem:[#allocation24 + $0xc14] sm:$0xf]  ;;  %v11836_v8 = vor.u32 %v13331_v35, %v11833_v4  ;;  %7364 = vmatpush.bf16.msrb.mxu3 %v11292_v30  ;;  %v10655_v35 = vld [vmem:[#allocation24 + $0x518] sm:$0xf]  ;;  %v10400_v45 = vor.u32 %v12976_v56, %v10399_v37  ;;  %v10944_v30 = vor.u32 %v13112_v26, %v10943_v48 }
 0x75c   :  { %v11545_v24 = vld [vmem:[#allocation24 + $0xc30] sm:$0xf0]  ;;  %7352 = vmatmul.bf16.vlgmr.msrb.gmra.mxu2 %v15215_v36  ;;  %v10111_v4 = vld [vmem:[#allocation24 + $0xd8] sm:$0xf] }
 0x75d   :  { %v11548_v19 = vor.u32 %v13259_v39, %v11545_v24  ;;  %v13323_v43 = vld [vmem:[#allocation24 + $0xe14] sm:$0xf]  ;;  %7396 = vmatpush.bf16.msra.mxu2 %v10240_v25  ;;  %7389 = vmatpush.bf16.msra.mxu1 %v11836_v8  ;;  %v12904_v32 = vld [vmem:[#allocation24 + $0xf4] sm:$0xf0]  ;;  %v10656_v25 = vor.u32 %v13040_v3, %v10655_v35 }
 0x75e   :  { %v11801_v41 = vld [vmem:[#allocation24 + $0xe30] sm:$0xf0]  ;;  %7365 = vmatmul.bf16.vlgmr.msrb.gmra.mxu3 %v15239_v42  ;;  %v10367_v39 = vld [vmem:[#allocation24 + $0x2d8] sm:$0xf]  ;;  %v10112_v21 = vor.u32 %v12904_v32, %v10111_v4 }
 0x75f   :  { %7409 = vmatpush.bf16.msra.mxu3 %v10496_v20  ;;  %7377 = vmatpush.bf16.msra.mxu0 %v11548_v19  ;;  %v11804_v29 = vor.u32 %v13323_v43, %v11801_v41  ;;  %v12968_v24 = vld [vmem:[#allocation24 + $0x2f4] sm:$0xf0] }
 0x760   :  { %v13032_v20 = vld [vmem:[#allocation24 + $0x4f4] sm:$0xf0]  ;;  %v10368_v50 = vor.u32 %v12968_v24, %v10367_v39 }
 0x761   :  { %7397 = vmatpush.bf16.msra.mxu2 %v10208_v13  ;;  %7390 = vmatpush.bf16.msra.mxu1 %v11804_v29  ;;  %v12896_v8 = vld [vmem:[#allocation24 + $0xb4] sm:$0xf0]  ;;  %v10624_v43 = vor.u32 %v13032_v20, %v10623_v60 }
 0x762   :  { %7378 = vmatmul.bf16.vlgmr.msra.gmra.mxu0 %v15251_v44  ;;  %v10335_v19 = vld [vmem:[#allocation24 + $0x298] sm:$0xf]  ;;  %v10080_v1 = vor.u32 %v12896_v8, %v10079_v62  ;;  %v7186_v62 = vpop.f32.mrf.mxu1  ;;  %v7147_v8 = vpop.f32.mrf.mxu2 }
 0x763   :  { %7422 = vmatpush.bf16.msrb.mxu0 %v10752_v6  ;;  %7410 = vmatpush.bf16.msra.mxu3 %v10464_v2  ;;  %v12960_v59 = vld [vmem:[#allocation24 + $0x2b4] sm:$0xf0] }
 0x764   :  { %7391 = vmatmul.bf16.vlgmr.msra.gmra.mxu1 %v15256_v57  ;;  %v10879_v41 = vld [vmem:[#allocation24 + $0x6d8] sm:$0xf]  ;;  %v10336_v55 = vor.u32 %v12960_v59, %v10335_v19 }
 0x765   :  { %7435 = vmatpush.bf16.msrb.mxu1 %v11008_v53  ;;  %7398 = vmatpush.bf16.msra.mxu2 %v10176_v40  ;;  %v13096_v6 = vld [vmem:[#allocation24 + $0x6f4] sm:$0xf0]  ;;  %v7146_v53 = vadd.f32 %v7145_v38, %v15319_v28 }
 0x766   :  { %v10591_v22 = vld [vmem:[#allocation24 + $0x498] sm:$0xf]  ;;  %v10880_v12 = vor.u32 %v13096_v6, %v10879_v41 }
 0x767   :  { %7423 = vmatpush.bf16.msrb.mxu0 %v10720_v10  ;;  %7411 = vmatpush.bf16.msra.mxu3 %v10432_v51  ;;  %v13024_v13 = vld [vmem:[#allocation24 + $0x4b4] sm:$0xf0]  ;;  %v7158_v10 = vpop.f32.mrf.mxu3 }
 0x768   :  { %v10047_v33 = vld [vmem:[#allocation24 + $0x58] sm:$0xf]  ;;  %v10592_v17 = vor.u32 %v13024_v13, %v10591_v22  ;;  %v7159_v34 = vadd.f32 %v7158_v10, %v7146_v53 }
 0x769   :  { %7436 = vmatpush.bf16.msrb.mxu1 %v10976_v7  ;;  %7399 = vmatpush.bf16.msra.mxu2 %v10144_v52  ;;  %v12888_v2 = vld [vmem:[#allocation24 + $0x74] sm:$0xf0] }
 0x76a   :  { %v10303_v29 = vld [vmem:[#allocation24 + $0x258] sm:$0xf]  ;;  %v10048_v49 = vor.u32 %v12888_v2, %v10047_v33  ;;  %v7172_v28 = vadd.f32 %v7171_v16, %v7159_v34 }
 0x76b   :  { %7424 = vmatpush.bf16.msrb.mxu0 %v10688_v54  ;;  %7412 = vmatpush.bf16.msra.mxu3 %v10400_v45  ;;  %v12952_v31 = vld [vmem:[#allocation24 + $0x274] sm:$0xf0]  ;;  %v7173_v54 = vpop.f32.mrf.mxu0 }
 0x76c   :  { %v10847_v58 = vld [vmem:[#allocation24 + $0x698] sm:$0xf]  ;;  %v10304_v47 = vor.u32 %v12952_v31, %v10303_v29  ;;  %v7185_v14 = vadd.f32 %v7184_v23, %v7172_v28  ;;  %v7622_v23 = vsel %vm7606_vm4, %v15310_v63, %v7614_v27 }
 0x76d   :  { %7437 = vmatpush.bf16.msrb.mxu1 %v10944_v30  ;;  %7400 = vmatpush.bf16.msra.mxu2 %v10112_v21  ;;  %v13088_v40 = vld [vmem:[#allocation24 + $0x6b4] sm:$0xf0] }
 0x76e   :  { %v10559_v0 = vld [vmem:[#allocation24 + $0x458] sm:$0xf]  ;;  %v10848_v35 = vor.u32 %v13088_v40, %v10847_v58  ;;  %vm7607_vm5 = vcmp.gt.f32.partialorder %v7185_v14, 0.0 }
 0x76f   :  { %7425 = vmatpush.bf16.msrb.mxu0 %v10656_v25  ;;  %7413 = vmatpush.bf16.msra.mxu3 %v10368_v50  ;;  %v13016_v51 = vld [vmem:[#allocation24 + $0x474] sm:$0xf0]  ;;  %v7160_v6 = vpop.f32.mrf.mxu3 }
 0x770   :  { %v10015_v37 = vld [vmem:[#allocation24 + $0x18] sm:$0xf]  ;;  %v10560_v3 = vor.u32 %v13016_v51, %v10559_v0 }
 0x771   :  { %7438 = vmatpush.bf16.msrb.mxu1 %v10912_v15  ;;  %7401 = vmatpush.bf16.msra.mxu2 %v10080_v1  ;;  %v12880_v56 = vld [vmem:[#allocation24 + $0x34] sm:$0xf0] }
 0x772   :  { %v10271_v7 = vld [vmem:[#allocation24 + $0x218] sm:$0xf]  ;;  %v10016_v24 = vor.u32 %v12880_v56, %v10015_v37 }
 0x773   :  { %7426 = vmatpush.bf16.msrb.mxu0 %v10624_v43  ;;  %7414 = vmatpush.bf16.msra.mxu3 %v10336_v55  ;;  %v12944_v48 = vld [vmem:[#allocation24 + $0x234] sm:$0xf0]  ;;  %v7615_v43 = vmul.f32 0.1, %v7185_v14  ;;  %v7223_v6 = vpop.f32.mrf.mxu0 }
 0x774   :  { %v11263_v26 = vld [vmem:[#allocation24 + $0x9d8] sm:$0xf]  ;;  %v10272_v21 = vor.u32 %v12944_v48, %v10271_v7 }
 0x775   :  { %v13192_v52 = vld [vmem:[#allocation24 + $0x9f4] sm:$0xf0]  ;;  %7439 = vmatpush.bf16.msrb.mxu1 %v10880_v12  ;;  %7402 = vmatpush.bf16.msra.mxu2 %v10048_v49  ;;  %v7623_v38 = vsel %vm7607_vm5, %v7185_v14, %v7615_v43 }
 0x776   :  { %v10815_v45 = vld [vmem:[#allocation24 + $0x658] sm:$0xf]  ;;  %v11264_v60 = vor.u32 %v13192_v52, %v11263_v26  ;;  %v15331_v10 = vpack.c.bf16 %v7623_v38, %v7622_v23 }
 0x777   :  { %7427 = vmatpush.bf16.msrb.mxu0 %v10592_v17  ;;  %v11519_v4 = vld [vmem:[#allocation24 + $0xbd8] sm:$0xf]  ;;  %7415 = vmatpush.bf16.msra.mxu3 %v10304_v47 }
 0x778   :  { %v13256_v32 = vld [vmem:[#allocation24 + $0xbf4] sm:$0xf0] }
 0x779   :  { %v13080_v39 = vld [vmem:[#allocation24 + $0x674] sm:$0xf0]  ;;  %v11520_v16 = vor.u32 %v13256_v32, %v11519_v4  ;;  %7440 = vmatpush.bf16.msrb.mxu1 %v10848_v35  ;;  %7403 = vmatpush.bf16.msra.mxu2 %v10016_v24 }
 0x77a   :  { %v10527_v30 = vld [vmem:[#allocation24 + $0x418] sm:$0xf]  ;;  %v10816_v41 = vor.u32 %v13080_v39, %v10815_v45 }
 0x77b   :  { %v13008_v25 = vld [vmem:[#allocation24 + $0x434] sm:$0xf0]  ;;  %7428 = vmatpush.bf16.msrb.mxu0 %v10560_v3  ;;  %7416 = vmatpush.bf16.msra.mxu3 %v10272_v21 }
 0x77c   :  { %v11775_v20 = vld [vmem:[#allocation24 + $0xdd8] sm:$0xf]  ;;  %v10528_v1 = vor.u32 %v13008_v25, %v10527_v30  ;;  %7404 = vmatmul.bf16.vlgmr.msra.gmra.mxu2 %v15150_v61 }
 0x77d   :  { %v13320_v50 = vld [vmem:[#allocation24 + $0xdf4] sm:$0xf0]  ;;  %7448 = vmatpush.bf16.msrb.mxu2 %v11264_v60  ;;  %7441 = vmatpush.bf16.msrb.mxu1 %v10816_v41 }
 0x77e   :  { %v11231_v19 = vld [vmem:[#allocation24 + $0x998] sm:$0xf]  ;;  %v11776_v33 = vor.u32 %v13320_v50, %v11775_v20  ;;  %7417 = vmatmul.bf16.vlgmr.msra.gmra.mxu3 %v15157_v18 }
 0x77f   :  { %v13184_v59 = vld [vmem:[#allocation24 + $0x9b4] sm:$0xf0]  ;;  %7461 = vmatpush.bf16.msrb.mxu3 %v11520_v16  ;;  %7429 = vmatpush.bf16.msrb.mxu0 %v10528_v1 }
 0x780   :  { %v11487_v15 = vld [vmem:[#allocation24 + $0xb98] sm:$0xf]  ;;  %v11232_v31 = vor.u32 %v13184_v59, %v11231_v19 }
 0x781   :  { %v13248_v22 = vld [vmem:[#allocation24 + $0xbb4] sm:$0xf0] }
 0x782   :  { %v10783_v13 = vld [vmem:[#allocation24 + $0x618] sm:$0xf]  ;;  %v11488_v17 = vor.u32 %v13248_v22, %v11487_v15  ;;  %7449 = vmatpush.bf16.msrb.mxu2 %v11232_v31  ;;  %7430 = vmatmul.bf16.vlgmr.msrb.gmra.mxu0 %v15164_v9 }
 0x783   :  { %v13072_v55 = vld [vmem:[#allocation24 + $0x634] sm:$0xf0]  ;;  %7474 = vmatpush.bf16.msra.mxu0 %v11776_v33 }
 0x784   :  { %v12031_v2 = vld [vmem:[#allocation24 + $0xfd8] sm:$0xf]  ;;  %v10784_v49 = vor.u32 %v13072_v55, %v10783_v13  ;;  %7462 = vmatpush.bf16.msrb.mxu3 %v11488_v17 }
 0x785   :  { %v13384_v29 = vld [vmem:[#allocation24 + $0xff4] sm:$0xf0] }
 0x786   :  { %v11743_v12 = vld [vmem:[#allocation24 + $0xd98] sm:$0xf]  ;;  %v12032_v63 = vor.u32 %v13384_v29, %v12031_v2  ;;  %7442 = vmatpush.bf16.msrb.mxu1 %v10784_v49  ;;  %v4200_v2 = vperm.slane %v15316_v11, 4 }
 0x787   :  { %v13312_v53 = vld [vmem:[#allocation24 + $0xdb4] sm:$0xf0] }
 0x788   :  { %v11199_v58 = vld [vmem:[#allocation24 + $0x958] sm:$0xf]  ;;  %v11744_v34 = vor.u32 %v13312_v53, %v11743_v12 }
 0x789   :  { %v13176_v40 = vld [vmem:[#allocation24 + $0x974] sm:$0xf0]  ;;  %7443 = vmatmul.bf16.vlgmr.msrb.gmra.mxu1 %v15173_v5 }
 0x78a   :  { %v11455_v0 = vld [vmem:[#allocation24 + $0xb58] sm:$0xf]  ;;  %v11200_v56 = vor.u32 %v13176_v40, %v11199_v58  ;;  %7487 = vmatpush.bf16.msra.mxu1 %v12032_v63  ;;  %7475 = vmatpush.bf16.msra.mxu0 %v11744_v34  ;;  %v7236_v58 = vpop.f32.mrf.mxu1  ;;  %v7197_v40 = vpop.f32.mrf.mxu2 }
 0x78b   :  { %v13240_v51 = vld [vmem:[#allocation24 + $0xb74] sm:$0xf0]  ;;  %v7198_v63 = vadd.f32 %v7197_v40, %v4200_v2  ;;  %v7210_v34 = vpop.f32.mrf.mxu3  ;;  %v10465_v2 = vld [vmem:[#allocation24 + $0x3b8] sm:$0xf0] }
 0x78c   :  { %v11999_v47 = vld [vmem:[#allocation24 + $0xf98] sm:$0xf]  ;;  %v11456_v48 = vor.u32 %v13240_v51, %v11455_v0  ;;  %7450 = vmatpush.bf16.msrb.mxu2 %v11200_v56 }
 0x78d   :  { %v13376_v37 = vld [vmem:[#allocation24 + $0xfb4] sm:$0xf0] }
 0x78e   :  { %v11711_v7 = vld [vmem:[#allocation24 + $0xd58] sm:$0xf]  ;;  %v12000_v3 = vor.u32 %v13376_v37, %v11999_v47  ;;  %7463 = vmatpush.bf16.msrb.mxu3 %v11456_v48  ;;  %v7211_v48 = vadd.f32 %v7210_v34, %v7198_v63  ;;  %v12980_v63 = vld [vmem:[#allocation24 + $0x35c] sm:$0xf] }
 0x78f   :  { %v13304_v54 = vld [vmem:[#allocation24 + $0xd74] sm:$0xf0]  ;;  %v10433_v34 = vld [vmem:[#allocation24 + $0x378] sm:$0xf0] }
 0x790   :  { %v11167_v26 = vld [vmem:[#allocation24 + $0x918] sm:$0xf]  ;;  %v11712_v45 = vor.u32 %v13304_v54, %v11711_v7  ;;  %7488 = vmatpush.bf16.msra.mxu1 %v12000_v3  ;;  %v7225_v3 = vpop.f32.mrf.mxu0 }
 0x791   :  { %v13168_v52 = vld [vmem:[#allocation24 + $0x934] sm:$0xf0]  ;;  %v10401_v3 = vld [vmem:[#allocation24 + $0x338] sm:$0xf0] }
 0x792   :  { %v11423_v28 = vld [vmem:[#allocation24 + $0xb18] sm:$0xf]  ;;  %v11168_v39 = vor.u32 %v13168_v52, %v11167_v26  ;;  %7476 = vmatpush.bf16.msra.mxu0 %v11712_v45 }
 0x793   :  { %v13232_v35 = vld [vmem:[#allocation24 + $0xb34] sm:$0xf0] }
 0x794   :  { %v11967_v4 = vld [vmem:[#allocation24 + $0xf58] sm:$0xf]  ;;  %v11424_v25 = vor.u32 %v13232_v35, %v11423_v28  ;;  %7451 = vmatpush.bf16.msrb.mxu2 %v11168_v39  ;;  %v7224_v39 = vadd.f32 %v7223_v6, %v7211_v48  ;;  %v12924_v6 = vld [vmem:[#allocation24 + $0x19c] sm:$0xf] }
 0x795   :  { %v13368_v32 = vld [vmem:[#allocation24 + $0xf74] sm:$0xf0]  ;;  %v10689_v48 = vld [vmem:[#allocation24 + $0x578] sm:$0xf0] }
 0x796   :  { %v11679_v24 = vld [vmem:[#allocation24 + $0xd18] sm:$0xf]  ;;  %v11968_v20 = vor.u32 %v13368_v32, %v11967_v4  ;;  %7464 = vmatpush.bf16.msrb.mxu3 %v11424_v25  ;;  %v12932_v4 = vld [vmem:[#allocation24 + $0x1dc] sm:$0xf] }
 0x797   :  { %v13296_v30 = vld [vmem:[#allocation24 + $0xd34] sm:$0xf0]  ;;  %v10241_v32 = vld [vmem:[#allocation24 + $0x1f8] sm:$0xf0] }
 0x798   :  { %v11135_v27 = vld [vmem:[#allocation24 + $0x8d8] sm:$0xf]  ;;  %v11680_v50 = vor.u32 %v13296_v30, %v11679_v24  ;;  %7489 = vmatpush.bf16.msra.mxu1 %v11968_v20 }
 0x799   :  { %v13160_v14 = vld [vmem:[#allocation24 + $0x8f4] sm:$0xf0] }
 0x79a   :  { %v11391_v21 = vld [vmem:[#allocation24 + $0xad8] sm:$0xf]  ;;  %v11136_v16 = vor.u32 %v13160_v14, %v11135_v27  ;;  %7477 = vmatpush.bf16.msra.mxu0 %v11680_v50  ;;  %v12996_v27 = vld [vmem:[#allocation24 + $0x3dc] sm:$0xf] }
 0x79b   :  { %v13224_v60 = vld [vmem:[#allocation24 + $0xaf4] sm:$0xf0]  ;;  %v10497_v14 = vld [vmem:[#allocation24 + $0x3f8] sm:$0xf0] }
 0x79c   :  { %v11935_v62 = vld [vmem:[#allocation24 + $0xf18] sm:$0xf]  ;;  %v11392_v15 = vor.u32 %v13224_v60, %v11391_v21  ;;  %7452 = vmatpush.bf16.msrb.mxu2 %v11136_v16  ;;  %v13060_v16 = vld [vmem:[#allocation24 + $0x5dc] sm:$0xf] }
 0x79d   :  { %v13360_v8 = vld [vmem:[#allocation24 + $0xf34] sm:$0xf0] }
 0x79e   :  { %v11647_v19 = vld [vmem:[#allocation24 + $0xcd8] sm:$0xf]  ;;  %v11936_v13 = vor.u32 %v13360_v8, %v11935_v62  ;;  %7465 = vmatpush.bf16.msrb.mxu3 %v11392_v15  ;;  %v10244_v8 = vor.u32 %v12932_v4, %v10241_v32  ;;  %v7238_v15 = vpop.f32.mrf.mxu1  ;;  %v13108_v32 = vld [vmem:[#allocation24 + $0x75c] sm:$0xf] }
 0x79f   :  { %v13288_v59 = vld [vmem:[#allocation24 + $0xcf4] sm:$0xf0]  ;;  %v13028_v15 = vld [vmem:[#allocation24 + $0x4dc] sm:$0xf] }
 0x7a0   :  { %v11103_v43 = vld [vmem:[#allocation24 + $0x898] sm:$0xf]  ;;  %v11648_v55 = vor.u32 %v13288_v59, %v11647_v19  ;;  %7490 = vmatpush.bf16.msra.mxu1 %v11936_v13  ;;  %v10753_v19 = vld [vmem:[#allocation24 + $0x5f8] sm:$0xf0]  ;;  %v15338_v59 = vadd.f32 %v7236_v58, %v7224_v39  ;;  %v7212_v13 = vpop.f32.mrf.mxu3 }
 0x7a1   :  { %v13152_v41 = vld [vmem:[#allocation24 + $0x8b4] sm:$0xf0]  ;;  %v10721_v58 = vld [vmem:[#allocation24 + $0x5b8] sm:$0xf0] }
 0x7a2   :  { %v11359_v1 = vld [vmem:[#allocation24 + $0xa98] sm:$0xf]  ;;  %v11104_v38 = vor.u32 %v13152_v41, %v11103_v43  ;;  %7478 = vmatpush.bf16.msra.mxu0 %v11648_v55  ;;  %v7199_v43 = vpop.f32.mrf.mxu2  ;;  %v10500_v41 = vor.u32 %v12996_v27, %v10497_v14  ;;  %v10945_v39 = vld [vmem:[#allocation24 + $0x778] sm:$0xf0] }
 0x7a3   :  { %v13216_v22 = vld [vmem:[#allocation24 + $0xab4] sm:$0xf0]  ;;  %v12900_v14 = vld [vmem:[#allocation24 + $0xdc] sm:$0xf] }
 0x7a4   :  { %v11903_v33 = vld [vmem:[#allocation24 + $0xed8] sm:$0xf]  ;;  %v11360_v12 = vor.u32 %v13216_v22, %v11359_v1  ;;  %7453 = vmatpush.bf16.msrb.mxu2 %v11104_v38  ;;  %v10209_v1 = vld [vmem:[#allocation24 + $0x1b8] sm:$0xf0] }
 0x7a5   :  { %v13352_v23 = vld [vmem:[#allocation24 + $0xef4] sm:$0xf0]  ;;  %v10625_v43 = vld [vmem:[#allocation24 + $0x4f8] sm:$0xf0] }
 0x7a6   :  { %v11615_v29 = vld [vmem:[#allocation24 + $0xc98] sm:$0xf]  ;;  %v11904_v51 = vor.u32 %v13352_v23, %v11903_v33  ;;  %7466 = vmatpush.bf16.msrb.mxu3 %v11360_v12  ;;  %v12988_v33 = vld [vmem:[#allocation24 + $0x39c] sm:$0xf] }
 0x7a7   :  { %v13280_v31 = vld [vmem:[#allocation24 + $0xcb4] sm:$0xf0]  ;;  %v11009_v12 = vld [vmem:[#allocation24 + $0x7f8] sm:$0xf0]  ;;  %v10468_v40 = vor.u32 %v12988_v33, %v10465_v2  ;;  %v10628_v2 = vor.u32 %v13028_v15, %v10625_v43 }
 0x7a8   :  { %v11071_v53 = vld [vmem:[#allocation24 + $0x858] sm:$0xf]  ;;  %v11616_v47 = vor.u32 %v13280_v31, %v11615_v29  ;;  %7491 = vmatpush.bf16.msra.mxu1 %v11904_v51  ;;  %v10756_v29 = vor.u32 %v13060_v16, %v10753_v19  ;;  %v13124_v31 = vld [vmem:[#allocation24 + $0x7dc] sm:$0xf] }
 0x7a9   :  { %v13144_v17 = vld [vmem:[#allocation24 + $0x874] sm:$0xf0]  ;;  %v10913_v16 = vld [vmem:[#allocation24 + $0x738] sm:$0xf0] }
 0x7aa   :  { %v11327_v49 = vld [vmem:[#allocation24 + $0xa58] sm:$0xf]  ;;  %v11072_v56 = vor.u32 %v13144_v17, %v11071_v53  ;;  %7479 = vmatpush.bf16.msra.mxu0 %v11616_v47  ;;  %v10212_v53 = vor.u32 %v12924_v6, %v10209_v1  ;;  %v13052_v17 = vld [vmem:[#allocation24 + $0x59c] sm:$0xf]  ;;  %v11012_v47 = vor.u32 %v13124_v31, %v11009_v12 }
 0x7ab   :  { %v13208_v0 = vld [vmem:[#allocation24 + $0xa74] sm:$0xf0]  ;;  %v12892_v6 = vld [vmem:[#allocation24 + $0x9c] sm:$0xf] }
 0x7ac   :  { %v11871_v11 = vld [vmem:[#allocation24 + $0xe98] sm:$0xf]  ;;  %v11328_v26 = vor.u32 %v13208_v0, %v11327_v49  ;;  %7454 = vmatpush.bf16.msrb.mxu2 %v11072_v56  ;;  %v12916_v49 = vld [vmem:[#allocation24 + $0x15c] sm:$0xf] }
 0x7ad   :  { %v13344_v37 = vld [vmem:[#allocation24 + $0xeb4] sm:$0xf0]  ;;  %v10177_v0 = vld [vmem:[#allocation24 + $0x178] sm:$0xf0] }
 0x7ae   :  { %v11583_v7 = vld [vmem:[#allocation24 + $0xc58] sm:$0xf]  ;;  %v11872_v24 = vor.u32 %v13344_v37, %v11871_v11  ;;  %7467 = vmatpush.bf16.msrb.mxu3 %v11328_v26  ;;  %v10724_v11 = vor.u32 %v13052_v17, %v10721_v58  ;;  %v13116_v37 = vld [vmem:[#allocation24 + $0x79c] sm:$0xf]  ;;  %v10436_v26 = vor.u32 %v12980_v63, %v10433_v34 }
 0x7af   :  { %v13272_v54 = vld [vmem:[#allocation24 + $0xc74] sm:$0xf0]  ;;  %v10977_v56 = vld [vmem:[#allocation24 + $0x7b8] sm:$0xf0] }
 0x7b0   :  { %v11039_v52 = vld [vmem:[#allocation24 + $0x818] sm:$0xf]  ;;  %v11584_v30 = vor.u32 %v13272_v54, %v11583_v7  ;;  %7492 = vmatpush.bf16.msra.mxu1 %v11872_v24  ;;  %v10180_v7 = vor.u32 %v12916_v49, %v10177_v0  ;;  %v13044_v54 = vld [vmem:[#allocation24 + $0x55c] sm:$0xf]  ;;  %v7249_v49 = vpop.f32.mrf.mxu2 }
 0x7b1   :  { %v13136_v28 = vld [vmem:[#allocation24 + $0x834] sm:$0xf0]  ;;  %v10692_v4 = vor.u32 %v13044_v54, %v10689_v48  ;;  %v10081_v1 = vld [vmem:[#allocation24 + $0xb8] sm:$0xf0]  ;;  %v7250_v34 = vadd.f32 %v7249_v49, %v15338_v59 }
 0x7b2   :  { %v11295_v35 = vld [vmem:[#allocation24 + $0xa18] sm:$0xf]  ;;  %v11040_v60 = vor.u32 %v13136_v28, %v11039_v52  ;;  %7480 = vmatpush.bf16.msra.mxu0 %v11584_v30  ;;  %v12908_v52 = vld [vmem:[#allocation24 + $0x11c] sm:$0xf] }
 0x7b3   :  { %v13200_v45 = vld [vmem:[#allocation24 + $0xa34] sm:$0xf0]  ;;  %v10145_v28 = vld [vmem:[#allocation24 + $0x138] sm:$0xf0] }
 0x7b4   :  { %v11839_v25 = vld [vmem:[#allocation24 + $0xe58] sm:$0xf]  ;;  %v11296_v62 = vor.u32 %v13200_v45, %v11295_v35  ;;  %7455 = vmatpush.bf16.msrb.mxu2 %v11040_v60  ;;  %v12972_v35 = vld [vmem:[#allocation24 + $0x31c] sm:$0xf]  ;;  %v10980_v45 = vor.u32 %v13116_v37, %v10977_v56  ;;  %v10148_v24 = vor.u32 %v12908_v52, %v10145_v28 }
 0x7b5   :  { %v13336_v21 = vld [vmem:[#allocation24 + $0xe74] sm:$0xf0]  ;;  %v13036_v30 = vld [vmem:[#allocation24 + $0x51c] sm:$0xf]  ;;  %v10404_v27 = vor.u32 %v12972_v35, %v10401_v3 }
 0x7b6   :  { %v11551_v20 = vld [vmem:[#allocation24 + $0xc18] sm:$0xf]  ;;  %v11840_v22 = vor.u32 %v13336_v21, %v11839_v25  ;;  %7468 = vmatpush.bf16.msrb.mxu3 %v11296_v62  ;;  %v10657_v25 = vld [vmem:[#allocation24 + $0x538] sm:$0xf0] }
 0x7b7   :  { %v13264_v50 = vld [vmem:[#allocation24 + $0xc34] sm:$0xf0]  ;;  %7456 = vmatmul.bf16.vlgmr.msrb.gmra.mxu2 %v15215_v36  ;;  %v10113_v21 = vld [vmem:[#allocation24 + $0xf8] sm:$0xf0]  ;;  %v10660_v62 = vor.u32 %v13036_v30, %v10657_v25 }
 0x7b8   :  { %v11552_v55 = vor.u32 %v13264_v50, %v11551_v20  ;;  %v11807_v23 = vld [vmem:[#allocation24 + $0xe18] sm:$0xf]  ;;  %7500 = vmatpush.bf16.msra.mxu2 %v10244_v8  ;;  %7493 = vmatpush.bf16.msra.mxu1 %v11840_v22  ;;  %v12964_v60 = vld [vmem:[#allocation24 + $0x2dc] sm:$0xf]  ;;  %v10948_v50 = vor.u32 %v13108_v32, %v10945_v39  ;;  %v10116_v19 = vor.u32 %v12900_v14, %v10113_v21  ;;  %v7275_v22 = vpop.f32.mrf.mxu0 }
 0x7b9   :  { %v13328_v38 = vld [vmem:[#allocation24 + $0xe34] sm:$0xf0]  ;;  %7469 = vmatmul.bf16.vlgmr.msrb.gmra.mxu3 %v15239_v42  ;;  %v10369_v20 = vld [vmem:[#allocation24 + $0x2f8] sm:$0xf0] }
 0x7ba   :  { %7513 = vmatpush.bf16.msra.mxu3 %v10500_v41  ;;  %7481 = vmatpush.bf16.msra.mxu0 %v11552_v55  ;;  %v11808_v51 = vor.u32 %v13328_v38, %v11807_v23  ;;  %v13100_v8 = vld [vmem:[#allocation24 + $0x71c] sm:$0xf]  ;;  %v10372_v41 = vor.u32 %v12964_v60, %v10369_v20 }
 0x7bb   :  { %v12956_v13 = vld [vmem:[#allocation24 + $0x29c] sm:$0xf]  ;;  %v10916_v33 = vor.u32 %v13100_v8, %v10913_v16 }
 0x7bc   :  { %7501 = vmatpush.bf16.msra.mxu2 %v10212_v53  ;;  %7494 = vmatpush.bf16.msra.mxu1 %v11808_v51  ;;  %v10337_v55 = vld [vmem:[#allocation24 + $0x2b8] sm:$0xf0] }
 0x7bd   :  { %7482 = vmatmul.bf16.vlgmr.msra.gmra.mxu0 %v15251_v44  ;;  %v13092_v23 = vld [vmem:[#allocation24 + $0x6dc] sm:$0xf]  ;;  %v10340_v53 = vor.u32 %v12956_v13, %v10337_v55 }
 0x7be   :  { %7526 = vmatpush.bf16.msrb.mxu0 %v10756_v29  ;;  %7514 = vmatpush.bf16.msra.mxu3 %v10468_v40  ;;  %v10881_v38 = vld [vmem:[#allocation24 + $0x6f8] sm:$0xf0]  ;;  %v10084_v29 = vor.u32 %v12892_v6, %v10081_v1  ;;  %v7288_v40 = vpop.f32.mrf.mxu1 }
 0x7bf   :  { %7495 = vmatmul.bf16.vlgmr.msra.gmra.mxu1 %v15256_v57  ;;  %v13020_v31 = vld [vmem:[#allocation24 + $0x49c] sm:$0xf]  ;;  %v10884_v63 = vor.u32 %v13092_v23, %v10881_v38 }
 0x7c0   :  { %7539 = vmatpush.bf16.msrb.mxu1 %v11012_v47  ;;  %7502 = vmatpush.bf16.msra.mxu2 %v10180_v7  ;;  %v10593_v12 = vld [vmem:[#allocation24 + $0x4b8] sm:$0xf0]  ;;  %v7262_v47 = vpop.f32.mrf.mxu3 }
 0x7c1   :  { %v12884_v17 = vld [vmem:[#allocation24 + $0x5c] sm:$0xf] }
 0x7c2   :  { %7527 = vmatpush.bf16.msrb.mxu0 %v10724_v11  ;;  %7515 = vmatpush.bf16.msra.mxu3 %v10436_v26  ;;  %v10049_v58 = vld [vmem:[#allocation24 + $0x78] sm:$0xf0]  ;;  %v10596_v11 = vor.u32 %v13020_v31, %v10593_v12  ;;  %v7263_v26 = vadd.f32 %v7262_v47, %v7250_v34 }
 0x7c3   :  { %v12948_v0 = vld [vmem:[#allocation24 + $0x25c] sm:$0xf]  ;;  %v10052_v7 = vor.u32 %v12884_v17, %v10049_v58 }
 0x7c4   :  { %7540 = vmatpush.bf16.msrb.mxu1 %v10980_v45  ;;  %7503 = vmatpush.bf16.msra.mxu2 %v10148_v24  ;;  %v10305_v51 = vld [vmem:[#allocation24 + $0x278] sm:$0xf0]  ;;  %v7277_v45 = vpop.f32.mrf.mxu0  ;;  %v7276_v59 = vadd.f32 %v7275_v22, %v7263_v26 }
 0x7c5   :  { %v13084_v37 = vld [vmem:[#allocation24 + $0x69c] sm:$0xf]  ;;  %v10308_v52 = vor.u32 %v12948_v0, %v10305_v51 }
 0x7c6   :  { %7528 = vmatpush.bf16.msrb.mxu0 %v10692_v4  ;;  %7516 = vmatpush.bf16.msra.mxu3 %v10404_v27  ;;  %v10849_v56 = vld [vmem:[#allocation24 + $0x6b8] sm:$0xf0]  ;;  %v7290_v43 = vpop.f32.mrf.mxu1 }
 0x7c7   :  { %v13012_v54 = vld [vmem:[#allocation24 + $0x45c] sm:$0xf]  ;;  %v10852_v24 = vor.u32 %v13084_v37, %v10849_v56 }
 0x7c8   :  { %7541 = vmatpush.bf16.msrb.mxu1 %v10948_v50  ;;  %7504 = vmatpush.bf16.msra.mxu2 %v10116_v19  ;;  %v10561_v48 = vld [vmem:[#allocation24 + $0x478] sm:$0xf0]  ;;  %v7264_v55 = vpop.f32.mrf.mxu3 }
 0x7c9   :  { %v12876_v28 = vld [vmem:[#allocation24 + $0x1c] sm:$0xf]  ;;  %v10564_v30 = vor.u32 %v13012_v54, %v10561_v48 }
 0x7ca   :  { %7529 = vmatpush.bf16.msrb.mxu0 %v10660_v62  ;;  %7517 = vmatpush.bf16.msra.mxu3 %v10372_v41  ;;  %v10017_v35 = vld [vmem:[#allocation24 + $0x38] sm:$0xf0]  ;;  %v15345_v62 = vadd.f32 %v7288_v40, %v7276_v59  ;;  %v7251_v41 = vpop.f32.mrf.mxu2 }
 0x7cb   :  { %v12940_v3 = vld [vmem:[#allocation24 + $0x21c] sm:$0xf]  ;;  %v10020_v60 = vor.u32 %v12876_v28, %v10017_v35 }
 0x7cc   :  { %7542 = vmatpush.bf16.msrb.mxu1 %v10916_v33  ;;  %7505 = vmatpush.bf16.msra.mxu2 %v10084_v29  ;;  %v10273_v4 = vld [vmem:[#allocation24 + $0x238] sm:$0xf0]  ;;  %v15351_v41 = vpop.f32.mrf.mxu0  ;;  %vm7608_vm7 = vcmp.gt.f32.partialorder %v15345_v62, 0.0 }
 0x7cd   :  { %v13188_v32 = vld [vmem:[#allocation24 + $0x9dc] sm:$0xf]  ;;  %v10276_v8 = vor.u32 %v12940_v3, %v10273_v4 }
 0x7ce   :  { %7530 = vmatpush.bf16.msrb.mxu0 %v10628_v2  ;;  %7518 = vmatpush.bf16.msra.mxu3 %v10340_v53  ;;  %v11265_v39 = vld [vmem:[#allocation24 + $0x9f8] sm:$0xf0] }
 0x7cf   :  { %v13076_v25 = vld [vmem:[#allocation24 + $0x65c] sm:$0xf]  ;;  %v11268_v16 = vor.u32 %v13188_v32, %v11265_v39 }
 0x7d0   :  { %7543 = vmatpush.bf16.msrb.mxu1 %v10884_v63  ;;  %v13252_v27 = vld [vmem:[#allocation24 + $0xbdc] sm:$0xf]  ;;  %7506 = vmatpush.bf16.msra.mxu2 %v10052_v7 }
 0x7d1   :  { %v11521_v14 = vld [vmem:[#allocation24 + $0xbf8] sm:$0xf0] }
 0x7d2   :  { %7531 = vmatpush.bf16.msrb.mxu0 %v10596_v11  ;;  %v10817_v21 = vld [vmem:[#allocation24 + $0x678] sm:$0xf0]  ;;  %7519 = vmatpush.bf16.msra.mxu3 %v10308_v52  ;;  %v11524_v6 = vor.u32 %v13252_v27, %v11521_v14 }
 0x7d3   :  { %v13004_v20 = vld [vmem:[#allocation24 + $0x41c] sm:$0xf]  ;;  %v10820_v13 = vor.u32 %v13076_v25, %v10817_v21 }
 0x7d4   :  { %v10529_v50 = vld [vmem:[#allocation24 + $0x438] sm:$0xf0]  ;;  %7544 = vmatpush.bf16.msrb.mxu1 %v10852_v24  ;;  %7507 = vmatpush.bf16.msra.mxu2 %v10020_v60 }
 0x7d5   :  { %v13316_v19 = vld [vmem:[#allocation24 + $0xddc] sm:$0xf]  ;;  %v10532_v33 = vor.u32 %v13004_v20, %v10529_v50 }
 0x7d6   :  { %v11777_v15 = vld [vmem:[#allocation24 + $0xdf8] sm:$0xf0]  ;;  %7532 = vmatpush.bf16.msrb.mxu0 %v10564_v30  ;;  %7520 = vmatpush.bf16.msra.mxu3 %v10276_v8 }
 0x7d7   :  { %v13180_v1 = vld [vmem:[#allocation24 + $0x99c] sm:$0xf]  ;;  %v11780_v31 = vor.u32 %v13316_v19, %v11777_v15  ;;  %7508 = vmatmul.bf16.vlgmr.msra.gmra.mxu2 %v15150_v61 }
 0x7d8   :  { %v11233_v22 = vld [vmem:[#allocation24 + $0x9b8] sm:$0xf0]  ;;  %7552 = vmatpush.bf16.msrb.mxu2 %v11268_v16  ;;  %7545 = vmatpush.bf16.msrb.mxu1 %v10820_v13 }
 0x7d9   :  { %v13244_v2 = vld [vmem:[#allocation24 + $0xb9c] sm:$0xf]  ;;  %v11236_v17 = vor.u32 %v13180_v1, %v11233_v22  ;;  %7521 = vmatmul.bf16.vlgmr.msra.gmra.mxu3 %v15157_v18 }
 0x7da   :  { %v11489_v23 = vld [vmem:[#allocation24 + $0xbb8] sm:$0xf0]  ;;  %7565 = vmatpush.bf16.msrb.mxu3 %v11524_v6  ;;  %7533 = vmatpush.bf16.msrb.mxu0 %v10532_v33 }
 0x7db   :  { %v13068_v38 = vld [vmem:[#allocation24 + $0x61c] sm:$0xf]  ;;  %v11492_v49 = vor.u32 %v13244_v2, %v11489_v23 }
 0x7dc   :  { %v10785_v29 = vld [vmem:[#allocation24 + $0x638] sm:$0xf0]  ;;  %7553 = vmatpush.bf16.msrb.mxu2 %v11236_v17  ;;  %v15355_v17 = vpop.f32.mrf.mxu2 }
 0x7dd   :  { %v13380_v12 = vld [vmem:[#allocation24 + $0xfdc] sm:$0xf]  ;;  %v10788_v63 = vor.u32 %v13068_v38, %v10785_v29  ;;  %7534 = vmatmul.bf16.vlgmr.msrb.gmra.mxu0 %v15164_v9 }
 0x7de   :  { %v12033_v53 = vld [vmem:[#allocation24 + $0xff8] sm:$0xf0]  ;;  %7578 = vmatpush.bf16.msra.mxu0 %v11780_v31  ;;  %7566 = vmatpush.bf16.msrb.mxu3 %v11492_v49 }
 0x7df   :  { %v13308_v58 = vld [vmem:[#allocation24 + $0xd9c] sm:$0xf]  ;;  %v12036_v11 = vor.u32 %v13380_v12, %v12033_v53  ;;  %7546 = vmatpush.bf16.msrb.mxu1 %v10788_v63  ;;  %v15353_v53 = vpop.f32.mrf.mxu1 }
 0x7e0   :  { %v11745_v40 = vld [vmem:[#allocation24 + $0xdb8] sm:$0xf0] }
 0x7e1   :  { %v13172_v0 = vld [vmem:[#allocation24 + $0x95c] sm:$0xf]  ;;  %v11748_v37 = vor.u32 %v13308_v58, %v11745_v40 }
 0x7e2   :  { %v11201_v51 = vld [vmem:[#allocation24 + $0x978] sm:$0xf0]  ;;  %7547 = vmatmul.bf16.vlgmr.msrb.gmra.mxu1 %v15173_v5 }
 0x7e3   :  { %v13236_v34 = vld [vmem:[#allocation24 + $0xb5c] sm:$0xf]  ;;  %v11204_v54 = vor.u32 %v13172_v0, %v11201_v51  ;;  %7591 = vmatpush.bf16.msra.mxu1 %v12036_v11  ;;  %7579 = vmatpush.bf16.msra.mxu0 %v11748_v37  ;;  %v15357_v0 = vpop.f32.mrf.mxu3 }
 0x7e4   :  { %v11457_v47 = vld [vmem:[#allocation24 + $0xb78] sm:$0xf0] }
 0x7e5   :  { %v13372_v56 = vld [vmem:[#allocation24 + $0xf9c] sm:$0xf]  ;;  %v11460_v52 = vor.u32 %v13236_v34, %v11457_v47  ;;  %7554 = vmatpush.bf16.msrb.mxu2 %v11204_v54 }
 0x7e6   :  { %v12001_v7 = vld [vmem:[#allocation24 + $0xfb8] sm:$0xf0] }
 0x7e7   :  { %v13300_v48 = vld [vmem:[#allocation24 + $0xd5c] sm:$0xf]  ;;  %v12004_v61 = vor.u32 %v13372_v56, %v12001_v7  ;;  %7567 = vmatpush.bf16.msrb.mxu3 %v11460_v52 }
 0x7e8   :  { %v11713_v26 = vld [vmem:[#allocation24 + $0xd78] sm:$0xf0] }
 0x7e9   :  { %v13164_v28 = vld [vmem:[#allocation24 + $0x91c] sm:$0xf]  ;;  %v11716_v4 = vor.u32 %v13300_v48, %v11713_v26  ;;  %7592 = vmatpush.bf16.msra.mxu1 %v12004_v61  ;;  %v7329_v26 = vpop.f32.mrf.mxu0 }
 0x7ea   :  { %v11169_v35 = vld [vmem:[#allocation24 + $0x938] sm:$0xf0] }
 0x7eb   :  { %v13228_v3 = vld [vmem:[#allocation24 + $0xb1c] sm:$0xf]  ;;  %v11172_v39 = vor.u32 %v13164_v28, %v11169_v35  ;;  %7580 = vmatpush.bf16.msra.mxu0 %v11716_v4  ;;  %v12095_v28 = vld [vmem:[#allocation27 + $0x70] sm:$0xf]  ;;  %v13400_v35 = vld [vmem:[#allocation27 + $0x74] sm:$0xf0] }
 0x7ec   :  { %v11425_v45 = vld [vmem:[#allocation24 + $0xb38] sm:$0xf0]  ;;  %v12159_v4 = vld [vmem:[#allocation27 + $0xf0] sm:$0xf] }
 0x7ed   :  { %v13364_v32 = vld [vmem:[#allocation24 + $0xf5c] sm:$0xf]  ;;  %v11428_v9 = vor.u32 %v13228_v3, %v11425_v45  ;;  %7555 = vmatpush.bf16.msrb.mxu2 %v11172_v39 }
 0x7ee   :  { %v11969_v18 = vld [vmem:[#allocation24 + $0xf78] sm:$0xf0] }
 0x7ef   :  { %v13292_v59 = vld [vmem:[#allocation24 + $0xd1c] sm:$0xf]  ;;  %v11972_v21 = vor.u32 %v13364_v32, %v11969_v18  ;;  %7568 = vmatpush.bf16.msrb.mxu3 %v11428_v9  ;;  %v13416_v32 = vld [vmem:[#allocation27 + $0xf4] sm:$0xf0] }
 0x7f0   :  { %v11681_v24 = vld [vmem:[#allocation24 + $0xd38] sm:$0xf0] }
 0x7f1   :  { %v13156_v30 = vld [vmem:[#allocation24 + $0x8dc] sm:$0xf]  ;;  %v11684_v60 = vor.u32 %v13292_v59, %v11681_v24  ;;  %7593 = vmatpush.bf16.msra.mxu1 %v11972_v21  ;;  %v7303_v21 = vpop.f32.mrf.mxu2 }
 0x7f2   :  { %v11137_v25 = vld [vmem:[#allocation24 + $0x8f8] sm:$0xf0] }
 0x7f3   :  { %v13220_v27 = vld [vmem:[#allocation24 + $0xadc] sm:$0xf]  ;;  %v11140_v8 = vor.u32 %v13156_v30, %v11137_v25  ;;  %7581 = vmatpush.bf16.msra.mxu0 %v11684_v60  ;;  %v12096_v30 = vor.u32 %v13400_v35, %v12095_v28  ;;  %v12223_v25 = vld [vmem:[#allocation27 + $0x170] sm:$0xf]  ;;  %v12160_v60 = vor.u32 %v13416_v32, %v12159_v4  ;;  %v12199_v35 = vld [vmem:[#allocation27 + $0x140] sm:$0xf] }
 0x7f4   :  { %v11393_v14 = vld [vmem:[#allocation24 + $0xaf8] sm:$0xf0]  ;;  %v12063_v4 = vld [vmem:[#allocation27 + $0x30] sm:$0xf]  ;;  %v13392_v32 = vld [vmem:[#allocation27 + $0x34] sm:$0xf0] }
 0x7f5   :  { %v13356_v20 = vld [vmem:[#allocation24 + $0xf1c] sm:$0xf]  ;;  %v11396_v15 = vor.u32 %v13220_v27, %v11393_v14  ;;  %7556 = vmatpush.bf16.msrb.mxu2 %v11140_v8  ;;  %v13432_v27 = vld [vmem:[#allocation27 + $0x174] sm:$0xf0]  ;;  %v7342_v14 = vpop.f32.mrf.mxu1 }
 0x7f6   :  { %v11937_v50 = vld [vmem:[#allocation24 + $0xf38] sm:$0xf0]  ;;  %v13424_v14 = vld [vmem:[#allocation27 + $0x134] sm:$0xf0] }
 0x7f7   :  { %v13284_v16 = vld [vmem:[#allocation24 + $0xcdc] sm:$0xf]  ;;  %v11940_v22 = vor.u32 %v13356_v20, %v11937_v50  ;;  %7569 = vmatpush.bf16.msrb.mxu3 %v11396_v15  ;;  %v12087_v20 = vld [vmem:[#allocation27 + $0x60] sm:$0xf]  ;;  %v13398_v50 = vld [vmem:[#allocation27 + $0x64] sm:$0xf0] }
 0x7f8   :  { %v11649_v19 = vld [vmem:[#allocation24 + $0xcf8] sm:$0xf0]  ;;  %v12151_v15 = vld [vmem:[#allocation27 + $0xe0] sm:$0xf] }
 0x7f9   :  { %v13148_v43 = vld [vmem:[#allocation24 + $0x89c] sm:$0xf]  ;;  %v11652_v13 = vor.u32 %v13284_v16, %v11649_v19  ;;  %7594 = vmatpush.bf16.msra.mxu1 %v11940_v22  ;;  %v7316_v16 = vpop.f32.mrf.mxu3  ;;  %v12287_v22 = vld [vmem:[#allocation27 + $0x1f0] sm:$0xf] }
 0x7fa   :  { %v11105_v5 = vld [vmem:[#allocation24 + $0x8b8] sm:$0xf0]  ;;  %v13406_v16 = vld [vmem:[#allocation27 + $0xa4] sm:$0xf0] }
 0x7fb   :  { %v13212_v6 = vld [vmem:[#allocation24 + $0xa9c] sm:$0xf]  ;;  %v11108_v2 = vor.u32 %v13148_v43, %v11105_v5  ;;  %7582 = vmatpush.bf16.msra.mxu0 %v11652_v13  ;;  %v13414_v43 = vld [vmem:[#allocation27 + $0xe4] sm:$0xf0]  ;;  %v13448_v13 = vld [vmem:[#allocation27 + $0x1f4] sm:$0xf0] }
 0x7fc   :  { %v11361_v1 = vld [vmem:[#allocation24 + $0xab8] sm:$0xf0] }
 0x7fd   :  { %v13348_v55 = vld [vmem:[#allocation24 + $0xedc] sm:$0xf]  ;;  %v11364_v29 = vor.u32 %v13212_v6, %v11361_v1  ;;  %7557 = vmatpush.bf16.msrb.mxu2 %v11108_v2  ;;  %v12224_v1 = vor.u32 %v13432_v27, %v12223_v25  ;;  %v13430_v2 = vld [vmem:[#allocation27 + $0x164] sm:$0xf0]  ;;  %v12064_v25 = vor.u32 %v13392_v32, %v12063_v4  ;;  %v12191_v27 = vld [vmem:[#allocation27 + $0x130] sm:$0xf] }
 0x7fe   :  { %v11905_v33 = vld [vmem:[#allocation24 + $0xef8] sm:$0xf0] }
 0x7ff   :  { %v13276_v23 = vld [vmem:[#allocation24 + $0xc9c] sm:$0xf]  ;;  %v11908_v49 = vor.u32 %v13348_v55, %v11905_v33  ;;  %7570 = vmatpush.bf16.msrb.mxu3 %v11364_v29  ;;  %v12088_v55 = vor.u32 %v13398_v50, %v12087_v20  ;;  %v12215_v33 = vld [vmem:[#allocation27 + $0x160] sm:$0xf]  ;;  %v13396_v29 = vld [vmem:[#allocation27 + $0x54] sm:$0xf0]  ;;  %v15367_v50 = vpop.f32.mrf.mxu0 }
 0x800   :  { %v11617_v38 = vld [vmem:[#allocation24 + $0xcb8] sm:$0xf0]  ;;  %v13390_v20 = vld [vmem:[#allocation27 + $0x24] sm:$0xf0] }
 0x801   :  { %v13140_v31 = vld [vmem:[#allocation24 + $0x85c] sm:$0xf]  ;;  %v11620_v51 = vor.u32 %v13276_v23, %v11617_v38  ;;  %7595 = vmatpush.bf16.msra.mxu1 %v11908_v49  ;;  %v12152_v23 = vor.u32 %v13414_v43, %v12151_v15  ;;  %v12079_v38 = vld [vmem:[#allocation27 + $0x50] sm:$0xf]  ;;  %v12216_v49 = vor.u32 %v13430_v2, %v12215_v33  ;;  %v12192_v15 = vor.u32 %v13424_v14, %v12191_v27  ;;  %v13388_v33 = vld [vmem:[#allocation27 + $0x14] sm:$0xf0]  ;;  %v15370_v2 = vpop.f32.mrf.mxu1 }
 0x802   :  { %v11073_v12 = vld [vmem:[#allocation24 + $0x878] sm:$0xf0]  ;;  %v12255_v43 = vld [vmem:[#allocation27 + $0x1b0] sm:$0xf]  ;;  %v13462_v27 = vld [vmem:[#allocation27 + $0x264] sm:$0xf0] }
 0x803   :  { %v13204_v58 = vld [vmem:[#allocation24 + $0xa5c] sm:$0xf]  ;;  %v11076_v47 = vor.u32 %v13140_v31, %v11073_v12  ;;  %7583 = vmatpush.bf16.msra.mxu0 %v11620_v51  ;;  %v12143_v12 = vld [vmem:[#allocation27 + $0xd0] sm:$0xf]  ;;  %v12279_v51 = vld [vmem:[#allocation27 + $0x1e0] sm:$0xf] }
 0x804   :  { %v11329_v40 = vld [vmem:[#allocation24 + $0xa78] sm:$0xf0] }
 0x805   :  { %v13340_v63 = vld [vmem:[#allocation24 + $0xe9c] sm:$0xf]  ;;  %v11332_v56 = vor.u32 %v13204_v58, %v11329_v40  ;;  %7558 = vmatpush.bf16.msrb.mxu2 %v11076_v47  ;;  %v13412_v58 = vld [vmem:[#allocation27 + $0xd4] sm:$0xf0]  ;;  %v12288_v40 = vor.u32 %v13448_v13, %v12287_v22  ;;  %v12207_v47 = vld [vmem:[#allocation27 + $0x150] sm:$0xf] }
 0x806   :  { %v11873_v34 = vld [vmem:[#allocation24 + $0xeb8] sm:$0xf0]  ;;  %v13422_v22 = vld [vmem:[#allocation27 + $0x124] sm:$0xf0] }
 0x807   :  { %v13268_v11 = vld [vmem:[#allocation24 + $0xc5c] sm:$0xf]  ;;  %v11876_v3 = vor.u32 %v13340_v63, %v11873_v34  ;;  %7571 = vmatpush.bf16.msrb.mxu3 %v11332_v56  ;;  %v13446_v63 = vld [vmem:[#allocation27 + $0x1e4] sm:$0xf0]  ;;  %v12080_v34 = vor.u32 %v13396_v29, %v12079_v38  ;;  %v12071_v56 = vld [vmem:[#allocation27 + $0x40] sm:$0xf] }
 0x808   :  { %v11585_v37 = vld [vmem:[#allocation24 + $0xc78] sm:$0xf0]  ;;  %v12111_v38 = vld [vmem:[#allocation27 + $0x90] sm:$0xf]  ;;  %v13404_v29 = vld [vmem:[#allocation27 + $0x94] sm:$0xf0] }
 0x809   :  { %v13132_v7 = vld [vmem:[#allocation24 + $0x81c] sm:$0xf]  ;;  %v11588_v45 = vor.u32 %v13268_v11, %v11585_v37  ;;  %7596 = vmatpush.bf16.msra.mxu1 %v11876_v3  ;;  %v13428_v11 = vld [vmem:[#allocation27 + $0x154] sm:$0xf0]  ;;  %v12144_v37 = vor.u32 %v13412_v58, %v12143_v12  ;;  %v13426_v3 = vld [vmem:[#allocation27 + $0x144] sm:$0xf0]  ;;  %v7366_v12 = vpop.f32.mrf.mxu3 }
 0x80a   :  { %v11041_v54 = vld [vmem:[#allocation24 + $0x838] sm:$0xf0]  ;;  %v12208_v26 = vor.u32 %v13428_v11, %v12207_v47  ;;  %v12112_v47 = vor.u32 %v13404_v29, %v12111_v38  ;;  %v12039_v11 = vld [vmem:[#allocation27] sm:$0xf] }
 0x80b   :  { %v13196_v48 = vld [vmem:[#allocation24 + $0xa1c] sm:$0xf]  ;;  %v11044_v39 = vor.u32 %v13132_v7, %v11041_v54  ;;  %7584 = vmatpush.bf16.msra.mxu0 %v11588_v45  ;;  %v13394_v7 = vld [vmem:[#allocation27 + $0x44] sm:$0xf0]  ;;  %v12135_v54 = vld [vmem:[#allocation27 + $0xc0] sm:$0xf] }
 0x80c   :  { %v11297_v52 = vld [vmem:[#allocation24 + $0xa38] sm:$0xf0]  ;;  %v12072_v28 = vor.u32 %v13394_v7, %v12071_v56  ;;  %v15362_v45 = vld [vmem:[#allocation26] sm:$0xff]  ;;  %v12103_v56 = vld [vmem:[#allocation27 + $0x80] sm:$0xf]  ;;  %v7381_v7 = vpop.f32.mrf.mxu0 }
 0x80d   :  { %v13332_v61 = vld [vmem:[#allocation24 + $0xe5c] sm:$0xf]  ;;  %v11300_v9 = vor.u32 %v13196_v48, %v11297_v52  ;;  %7559 = vmatpush.bf16.msrb.mxu2 %v11044_v39  ;;  %v13410_v48 = vld [vmem:[#allocation27 + $0xc4] sm:$0xf0]  ;;  %v12271_v52 = vld [vmem:[#allocation27 + $0x1d0] sm:$0xf] }
 0x80e   :  { %v11841_v18 = vld [vmem:[#allocation24 + $0xe78] sm:$0xf0]  ;;  %v13408_v39 = vld [vmem:[#allocation27 + $0xb4] sm:$0xf0]  ;;  %v12311_v7 = vld [vmem:[#allocation27 + $0x220] sm:$0xf] }
 0x80f   :  { %v13260_v59 = vld [vmem:[#allocation24 + $0xc1c] sm:$0xf]  ;;  %v11844_v8 = vor.u32 %v13332_v61, %v11841_v18  ;;  %7572 = vmatpush.bf16.msrb.mxu3 %v11300_v9  ;;  %v12136_v61 = vor.u32 %v13410_v48, %v12135_v54  ;;  %v12127_v18 = vld [vmem:[#allocation27 + $0xb0] sm:$0xf]  ;;  %v12263_v9 = vld [vmem:[#allocation27 + $0x1c0] sm:$0xf] }
 0x810   :  { %v11553_v24 = vld [vmem:[#allocation24 + $0xc38] sm:$0xf0]  ;;  %7560 = vmatmul.bf16.vlgmr.msrb.gmra.mxu2 %v15215_v36  ;;  %v12280_v36 = vor.u32 %v13446_v63, %v12279_v51  ;;  %v12175_v63 = vld [vmem:[#allocation27 + $0x110] sm:$0xf]  ;;  %v13402_v54 = vld [vmem:[#allocation27 + $0x84] sm:$0xf0] }
 0x811   :  { %v11556_v19 = vor.u32 %v13260_v59, %v11553_v24  ;;  %v13324_v5 = vld [vmem:[#allocation24 + $0xe1c] sm:$0xf]  ;;  %8442 = vmatpush.bf16.msra.mxu2 %v12096_v30  ;;  %7597 = vmatpush.bf16.msra.mxu1 %v11844_v8  ;;  %v12200_v24 = vor.u32 %v13426_v3, %v12199_v35  ;;  %v13442_v30 = vld [vmem:[#allocation27 + $0x1c4] sm:$0xf0]  ;;  %v12119_v8 = vld [vmem:[#allocation27 + $0xa0] sm:$0xf]  ;;  %v12104_v32 = vor.u32 %v13402_v54, %v12103_v56 }
 0x812   :  { %v11809_v6 = vld [vmem:[#allocation24 + $0xe38] sm:$0xf0]  ;;  %7573 = vmatmul.bf16.vlgmr.msrb.gmra.mxu3 %v15239_v42  ;;  %v13444_v42 = vld [vmem:[#allocation27 + $0x1d4] sm:$0xf0]  ;;  %v12120_v13 = vor.u32 %v13406_v16, %v12119_v8  ;;  %v12351_v48 = vld [vmem:[#allocation27 + $0x270] sm:$0xf]  ;;  %v7780_v8 = vunpack.c.l.b16 %v15331_v10 }
 0x813   :  { %8455 = vmatpush.bf16.msra.mxu3 %v12160_v60  ;;  %7585 = vmatpush.bf16.msra.mxu0 %v11556_v19  ;;  %v11812_v31 = vor.u32 %v13324_v5, %v11809_v6  ;;  %v12272_v59 = vor.u32 %v13444_v42, %v12271_v52  ;;  %v12055_v60 = vld [vmem:[#allocation27 + $0x20] sm:$0xf]  ;;  %v12264_v19 = vor.u32 %v13442_v30, %v12263_v9  ;;  %v13440_v5 = vld [vmem:[#allocation27 + $0x1b4] sm:$0xf0]  ;;  %v12239_v42 = vld [vmem:[#allocation27 + $0x190] sm:$0xf] }
 0x814   :  { %v12056_v6 = vor.u32 %v13390_v20, %v12055_v60  ;;  %v13480_v35 = vld [vmem:[#allocation27 + $0x2f4] sm:$0xf0]  ;;  %v12407_v20 = vld [vmem:[#allocation27 + $0x2e0] sm:$0xf]  ;;  %v13454_v54 = vld [vmem:[#allocation27 + $0x224] sm:$0xf0] }
 0x815   :  { %8443 = vmatpush.bf16.msra.mxu2 %v12088_v55  ;;  %7598 = vmatpush.bf16.msra.mxu1 %v11812_v31  ;;  %v12047_v55 = vld [vmem:[#allocation27 + $0x10] sm:$0xf]  ;;  %v12256_v31 = vor.u32 %v13440_v5, %v12255_v43  ;;  %v13436_v3 = vld [vmem:[#allocation27 + $0x194] sm:$0xf0]  ;;  %v12231_v16 = vld [vmem:[#allocation27 + $0x180] sm:$0xf] }
 0x816   :  { %7586 = vmatmul.bf16.vlgmr.msra.gmra.mxu0 %v15251_v44  ;;  %v4201_v44 = vperm.slane %v15362_v45, 5  ;;  %v12048_v51 = vor.u32 %v13388_v33, %v12047_v55  ;;  %v13476_v55 = vld [vmem:[#allocation27 + $0x2d4] sm:$0xf0]  ;;  %v7781_v33 = vunpack.c.h.b16 %v15331_v10 }
 0x817   :  { %8468 = vmatpush.bf16.msrb.mxu0 %v12224_v1  ;;  %8456 = vmatpush.bf16.msra.mxu3 %v12152_v23  ;;  %v12183_v1 = vld [vmem:[#allocation27 + $0x120] sm:$0xf]  ;;  %v7353_v23 = vpop.f32.mrf.mxu2 }
 0x818   :  { %7599 = vmatmul.bf16.vlgmr.msra.gmra.mxu1 %v15256_v57  ;;  %v7302_v21 = vadd.f32 %v15355_v17, %v4201_v44  ;;  %v12128_v57 = vor.u32 %v13408_v39, %v12127_v18  ;;  %v12184_v58 = vor.u32 %v13422_v22, %v12183_v1  ;;  %v7778_v39 = vunpack.c.l.b16 %v15296_v46  ;;  %v13460_v1 = vld [vmem:[#allocation27 + $0x254] sm:$0xf0] }
 0x819   :  { %8481 = vmatpush.bf16.msrb.mxu1 %v12288_v40  ;;  %8444 = vmatpush.bf16.msra.mxu2 %v12080_v34  ;;  %v12247_v40 = vld [vmem:[#allocation27 + $0x1a0] sm:$0xf]  ;;  %v15388_v10 = vpack.c.b16 %v7781_v33, %v7781_v33 }
 0x81a   :  { %v7315_v17 = vadd.f32 %v15357_v0, %v7302_v21  ;;  %v13420_v0 = vld [vmem:[#allocation27 + $0x114] sm:$0xf0]  ;;  %v12240_v21 = vor.u32 %v13436_v3, %v12239_v42  ;;  %v4202_v42 = vperm.slane %v15362_v45, 6  ;;  %v12303_v3 = vld [vmem:[#allocation27 + $0x210] sm:$0xf] }
 0x81b   :  { %8469 = vmatpush.bf16.msrb.mxu0 %v12216_v49  ;;  %8457 = vmatpush.bf16.msra.mxu3 %v12144_v37  ;;  %v13438_v49 = vld [vmem:[#allocation27 + $0x1a4] sm:$0xf0]  ;;  %v12176_v52 = vor.u32 %v13420_v0, %v12175_v63  ;;  %v12319_v0 = vld [vmem:[#allocation27 + $0x230] sm:$0xf] }
 0x81c   :  { %v7328_v34 = vadd.f32 %v15351_v41, %v7315_v17  ;;  %v13386_v37 = vld [vmem:[#allocation27 + $0x4] sm:$0xf0]  ;;  %v12167_v41 = vld [vmem:[#allocation27 + $0x100] sm:$0xf] }
 0x81d   :  { %8482 = vmatpush.bf16.msrb.mxu1 %v12280_v36  ;;  %8445 = vmatpush.bf16.msra.mxu2 %v12072_v28  ;;  %v13464_v36 = vld [vmem:[#allocation27 + $0x274] sm:$0xf0]  ;;  %v12415_v28 = vld [vmem:[#allocation27 + $0x2f0] sm:$0xf]  ;;  %v12040_v44 = vor.u32 %v13386_v37, %v12039_v11 }
 0x81e   :  { %v7341_v4 = vadd.f32 %v15353_v53, %v7328_v34  ;;  %v12352_v18 = vor.u32 %v13464_v36, %v12351_v48  ;;  %v12416_v30 = vor.u32 %v13480_v35, %v12415_v28  ;;  %v13478_v53 = vld [vmem:[#allocation27 + $0x2e4] sm:$0xf0]  ;;  %v13456_v34 = vld [vmem:[#allocation27 + $0x234] sm:$0xf0]  ;;  %v12383_v11 = vld [vmem:[#allocation27 + $0x2b0] sm:$0xf]  ;;  %v7431_v36 = vpop.f32.mrf.mxu0  ;;  %v12312_v35 = vor.u32 %v13454_v54, %v12311_v7 }
 0x81f   :  { %8470 = vmatpush.bf16.msrb.mxu0 %v12208_v26  ;;  %8458 = vmatpush.bf16.msra.mxu3 %v12136_v61  ;;  %v12248_v26 = vor.u32 %v13438_v49, %v12247_v40  ;;  %v13418_v61 = vld [vmem:[#allocation27 + $0x104] sm:$0xf0]  ;;  %v7355_v9 = vpop.f32.mrf.mxu2  ;;  %v12408_v5 = vor.u32 %v13478_v53, %v12407_v20  ;;  %v12391_v40 = vld [vmem:[#allocation27 + $0x2c0] sm:$0xf]  ;;  %v13472_v37 = vld [vmem:[#allocation27 + $0x2b4] sm:$0xf0]  ;;  %v12320_v56 = vor.u32 %v13456_v34, %v12319_v0 }
 0x820   :  { %v7354_v14 = vadd.f32 %v7353_v23, %v7341_v4  ;;  %v12168_v60 = vor.u32 %v13418_v61, %v12167_v41  ;;  %v15384_v23 = vpack.c.b16 %v7780_v8, %v7780_v8  ;;  %v13474_v49 = vld [vmem:[#allocation27 + $0x2c4] sm:$0xf0]  ;;  %v7616_v28 = vmul.f32 0.1, %v15345_v62  ;;  %v13399_v53 = vld [vmem:[#allocation27 + $0x74] sm:$0xf] }
 0x821   :  { %8483 = vmatpush.bf16.msrb.mxu1 %v12272_v59  ;;  %8446 = vmatpush.bf16.msra.mxu2 %v12064_v25  ;;  %v7779_v59 = vunpack.c.h.b16 %v15296_v46  ;;  %v12343_v25 = vld [vmem:[#allocation27 + $0x260] sm:$0xf]  ;;  %v12392_v63 = vor.u32 %v13474_v49, %v12391_v40  ;;  %v13466_v20 = vld [vmem:[#allocation27 + $0x284] sm:$0xf0]  ;;  %v12097_v8 = vld [vmem:[#allocation27 + $0x78] sm:$0xf0] }
 0x822   :  { %v12344_v46 = vor.u32 %v13462_v27, %v12343_v25  ;;  %v7367_v22 = vadd.f32 %v7366_v12, %v7354_v14  ;;  %v13458_v12 = vld [vmem:[#allocation27 + $0x244] sm:$0xf0]  ;;  %v12295_v14 = vld [vmem:[#allocation27 + $0x200] sm:$0xf]  ;;  %v13395_v0 = vld [vmem:[#allocation27 + $0x54] sm:$0xf] }
 0x823   :  { %8471 = vmatpush.bf16.msrb.mxu0 %v12200_v24  ;;  %8459 = vmatpush.bf16.msra.mxu3 %v12128_v57  ;;  %v7394_v24 = vpop.f32.mrf.mxu1  ;;  %v7368_v57 = vpop.f32.mrf.mxu3  ;;  %v15379_v43 = vpack.c.b16 %v7779_v59, %v7779_v59  ;;  %v12081_v34 = vld [vmem:[#allocation27 + $0x58] sm:$0xf0]  ;;  %v12543_v7 = vld [vmem:[#allocation27 + $0x3f0] sm:$0xf]  ;;  %v13512_v54 = vld [vmem:[#allocation27 + $0x3f4] sm:$0xf0] }
 0x824   :  { %v7624_v24 = vsel %vm7608_vm7, %v15345_v62, %v7616_v28  ;;  %v12359_v57 = vld [vmem:[#allocation27 + $0x280] sm:$0xf]  ;;  %v13409_v28 = vld [vmem:[#allocation27 + $0xc4] sm:$0xf] }
 0x825   :  { %8484 = vmatpush.bf16.msrb.mxu1 %v12264_v19  ;;  %8447 = vmatpush.bf16.msra.mxu2 %v12056_v6  ;;  %v13434_v19 = vld [vmem:[#allocation27 + $0x184] sm:$0xf0]  ;;  %v12335_v6 = vld [vmem:[#allocation27 + $0x250] sm:$0xf]  ;;  %v12360_v62 = vor.u32 %v13466_v20, %v12359_v57  ;;  %v13387_v57 = vld [vmem:[#allocation27 + $0x14] sm:$0xf] }
 0x826   :  { %v12232_v17 = vor.u32 %v13434_v19, %v12231_v16  ;;  %v12336_v38 = vor.u32 %v13460_v1, %v12335_v6  ;;  %v13415_v19 = vld [vmem:[#allocation27 + $0xf4] sm:$0xf]  ;;  %v12100_v1 = vor.u32 %v13399_v53, %v12097_v8  ;;  %v13510_v53 = vld [vmem:[#allocation27 + $0x3e4] sm:$0xf0] }
 0x827   :  { %8472 = vmatpush.bf16.msrb.mxu0 %v12192_v15  ;;  %8460 = vmatpush.bf16.msra.mxu3 %v12120_v13  ;;  %v15377_v15 = vpack.c.b16 %v7778_v39, %v7778_v39  ;;  %v12399_v13 = vld [vmem:[#allocation27 + $0x2d0] sm:$0xf]  ;;  %v7405_v4 = vpop.f32.mrf.mxu2 }
 0x828   :  { %v12400_v29 = vor.u32 %v13476_v55, %v12399_v13  ;;  %v7406_v39 = vadd.f32 %v7405_v4, %v4202_v42  ;;  %v12544_v42 = vor.u32 %v13512_v54, %v12543_v7  ;;  %v12129_v4 = vld [vmem:[#allocation27 + $0xb8] sm:$0xf0]  ;;  %v12455_v7 = vld [vmem:[#allocation27 + $0x340] sm:$0xf]  ;;  %v13490_v54 = vld [vmem:[#allocation27 + $0x344] sm:$0xf0] }
 0x829   :  { %8485 = vmatpush.bf16.msrb.mxu1 %v12256_v31  ;;  %8448 = vmatpush.bf16.msra.mxu2 %v12048_v51  ;;  %v12327_v31 = vld [vmem:[#allocation27 + $0x240] sm:$0xf] }
 0x82a   :  { %v12328_v51 = vor.u32 %v13458_v12, %v12327_v31  ;;  %v13413_v12 = vld [vmem:[#allocation27 + $0xe4] sm:$0xf] }
 0x82b   :  { %8473 = vmatpush.bf16.msrb.mxu0 %v12184_v58  ;;  %8461 = vmatpush.bf16.msra.mxu3 %v12112_v47  ;;  %v7380_v58 = vadd.f32 %v15367_v50, %v7367_v22  ;;  %v12384_v50 = vor.u32 %v13472_v37, %v12383_v11  ;;  %v7444_v61 = vpop.f32.mrf.mxu1  ;;  %v7418_v59 = vpop.f32.mrf.mxu3  ;;  %v12145_v11 = vld [vmem:[#allocation27 + $0xd8] sm:$0xf0]  ;;  %v12479_v37 = vld [vmem:[#allocation27 + $0x370] sm:$0xf] }
 0x82c   :  { %v7419_v25 = vadd.f32 %v7418_v59, %v7406_v39  ;;  %v13389_v39 = vld [vmem:[#allocation27 + $0x24] sm:$0xf]  ;;  %v12057_v59 = vld [vmem:[#allocation27 + $0x28] sm:$0xf0] }
 0x82d   :  { %8486 = vmatpush.bf16.msrb.mxu1 %v12248_v26  ;;  %8449 = vmatpush.bf16.msra.mxu2 %v12040_v44  ;;  %v7393_v47 = vadd.f32 %v15370_v2, %v7380_v58  ;;  %v12375_v26 = vld [vmem:[#allocation27 + $0x2a0] sm:$0xf]  ;;  %v13452_v44 = vld [vmem:[#allocation27 + $0x214] sm:$0xf0]  ;;  %v12153_v58 = vld [vmem:[#allocation27 + $0xe8] sm:$0xf0] }
 0x82e   :  { %v12304_v9 = vor.u32 %v13452_v44, %v12303_v3  ;;  %v7432_v16 = vadd.f32 %v7431_v36, %v7419_v25  ;;  %v13393_v36 = vld [vmem:[#allocation27 + $0x44] sm:$0xf]  ;;  %v13391_v44 = vld [vmem:[#allocation27 + $0x34] sm:$0xf]  ;;  %v12471_v25 = vld [vmem:[#allocation27 + $0x360] sm:$0xf] }
 0x82f   :  { %8474 = vmatpush.bf16.msrb.mxu0 %v12176_v52  ;;  %8462 = vmatpush.bf16.msra.mxu3 %v12104_v32  ;;  %v7617_v48 = vmul.f32 0.1, %v7393_v47  ;;  %v13470_v52 = vld [vmem:[#allocation27 + $0x2a4] sm:$0xf0]  ;;  %vm7609_vm6 = vcmp.gt.f32.partialorder %v7393_v47, 0.0  ;;  %v7407_v55 = vpop.f32.mrf.mxu2 }
 0x830   :  { %8450 = vmatmul.bf16.vlgmr.msra.gmra.mxu2 %v15377_v15  ;;  %v12376_v2 = vor.u32 %v13470_v52, %v12375_v26  ;;  %v12367_v32 = vld [vmem:[#allocation27 + $0x290] sm:$0xf]  ;;  %v15396_v22 = vadd.f32 %v7444_v61, %v7432_v16  ;;  %v12073_v26 = vld [vmem:[#allocation27 + $0x48] sm:$0xf0]  ;;  %v13407_v61 = vld [vmem:[#allocation27 + $0xb4] sm:$0xf] }
 0x831   :  { %8494 = vmatpush.bf16.msrb.mxu2 %v12352_v18  ;;  %8487 = vmatpush.bf16.msrb.mxu1 %v12240_v21  ;;  %v7625_v41 = vsel %vm7609_vm6, %v7393_v47, %v7617_v48  ;;  %v13468_v18 = vld [vmem:[#allocation27 + $0x294] sm:$0xf0]  ;;  %v13450_v21 = vld [vmem:[#allocation27 + $0x204] sm:$0xf0]  ;;  %v13411_v47 = vld [vmem:[#allocation27 + $0xd4] sm:$0xf] }
 0x832   :  { %8463 = vmatmul.bf16.vlgmr.msra.gmra.mxu3 %v15379_v43  ;;  %v12368_v27 = vor.u32 %v13468_v18, %v12367_v32  ;;  %v12148_v48 = vor.u32 %v13411_v47, %v12145_v11  ;;  %v12132_v18 = vor.u32 %v13407_v61, %v12129_v4  ;;  %v13403_v16 = vld [vmem:[#allocation27 + $0x94] sm:$0xf] }
 0x833   :  { %8507 = vmatpush.bf16.msrb.mxu3 %v12416_v30  ;;  %8475 = vmatpush.bf16.msrb.mxu0 %v12168_v60  ;;  %v7630_v30 = vpack.c.bf16 %v7625_v41, %v7624_v24  ;;  %v7433_v60 = vpop.f32.mrf.mxu0  ;;  %v7446_v13 = vpop.f32.mrf.mxu1  ;;  %v12065_v41 = vld [vmem:[#allocation27 + $0x38] sm:$0xf0]  ;;  %v13463_v47 = vld [vmem:[#allocation27 + $0x274] sm:$0xf] }
 0x834   :  { %v7420_v31 = vpop.f32.mrf.mxu3  ;;  %v12068_v32 = vor.u32 %v13391_v44, %v12065_v41  ;;  %v12049_v60 = vld [vmem:[#allocation27 + $0x18] sm:$0xf0]  ;;  %v13508_v13 = vld [vmem:[#allocation27 + $0x3d4] sm:$0xf0]  ;;  %v12447_v41 = vld [vmem:[#allocation27 + $0x330] sm:$0xf] }
 0x835   :  { %8495 = vmatpush.bf16.msrb.mxu2 %v12344_v46  ;;  %8488 = vmatpush.bf16.msrb.mxu1 %v12232_v17  ;;  %v12161_v46 = vld [vmem:[#allocation27 + $0xf8] sm:$0xf0]  ;;  %v7782_v6 = vunpack.c.l.b16 %v7630_v30  ;;  %v7783_v17 = vunpack.c.h.b16 %v7630_v30  ;;  %v12121_v30 = vld [vmem:[#allocation27 + $0xa8] sm:$0xf0]  ;;  %v12052_v31 = vor.u32 %v13387_v57, %v12049_v60  ;;  %v13486_v57 = vld [vmem:[#allocation27 + $0x324] sm:$0xf0] }
 0x836   :  { %8476 = vmatmul.bf16.vlgmr.msrb.gmra.mxu0 %v15384_v23  ;;  %v12164_v33 = vor.u32 %v13415_v19, %v12161_v46  ;;  %v12113_v19 = vld [vmem:[#allocation27 + $0x98] sm:$0xf0]  ;;  %v12503_v60 = vld [vmem:[#allocation27 + $0x3a0] sm:$0xf] }
 0x837   :  { %8508 = vmatpush.bf16.msrb.mxu3 %v12408_v5  ;;  %v12296_v5 = vor.u32 %v13450_v21, %v12295_v14  ;;  %v15398_v40 = vpack.c.b16 %v7782_v6, %v7782_v6  ;;  %v12535_v14 = vld [vmem:[#allocation27 + $0x3e0] sm:$0xf]  ;;  %v12060_v21 = vor.u32 %v13389_v39, %v12057_v59  ;;  %v12511_v39 = vld [vmem:[#allocation27 + $0x3b0] sm:$0xf]  ;;  %v13504_v59 = vld [vmem:[#allocation27 + $0x3b4] sm:$0xf0] }
 0x838   :  { %8489 = vmatmul.bf16.vlgmr.msrb.gmra.mxu1 %v15388_v10  ;;  %v12536_v46 = vor.u32 %v13510_v53, %v12535_v14  ;;  %v13459_v53 = vld [vmem:[#allocation27 + $0x254] sm:$0xf] }
 0x839   :  { %8496 = vmatpush.bf16.msrb.mxu2 %v12336_v38  ;;  %v13397_v38 = vld [vmem:[#allocation27 + $0x64] sm:$0xf]  ;;  %8533 = vmatpush.bf16.msra.mxu1 %v12544_v42 }
 0x83b   :  { %8509 = vmatpush.bf16.msrb.mxu3 %v12400_v29  ;;  %v12089_v29 = vld [vmem:[#allocation27 + $0x68] sm:$0xf0]  ;;  %v7483_v24 = vpop.f32.mrf.mxu0 }
 0x83c   :  { %v12092_v49 = vor.u32 %v13397_v38, %v12089_v29  ;;  %v7496_v6 = vpop.f32.mrf.mxu1 }
 0x83d   :  { %8497 = vmatpush.bf16.msrb.mxu2 %v12328_v51  ;;  %v15400_v51 = vpack.c.b16 %v7783_v17, %v7783_v17  ;;  %v12527_v17 = vld [vmem:[#allocation27 + $0x3d0] sm:$0xf]  ;;  %8534 = vmatpush.bf16.msra.mxu1 %v12536_v46  ;;  %v13475_v46 = vld [vmem:[#allocation27 + $0x2d4] sm:$0xf] }
 0x83e   :  { %v12528_v29 = vor.u32 %v13508_v13, %v12527_v17  ;;  %v12495_v17 = vld [vmem:[#allocation27 + $0x390] sm:$0xf]  ;;  %v13500_v13 = vld [vmem:[#allocation27 + $0x394] sm:$0xf0] }
 0x83f   :  { %8510 = vmatpush.bf16.msrb.mxu3 %v12392_v63  ;;  %v12156_v63 = vor.u32 %v13413_v12, %v12153_v58  ;;  %v13385_v12 = vld [vmem:[#allocation27 + $0x4] sm:$0xf]  ;;  %v12041_v58 = vld [vmem:[#allocation27 + $0x8] sm:$0xf0] }
 0x841   :  { %8498 = vmatpush.bf16.msrb.mxu2 %v12320_v56  ;;  %v12084_v56 = vor.u32 %v13395_v0, %v12081_v34  ;;  %v13401_v0 = vld [vmem:[#allocation27 + $0x84] sm:$0xf]  ;;  %v12105_v34 = vld [vmem:[#allocation27 + $0x88] sm:$0xf0]  ;;  %8535 = vmatpush.bf16.msra.mxu1 %v12528_v29 }
 0x842   :  { %v12329_v29 = vld [vmem:[#allocation27 + $0x248] sm:$0xf0] }
 0x843   :  { %8511 = vmatpush.bf16.msrb.mxu3 %v12384_v50  ;;  %v13496_v50 = vld [vmem:[#allocation27 + $0x374] sm:$0xf0]  ;;  %v7485_v11 = vpop.f32.mrf.mxu0 }
 0x844   :  { %v12480_v52 = vor.u32 %v13496_v50, %v12479_v37  ;;  %v12353_v37 = vld [vmem:[#allocation27 + $0x278] sm:$0xf0]  ;;  %v7498_v61 = vpop.f32.mrf.mxu1 }
 0x845   :  { %8499 = vmatpush.bf16.msrb.mxu2 %v12312_v35  ;;  %v12137_v35 = vld [vmem:[#allocation27 + $0xc8] sm:$0xf0]  ;;  %v12417_v50 = vld [vmem:[#allocation27 + $0x2f8] sm:$0xf0]  ;;  %v13469_v61 = vld [vmem:[#allocation27 + $0x2a4] sm:$0xf] }
 0x846   :  { %8520 = vmatpush.bf16.msra.mxu0 %v12480_v52  ;;  %v12140_v3 = vor.u32 %v13409_v28, %v12137_v35  ;;  %v13506_v52 = vld [vmem:[#allocation27 + $0x3c4] sm:$0xf0]  ;;  %v12108_v28 = vor.u32 %v13401_v0, %v12105_v34  ;;  %v12356_v35 = vor.u32 %v13463_v47, %v12353_v37  ;;  %v12487_v0 = vld [vmem:[#allocation27 + $0x380] sm:$0xf]  ;;  %v12225_v47 = vld [vmem:[#allocation27 + $0x178] sm:$0xf0] }
 0x847   :  { %8512 = vmatpush.bf16.msrb.mxu3 %v12376_v2  ;;  %v12076_v2 = vor.u32 %v13393_v36, %v12073_v26  ;;  %v12044_v36 = vor.u32 %v13385_v12, %v12041_v58  ;;  %v12456_v26 = vor.u32 %v13490_v54, %v12455_v7  ;;  %v12393_v12 = vld [vmem:[#allocation27 + $0x2c8] sm:$0xf0]  ;;  %v12496_v58 = vor.u32 %v13500_v13, %v12495_v17  ;;  %v13498_v34 = vld [vmem:[#allocation27 + $0x384] sm:$0xf0]  ;;  %v13447_v37 = vld [vmem:[#allocation27 + $0x1f4] sm:$0xf] }
 0x848   :  { %v12321_v7 = vld [vmem:[#allocation27 + $0x238] sm:$0xf0]  ;;  %v13449_v17 = vld [vmem:[#allocation27 + $0x204] sm:$0xf]  ;;  %v12297_v13 = vld [vmem:[#allocation27 + $0x208] sm:$0xf0] }
 0x849   :  { %8500 = vmatpush.bf16.msrb.mxu2 %v12304_v9  ;;  %v13405_v9 = vld [vmem:[#allocation27 + $0xa4] sm:$0xf] }
 0x84a   :  { %v12124_v8 = vor.u32 %v13405_v9, %v12121_v30  ;;  %v13477_v9 = vld [vmem:[#allocation27 + $0x2e4] sm:$0xf]  ;;  %v12409_v30 = vld [vmem:[#allocation27 + $0x2e8] sm:$0xf0] }
 0x84b   :  { %8513 = vmatpush.bf16.msrb.mxu3 %v12368_v27  ;;  %v13494_v27 = vld [vmem:[#allocation27 + $0x364] sm:$0xf0] }
 0x84c   :  { %v12472_v20 = vor.u32 %v13494_v27, %v12471_v25  ;;  %v12512_v27 = vor.u32 %v13504_v59, %v12511_v39  ;;  %v12217_v39 = vld [vmem:[#allocation27 + $0x168] sm:$0xf0]  ;;  %v13445_v59 = vld [vmem:[#allocation27 + $0x1e4] sm:$0xf] }
 0x84d   :  { %8501 = vmatpush.bf16.msrb.mxu2 %v12296_v5  ;;  %v12463_v5 = vld [vmem:[#allocation27 + $0x350] sm:$0xf] }
 0x84e   :  { %8521 = vmatpush.bf16.msra.mxu0 %v12472_v20  ;;  %v12412_v20 = vor.u32 %v13477_v9, %v12409_v30  ;;  %v12281_v30 = vld [vmem:[#allocation27 + $0x1e8] sm:$0xf0] }
 0x84f   :  { %8514 = vmatpush.bf16.msrb.mxu3 %v12360_v62  ;;  %v7457_v62 = vpop.f32.mrf.mxu2 }
 0x850   :  { %8502 = vmatmul.bf16.vlgmr.msrb.gmra.mxu2 %v15398_v40  ;;  %v7458_v55 = vadd.f32 %v7457_v62, %v15396_v22  ;;  %v12431_v62 = vld [vmem:[#allocation27 + $0x310] sm:$0xf] }
 0x851   :  { %8546 = vmatpush.bf16.msra.mxu2 %v12100_v1  ;;  %v13492_v1 = vld [vmem:[#allocation27 + $0x354] sm:$0xf0] }
 0x852   :  { %8515 = vmatmul.bf16.vlgmr.msrb.gmra.mxu3 %v15400_v51  ;;  %v12464_v38 = vor.u32 %v13492_v1, %v12463_v5  ;;  %v12401_v5 = vld [vmem:[#allocation27 + $0x2d8] sm:$0xf0]  ;;  %v13484_v1 = vld [vmem:[#allocation27 + $0x314] sm:$0xf0] }
 0x853   :  { %8559 = vmatpush.bf16.msra.mxu3 %v12164_v33  ;;  %v7470_v33 = vpop.f32.mrf.mxu3 }
 0x854   :  { %8522 = vmatpush.bf16.msra.mxu0 %v12464_v38  ;;  %v12404_v38 = vor.u32 %v13475_v46, %v12401_v5 }
 0x855   :  { %8547 = vmatpush.bf16.msra.mxu2 %v12092_v49  ;;  %v7471_v49 = vadd.f32 %v7470_v33, %v7458_v55  ;;  %v13457_v33 = vld [vmem:[#allocation27 + $0x244] sm:$0xf] }
 0x856   :  { %v12332_v11 = vor.u32 %v13457_v33, %v12329_v29  ;;  %v13465_v33 = vld [vmem:[#allocation27 + $0x284] sm:$0xf]  ;;  %v12300_v29 = vor.u32 %v13449_v17, %v12297_v13  ;;  %v13495_v17 = vld [vmem:[#allocation27 + $0x374] sm:$0xf] }
 0x857   :  { %8560 = vmatpush.bf16.msra.mxu3 %v12156_v63  ;;  %v12116_v63 = vor.u32 %v13403_v16, %v12113_v19  ;;  %v7484_v22 = vadd.f32 %v7483_v24, %v7471_v49  ;;  %v7459_v4 = vpop.f32.mrf.mxu2  ;;  %v13502_v19 = vld [vmem:[#allocation27 + $0x3a4] sm:$0xf0]  ;;  %v12423_v49 = vld [vmem:[#allocation27 + $0x300] sm:$0xf] }
 0x858   :  { %8523 = vmatpush.bf16.msra.mxu0 %v12456_v26  ;;  %v12488_v26 = vor.u32 %v13498_v34, %v12487_v0  ;;  %v12377_v4 = vld [vmem:[#allocation27 + $0x2a8] sm:$0xf0]  ;;  %v13441_v34 = vld [vmem:[#allocation27 + $0x1c4] sm:$0xf] }
 0x859   :  { %8548 = vmatpush.bf16.msra.mxu2 %v12084_v56  ;;  %v13479_v56 = vld [vmem:[#allocation27 + $0x2f4] sm:$0xf]  ;;  %v15405_v42 = vadd.f32 %v7496_v6, %v7484_v22  ;;  %v12504_v6 = vor.u32 %v13502_v19, %v12503_v60  ;;  %v12369_v19 = vld [vmem:[#allocation27 + $0x298] sm:$0xf0]  ;;  %v12201_v0 = vld [vmem:[#allocation27 + $0x148] sm:$0xf0] }
 0x85a   :  { %v13455_v22 = vld [vmem:[#allocation27 + $0x234] sm:$0xf] }
 0x85b   :  { %8561 = vmatpush.bf16.msra.mxu3 %v12148_v48  ;;  %v12519_v48 = vld [vmem:[#allocation27 + $0x3c0] sm:$0xf]  ;;  %v7472_v24 = vpop.f32.mrf.mxu3  ;;  %v13443_v60 = vld [vmem:[#allocation27 + $0x1d4] sm:$0xf]  ;;  %vm7610_vm8 = vcmp.gt.f32.partialorder %v15405_v42, 0.0 }
 0x85c   :  { %v12520_v44 = vor.u32 %v13506_v52, %v12519_v48  ;;  %v13471_v48 = vld [vmem:[#allocation27 + $0x2b4] sm:$0xf] }
 0x85d   :  { %8549 = vmatpush.bf16.msra.mxu2 %v12076_v2  ;;  %v13461_v2 = vld [vmem:[#allocation27 + $0x264] sm:$0xf] }
 0x85e   :  { %8536 = vmatpush.bf16.msra.mxu1 %v12520_v44  ;;  %v12313_v44 = vld [vmem:[#allocation27 + $0x228] sm:$0xf0] }
 0x85f   :  { %8562 = vmatpush.bf16.msra.mxu3 %v12140_v3  ;;  %v12345_v3 = vld [vmem:[#allocation27 + $0x268] sm:$0xf0] }
 0x860   :  { %v12348_v14 = vor.u32 %v13461_v2, %v12345_v3  ;;  %v13453_v3 = vld [vmem:[#allocation27 + $0x224] sm:$0xf] }
 0x861   :  { %8550 = vmatpush.bf16.msra.mxu2 %v12068_v32  ;;  %v12420_v32 = vor.u32 %v13479_v56, %v12417_v50  ;;  %v12289_v56 = vld [vmem:[#allocation27 + $0x1f8] sm:$0xf0]  ;;  %v12316_v24 = vor.u32 %v13453_v3, %v12313_v44  ;;  %v13435_v44 = vld [vmem:[#allocation27 + $0x194] sm:$0xf] }
 0x862   :  { %8537 = vmatpush.bf16.msra.mxu1 %v12512_v27  ;;  %v12209_v27 = vld [vmem:[#allocation27 + $0x158] sm:$0xf0] }
 0x863   :  { %8563 = vmatpush.bf16.msra.mxu3 %v12132_v18  ;;  %v13488_v18 = vld [vmem:[#allocation27 + $0x334] sm:$0xf0]  ;;  %v7522_v5 = vpop.f32.mrf.mxu3 }
 0x864   :  { %v12448_v25 = vor.u32 %v13488_v18, %v12447_v41  ;;  %v15409_v41 = vpop.f32.mrf.mxu0  ;;  %v13429_v18 = vld [vmem:[#allocation27 + $0x164] sm:$0xf] }
 0x865   :  { %8551 = vmatpush.bf16.msra.mxu2 %v12060_v21  ;;  %v12439_v21 = vld [vmem:[#allocation27 + $0x320] sm:$0xf]  ;;  %v12220_v9 = vor.u32 %v13429_v18, %v12217_v39  ;;  %v12169_v18 = vld [vmem:[#allocation27 + $0x108] sm:$0xf0] }
 0x866   :  { %8524 = vmatpush.bf16.msra.mxu0 %v12448_v25  ;;  %v12440_v16 = vor.u32 %v13486_v57, %v12439_v21  ;;  %8538 = vmatpush.bf16.msra.mxu1 %v12504_v6  ;;  %v13427_v25 = vld [vmem:[#allocation27 + $0x154] sm:$0xf]  ;;  %v12305_v21 = vld [vmem:[#allocation27 + $0x218] sm:$0xf0]  ;;  %v12284_v57 = vor.u32 %v13445_v59, %v12281_v30  ;;  %v13433_v59 = vld [vmem:[#allocation27 + $0x184] sm:$0xf] }
 0x867   :  { %8564 = vmatpush.bf16.msra.mxu3 %v12124_v8  ;;  %v12337_v8 = vld [vmem:[#allocation27 + $0x258] sm:$0xf0]  ;;  %v12212_v46 = vor.u32 %v13427_v25, %v12209_v27 }
 0x868   :  { %v12340_v55 = vor.u32 %v13459_v53, %v12337_v8  ;;  %v15411_v53 = vpop.f32.mrf.mxu1  ;;  %v7509_v8 = vpop.f32.mrf.mxu2 }
 0x869   :  { %8552 = vmatpush.bf16.msra.mxu2 %v12052_v31  ;;  %v13473_v31 = vld [vmem:[#allocation27 + $0x2c4] sm:$0xf] }
 0x86a   :  { %8525 = vmatpush.bf16.msra.mxu0 %v12440_v16  ;;  %v12396_v50 = vor.u32 %v13473_v31, %v12393_v12  ;;  %8539 = vmatpush.bf16.msra.mxu1 %v12496_v58  ;;  %v13467_v16 = vld [vmem:[#allocation27 + $0x294] sm:$0xf] }
 0x86b   :  { %8565 = vmatpush.bf16.msra.mxu3 %v12116_v63  ;;  %v13482_v63 = vld [vmem:[#allocation27 + $0x304] sm:$0xf0]  ;;  %v7524_v58 = vpop.f32.mrf.mxu3 }
 0x86c   :  { %v12424_v54 = vor.u32 %v13482_v63, %v12423_v49  ;;  %v4203_v49 = vperm.slane %v15362_v45, 7  ;;  %v13425_v63 = vld [vmem:[#allocation27 + $0x144] sm:$0xf] }
 0x86d   :  { %8553 = vmatpush.bf16.msra.mxu2 %v12044_v36  ;;  %v12385_v36 = vld [vmem:[#allocation27 + $0x2b8] sm:$0xf0]  ;;  %v13493_v58 = vld [vmem:[#allocation27 + $0x364] sm:$0xf] }
 0x86e   :  { %v12388_v2 = vor.u32 %v13471_v48, %v12385_v36  ;;  %8540 = vmatpush.bf16.msra.mxu1 %v12488_v26  ;;  %v12185_v48 = vld [vmem:[#allocation27 + $0x128] sm:$0xf0]  ;;  %v7510_v36 = vadd.f32 %v7509_v8, %v4203_v49  ;;  %v13437_v26 = vld [vmem:[#allocation27 + $0x1a4] sm:$0xf] }
 0x86f   :  { %8566 = vmatpush.bf16.msra.mxu3 %v12108_v28  ;;  %v12292_v28 = vor.u32 %v13447_v37, %v12289_v56  ;;  %v12193_v37 = vld [vmem:[#allocation27 + $0x138] sm:$0xf0] }
 0x870   :  { %8554 = vmatmul.bf16.vlgmr.msra.gmra.mxu2 %v15377_v15  ;;  %v12432_v15 = vor.u32 %v13484_v1, %v12431_v62  ;;  %v12372_v1 = vor.u32 %v13467_v16, %v12369_v19  ;;  %v7550_v12 = vpop.f32.mrf.mxu1  ;;  %v7523_v3 = vadd.f32 %v7522_v5, %v7510_v36  ;;  %v13505_v36 = vld [vmem:[#allocation27 + $0x3c4] sm:$0xf] }
 0x871   :  { %8598 = vmatpush.bf16.msrb.mxu2 %v12356_v35  ;;  %v12324_v35 = vor.u32 %v13455_v22, %v12321_v7  ;;  %v12257_v22 = vld [vmem:[#allocation27 + $0x1b8] sm:$0xf0] }
 0x872   :  { %8567 = vmatmul.bf16.vlgmr.msra.gmra.mxu3 %v15379_v43  ;;  %v13431_v43 = vld [vmem:[#allocation27 + $0x174] sm:$0xf]  ;;  %8526 = vmatpush.bf16.msra.mxu0 %v12432_v15  ;;  %v7511_v15 = vpop.f32.mrf.mxu2  ;;  %v7536_v39 = vadd.f32 %v15409_v41, %v7523_v3  ;;  %v7618_v41 = vmul.f32 0.1, %v15405_v42  ;;  %v12449_v3 = vld [vmem:[#allocation27 + $0x338] sm:$0xf0] }
 0x873   :  { %8611 = vmatpush.bf16.msrb.mxu3 %v12420_v32  ;;  %v12228_v52 = vor.u32 %v13431_v43, %v12225_v47  ;;  %v13451_v32 = vld [vmem:[#allocation27 + $0x214] sm:$0xf]  ;;  %8585 = vmatpush.bf16.msrb.mxu1 %v12292_v28  ;;  %v12204_v43 = vor.u32 %v13425_v63, %v12201_v0  ;;  %v12265_v47 = vld [vmem:[#allocation27 + $0x1c8] sm:$0xf0] }
 0x874   :  { %v12308_v62 = vor.u32 %v13451_v32, %v12305_v21  ;;  %v12268_v56 = vor.u32 %v13441_v34, %v12265_v47  ;;  %v13417_v32 = vld [vmem:[#allocation27 + $0x104] sm:$0xf]  ;;  %v7549_v27 = vadd.f32 %v15411_v53, %v7536_v39  ;;  %v7626_v53 = vsel %vm7610_vm8, %v15405_v42, %v7618_v41  ;;  %v12473_v0 = vld [vmem:[#allocation27 + $0x368] sm:$0xf0]  ;;  %v12497_v41 = vld [vmem:[#allocation27 + $0x398] sm:$0xf0] }
 0x875   :  { %8599 = vmatpush.bf16.msrb.mxu2 %v12348_v14  ;;  %v12380_v14 = vor.u32 %v13469_v61, %v12377_v4  ;;  %v12241_v61 = vld [vmem:[#allocation27 + $0x198] sm:$0xf0]  ;;  %v12172_v30 = vor.u32 %v13417_v32, %v12169_v18  ;;  %v13509_v34 = vld [vmem:[#allocation27 + $0x3e4] sm:$0xf]  ;;  %v12476_v42 = vor.u32 %v13493_v58, %v12473_v0 }
 0x876   :  { %8527 = vmatpush.bf16.msra.mxu0 %v12424_v54  ;;  %v13421_v54 = vld [vmem:[#allocation27 + $0x124] sm:$0xf]  ;;  %v12244_v4 = vor.u32 %v13435_v44, %v12241_v61  ;;  %v13503_v44 = vld [vmem:[#allocation27 + $0x3b4] sm:$0xf]  ;;  %v12513_v61 = vld [vmem:[#allocation27 + $0x3b8] sm:$0xf0] }
 0x877   :  { %8612 = vmatpush.bf16.msrb.mxu3 %v12412_v20  ;;  %v12273_v20 = vld [vmem:[#allocation27 + $0x1d8] sm:$0xf0]  ;;  %8586 = vmatpush.bf16.msrb.mxu1 %v12284_v57  ;;  %v12188_v28 = vor.u32 %v13421_v54, %v12185_v48  ;;  %v13489_v54 = vld [vmem:[#allocation27 + $0x344] sm:$0xf]  ;;  %v12457_v48 = vld [vmem:[#allocation27 + $0x348] sm:$0xf0] }
 0x878   :  { %v12276_v6 = vor.u32 %v13443_v60, %v12273_v20 }
 0x879   :  { %8600 = vmatpush.bf16.msrb.mxu2 %v12340_v55  ;;  %v7537_v55 = vpop.f32.mrf.mxu0 }
 0x87a   :  { %8572 = vmatpush.bf16.msrb.mxu0 %v12228_v52  ;;  %v12249_v52 = vld [vmem:[#allocation27 + $0x1a8] sm:$0xf0]  ;;  %v12481_v55 = vld [vmem:[#allocation27 + $0x378] sm:$0xf0] }
 0x87b   :  { %8613 = vmatpush.bf16.msrb.mxu3 %v12404_v38  ;;  %v12361_v38 = vld [vmem:[#allocation27 + $0x288] sm:$0xf0]  ;;  %8587 = vmatpush.bf16.msrb.mxu1 %v12276_v6  ;;  %v12484_v12 = vor.u32 %v13495_v17, %v12481_v55  ;;  %v13497_v17 = vld [vmem:[#allocation27 + $0x384] sm:$0xf] }
 0x87c   :  { %v12364_v31 = vor.u32 %v13465_v33, %v12361_v38  ;;  %v13511_v33 = vld [vmem:[#allocation27 + $0x3f4] sm:$0xf]  ;;  %v12545_v38 = vld [vmem:[#allocation27 + $0x3f8] sm:$0xf0] }
 0x87d   :  { %8601 = vmatpush.bf16.msrb.mxu2 %v12332_v11  ;;  %v13423_v11 = vld [vmem:[#allocation27 + $0x134] sm:$0xf]  ;;  %v12548_v15 = vor.u32 %v13511_v33, %v12545_v38 }
 0x87e   :  { %8573 = vmatpush.bf16.msrb.mxu0 %v12220_v9  ;;  %v12196_v7 = vor.u32 %v13423_v11, %v12193_v37  ;;  %v13491_v11 = vld [vmem:[#allocation27 + $0x354] sm:$0xf]  ;;  %v12465_v37 = vld [vmem:[#allocation27 + $0x358] sm:$0xf0] }
 0x87f   :  { %8614 = vmatpush.bf16.msrb.mxu3 %v12396_v50  ;;  %v13439_v50 = vld [vmem:[#allocation27 + $0x1b4] sm:$0xf]  ;;  %8588 = vmatpush.bf16.msrb.mxu1 %v12268_v56 }
 0x880   :  { %v12260_v45 = vor.u32 %v13439_v50, %v12257_v22  ;;  %v13507_v56 = vld [vmem:[#allocation27 + $0x3d4] sm:$0xf]  ;;  %v12529_v50 = vld [vmem:[#allocation27 + $0x3d8] sm:$0xf0]  ;;  %v12468_v22 = vor.u32 %v13491_v11, %v12465_v37 }
 0x881   :  { %8602 = vmatpush.bf16.msrb.mxu2 %v12324_v35  ;;  %v12252_v35 = vor.u32 %v13437_v26, %v12249_v52  ;;  %v12521_v26 = vld [vmem:[#allocation27 + $0x3c8] sm:$0xf0] }
 0x882   :  { %8574 = vmatpush.bf16.msrb.mxu0 %v12212_v46 }
 0x883   :  { %8615 = vmatpush.bf16.msrb.mxu3 %v12388_v2  ;;  %8589 = vmatpush.bf16.msrb.mxu1 %v12260_v45  ;;  %v13419_v2 = vld [vmem:[#allocation27 + $0x114] sm:$0xf]  ;;  %v15427_v45 = vld [vmem:[#allocation29] sm:$0x3] }
 0x884   :  { %v7771_v58 = vperm.slane %v15427_v45, 1 }
 0x885   :  { %8603 = vmatpush.bf16.msrb.mxu2 %v12316_v24  ;;  %v12233_v24 = vld [vmem:[#allocation27 + $0x188] sm:$0xf0] }
 0x886   :  { %8575 = vmatpush.bf16.msrb.mxu0 %v12204_v43  ;;  %v12236_v25 = vor.u32 %v13433_v59, %v12233_v24  ;;  %v12537_v43 = vld [vmem:[#allocation27 + $0x3e8] sm:$0xf0]  ;;  %v12516_v59 = vor.u32 %v13503_v44, %v12513_v61  ;;  %v13485_v24 = vld [vmem:[#allocation27 + $0x324] sm:$0xf] }
 0x887   :  { %8616 = vmatpush.bf16.msrb.mxu3 %v12380_v14  ;;  %8590 = vmatpush.bf16.msrb.mxu1 %v12252_v35  ;;  %v12540_v47 = vor.u32 %v13509_v34, %v12537_v43  ;;  %v12460_v35 = vor.u32 %v13489_v54, %v12457_v48 }
 0x889   :  { %8604 = vmatpush.bf16.msrb.mxu2 %v12308_v62 }
 0x88a   :  { %8576 = vmatpush.bf16.msrb.mxu0 %v12196_v7  ;;  %v12532_v7 = vor.u32 %v13507_v56, %v12529_v50 }
 0x88b   :  { %8617 = vmatpush.bf16.msrb.mxu3 %v12372_v1  ;;  %8591 = vmatpush.bf16.msrb.mxu1 %v12244_v4 }
 0x88d   :  { %8605 = vmatpush.bf16.msrb.mxu2 %v12300_v29 }
 0x88e   :  { %8577 = vmatpush.bf16.msrb.mxu0 %v12188_v28  ;;  %v7770_v28 = vperm.slane %v15427_v45, 0 }
 0x88f   :  { %8618 = vmatpush.bf16.msrb.mxu3 %v12364_v31  ;;  %8592 = vmatpush.bf16.msrb.mxu1 %v12236_v25  ;;  %v13501_v25 = vld [vmem:[#allocation27 + $0x3a4] sm:$0xf] }
 0x890   :  { %8606 = vmatmul.bf16.vlgmr.msrb.gmra.mxu2 %v15398_v40  ;;  %v12177_v40 = vld [vmem:[#allocation27 + $0x118] sm:$0xf0] }
 0x892   :  { %8619 = vmatmul.bf16.vlgmr.msrb.gmra.mxu3 %v15400_v51  ;;  %v12180_v51 = vor.u32 %v13419_v2, %v12177_v40  ;;  %v12524_v2 = vor.u32 %v13505_v36, %v12521_v26  ;;  %v13487_v40 = vld [vmem:[#allocation27 + $0x334] sm:$0xf] }
 0x893   :  { %v7587_v9 = vpop.f32.mrf.mxu0  ;;  %v7561_v21 = vpop.f32.mrf.mxu2  ;;  %v12452_v39 = vor.u32 %v13487_v40, %v12449_v3 }
 0x894   :  { %8578 = vmatpush.bf16.msrb.mxu0 %v12180_v51  ;;  %v7562_v57 = vadd.f32 %v7561_v21, %v7549_v27  ;;  %v12505_v27 = vld [vmem:[#allocation27 + $0x3a8] sm:$0xf0] }
 0x895   :  { %v7600_v14 = vpop.f32.mrf.mxu1  ;;  %v7574_v60 = vpop.f32.mrf.mxu3 }
 0x896   :  { %v7575_v20 = vadd.f32 %v7574_v60, %v7562_v57  ;;  %v12508_v60 = vor.u32 %v13501_v25, %v12505_v27 }
 0x898   :  { %8579 = vmatpush.bf16.msrb.mxu0 %v12172_v30  ;;  %v7588_v16 = vadd.f32 %v7587_v9, %v7575_v20  ;;  %v12441_v30 = vld [vmem:[#allocation27 + $0x328] sm:$0xf0]  ;;  %v13483_v20 = vld [vmem:[#allocation27 + $0x314] sm:$0xf] }
 0x899   :  { %v12444_v57 = vor.u32 %v13485_v24, %v12441_v30 }
 0x89a   :  { %v7601_v19 = vadd.f32 %v7600_v14, %v7588_v16  ;;  %v13499_v16 = vld [vmem:[#allocation27 + $0x394] sm:$0xf] }
 0x89b   :  { %v7589_v8 = vpop.f32.mrf.mxu0  ;;  %v7563_v5 = vpop.f32.mrf.mxu2 }
 0x89c   :  { %vm7611_vm9 = vcmp.gt.f32.partialorder %v7601_v19, 0.0  ;;  %v7619_v6 = vmul.f32 0.1, %v7601_v19  ;;  %v12433_v8 = vld [vmem:[#allocation27 + $0x318] sm:$0xf0] }
 0x89d   :  { %v7602_v46 = vpop.f32.mrf.mxu1  ;;  %v7576_v62 = vpop.f32.mrf.mxu3 }
 0x89e   :  { %v7627_v1 = vsel %vm7611_vm9, %v7601_v19, %v7619_v6  ;;  %v12436_v62 = vor.u32 %v13483_v20, %v12433_v8 }
 0x89f   :  { %v7631_v13 = vpack.c.bf16 %v7627_v1, %v7626_v53  ;;  %v12500_v53 = vor.u32 %v13499_v16, %v12497_v41  ;;  %v13481_v1 = vld [vmem:[#allocation27 + $0x304] sm:$0xf] }
 0x8a1   :  { %v7784_v29 = vunpack.c.l.b16 %v7631_v13  ;;  %v7785_v31 = vunpack.c.h.b16 %v7631_v13 }
 0x8a3   :  { %v15421_v49 = vpack.c.b16 %v7784_v29, %v7784_v29  ;;  %v15423_v63 = vpack.c.b16 %v7785_v31, %v7785_v31 }
 0x8a5   :  { %8528 = vmatmul.bf16.vlgmr.msra.gmra.mxu0 %v15421_v49  ;;  %8541 = vmatmul.bf16.vlgmr.msra.gmra.mxu1 %v15423_v63 }
 0x8a6   :  { %8624 = vmatpush.bf16.msra.mxu0 %v12484_v12  ;;  %8637 = vmatpush.bf16.msra.mxu1 %v12548_v15 }
 0x8aa   :  { %8625 = vmatpush.bf16.msra.mxu0 %v12476_v42  ;;  %8638 = vmatpush.bf16.msra.mxu1 %v12540_v47 }
 0x8ae   :  { %8626 = vmatpush.bf16.msra.mxu0 %v12468_v22  ;;  %8639 = vmatpush.bf16.msra.mxu1 %v12532_v7 }
 0x8b2   :  { %8627 = vmatpush.bf16.msra.mxu0 %v12460_v35  ;;  %8640 = vmatpush.bf16.msra.mxu1 %v12524_v2 }
 0x8b3   :  { %v8477_v52 = vpop.f32.mrf.mxu0  ;;  %v8451_v4 = vpop.f32.mrf.mxu2 }
 0x8b4   :  { %v8452_v32 = vadd.f32 %v8451_v4, %v7770_v28 }
 0x8b5   :  { %v8490_v51 = vpop.f32.mrf.mxu1  ;;  %v8464_v18 = vpop.f32.mrf.mxu3  ;;  %8580 = vmatmul.bf16.vlgmr.msrb.gmra.mxu0 %v15384_v23  ;;  %8593 = vmatmul.bf16.vlgmr.msrb.gmra.mxu1 %v15388_v10  ;;  %v12425_v23 = vld [vmem:[#allocation27 + $0x308] sm:$0xf0] }
 0x8b6   :  { %v8465_v9 = vadd.f32 %v8464_v18, %v8452_v32  ;;  %8628 = vmatpush.bf16.msra.mxu0 %v12452_v39  ;;  %8641 = vmatpush.bf16.msra.mxu1 %v12516_v59  ;;  %v12489_v10 = vld [vmem:[#allocation27 + $0x388] sm:$0xf0]  ;;  %v12428_v13 = vor.u32 %v13481_v1, %v12425_v23 }
 0x8b7   :  { %v12492_v55 = vor.u32 %v13497_v17, %v12489_v10 }
 0x8b8   :  { %v8478_v21 = vadd.f32 %v8477_v52, %v8465_v9 }
 0x8ba   :  { %v8491_v19 = vadd.f32 %v8490_v51, %v8478_v21  ;;  %8629 = vmatpush.bf16.msra.mxu0 %v12444_v57  ;;  %8642 = vmatpush.bf16.msra.mxu1 %v12508_v60 }
 0x8bb   :  { %v8479_v14 = vpop.f32.mrf.mxu0  ;;  %v8453_v5 = vpop.f32.mrf.mxu2 }
 0x8bd   :  { %v8492_v46 = vpop.f32.mrf.mxu1  ;;  %v8466_v6 = vpop.f32.mrf.mxu3 }
 0x8be   :  { %8630 = vmatpush.bf16.msra.mxu0 %v12436_v62  ;;  %8643 = vmatpush.bf16.msra.mxu1 %v12500_v53 }
 0x8c2   :  { %8631 = vmatpush.bf16.msra.mxu0 %v12428_v13  ;;  %8644 = vmatpush.bf16.msra.mxu1 %v12492_v55 }
 0x8c5   :  { %8632 = vmatmul.bf16.vlgmr.msra.gmra.mxu0 %v15421_v49  ;;  %8645 = vmatmul.bf16.vlgmr.msra.gmra.mxu1 %v15423_v63 }
 0x8d3   :  { %v8503_v33 = vpop.f32.mrf.mxu2 }
 0x8d4   :  { %v8504_v38 = vadd.f32 %v8503_v33, %v8491_v19 }
 0x8d5   :  { %v8516_v29 = vpop.f32.mrf.mxu3 }
 0x8d6   :  { %v8517_v31 = vadd.f32 %v8516_v29, %v8504_v38 }
 0x8db   :  { %v8505_v12 = vpop.f32.mrf.mxu2 }
 0x8dd   :  { %v8518_v15 = vpop.f32.mrf.mxu3 }
 0x8f3   :  { %v8555_v0 = vpop.f32.mrf.mxu2 }
 0x8f4   :  { %v8556_v34 = vadd.f32 %v8555_v0, %v7771_v58 }
 0x8f5   :  { %v8568_v43 = vpop.f32.mrf.mxu3 }
 0x8f6   :  { %v8569_v42 = vadd.f32 %v8568_v43, %v8556_v34 }
 0x8fb   :  { %v8557_v47 = vpop.f32.mrf.mxu2 }
 0x8fd   :  { %v8570_v11 = vpop.f32.mrf.mxu3 }
 0x913   :  { %v8607_v37 = vpop.f32.mrf.mxu2 }
 0x915   :  { %v8620_v56 = vpop.f32.mrf.mxu3 }
 0x91b   :  { %v8609_v50 = vpop.f32.mrf.mxu2 }
 0x91d   :  { %v8622_v49 = vpop.f32.mrf.mxu3 }
 0x922   :  { %v8529_v22 = vpop.f32.mrf.mxu0  ;;  %v8542_v63 = vpop.f32.mrf.mxu1 }
 0x923   :  { %v8530_v7 = vadd.f32 %v8529_v22, %v8517_v31 }
 0x925   :  { %v8543_v54 = vadd.f32 %v8542_v63, %v8530_v7 }
 0x927   :  { %8650 = vst [vmem:[#allocation30] sm:$0xff] %v8543_v54 }
 0x92a   :  { %v8531_v48 = vpop.f32.mrf.mxu0  ;;  %v8544_v36 = vpop.f32.mrf.mxu1 }
 0x932   :  { %v8581_v26 = vpop.f32.mrf.mxu0  ;;  %v8594_v52 = vpop.f32.mrf.mxu1 }
 0x933   :  { %v8582_v45 = vadd.f32 %v8581_v26, %v8569_v42 }
 0x935   :  { %v8595_v28 = vadd.f32 %v8594_v52, %v8582_v45 }
 0x937   :  { %v8608_v40 = vadd.f32 %v8607_v37, %v8595_v28 }
 0x939   :  { %v8621_v3 = vadd.f32 %v8620_v56, %v8608_v40 }
 0x93a   :  { %v8583_v35 = vpop.f32.mrf.mxu0  ;;  %v8596_v2 = vpop.f32.mrf.mxu1 }
 0x942   :  { %v8633_v44 = vpop.f32.mrf.mxu0  ;;  %v8646_v61 = vpop.f32.mrf.mxu1 }
 0x943   :  { %v8634_v51 = vadd.f32 %v8633_v44, %v8621_v3 }
 0x945   :  { %v8647_v4 = vadd.f32 %v8646_v61, %v8634_v51 }
 0x947   :  { %8651 = vst [vmem:[#allocation30 + $0x8] sm:$0xff] %v8647_v4 }
 0x948   :  { %8662 = dma.vmem_to_hbm [thread:$0]  %s8658_s16, 256, %s8660_s29, [#allocation5]  }
 0x94a   :  { %v8635_v32 = vpop.f32.mrf.mxu0  ;;  %v8648_v18 = vpop.f32.mrf.mxu1 }
 0x94b   :  { %14023 = dma.done.wait [#allocation5], 256  }
 0x94c   :  { %14024 = vsyncadd [#allocation5], 4294967040 }
 0x94d   :  { %8667 = vsyncpa [#allocation4], 1 }
 0x94e   :  { %8668 = vsyncpa [#allocation7], 1 }
 0x94f   :  { %8669 = vsyncpa [#allocation10], 1 }
 0x950   :  { %8670 = vsyncpa [#allocation13], 1 }
 0x951   :  { %8671 = vsyncpa [#allocation16], 1 }
 0x952   :  { %8672 = vsyncpa [#allocation19], 1 }
 0x953   :  { %8673 = vsyncpa [#allocation22], 1 }
 0x954   :  { %8674 = vsyncpa [#allocation25], 1 }
 0x955   :  { %8675 = vsyncpa [#allocation28], 1 }
 0x956   :  { %8676 = vsyncpa [#allocation5], 1 }

</bundles_post_ra>
